<compile_context>
chip_gen: v6e
topology: v6e:2x2x1
jax: 0.10.0
libtpu: 0.0.40
codegen_flags: <defaults>
</compile_context>

<pallas_src>
import functools

import jax
import jax.numpy as jnp
from jax.experimental import pallas as pl
from jax.experimental.pallas import tpu as pltpu


_VMEM_LIMIT = 40 * 1024 * 1024      # above default scoped limit, safe on v7x 64 MiB/TC
_BLOCK_BUDGET = 24 * 1024 * 1024    # target bytes for pipelined blocks per pallas_call
_LN_EPS = 1e-5


def _pad_c(c):
    """Round a channel count up to a multiple of 128 (lane width)."""
    return max(128, ((c + 127) // 128) * 128)


def _pick_tile(H, W, kp, cout_pad, *, max_rows=2048):
    """Largest row-tile th (divisor of H) whose pipelined blocks fit the VMEM budget."""
    def ok(th):
        # (8,128) rule: second-to-last block dim must be %8 or equal the full dim.
        return th == H or (th * W) % 8 == 0

    def vmem_bytes(th):
        xh = (th + 2) * W * kp * 2          # bf16 input block
        y = th * W * cout_pad * 2           # bf16 output block
        acc = th * W * cout_pad * 4         # f32 accumulator temporary
        wb = 3 * kp * cout_pad * 2          # bf16 weights
        vec = 4 * cout_pad * 4 + 8 * 128 * 4
        return 2 * (xh + y) + acc + 2 * (wb + vec)   # in/out double-buffered

    divs = [t for t in range(1, H + 1) if H % t == 0 and ok(t)]
    fit = [t for t in divs if t * W <= max_rows and vmem_bytes(t) <= _BLOCK_BUDGET]
    # TODO(synk): for huge W even the smallest valid row-tile may exceed the
    #             budget; a column grid axis would be needed in that case.
    th = max(fit) if fit else min(divs)
    return th, H // th


# ----------------------------------------------------------------------------
# Pallas kernels
# ----------------------------------------------------------------------------
def _conv_taps(x2d_ref, w_ref, b_ref, *, W, m):
    """3x3 conv as 3 row-offset (m, K) @ (K, Cout) MXU matmuls; f32 accumulation.

    x2d_ref: ((th+2)*W, K) view — dx taps already packed into K over real channels.
    w_ref:   (3, K, Cout_pad); b_ref: (1, Cout_pad).
    """
    cout = w_ref.shape[-1]
    acc = jnp.zeros((m, cout), jnp.float32)
    for dy in range(3):
        acc = acc + jnp.dot(x2d_ref[dy * W:dy * W + m, :], w_ref[dy],
                            preferred_element_type=jnp.float32)
    return acc + b_ref[...]


def _conv_fused_kernel(xh_ref, w_ref, b_ref, g_ref, bt_ref, o_ref, *,
                       W, m, count, apply_ln, apply_relu):
    """Single-tile path: conv + bias (+ whole-map LN + ReLU) fully fused."""
    y = _conv_taps(xh_ref.at[0], w_ref, b_ref, W=W, m=m)          # (m, Cout_pad) f32
    if apply_ln:
        s = jnp.sum(jnp.sum(y, axis=0, keepdims=True), axis=1, keepdims=True)
        ss = jnp.sum(jnp.sum(y * y, axis=0, keepdims=True), axis=1, keepdims=True)
        mean = s * (1.0 / count)
        var = jnp.maximum(ss * (1.0 / count) - mean * mean, 0.0)
        rstd = jax.lax.rsqrt(var + _LN_EPS)                       # (1, 1)
        y = (y - mean) * rstd * g_ref[...] + bt_ref[...]
    if apply_relu:
        y = jnp.maximum(y, 0.0)
    o_ref[0] = y.astype(o_ref.dtype)


def _conv_stats_kernel(xh_ref, w_ref, b_ref, y_ref, st_ref, *, W, m):
    """Pass 1 (nt > 1): conv + bias -> bf16 pre-norm output + per-tile LN stats."""
    y = _conv_taps(xh_ref.at[0, 0], w_ref, b_ref, W=W, m=m)       # f32
    y_ref[0] = y.astype(y_ref.dtype)                              # bf16 intermediate
    s = jnp.sum(jnp.sum(y, axis=0, keepdims=True), axis=1, keepdims=True)
    ss = jnp.sum(jnp.sum(y * y, axis=0, keepdims=True), axis=1, keepdims=True)
    lane = jax.lax.broadcasted_iota(jnp.int32, (8, 128), 1)
    st_ref[0, 0] = jnp.where(lane == 0, s, 0.0) + jnp.where(lane == 1, ss, 0.0)


def _conv_plain_kernel(xh_ref, w_ref, b_ref, o_ref, *, W, m, apply_relu):
    """Multi-tile conv + bias (+ReLU), no norm (output convolution)."""
    y = _conv_taps(xh_ref.at[0, 0], w_ref, b_ref, W=W, m=m)
    if apply_relu:
        y = jnp.maximum(y, 0.0)
    o_ref[0] = y.astype(o_ref.dtype)


def _affine_relu_kernel(y_ref, sc_ref, sh_ref, o_ref, *, apply_relu):
    """Pass 2 (nt > 1): per-image LN folded into scale/shift + ReLU, bf16 out."""
    out = y_ref[0].astype(jnp.float32) * sc_ref[0] + sh_ref[0]
    if apply_relu:
        out = jnp.maximum(out, 0.0)
    o_ref[0] = out.astype(o_ref.dtype)


# ----------------------------------------------------------------------------
# Conv block wrapper
# ----------------------------------------------------------------------------
def conv3x3_block(x, p, cout_real, *, apply_ln=True, apply_relu=True):
    """3x3 conv (stride 1, pad 1) + bias [+ whole-map LN + ReLU].

    x: (N, H, W, Cin_real) — real channels only.
    Returns (N, H, W, cout_real) bf16.
    """
    N, H, W, cr = x.shape
    w, b, gamma, beta = p["w"], p["b"], p["gamma"], p["beta"]
    _, kp, cout_pad = w.shape
    assert kp >= 3 * cr and kp % 128 == 0

    # Host side: spatial pad, pack the 3 horizontal taps over REAL channels,
    # then lane-pad the packed K axis once (K = pad128(3*Cin_real)).
    xb = x.astype(jnp.bfloat16)
    xp = jnp.pad(xb, ((0, 0), (1, 1), (1, 1), (0, 0)))
    xcat = jnp.concatenate(
        [xp[:, :, 0:W], xp[:, :, 1:W + 1], xp[:, :, 2:W + 2]], axis=-1)
    if kp > 3 * cr:
        xcat = jnp.pad(xcat, ((0, 0), (0, 0), (0, 0), (0, kp - 3 * cr)))
    # xcat: (N, H+2, W, kp) bf16

    th, nt = _pick_tile(H, W, kp, cout_pad)
    m = th * W
    count = float(H * W * cout_real)     # padded channels are exactly zero

    conv_flops = 2 * N * H * W * 9 * cr * cout_real
    conv_bytes = (N * (H + 2) * W * kp * 2 + w.size * 2 + N * H * W * cout_pad * 2)
    conv_cost = pl.CostEstimate(flops=conv_flops, transcendentals=N,
                                bytes_accessed=conv_bytes)

    w_spec = pl.BlockSpec((3, kp, cout_pad), lambda *_: (0, 0, 0))
    vec_spec = pl.BlockSpec((1, cout_pad), lambda *_: (0, 0))

    if nt == 1:
        # Whole feature map in one tile: fully fused single pass.
        xh = xcat.reshape(N, (H + 2) * W, kp)
        kern = functools.partial(_conv_fused_kernel, W=W, m=m, count=count,
                                 apply_ln=apply_ln, apply_relu=apply_relu)
        out = pl.pallas_call(
            kern,
            out_shape=jax.ShapeDtypeStruct((N, H * W, cout_pad), jnp.bfloat16),
            grid=(N,),
            in_specs=[pl.BlockSpec((1, (H + 2) * W, kp), lambda n: (n, 0, 0)),
                      w_spec, vec_spec, vec_spec, vec_spec],
            out_specs=pl.BlockSpec((1, m, cout_pad), lambda n: (n, 0, 0)),
            compiler_params=pltpu.CompilerParams(
                dimension_semantics=("parallel",),
                vmem_limit_bytes=_VMEM_LIMIT),
            cost_estimate=conv_cost,
        )(xh, w, b, gamma, beta)
        return out.reshape(N, H, W, cout_pad)[..., :cout_real]

    # Multi-tile path: row tiles with a 2-row halo, flat 2-D lane-dense blocks.
    xh = jnp.stack(
        [xcat[:, i * th:i * th + th + 2].reshape(N, (th + 2) * W, kp)
         for i in range(nt)], axis=1)                     # (N, nt, (th+2)*W, kp)

    x_spec = pl.BlockSpec((1, 1, (th + 2) * W, kp), lambda n, i: (n, i, 0, 0))
    y_spec = pl.BlockSpec((1, m, cout_pad), lambda n, i: (n, i, 0))
    st_spec = pl.BlockSpec((1, 1, 8, 128), lambda n, i: (n, i, 0, 0))

    if not apply_ln:
        kern = functools.partial(_conv_plain_kernel, W=W, m=m, apply_relu=apply_relu)
        out = pl.pallas_call(
            kern,
            out_shape=jax.ShapeDtypeStruct((N, H * W, cout_pad), jnp.bfloat16),
            grid=(N, nt),
            in_specs=[x_spec, w_spec, vec_spec],
            out_specs=y_spec,
            compiler_params=pltpu.CompilerParams(
                dimension_semantics=("parallel", "parallel"),
                vmem_limit_bytes=_VMEM_LIMIT),
            cost_estimate=conv_cost,
        )(xh, w, b)
        return out.reshape(N, H, W, cout_pad)[..., :cout_real]

    # Pass 1: conv + bias, bf16 pre-norm output + per-tile stats (fully parallel).
    kern1 = functools.partial(_conv_stats_kernel, W=W, m=m)
    y, stats = pl.pallas_call(
        kern1,
        out_shape=(jax.ShapeDtypeStruct((N, H * W, cout_pad), jnp.bfloat16),
                   jax.ShapeDtypeStruct((N, nt, 8, 128), jnp.float32)),
        grid=(N, nt),
        in_specs=[x_spec, w_spec, vec_spec],
        out_specs=(y_spec, st_spec),
        compiler_params=pltpu.CompilerParams(
            dimension_semantics=("parallel", "parallel"),
            vmem_limit_bytes=_VMEM_LIMIT),
        cost_estimate=conv_cost,
    )(xh, w, b)

    # Tiny XLA reduction: fold per-tile stats into per-image scale / shift.
    s_tot = jnp.sum(stats[:, :, 0, 0], axis=1)            # (N,)
    ss_tot = jnp.sum(stats[:, :, 0, 1], axis=1)
    mean = s_tot / count
    var = jnp.maximum(ss_tot / count - mean * mean, 0.0)
    rstd = jax.lax.rsqrt(var + _LN_EPS)
    scale = (rstd[:, None] * gamma)[:, None, :]            # (N, 1, cout_pad)
    shift = (beta - (mean * rstd)[:, None] * gamma)[:, None, :]

    # Pass 2: lane-dense affine + ReLU.
    kern2 = functools.partial(_affine_relu_kernel, apply_relu=apply_relu)
    out = pl.pallas_call(
        kern2,
        out_shape=jax.ShapeDtypeStruct((N, H * W, cout_pad), jnp.bfloat16),
        grid=(N, nt),
        in_specs=[y_spec,
                  pl.BlockSpec((1, 1, cout_pad), lambda n, i: (n, 0, 0)),
                  pl.BlockSpec((1, 1, cout_pad), lambda n, i: (n, 0, 0))],
        out_specs=y_spec,
        compiler_params=pltpu.CompilerParams(
            dimension_semantics=("parallel", "parallel"),
            vmem_limit_bytes=_VMEM_LIMIT),
        cost_estimate=pl.CostEstimate(
            flops=2 * N * H * W * cout_pad, transcendentals=0,
            bytes_accessed=N * H * W * cout_pad * 4),
    )(y, scale, shift)
    return out.reshape(N, H, W, cout_pad)[..., :cout_real]


# ----------------------------------------------------------------------------
# Parameter init (deterministic, synthetic), pre-packed / pre-padded weights
# ----------------------------------------------------------------------------
def _conv_params(key, cin_real, cout_real):
    cout_pad = _pad_c(cout_real)
    kp = _pad_c(3 * cin_real)
    w = (jax.random.normal(key, (3, 3, cin_real, cout_real), jnp.float32)
         / jnp.sqrt(9.0 * cin_real))
    wp = jnp.zeros((3, kp, cout_pad), jnp.float32)
    # K layout: dy-major (leading axis), then dx-major / channel-minor, matching
    # the host-side dx-packed input.
    wp = wp.at[:, :3 * cin_real, :cout_real].set(w.reshape(3, 3 * cin_real, cout_real))
    gamma = jnp.zeros((1, cout_pad), jnp.float32).at[0, :cout_real].set(1.0)
    return dict(w=wp.astype(jnp.bfloat16),
                b=jnp.zeros((1, cout_pad), jnp.float32),
                gamma=gamma,
                beta=jnp.zeros((1, cout_pad), jnp.float32))


def init_vertex_net_params(key, input_dim, output_dim, dim, levels):
    ch = [dim * (2 ** l) for l in range(levels + 1)]
    keys = iter(list(jax.random.split(key, 2 * (levels + 1))))

    enc = [_conv_params(next(keys), input_dim, ch[0])]
    for l in range(1, levels + 1):
        enc.append(_conv_params(next(keys), ch[l - 1], ch[l]))

    dec = {}
    for l in range(levels, 0, -1):
        dec[str(l)] = _conv_params(next(keys), ch[l] + ch[l - 1], ch[l - 1])

    out = _conv_params(next(keys), ch[0], output_dim)
    return dict(enc=enc, dec=dec, out=out)


# ----------------------------------------------------------------------------
# VertexNet forward (UNet)
# ----------------------------------------------------------------------------
def vertex_net_forward(x_nchw, params, *, levels, dim, output_dim):
    ch = [dim * (2 ** l) for l in range(levels + 1)]

    x = jnp.transpose(x_nchw, (0, 2, 3, 1)).astype(jnp.bfloat16)   # NCHW -> NHWC

    h = conv3x3_block(x, params["enc"][0], ch[0])
    skips = [h]
    for l in range(1, levels + 1):
        n_, hh, ww, c = h.shape
        # 2x2 average-pool downsample, bf16 throughout.
        # TODO(synk): fuse the pool into the following conv kernel.
        h = h.reshape(n_, hh // 2, 2, ww // 2, 2, c).mean(axis=(2, 4)).astype(jnp.bfloat16)
        h = conv3x3_block(h, params["enc"][l], ch[l])
        if l < levels:
            skips.append(h)

    for l in range(levels, 0, -1):
        n_, hh, ww, c = h.shape
        # TODO(synk): jax.image.resize 'bilinear' (half-pixel) may differ from
        #             torch Upsample align_corners semantics at the borders;
        #             fuse upsample + skip concat into the decoder conv later.
        h = jax.image.resize(h, (n_, 2 * hh, 2 * ww, c), method="bilinear")
        h = jnp.concatenate([h, skips[l - 1]], axis=-1)
        h = conv3x3_block(h, params["dec"][str(l)], ch[l - 1])

    out = conv3x3_block(h, params["out"], output_dim,
                        apply_ln=False, apply_relu=False)          # bf16
    out = out.astype(jnp.float32)
    return jnp.transpose(out, (0, 3, 1, 2))                        # NHWC -> NCHW


# ----------------------------------------------------------------------------
if __name__ == "__main__":
    key = jax.random.PRNGKey(0)
    k_param, k_input = jax.random.split(key)

    # Small shapes consistent with VertexNet(input_dim, output_dim, dim, unet_levels)
    N, input_dim, output_dim, dim = 2, 4, 3, 8
    H = W = 16
    unet_levels = 3

    params = init_vertex_net_params(k_param, input_dim, output_dim, dim, unet_levels)
    images = jax.random.normal(k_input, (N, input_dim, H, W), jnp.float32)  # NCHW

    fwd = jax.jit(functools.partial(vertex_net_forward, levels=unet_levels,
                                    dim=dim, output_dim=output_dim))
    out = fwd(images, params)
    out = jax.block_until_ready(out)

    assert out.shape == (N, output_dim, H, W), out.shape
    assert bool(jnp.all(jnp.isfinite(out)))
    print("KERNEL_OK")
</pallas_src>

<mosaic_0001>
module attributes {stable_mosaic.version = 11 : i64} {
  func.func @_conv_fused_kernel(%arg0: i32, %arg1: memref<1x288x128xbf16, #tpu.memory_space<vmem>>, %arg2: memref<3x128x128xbf16, #tpu.memory_space<vmem>>, %arg3: memref<1x128xf32, #tpu.memory_space<vmem>>, %arg4: memref<1x128xf32, #tpu.memory_space<vmem>>, %arg5: memref<1x128xf32, #tpu.memory_space<vmem>>, %arg6: memref<1x256x128xbf16, #tpu.memory_space<vmem>>) attributes {dimension_semantics = [#tpu.dimension_semantics<parallel>], iteration_bounds = array<i64: 2>, scalar_prefetch = 0 : i64, scratch_operands = 0 : i64, tpu.core_type = #tpu.core_type<tc>, window_params = [{transform_indices = @transform_0, window_bounds = array<i64: 1, 288, 128>}, {pipeline_mode = #tpu.pipeline_mode<synchronous>, transform_indices = @transform_1, window_bounds = array<i64: 3, 128, 128>}, {pipeline_mode = #tpu.pipeline_mode<synchronous>, transform_indices = @transform_2, window_bounds = array<i64: 1, 128>}, {pipeline_mode = #tpu.pipeline_mode<synchronous>, transform_indices = @transform_3, window_bounds = array<i64: 1, 128>}, {pipeline_mode = #tpu.pipeline_mode<synchronous>, transform_indices = @transform_4, window_bounds = array<i64: 1, 128>}, {transform_indices = @transform_5, window_bounds = array<i64: 1, 256, 128>}]} {
    %cst = arith.constant 0.000000e+00 : f32
    %0 = vector.broadcast %cst : f32 to vector<256x128xf32>
    %c0_i32 = arith.constant 0 : i32
    %c0_i32_0 = arith.constant 0 : i32
    %c0_i32_1 = arith.constant 0 : i32
    %1 = tpu.memref_slice %arg1[%c0_i32, %c0_i32_0, %c0_i32_1] : memref<1x288x128xbf16, #tpu.memory_space<vmem>> -> memref<1x288x128xbf16, #tpu.memory_space<vmem>>
    %2 = tpu.memref_squeeze %1 : memref<1x288x128xbf16, #tpu.memory_space<vmem>> -> memref<288x128xbf16, #tpu.memory_space<vmem>>
    %c0 = arith.constant 0 : index
    %c0_2 = arith.constant 0 : index
    %3 = vector.load %2[%c0, %c0_2] : memref<288x128xbf16, #tpu.memory_space<vmem>>, vector<256x128xbf16>
    %c0_3 = arith.constant 0 : index
    %c0_4 = arith.constant 0 : index
    %c0_5 = arith.constant 0 : index
    %4 = vector.load %arg2[%c0_3, %c0_4, %c0_5] : memref<3x128x128xbf16, #tpu.memory_space<vmem>>, vector<1x128x128xbf16>
    %5 = vector.shape_cast %4 : vector<1x128x128xbf16> to vector<128x128xbf16>
    %cst_6 = arith.constant dense<0.000000e+00> : vector<256x128xf32>
    %6 = tpu.matmul %3, %5, %cst_6 {dimension_numbers = #tpu.dot_dimension_numbers<[1], [0], [0], [1], [0, 0, 1, 1], [], []>} : vector<256x128xbf16>, vector<128x128xbf16>, vector<256x128xf32> -> vector<256x128xf32>
    %7 = arith.addf %0, %6 : vector<256x128xf32>
    %c0_i32_7 = arith.constant 0 : i32
    %c0_i32_8 = arith.constant 0 : i32
    %c0_i32_9 = arith.constant 0 : i32
    %8 = tpu.memref_slice %arg1[%c0_i32_7, %c0_i32_8, %c0_i32_9] : memref<1x288x128xbf16, #tpu.memory_space<vmem>> -> memref<1x288x128xbf16, #tpu.memory_space<vmem>>
    %9 = tpu.memref_squeeze %8 : memref<1x288x128xbf16, #tpu.memory_space<vmem>> -> memref<288x128xbf16, #tpu.memory_space<vmem>>
    %c16 = arith.constant 16 : index
    %c0_10 = arith.constant 0 : index
    %10 = vector.load %9[%c16, %c0_10] : memref<288x128xbf16, #tpu.memory_space<vmem>>, vector<256x128xbf16>
    %c1 = arith.constant 1 : index
    %c0_11 = arith.constant 0 : index
    %c0_12 = arith.constant 0 : index
    %11 = vector.load %arg2[%c1, %c0_11, %c0_12] : memref<3x128x128xbf16, #tpu.memory_space<vmem>>, vector<1x128x128xbf16>
    %12 = vector.shape_cast %11 : vector<1x128x128xbf16> to vector<128x128xbf16>
    %cst_13 = arith.constant dense<0.000000e+00> : vector<256x128xf32>
    %13 = tpu.matmul %10, %12, %cst_13 {dimension_numbers = #tpu.dot_dimension_numbers<[1], [0], [0], [1], [0, 0, 1, 1], [], []>} : vector<256x128xbf16>, vector<128x128xbf16>, vector<256x128xf32> -> vector<256x128xf32>
    %14 = arith.addf %7, %13 : vector<256x128xf32>
    %c0_i32_14 = arith.constant 0 : i32
    %c0_i32_15 = arith.constant 0 : i32
    %c0_i32_16 = arith.constant 0 : i32
    %15 = tpu.memref_slice %arg1[%c0_i32_14, %c0_i32_15, %c0_i32_16] : memref<1x288x128xbf16, #tpu.memory_space<vmem>> -> memref<1x288x128xbf16, #tpu.memory_space<vmem>>
    %16 = tpu.memref_squeeze %15 : memref<1x288x128xbf16, #tpu.memory_space<vmem>> -> memref<288x128xbf16, #tpu.memory_space<vmem>>
    %c32 = arith.constant 32 : index
    %c0_17 = arith.constant 0 : index
    %17 = vector.load %16[%c32, %c0_17] : memref<288x128xbf16, #tpu.memory_space<vmem>>, vector<256x128xbf16>
    %c2 = arith.constant 2 : index
    %c0_18 = arith.constant 0 : index
    %c0_19 = arith.constant 0 : index
    %18 = vector.load %arg2[%c2, %c0_18, %c0_19] : memref<3x128x128xbf16, #tpu.memory_space<vmem>>, vector<1x128x128xbf16>
    %19 = vector.shape_cast %18 : vector<1x128x128xbf16> to vector<128x128xbf16>
    %cst_20 = arith.constant dense<0.000000e+00> : vector<256x128xf32>
    %20 = tpu.matmul %17, %19, %cst_20 {dimension_numbers = #tpu.dot_dimension_numbers<[1], [0], [0], [1], [0, 0, 1, 1], [], []>} : vector<256x128xbf16>, vector<128x128xbf16>, vector<256x128xf32> -> vector<256x128xf32>
    %21 = arith.addf %14, %20 : vector<256x128xf32>
    %c0_21 = arith.constant 0 : index
    %c0_22 = arith.constant 0 : index
    %22 = vector.load %arg3[%c0_21, %c0_22] : memref<1x128xf32, #tpu.memory_space<vmem>>, vector<1x128xf32>
    %23 = vector.broadcast %22 : vector<1x128xf32> to vector<256x128xf32>
    %24 = arith.addf %21, %23 : vector<256x128xf32>
    %cst_23 = arith.constant dense<0.000000e+00> : vector<128xf32>
    %25 = vector.multi_reduction <add>, %24, %cst_23 [0] : vector<256x128xf32> to vector<128xf32>
    %26 = vector.shape_cast %25 : vector<128xf32> to vector<1x128xf32>
    %cst_24 = arith.constant dense<0.000000e+00> : vector<1xf32>
    %27 = vector.multi_reduction <add>, %26, %cst_24 [1] : vector<1x128xf32> to vector<1xf32>
    %28 = vector.shape_cast %27 : vector<1xf32> to vector<1x1xf32>
    %29 = arith.mulf %24, %24 : vector<256x128xf32>
    %cst_25 = arith.constant dense<0.000000e+00> : vector<128xf32>
    %30 = vector.multi_reduction <add>, %29, %cst_25 [0] : vector<256x128xf32> to vector<128xf32>
    %31 = vector.shape_cast %30 : vector<128xf32> to vector<1x128xf32>
    %cst_26 = arith.constant dense<0.000000e+00> : vector<1xf32>
    %32 = vector.multi_reduction <add>, %31, %cst_26 [1] : vector<1x128xf32> to vector<1xf32>
    %33 = vector.shape_cast %32 : vector<1xf32> to vector<1x1xf32>
    %cst_27 = arith.constant 4.8828125E-4 : f32
    %34 = vector.broadcast %cst_27 : f32 to vector<1x1xf32>
    %35 = arith.mulf %28, %34 : vector<1x1xf32>
    %cst_28 = arith.constant 4.8828125E-4 : f32
    %36 = vector.broadcast %cst_28 : f32 to vector<1x1xf32>
    %37 = arith.mulf %33, %36 : vector<1x1xf32>
    %38 = arith.mulf %35, %35 : vector<1x1xf32>
    %39 = arith.subf %37, %38 : vector<1x1xf32>
    %cst_29 = arith.constant 0.000000e+00 : f32
    %40 = vector.broadcast %cst_29 : f32 to vector<1x1xf32>
    %41 = arith.maximumf %39, %40 : vector<1x1xf32>
    %cst_30 = arith.constant 9.99999974E-6 : f32
    %42 = vector.broadcast %cst_30 : f32 to vector<1x1xf32>
    %43 = arith.addf %41, %42 : vector<1x1xf32>
    %44 = math.rsqrt %43 : vector<1x1xf32>
    %45 = vector.broadcast %35 : vector<1x1xf32> to vector<256x128xf32>
    %46 = arith.subf %24, %45 : vector<256x128xf32>
    %47 = vector.broadcast %44 : vector<1x1xf32> to vector<256x128xf32>
    %48 = arith.mulf %46, %47 : vector<256x128xf32>
    %c0_31 = arith.constant 0 : index
    %c0_32 = arith.constant 0 : index
    %49 = vector.load %arg4[%c0_31, %c0_32] : memref<1x128xf32, #tpu.memory_space<vmem>>, vector<1x128xf32>
    %50 = vector.broadcast %49 : vector<1x128xf32> to vector<256x128xf32>
    %51 = arith.mulf %48, %50 : vector<256x128xf32>
    %c0_33 = arith.constant 0 : index
    %c0_34 = arith.constant 0 : index
    %52 = vector.load %arg5[%c0_33, %c0_34] : memref<1x128xf32, #tpu.memory_space<vmem>>, vector<1x128xf32>
    %53 = vector.broadcast %52 : vector<1x128xf32> to vector<256x128xf32>
    %54 = arith.addf %51, %53 : vector<256x128xf32>
    %cst_35 = arith.constant 0.000000e+00 : f32
    %55 = vector.broadcast %cst_35 : f32 to vector<256x128xf32>
    %56 = arith.maximumf %54, %55 : vector<256x128xf32>
    %57 = arith.truncf %56 : vector<256x128xf32> to vector<256x128xbf16>
    %c0_36 = arith.constant 0 : index
    %c0_37 = arith.constant 0 : index
    %c0_38 = arith.constant 0 : index
    %58 = vector.load %arg6[%c0_36, %c0_37, %c0_38] : memref<1x256x128xbf16, #tpu.memory_space<vmem>>, vector<1x256x128xbf16>
    %59 = vector.shape_cast %58 : vector<1x256x128xbf16> to vector<256x128xbf16>
    %60 = vector.shape_cast %57 : vector<256x128xbf16> to vector<1x256x128xbf16>
    tpu.vector_store %arg6[%c0_36, %c0_37, %c0_38], %60 {strides = array<i32>} : memref<1x256x128xbf16, #tpu.memory_space<vmem>>, vector<1x256x128xbf16>,
    return
  }
  func.func @transform_0(%arg0: i32) -> (i32, i32, i32) {
    %c0_i32 = arith.constant 0 : i32
    %c0_i32_0 = arith.constant 0 : i32
    %c0_i32_1 = arith.constant 0 : i32
    return %arg0, %c0_i32, %c0_i32_0 : i32, i32, i32
  }
  func.func @transform_1(%arg0: i32) -> (i32, i32, i32) {
    %c0_i32 = arith.constant 0 : i32
    %c0_i32_0 = arith.constant 0 : i32
    %c0_i32_1 = arith.constant 0 : i32
    %c0_i32_2 = arith.constant 0 : i32
    return %c0_i32, %c0_i32_0, %c0_i32_1 : i32, i32, i32
  }
  func.func @transform_2(%arg0: i32) -> (i32, i32) {
    %c0_i32 = arith.constant 0 : i32
    %c0_i32_0 = arith.constant 0 : i32
    %c0_i32_1 = arith.constant 0 : i32
    return %c0_i32, %c0_i32_0 : i32, i32
  }
  func.func @transform_3(%arg0: i32) -> (i32, i32) {
    %c0_i32 = arith.constant 0 : i32
    %c0_i32_0 = arith.constant 0 : i32
    %c0_i32_1 = arith.constant 0 : i32
    return %c0_i32, %c0_i32_0 : i32, i32
  }
  func.func @transform_4(%arg0: i32) -> (i32, i32) {
    %c0_i32 = arith.constant 0 : i32
    %c0_i32_0 = arith.constant 0 : i32
    %c0_i32_1 = arith.constant 0 : i32
    return %c0_i32, %c0_i32_0 : i32, i32
  }
  func.func @transform_5(%arg0: i32) -> (i32, i32, i32) {
    %c0_i32 = arith.constant 0 : i32
    %c0_i32_0 = arith.constant 0 : i32
    %c0_i32_1 = arith.constant 0 : i32
    return %arg0, %c0_i32, %c0_i32_0 : i32, i32, i32
  }
}

module attributes {stable_mosaic.version = 11 : i64} {
  func.func @_conv_fused_kernel(%arg0: i32, %arg1: memref<1x80x128xbf16, #tpu.memory_space<vmem>>, %arg2: memref<3x128x128xbf16, #tpu.memory_space<vmem>>, %arg3: memref<1x128xf32, #tpu.memory_space<vmem>>, %arg4: memref<1x128xf32, #tpu.memory_space<vmem>>, %arg5: memref<1x128xf32, #tpu.memory_space<vmem>>, %arg6: memref<1x64x128xbf16, #tpu.memory_space<vmem>>) attributes {dimension_semantics = [#tpu.dimension_semantics<parallel>], iteration_bounds = array<i64: 2>, scalar_prefetch = 0 : i64, scratch_operands = 0 : i64, tpu.core_type = #tpu.core_type<tc>, window_params = [{transform_indices = @transform_0, window_bounds = array<i64: 1, 80, 128>}, {pipeline_mode = #tpu.pipeline_mode<synchronous>, transform_indices = @transform_1, window_bounds = array<i64: 3, 128, 128>}, {pipeline_mode = #tpu.pipeline_mode<synchronous>, transform_indices = @transform_2, window_bounds = array<i64: 1, 128>}, {pipeline_mode = #tpu.pipeline_mode<synchronous>, transform_indices = @transform_3, window_bounds = array<i64: 1, 128>}, {pipeline_mode = #tpu.pipeline_mode<synchronous>, transform_indices = @transform_4, window_bounds = array<i64: 1, 128>}, {transform_indices = @transform_5, window_bounds = array<i64: 1, 64, 128>}]} {
    %cst = arith.constant 0.000000e+00 : f32
    %0 = vector.broadcast %cst : f32 to vector<64x128xf32>
    %c0_i32 = arith.constant 0 : i32
    %c0_i32_0 = arith.constant 0 : i32
    %c0_i32_1 = arith.constant 0 : i32
    %1 = tpu.memref_slice %arg1[%c0_i32, %c0_i32_0, %c0_i32_1] : memref<1x80x128xbf16, #tpu.memory_space<vmem>> -> memref<1x80x128xbf16, #tpu.memory_space<vmem>>
    %2 = tpu.memref_squeeze %1 : memref<1x80x128xbf16, #tpu.memory_space<vmem>> -> memref<80x128xbf16, #tpu.memory_space<vmem>>
    %c0 = arith.constant 0 : index
    %c0_2 = arith.constant 0 : index
    %3 = vector.load %2[%c0, %c0_2] : memref<80x128xbf16, #tpu.memory_space<vmem>>, vector<64x128xbf16>
    %c0_3 = arith.constant 0 : index
    %c0_4 = arith.constant 0 : index
    %c0_5 = arith.constant 0 : index
    %4 = vector.load %arg2[%c0_3, %c0_4, %c0_5] : memref<3x128x128xbf16, #tpu.memory_space<vmem>>, vector<1x128x128xbf16>
    %5 = vector.shape_cast %4 : vector<1x128x128xbf16> to vector<128x128xbf16>
    %cst_6 = arith.constant dense<0.000000e+00> : vector<64x128xf32>
    %6 = tpu.matmul %3, %5, %cst_6 {dimension_numbers = #tpu.dot_dimension_numbers<[1], [0], [0], [1], [0, 0, 1, 1], [], []>} : vector<64x128xbf16>, vector<128x128xbf16>, vector<64x128xf32> -> vector<64x128xf32>
    %7 = arith.addf %0, %6 : vector<64x128xf32>
    %c0_i32_7 = arith.constant 0 : i32
    %c0_i32_8 = arith.constant 0 : i32
    %c0_i32_9 = arith.constant 0 : i32
    %8 = tpu.memref_slice %arg1[%c0_i32_7, %c0_i32_8, %c0_i32_9] : memref<1x80x128xbf16, #tpu.memory_space<vmem>> -> memref<1x80x128xbf16, #tpu.memory_space<vmem>>
    %9 = tpu.memref_squeeze %8 : memref<1x80x128xbf16, #tpu.memory_space<vmem>> -> memref<80x128xbf16, #tpu.memory_space<vmem>>
    %c8 = arith.constant 8 : index
    %c0_10 = arith.constant 0 : index
    %10 = vector.load %9[%c8, %c0_10] : memref<80x128xbf16, #tpu.memory_space<vmem>>, vector<64x128xbf16>
    %c1 = arith.constant 1 : index
    %c0_11 = arith.constant 0 : index
    %c0_12 = arith.constant 0 : index
    %11 = vector.load %arg2[%c1, %c0_11, %c0_12] : memref<3x128x128xbf16, #tpu.memory_space<vmem>>, vector<1x128x128xbf16>
    %12 = vector.shape_cast %11 : vector<1x128x128xbf16> to vector<128x128xbf16>
    %cst_13 = arith.constant dense<0.000000e+00> : vector<64x128xf32>
    %13 = tpu.matmul %10, %12, %cst_13 {dimension_numbers = #tpu.dot_dimension_numbers<[1], [0], [0], [1], [0, 0, 1, 1], [], []>} : vector<64x128xbf16>, vector<128x128xbf16>, vector<64x128xf32> -> vector<64x128xf32>
    %14 = arith.addf %7, %13 : vector<64x128xf32>
    %c0_i32_14 = arith.constant 0 : i32
    %c0_i32_15 = arith.constant 0 : i32
    %c0_i32_16 = arith.constant 0 : i32
    %15 = tpu.memref_slice %arg1[%c0_i32_14, %c0_i32_15, %c0_i32_16] : memref<1x80x128xbf16, #tpu.memory_space<vmem>> -> memref<1x80x128xbf16, #tpu.memory_space<vmem>>
    %16 = tpu.memref_squeeze %15 : memref<1x80x128xbf16, #tpu.memory_space<vmem>> -> memref<80x128xbf16, #tpu.memory_space<vmem>>
    %c16 = arith.constant 16 : index
    %c0_17 = arith.constant 0 : index
    %17 = vector.load %16[%c16, %c0_17] : memref<80x128xbf16, #tpu.memory_space<vmem>>, vector<64x128xbf16>
    %c2 = arith.constant 2 : index
    %c0_18 = arith.constant 0 : index
    %c0_19 = arith.constant 0 : index
    %18 = vector.load %arg2[%c2, %c0_18, %c0_19] : memref<3x128x128xbf16, #tpu.memory_space<vmem>>, vector<1x128x128xbf16>
    %19 = vector.shape_cast %18 : vector<1x128x128xbf16> to vector<128x128xbf16>
    %cst_20 = arith.constant dense<0.000000e+00> : vector<64x128xf32>
    %20 = tpu.matmul %17, %19, %cst_20 {dimension_numbers = #tpu.dot_dimension_numbers<[1], [0], [0], [1], [0, 0, 1, 1], [], []>} : vector<64x128xbf16>, vector<128x128xbf16>, vector<64x128xf32> -> vector<64x128xf32>
    %21 = arith.addf %14, %20 : vector<64x128xf32>
    %c0_21 = arith.constant 0 : index
    %c0_22 = arith.constant 0 : index
    %22 = vector.load %arg3[%c0_21, %c0_22] : memref<1x128xf32, #tpu.memory_space<vmem>>, vector<1x128xf32>
    %23 = vector.broadcast %22 : vector<1x128xf32> to vector<64x128xf32>
    %24 = arith.addf %21, %23 : vector<64x128xf32>
    %cst_23 = arith.constant dense<0.000000e+00> : vector<128xf32>
    %25 = vector.multi_reduction <add>, %24, %cst_23 [0] : vector<64x128xf32> to vector<128xf32>
    %26 = vector.shape_cast %25 : vector<128xf32> to vector<1x128xf32>
    %cst_24 = arith.constant dense<0.000000e+00> : vector<1xf32>
    %27 = vector.multi_reduction <add>, %26, %cst_24 [1] : vector<1x128xf32> to vector<1xf32>
    %28 = vector.shape_cast %27 : vector<1xf32> to vector<1x1xf32>
    %29 = arith.mulf %24, %24 : vector<64x128xf32>
    %cst_25 = arith.constant dense<0.000000e+00> : vector<128xf32>
    %30 = vector.multi_reduction <add>, %29, %cst_25 [0] : vector<64x128xf32> to vector<128xf32>
    %31 = vector.shape_cast %30 : vector<128xf32> to vector<1x128xf32>
    %cst_26 = arith.constant dense<0.000000e+00> : vector<1xf32>
    %32 = vector.multi_reduction <add>, %31, %cst_26 [1] : vector<1x128xf32> to vector<1xf32>
    %33 = vector.shape_cast %32 : vector<1xf32> to vector<1x1xf32>
    %cst_27 = arith.constant 9.765625E-4 : f32
    %34 = vector.broadcast %cst_27 : f32 to vector<1x1xf32>
    %35 = arith.mulf %28, %34 : vector<1x1xf32>
    %cst_28 = arith.constant 9.765625E-4 : f32
    %36 = vector.broadcast %cst_28 : f32 to vector<1x1xf32>
    %37 = arith.mulf %33, %36 : vector<1x1xf32>
    %38 = arith.mulf %35, %35 : vector<1x1xf32>
    %39 = arith.subf %37, %38 : vector<1x1xf32>
    %cst_29 = arith.constant 0.000000e+00 : f32
    %40 = vector.broadcast %cst_29 : f32 to vector<1x1xf32>
    %41 = arith.maximumf %39, %40 : vector<1x1xf32>
    %cst_30 = arith.constant 9.99999974E-6 : f32
    %42 = vector.broadcast %cst_30 : f32 to vector<1x1xf32>
    %43 = arith.addf %41, %42 : vector<1x1xf32>
    %44 = math.rsqrt %43 : vector<1x1xf32>
    %45 = vector.broadcast %35 : vector<1x1xf32> to vector<64x128xf32>
    %46 = arith.subf %24, %45 : vector<64x128xf32>
    %47 = vector.broadcast %44 : vector<1x1xf32> to vector<64x128xf32>
    %48 = arith.mulf %46, %47 : vector<64x128xf32>
    %c0_31 = arith.constant 0 : index
    %c0_32 = arith.constant 0 : index
    %49 = vector.load %arg4[%c0_31, %c0_32] : memref<1x128xf32, #tpu.memory_space<vmem>>, vector<1x128xf32>
    %50 = vector.broadcast %49 : vector<1x128xf32> to vector<64x128xf32>
    %51 = arith.mulf %48, %50 : vector<64x128xf32>
    %c0_33 = arith.constant 0 : index
    %c0_34 = arith.constant 0 : index
    %52 = vector.load %arg5[%c0_33, %c0_34] : memref<1x128xf32, #tpu.memory_space<vmem>>, vector<1x128xf32>
    %53 = vector.broadcast %52 : vector<1x128xf32> to vector<64x128xf32>
    %54 = arith.addf %51, %53 : vector<64x128xf32>
    %cst_35 = arith.constant 0.000000e+00 : f32
    %55 = vector.broadcast %cst_35 : f32 to vector<64x128xf32>
    %56 = arith.maximumf %54, %55 : vector<64x128xf32>
    %57 = arith.truncf %56 : vector<64x128xf32> to vector<64x128xbf16>
    %c0_36 = arith.constant 0 : index
    %c0_37 = arith.constant 0 : index
    %c0_38 = arith.constant 0 : index
    %58 = vector.load %arg6[%c0_36, %c0_37, %c0_38] : memref<1x64x128xbf16, #tpu.memory_space<vmem>>, vector<1x64x128xbf16>
    %59 = vector.shape_cast %58 : vector<1x64x128xbf16> to vector<64x128xbf16>
    %60 = vector.shape_cast %57 : vector<64x128xbf16> to vector<1x64x128xbf16>
    tpu.vector_store %arg6[%c0_36, %c0_37, %c0_38], %60 {strides = array<i32>} : memref<1x64x128xbf16, #tpu.memory_space<vmem>>, vector<1x64x128xbf16>,
    return
  }
  func.func @transform_0(%arg0: i32) -> (i32, i32, i32) {
    %c0_i32 = arith.constant 0 : i32
    %c0_i32_0 = arith.constant 0 : i32
    %c0_i32_1 = arith.constant 0 : i32
    return %arg0, %c0_i32, %c0_i32_0 : i32, i32, i32
  }
  func.func @transform_1(%arg0: i32) -> (i32, i32, i32) {
    %c0_i32 = arith.constant 0 : i32
    %c0_i32_0 = arith.constant 0 : i32
    %c0_i32_1 = arith.constant 0 : i32
    %c0_i32_2 = arith.constant 0 : i32
    return %c0_i32, %c0_i32_0, %c0_i32_1 : i32, i32, i32
  }
  func.func @transform_2(%arg0: i32) -> (i32, i32) {
    %c0_i32 = arith.constant 0 : i32
    %c0_i32_0 = arith.constant 0 : i32
    %c0_i32_1 = arith.constant 0 : i32
    return %c0_i32, %c0_i32_0 : i32, i32
  }
  func.func @transform_3(%arg0: i32) -> (i32, i32) {
    %c0_i32 = arith.constant 0 : i32
    %c0_i32_0 = arith.constant 0 : i32
    %c0_i32_1 = arith.constant 0 : i32
    return %c0_i32, %c0_i32_0 : i32, i32
  }
  func.func @transform_4(%arg0: i32) -> (i32, i32) {
    %c0_i32 = arith.constant 0 : i32
    %c0_i32_0 = arith.constant 0 : i32
    %c0_i32_1 = arith.constant 0 : i32
    return %c0_i32, %c0_i32_0 : i32, i32
  }
  func.func @transform_5(%arg0: i32) -> (i32, i32, i32) {
    %c0_i32 = arith.constant 0 : i32
    %c0_i32_0 = arith.constant 0 : i32
    %c0_i32_1 = arith.constant 0 : i32
    return %arg0, %c0_i32, %c0_i32_0 : i32, i32, i32
  }
}

module attributes {stable_mosaic.version = 11 : i64} {
  func.func @_conv_fused_kernel(%arg0: i32, %arg1: memref<1x8x128xbf16, #tpu.memory_space<vmem>>, %arg2: memref<3x128x128xbf16, #tpu.memory_space<vmem>>, %arg3: memref<1x128xf32, #tpu.memory_space<vmem>>, %arg4: memref<1x128xf32, #tpu.memory_space<vmem>>, %arg5: memref<1x128xf32, #tpu.memory_space<vmem>>, %arg6: memref<1x4x128xbf16, #tpu.memory_space<vmem>>) attributes {dimension_semantics = [#tpu.dimension_semantics<parallel>], iteration_bounds = array<i64: 2>, scalar_prefetch = 0 : i64, scratch_operands = 0 : i64, tpu.core_type = #tpu.core_type<tc>, window_params = [{transform_indices = @transform_0, window_bounds = array<i64: 1, 8, 128>}, {pipeline_mode = #tpu.pipeline_mode<synchronous>, transform_indices = @transform_1, window_bounds = array<i64: 3, 128, 128>}, {pipeline_mode = #tpu.pipeline_mode<synchronous>, transform_indices = @transform_2, window_bounds = array<i64: 1, 128>}, {pipeline_mode = #tpu.pipeline_mode<synchronous>, transform_indices = @transform_3, window_bounds = array<i64: 1, 128>}, {pipeline_mode = #tpu.pipeline_mode<synchronous>, transform_indices = @transform_4, window_bounds = array<i64: 1, 128>}, {transform_indices = @transform_5, window_bounds = array<i64: 1, 4, 128>}]} {
    %cst = arith.constant 0.000000e+00 : f32
    %0 = vector.broadcast %cst : f32 to vector<4x128xf32>
    %c0_i32 = arith.constant 0 : i32
    %c0_i32_0 = arith.constant 0 : i32
    %c0_i32_1 = arith.constant 0 : i32
    %1 = tpu.memref_slice %arg1[%c0_i32, %c0_i32_0, %c0_i32_1] : memref<1x8x128xbf16, #tpu.memory_space<vmem>> -> memref<1x8x128xbf16, #tpu.memory_space<vmem>>
    %2 = tpu.memref_squeeze %1 : memref<1x8x128xbf16, #tpu.memory_space<vmem>> -> memref<8x128xbf16, #tpu.memory_space<vmem>>
    %c0 = arith.constant 0 : index
    %c0_2 = arith.constant 0 : index
    %3 = vector.load %2[%c0, %c0_2] : memref<8x128xbf16, #tpu.memory_space<vmem>>, vector<4x128xbf16>
    %c0_3 = arith.constant 0 : index
    %c0_4 = arith.constant 0 : index
    %c0_5 = arith.constant 0 : index
    %4 = vector.load %arg2[%c0_3, %c0_4, %c0_5] : memref<3x128x128xbf16, #tpu.memory_space<vmem>>, vector<1x128x128xbf16>
    %5 = vector.shape_cast %4 : vector<1x128x128xbf16> to vector<128x128xbf16>
    %cst_6 = arith.constant dense<0.000000e+00> : vector<4x128xf32>
    %6 = tpu.matmul %3, %5, %cst_6 {dimension_numbers = #tpu.dot_dimension_numbers<[1], [0], [0], [1], [0, 0, 1, 1], [], []>} : vector<4x128xbf16>, vector<128x128xbf16>, vector<4x128xf32> -> vector<4x128xf32>
    %7 = arith.addf %0, %6 : vector<4x128xf32>
    %c0_i32_7 = arith.constant 0 : i32
    %c0_i32_8 = arith.constant 0 : i32
    %c0_i32_9 = arith.constant 0 : i32
    %8 = tpu.memref_slice %arg1[%c0_i32_7, %c0_i32_8, %c0_i32_9] : memref<1x8x128xbf16, #tpu.memory_space<vmem>> -> memref<1x8x128xbf16, #tpu.memory_space<vmem>>
    %9 = tpu.memref_squeeze %8 : memref<1x8x128xbf16, #tpu.memory_space<vmem>> -> memref<8x128xbf16, #tpu.memory_space<vmem>>
    %c2 = arith.constant 2 : index
    %c0_10 = arith.constant 0 : index
    %10 = vector.load %9[%c2, %c0_10] : memref<8x128xbf16, #tpu.memory_space<vmem>>, vector<4x128xbf16>
    %c1 = arith.constant 1 : index
    %c0_11 = arith.constant 0 : index
    %c0_12 = arith.constant 0 : index
    %11 = vector.load %arg2[%c1, %c0_11, %c0_12] : memref<3x128x128xbf16, #tpu.memory_space<vmem>>, vector<1x128x128xbf16>
    %12 = vector.shape_cast %11 : vector<1x128x128xbf16> to vector<128x128xbf16>
    %cst_13 = arith.constant dense<0.000000e+00> : vector<4x128xf32>
    %13 = tpu.matmul %10, %12, %cst_13 {dimension_numbers = #tpu.dot_dimension_numbers<[1], [0], [0], [1], [0, 0, 1, 1], [], []>} : vector<4x128xbf16>, vector<128x128xbf16>, vector<4x128xf32> -> vector<4x128xf32>
    %14 = arith.addf %7, %13 : vector<4x128xf32>
    %c0_i32_14 = arith.constant 0 : i32
    %c0_i32_15 = arith.constant 0 : i32
    %c0_i32_16 = arith.constant 0 : i32
    %15 = tpu.memref_slice %arg1[%c0_i32_14, %c0_i32_15, %c0_i32_16] : memref<1x8x128xbf16, #tpu.memory_space<vmem>> -> memref<1x8x128xbf16, #tpu.memory_space<vmem>>
    %16 = tpu.memref_squeeze %15 : memref<1x8x128xbf16, #tpu.memory_space<vmem>> -> memref<8x128xbf16, #tpu.memory_space<vmem>>
    %c4 = arith.constant 4 : index
    %c0_17 = arith.constant 0 : index
    %17 = vector.load %16[%c4, %c0_17] : memref<8x128xbf16, #tpu.memory_space<vmem>>, vector<4x128xbf16>
    %c2_18 = arith.constant 2 : index
    %c0_19 = arith.constant 0 : index
    %c0_20 = arith.constant 0 : index
    %18 = vector.load %arg2[%c2_18, %c0_19, %c0_20] : memref<3x128x128xbf16, #tpu.memory_space<vmem>>, vector<1x128x128xbf16>
    %19 = vector.shape_cast %18 : vector<1x128x128xbf16> to vector<128x128xbf16>
    %cst_21 = arith.constant dense<0.000000e+00> : vector<4x128xf32>
    %20 = tpu.matmul %17, %19, %cst_21 {dimension_numbers = #tpu.dot_dimension_numbers<[1], [0], [0], [1], [0, 0, 1, 1], [], []>} : vector<4x128xbf16>, vector<128x128xbf16>, vector<4x128xf32> -> vector<4x128xf32>
    %21 = arith.addf %14, %20 : vector<4x128xf32>
    %c0_22 = arith.constant 0 : index
    %c0_23 = arith.constant 0 : index
    %22 = vector.load %arg3[%c0_22, %c0_23] : memref<1x128xf32, #tpu.memory_space<vmem>>, vector<1x128xf32>
    %23 = vector.broadcast %22 : vector<1x128xf32> to vector<4x128xf32>
    %24 = arith.addf %21, %23 : vector<4x128xf32>
    %cst_24 = arith.constant dense<0.000000e+00> : vector<128xf32>
    %25 = vector.multi_reduction <add>, %24, %cst_24 [0] : vector<4x128xf32> to vector<128xf32>
    %26 = vector.shape_cast %25 : vector<128xf32> to vector<1x128xf32>
    %cst_25 = arith.constant dense<0.000000e+00> : vector<1xf32>
    %27 = vector.multi_reduction <add>, %26, %cst_25 [1] : vector<1x128xf32> to vector<1xf32>
    %28 = vector.shape_cast %27 : vector<1xf32> to vector<1x1xf32>
    %29 = arith.mulf %24, %24 : vector<4x128xf32>
    %cst_26 = arith.constant dense<0.000000e+00> : vector<128xf32>
    %30 = vector.multi_reduction <add>, %29, %cst_26 [0] : vector<4x128xf32> to vector<128xf32>
    %31 = vector.shape_cast %30 : vector<128xf32> to vector<1x128xf32>
    %cst_27 = arith.constant dense<0.000000e+00> : vector<1xf32>
    %32 = vector.multi_reduction <add>, %31, %cst_27 [1] : vector<1x128xf32> to vector<1xf32>
    %33 = vector.shape_cast %32 : vector<1xf32> to vector<1x1xf32>
    %cst_28 = arith.constant 3.906250e-03 : f32
    %34 = vector.broadcast %cst_28 : f32 to vector<1x1xf32>
    %35 = arith.mulf %28, %34 : vector<1x1xf32>
    %cst_29 = arith.constant 3.906250e-03 : f32
    %36 = vector.broadcast %cst_29 : f32 to vector<1x1xf32>
    %37 = arith.mulf %33, %36 : vector<1x1xf32>
    %38 = arith.mulf %35, %35 : vector<1x1xf32>
    %39 = arith.subf %37, %38 : vector<1x1xf32>
    %cst_30 = arith.constant 0.000000e+00 : f32
    %40 = vector.broadcast %cst_30 : f32 to vector<1x1xf32>
    %41 = arith.maximumf %39, %40 : vector<1x1xf32>
    %cst_31 = arith.constant 9.99999974E-6 : f32
    %42 = vector.broadcast %cst_31 : f32 to vector<1x1xf32>
    %43 = arith.addf %41, %42 : vector<1x1xf32>
    %44 = math.rsqrt %43 : vector<1x1xf32>
    %45 = vector.broadcast %35 : vector<1x1xf32> to vector<4x128xf32>
    %46 = arith.subf %24, %45 : vector<4x128xf32>
    %47 = vector.broadcast %44 : vector<1x1xf32> to vector<4x128xf32>
    %48 = arith.mulf %46, %47 : vector<4x128xf32>
    %c0_32 = arith.constant 0 : index
    %c0_33 = arith.constant 0 : index
    %49 = vector.load %arg4[%c0_32, %c0_33] : memref<1x128xf32, #tpu.memory_space<vmem>>, vector<1x128xf32>
    %50 = vector.broadcast %49 : vector<1x128xf32> to vector<4x128xf32>
    %51 = arith.mulf %48, %50 : vector<4x128xf32>
    %c0_34 = arith.constant 0 : index
    %c0_35 = arith.constant 0 : index
    %52 = vector.load %arg5[%c0_34, %c0_35] : memref<1x128xf32, #tpu.memory_space<vmem>>, vector<1x128xf32>
    %53 = vector.broadcast %52 : vector<1x128xf32> to vector<4x128xf32>
    %54 = arith.addf %51, %53 : vector<4x128xf32>
    %cst_36 = arith.constant 0.000000e+00 : f32
    %55 = vector.broadcast %cst_36 : f32 to vector<4x128xf32>
    %56 = arith.maximumf %54, %55 : vector<4x128xf32>
    %57 = arith.truncf %56 : vector<4x128xf32> to vector<4x128xbf16>
    %c0_37 = arith.constant 0 : index
    %c0_38 = arith.constant 0 : index
    %c0_39 = arith.constant 0 : index
    %58 = vector.load %arg6[%c0_37, %c0_38, %c0_39] : memref<1x4x128xbf16, #tpu.memory_space<vmem>>, vector<1x4x128xbf16>
    %59 = vector.shape_cast %58 : vector<1x4x128xbf16> to vector<4x128xbf16>
    %60 = vector.shape_cast %57 : vector<4x128xbf16> to vector<1x4x128xbf16>
    tpu.vector_store %arg6[%c0_37, %c0_38, %c0_39], %60 {strides = array<i32>} : memref<1x4x128xbf16, #tpu.memory_space<vmem>>, vector<1x4x128xbf16>,
    return
  }
  func.func @transform_0(%arg0: i32) -> (i32, i32, i32) {
    %c0_i32 = arith.constant 0 : i32
    %c0_i32_0 = arith.constant 0 : i32
    %c0_i32_1 = arith.constant 0 : i32
    return %arg0, %c0_i32, %c0_i32_0 : i32, i32, i32
  }
  func.func @transform_1(%arg0: i32) -> (i32, i32, i32) {
    %c0_i32 = arith.constant 0 : i32
    %c0_i32_0 = arith.constant 0 : i32
    %c0_i32_1 = arith.constant 0 : i32
    %c0_i32_2 = arith.constant 0 : i32
    return %c0_i32, %c0_i32_0, %c0_i32_1 : i32, i32, i32
  }
  func.func @transform_2(%arg0: i32) -> (i32, i32) {
    %c0_i32 = arith.constant 0 : i32
    %c0_i32_0 = arith.constant 0 : i32
    %c0_i32_1 = arith.constant 0 : i32
    return %c0_i32, %c0_i32_0 : i32, i32
  }
  func.func @transform_3(%arg0: i32) -> (i32, i32) {
    %c0_i32 = arith.constant 0 : i32
    %c0_i32_0 = arith.constant 0 : i32
    %c0_i32_1 = arith.constant 0 : i32
    return %c0_i32, %c0_i32_0 : i32, i32
  }
  func.func @transform_4(%arg0: i32) -> (i32, i32) {
    %c0_i32 = arith.constant 0 : i32
    %c0_i32_0 = arith.constant 0 : i32
    %c0_i32_1 = arith.constant 0 : i32
    return %c0_i32, %c0_i32_0 : i32, i32
  }
  func.func @transform_5(%arg0: i32) -> (i32, i32, i32) {
    %c0_i32 = arith.constant 0 : i32
    %c0_i32_0 = arith.constant 0 : i32
    %c0_i32_1 = arith.constant 0 : i32
    return %arg0, %c0_i32, %c0_i32_0 : i32, i32, i32
  }
}

module attributes {stable_mosaic.version = 11 : i64} {
  func.func @_conv_fused_kernel(%arg0: i32, %arg1: memref<1x24x128xbf16, #tpu.memory_space<vmem>>, %arg2: memref<3x128x128xbf16, #tpu.memory_space<vmem>>, %arg3: memref<1x128xf32, #tpu.memory_space<vmem>>, %arg4: memref<1x128xf32, #tpu.memory_space<vmem>>, %arg5: memref<1x128xf32, #tpu.memory_space<vmem>>, %arg6: memref<1x16x128xbf16, #tpu.memory_space<vmem>>) attributes {dimension_semantics = [#tpu.dimension_semantics<parallel>], iteration_bounds = array<i64: 2>, scalar_prefetch = 0 : i64, scratch_operands = 0 : i64, tpu.core_type = #tpu.core_type<tc>, window_params = [{transform_indices = @transform_0, window_bounds = array<i64: 1, 24, 128>}, {pipeline_mode = #tpu.pipeline_mode<synchronous>, transform_indices = @transform_1, window_bounds = array<i64: 3, 128, 128>}, {pipeline_mode = #tpu.pipeline_mode<synchronous>, transform_indices = @transform_2, window_bounds = array<i64: 1, 128>}, {pipeline_mode = #tpu.pipeline_mode<synchronous>, transform_indices = @transform_3, window_bounds = array<i64: 1, 128>}, {pipeline_mode = #tpu.pipeline_mode<synchronous>, transform_indices = @transform_4, window_bounds = array<i64: 1, 128>}, {transform_indices = @transform_5, window_bounds = array<i64: 1, 16, 128>}]} {
    %cst = arith.constant 0.000000e+00 : f32
    %0 = vector.broadcast %cst : f32 to vector<16x128xf32>
    %c0_i32 = arith.constant 0 : i32
    %c0_i32_0 = arith.constant 0 : i32
    %c0_i32_1 = arith.constant 0 : i32
    %1 = tpu.memref_slice %arg1[%c0_i32, %c0_i32_0, %c0_i32_1] : memref<1x24x128xbf16, #tpu.memory_space<vmem>> -> memref<1x24x128xbf16, #tpu.memory_space<vmem>>
    %2 = tpu.memref_squeeze %1 : memref<1x24x128xbf16, #tpu.memory_space<vmem>> -> memref<24x128xbf16, #tpu.memory_space<vmem>>
    %c0 = arith.constant 0 : index
    %c0_2 = arith.constant 0 : index
    %3 = vector.load %2[%c0, %c0_2] : memref<24x128xbf16, #tpu.memory_space<vmem>>, vector<16x128xbf16>
    %c0_3 = arith.constant 0 : index
    %c0_4 = arith.constant 0 : index
    %c0_5 = arith.constant 0 : index
    %4 = vector.load %arg2[%c0_3, %c0_4, %c0_5] : memref<3x128x128xbf16, #tpu.memory_space<vmem>>, vector<1x128x128xbf16>
    %5 = vector.shape_cast %4 : vector<1x128x128xbf16> to vector<128x128xbf16>
    %cst_6 = arith.constant dense<0.000000e+00> : vector<16x128xf32>
    %6 = tpu.matmul %3, %5, %cst_6 {dimension_numbers = #tpu.dot_dimension_numbers<[1], [0], [0], [1], [0, 0, 1, 1], [], []>} : vector<16x128xbf16>, vector<128x128xbf16>, vector<16x128xf32> -> vector<16x128xf32>
    %7 = arith.addf %0, %6 : vector<16x128xf32>
    %c0_i32_7 = arith.constant 0 : i32
    %c0_i32_8 = arith.constant 0 : i32
    %c0_i32_9 = arith.constant 0 : i32
    %8 = tpu.memref_slice %arg1[%c0_i32_7, %c0_i32_8, %c0_i32_9] : memref<1x24x128xbf16, #tpu.memory_space<vmem>> -> memref<1x24x128xbf16, #tpu.memory_space<vmem>>
    %9 = tpu.memref_squeeze %8 : memref<1x24x128xbf16, #tpu.memory_space<vmem>> -> memref<24x128xbf16, #tpu.memory_space<vmem>>
    %c4 = arith.constant 4 : index
    %c0_10 = arith.constant 0 : index
    %10 = vector.load %9[%c4, %c0_10] : memref<24x128xbf16, #tpu.memory_space<vmem>>, vector<16x128xbf16>
    %c1 = arith.constant 1 : index
    %c0_11 = arith.constant 0 : index
    %c0_12 = arith.constant 0 : index
    %11 = vector.load %arg2[%c1, %c0_11, %c0_12] : memref<3x128x128xbf16, #tpu.memory_space<vmem>>, vector<1x128x128xbf16>
    %12 = vector.shape_cast %11 : vector<1x128x128xbf16> to vector<128x128xbf16>
    %cst_13 = arith.constant dense<0.000000e+00> : vector<16x128xf32>
    %13 = tpu.matmul %10, %12, %cst_13 {dimension_numbers = #tpu.dot_dimension_numbers<[1], [0], [0], [1], [0, 0, 1, 1], [], []>} : vector<16x128xbf16>, vector<128x128xbf16>, vector<16x128xf32> -> vector<16x128xf32>
    %14 = arith.addf %7, %13 : vector<16x128xf32>
    %c0_i32_14 = arith.constant 0 : i32
    %c0_i32_15 = arith.constant 0 : i32
    %c0_i32_16 = arith.constant 0 : i32
    %15 = tpu.memref_slice %arg1[%c0_i32_14, %c0_i32_15, %c0_i32_16] : memref<1x24x128xbf16, #tpu.memory_space<vmem>> -> memref<1x24x128xbf16, #tpu.memory_space<vmem>>
    %16 = tpu.memref_squeeze %15 : memref<1x24x128xbf16, #tpu.memory_space<vmem>> -> memref<24x128xbf16, #tpu.memory_space<vmem>>
    %c8 = arith.constant 8 : index
    %c0_17 = arith.constant 0 : index
    %17 = vector.load %16[%c8, %c0_17] : memref<24x128xbf16, #tpu.memory_space<vmem>>, vector<16x128xbf16>
    %c2 = arith.constant 2 : index
    %c0_18 = arith.constant 0 : index
    %c0_19 = arith.constant 0 : index
    %18 = vector.load %arg2[%c2, %c0_18, %c0_19] : memref<3x128x128xbf16, #tpu.memory_space<vmem>>, vector<1x128x128xbf16>
    %19 = vector.shape_cast %18 : vector<1x128x128xbf16> to vector<128x128xbf16>
    %cst_20 = arith.constant dense<0.000000e+00> : vector<16x128xf32>
    %20 = tpu.matmul %17, %19, %cst_20 {dimension_numbers = #tpu.dot_dimension_numbers<[1], [0], [0], [1], [0, 0, 1, 1], [], []>} : vector<16x128xbf16>, vector<128x128xbf16>, vector<16x128xf32> -> vector<16x128xf32>
    %21 = arith.addf %14, %20 : vector<16x128xf32>
    %c0_21 = arith.constant 0 : index
    %c0_22 = arith.constant 0 : index
    %22 = vector.load %arg3[%c0_21, %c0_22] : memref<1x128xf32, #tpu.memory_space<vmem>>, vector<1x128xf32>
    %23 = vector.broadcast %22 : vector<1x128xf32> to vector<16x128xf32>
    %24 = arith.addf %21, %23 : vector<16x128xf32>
    %cst_23 = arith.constant dense<0.000000e+00> : vector<128xf32>
    %25 = vector.multi_reduction <add>, %24, %cst_23 [0] : vector<16x128xf32> to vector<128xf32>
    %26 = vector.shape_cast %25 : vector<128xf32> to vector<1x128xf32>
    %cst_24 = arith.constant dense<0.000000e+00> : vector<1xf32>
    %27 = vector.multi_reduction <add>, %26, %cst_24 [1] : vector<1x128xf32> to vector<1xf32>
    %28 = vector.shape_cast %27 : vector<1xf32> to vector<1x1xf32>
    %29 = arith.mulf %24, %24 : vector<16x128xf32>
    %cst_25 = arith.constant dense<0.000000e+00> : vector<128xf32>
    %30 = vector.multi_reduction <add>, %29, %cst_25 [0] : vector<16x128xf32> to vector<128xf32>
    %31 = vector.shape_cast %30 : vector<128xf32> to vector<1x128xf32>
    %cst_26 = arith.constant dense<0.000000e+00> : vector<1xf32>
    %32 = vector.multi_reduction <add>, %31, %cst_26 [1] : vector<1x128xf32> to vector<1xf32>
    %33 = vector.shape_cast %32 : vector<1xf32> to vector<1x1xf32>
    %cst_27 = arith.constant 0.001953125 : f32
    %34 = vector.broadcast %cst_27 : f32 to vector<1x1xf32>
    %35 = arith.mulf %28, %34 : vector<1x1xf32>
    %cst_28 = arith.constant 0.001953125 : f32
    %36 = vector.broadcast %cst_28 : f32 to vector<1x1xf32>
    %37 = arith.mulf %33, %36 : vector<1x1xf32>
    %38 = arith.mulf %35, %35 : vector<1x1xf32>
    %39 = arith.subf %37, %38 : vector<1x1xf32>
    %cst_29 = arith.constant 0.000000e+00 : f32
    %40 = vector.broadcast %cst_29 : f32 to vector<1x1xf32>
    %41 = arith.maximumf %39, %40 : vector<1x1xf32>
    %cst_30 = arith.constant 9.99999974E-6 : f32
    %42 = vector.broadcast %cst_30 : f32 to vector<1x1xf32>
    %43 = arith.addf %41, %42 : vector<1x1xf32>
    %44 = math.rsqrt %43 : vector<1x1xf32>
    %45 = vector.broadcast %35 : vector<1x1xf32> to vector<16x128xf32>
    %46 = arith.subf %24, %45 : vector<16x128xf32>
    %47 = vector.broadcast %44 : vector<1x1xf32> to vector<16x128xf32>
    %48 = arith.mulf %46, %47 : vector<16x128xf32>
    %c0_31 = arith.constant 0 : index
    %c0_32 = arith.constant 0 : index
    %49 = vector.load %arg4[%c0_31, %c0_32] : memref<1x128xf32, #tpu.memory_space<vmem>>, vector<1x128xf32>
    %50 = vector.broadcast %49 : vector<1x128xf32> to vector<16x128xf32>
    %51 = arith.mulf %48, %50 : vector<16x128xf32>
    %c0_33 = arith.constant 0 : index
    %c0_34 = arith.constant 0 : index
    %52 = vector.load %arg5[%c0_33, %c0_34] : memref<1x128xf32, #tpu.memory_space<vmem>>, vector<1x128xf32>
    %53 = vector.broadcast %52 : vector<1x128xf32> to vector<16x128xf32>
    %54 = arith.addf %51, %53 : vector<16x128xf32>
    %cst_35 = arith.constant 0.000000e+00 : f32
    %55 = vector.broadcast %cst_35 : f32 to vector<16x128xf32>
    %56 = arith.maximumf %54, %55 : vector<16x128xf32>
    %57 = arith.truncf %56 : vector<16x128xf32> to vector<16x128xbf16>
    %c0_36 = arith.constant 0 : index
    %c0_37 = arith.constant 0 : index
    %c0_38 = arith.constant 0 : index
    %58 = vector.load %arg6[%c0_36, %c0_37, %c0_38] : memref<1x16x128xbf16, #tpu.memory_space<vmem>>, vector<1x16x128xbf16>
    %59 = vector.shape_cast %58 : vector<1x16x128xbf16> to vector<16x128xbf16>
    %60 = vector.shape_cast %57 : vector<16x128xbf16> to vector<1x16x128xbf16>
    tpu.vector_store %arg6[%c0_36, %c0_37, %c0_38], %60 {strides = array<i32>} : memref<1x16x128xbf16, #tpu.memory_space<vmem>>, vector<1x16x128xbf16>,
    return
  }
  func.func @transform_0(%arg0: i32) -> (i32, i32, i32) {
    %c0_i32 = arith.constant 0 : i32
    %c0_i32_0 = arith.constant 0 : i32
    %c0_i32_1 = arith.constant 0 : i32
    return %arg0, %c0_i32, %c0_i32_0 : i32, i32, i32
  }
  func.func @transform_1(%arg0: i32) -> (i32, i32, i32) {
    %c0_i32 = arith.constant 0 : i32
    %c0_i32_0 = arith.constant 0 : i32
    %c0_i32_1 = arith.constant 0 : i32
    %c0_i32_2 = arith.constant 0 : i32
    return %c0_i32, %c0_i32_0, %c0_i32_1 : i32, i32, i32
  }
  func.func @transform_2(%arg0: i32) -> (i32, i32) {
    %c0_i32 = arith.constant 0 : i32
    %c0_i32_0 = arith.constant 0 : i32
    %c0_i32_1 = arith.constant 0 : i32
    return %c0_i32, %c0_i32_0 : i32, i32
  }
  func.func @transform_3(%arg0: i32) -> (i32, i32) {
    %c0_i32 = arith.constant 0 : i32
    %c0_i32_0 = arith.constant 0 : i32
    %c0_i32_1 = arith.constant 0 : i32
    return %c0_i32, %c0_i32_0 : i32, i32
  }
  func.func @transform_4(%arg0: i32) -> (i32, i32) {
    %c0_i32 = arith.constant 0 : i32
    %c0_i32_0 = arith.constant 0 : i32
    %c0_i32_1 = arith.constant 0 : i32
    return %c0_i32, %c0_i32_0 : i32, i32
  }
  func.func @transform_5(%arg0: i32) -> (i32, i32, i32) {
    %c0_i32 = arith.constant 0 : i32
    %c0_i32_0 = arith.constant 0 : i32
    %c0_i32_1 = arith.constant 0 : i32
    return %arg0, %c0_i32, %c0_i32_0 : i32, i32, i32
  }
}

module attributes {stable_mosaic.version = 11 : i64} {
  func.func @_conv_fused_kernel(%arg0: i32, %arg1: memref<1x24x384xbf16, #tpu.memory_space<vmem>>, %arg2: memref<3x384x128xbf16, #tpu.memory_space<vmem>>, %arg3: memref<1x128xf32, #tpu.memory_space<vmem>>, %arg4: memref<1x128xf32, #tpu.memory_space<vmem>>, %arg5: memref<1x128xf32, #tpu.memory_space<vmem>>, %arg6: memref<1x16x128xbf16, #tpu.memory_space<vmem>>) attributes {dimension_semantics = [#tpu.dimension_semantics<parallel>], iteration_bounds = array<i64: 2>, scalar_prefetch = 0 : i64, scratch_operands = 0 : i64, tpu.core_type = #tpu.core_type<tc>, window_params = [{transform_indices = @transform_0, window_bounds = array<i64: 1, 24, 384>}, {pipeline_mode = #tpu.pipeline_mode<synchronous>, transform_indices = @transform_1, window_bounds = array<i64: 3, 384, 128>}, {pipeline_mode = #tpu.pipeline_mode<synchronous>, transform_indices = @transform_2, window_bounds = array<i64: 1, 128>}, {pipeline_mode = #tpu.pipeline_mode<synchronous>, transform_indices = @transform_3, window_bounds = array<i64: 1, 128>}, {pipeline_mode = #tpu.pipeline_mode<synchronous>, transform_indices = @transform_4, window_bounds = array<i64: 1, 128>}, {transform_indices = @transform_5, window_bounds = array<i64: 1, 16, 128>}]} {
    %cst = arith.constant 0.000000e+00 : f32
    %0 = vector.broadcast %cst : f32 to vector<16x128xf32>
    %c0_i32 = arith.constant 0 : i32
    %c0_i32_0 = arith.constant 0 : i32
    %c0_i32_1 = arith.constant 0 : i32
    %1 = tpu.memref_slice %arg1[%c0_i32, %c0_i32_0, %c0_i32_1] : memref<1x24x384xbf16, #tpu.memory_space<vmem>> -> memref<1x24x384xbf16, #tpu.memory_space<vmem>>
    %2 = tpu.memref_squeeze %1 : memref<1x24x384xbf16, #tpu.memory_space<vmem>> -> memref<24x384xbf16, #tpu.memory_space<vmem>>
    %c0 = arith.constant 0 : index
    %c0_2 = arith.constant 0 : index
    %3 = vector.load %2[%c0, %c0_2] : memref<24x384xbf16, #tpu.memory_space<vmem>>, vector<16x384xbf16>
    %c0_3 = arith.constant 0 : index
    %c0_4 = arith.constant 0 : index
    %c0_5 = arith.constant 0 : index
    %4 = vector.load %arg2[%c0_3, %c0_4, %c0_5] : memref<3x384x128xbf16, #tpu.memory_space<vmem>>, vector<1x384x128xbf16>
    %5 = vector.shape_cast %4 : vector<1x384x128xbf16> to vector<384x128xbf16>
    %cst_6 = arith.constant dense<0.000000e+00> : vector<16x128xf32>
    %6 = tpu.matmul %3, %5, %cst_6 {dimension_numbers = #tpu.dot_dimension_numbers<[1], [0], [0], [1], [0, 0, 1, 1], [], []>} : vector<16x384xbf16>, vector<384x128xbf16>, vector<16x128xf32> -> vector<16x128xf32>
    %7 = arith.addf %0, %6 : vector<16x128xf32>
    %c0_i32_7 = arith.constant 0 : i32
    %c0_i32_8 = arith.constant 0 : i32
    %c0_i32_9 = arith.constant 0 : i32
    %8 = tpu.memref_slice %arg1[%c0_i32_7, %c0_i32_8, %c0_i32_9] : memref<1x24x384xbf16, #tpu.memory_space<vmem>> -> memref<1x24x384xbf16, #tpu.memory_space<vmem>>
    %9 = tpu.memref_squeeze %8 : memref<1x24x384xbf16, #tpu.memory_space<vmem>> -> memref<24x384xbf16, #tpu.memory_space<vmem>>
    %c4 = arith.constant 4 : index
    %c0_10 = arith.constant 0 : index
    %10 = vector.load %9[%c4, %c0_10] : memref<24x384xbf16, #tpu.memory_space<vmem>>, vector<16x384xbf16>
    %c1 = arith.constant 1 : index
    %c0_11 = arith.constant 0 : index
    %c0_12 = arith.constant 0 : index
    %11 = vector.load %arg2[%c1, %c0_11, %c0_12] : memref<3x384x128xbf16, #tpu.memory_space<vmem>>, vector<1x384x128xbf16>
    %12 = vector.shape_cast %11 : vector<1x384x128xbf16> to vector<384x128xbf16>
    %cst_13 = arith.constant dense<0.000000e+00> : vector<16x128xf32>
    %13 = tpu.matmul %10, %12, %cst_13 {dimension_numbers = #tpu.dot_dimension_numbers<[1], [0], [0], [1], [0, 0, 1, 1], [], []>} : vector<16x384xbf16>, vector<384x128xbf16>, vector<16x128xf32> -> vector<16x128xf32>
    %14 = arith.addf %7, %13 : vector<16x128xf32>
    %c0_i32_14 = arith.constant 0 : i32
    %c0_i32_15 = arith.constant 0 : i32
    %c0_i32_16 = arith.constant 0 : i32
    %15 = tpu.memref_slice %arg1[%c0_i32_14, %c0_i32_15, %c0_i32_16] : memref<1x24x384xbf16, #tpu.memory_space<vmem>> -> memref<1x24x384xbf16, #tpu.memory_space<vmem>>
    %16 = tpu.memref_squeeze %15 : memref<1x24x384xbf16, #tpu.memory_space<vmem>> -> memref<24x384xbf16, #tpu.memory_space<vmem>>
    %c8 = arith.constant 8 : index
    %c0_17 = arith.constant 0 : index
    %17 = vector.load %16[%c8, %c0_17] : memref<24x384xbf16, #tpu.memory_space<vmem>>, vector<16x384xbf16>
    %c2 = arith.constant 2 : index
    %c0_18 = arith.constant 0 : index
    %c0_19 = arith.constant 0 : index
    %18 = vector.load %arg2[%c2, %c0_18, %c0_19] : memref<3x384x128xbf16, #tpu.memory_space<vmem>>, vector<1x384x128xbf16>
    %19 = vector.shape_cast %18 : vector<1x384x128xbf16> to vector<384x128xbf16>
    %cst_20 = arith.constant dense<0.000000e+00> : vector<16x128xf32>
    %20 = tpu.matmul %17, %19, %cst_20 {dimension_numbers = #tpu.dot_dimension_numbers<[1], [0], [0], [1], [0, 0, 1, 1], [], []>} : vector<16x384xbf16>, vector<384x128xbf16>, vector<16x128xf32> -> vector<16x128xf32>
    %21 = arith.addf %14, %20 : vector<16x128xf32>
    %c0_21 = arith.constant 0 : index
    %c0_22 = arith.constant 0 : index
    %22 = vector.load %arg3[%c0_21, %c0_22] : memref<1x128xf32, #tpu.memory_space<vmem>>, vector<1x128xf32>
    %23 = vector.broadcast %22 : vector<1x128xf32> to vector<16x128xf32>
    %24 = arith.addf %21, %23 : vector<16x128xf32>
    %cst_23 = arith.constant dense<0.000000e+00> : vector<128xf32>
    %25 = vector.multi_reduction <add>, %24, %cst_23 [0] : vector<16x128xf32> to vector<128xf32>
    %26 = vector.shape_cast %25 : vector<128xf32> to vector<1x128xf32>
    %cst_24 = arith.constant dense<0.000000e+00> : vector<1xf32>
    %27 = vector.multi_reduction <add>, %26, %cst_24 [1] : vector<1x128xf32> to vector<1xf32>
    %28 = vector.shape_cast %27 : vector<1xf32> to vector<1x1xf32>
    %29 = arith.mulf %24, %24 : vector<16x128xf32>
    %cst_25 = arith.constant dense<0.000000e+00> : vector<128xf32>
    %30 = vector.multi_reduction <add>, %29, %cst_25 [0] : vector<16x128xf32> to vector<128xf32>
    %31 = vector.shape_cast %30 : vector<128xf32> to vector<1x128xf32>
    %cst_26 = arith.constant dense<0.000000e+00> : vector<1xf32>
    %32 = vector.multi_reduction <add>, %31, %cst_26 [1] : vector<1x128xf32> to vector<1xf32>
    %33 = vector.shape_cast %32 : vector<1xf32> to vector<1x1xf32>
    %cst_27 = arith.constant 0.001953125 : f32
    %34 = vector.broadcast %cst_27 : f32 to vector<1x1xf32>
    %35 = arith.mulf %28, %34 : vector<1x1xf32>
    %cst_28 = arith.constant 0.001953125 : f32
    %36 = vector.broadcast %cst_28 : f32 to vector<1x1xf32>
    %37 = arith.mulf %33, %36 : vector<1x1xf32>
    %38 = arith.mulf %35, %35 : vector<1x1xf32>
    %39 = arith.subf %37, %38 : vector<1x1xf32>
    %cst_29 = arith.constant 0.000000e+00 : f32
    %40 = vector.broadcast %cst_29 : f32 to vector<1x1xf32>
    %41 = arith.maximumf %39, %40 : vector<1x1xf32>
    %cst_30 = arith.constant 9.99999974E-6 : f32
    %42 = vector.broadcast %cst_30 : f32 to vector<1x1xf32>
    %43 = arith.addf %41, %42 : vector<1x1xf32>
    %44 = math.rsqrt %43 : vector<1x1xf32>
    %45 = vector.broadcast %35 : vector<1x1xf32> to vector<16x128xf32>
    %46 = arith.subf %24, %45 : vector<16x128xf32>
    %47 = vector.broadcast %44 : vector<1x1xf32> to vector<16x128xf32>
    %48 = arith.mulf %46, %47 : vector<16x128xf32>
    %c0_31 = arith.constant 0 : index
    %c0_32 = arith.constant 0 : index
    %49 = vector.load %arg4[%c0_31, %c0_32] : memref<1x128xf32, #tpu.memory_space<vmem>>, vector<1x128xf32>
    %50 = vector.broadcast %49 : vector<1x128xf32> to vector<16x128xf32>
    %51 = arith.mulf %48, %50 : vector<16x128xf32>
    %c0_33 = arith.constant 0 : index
    %c0_34 = arith.constant 0 : index
    %52 = vector.load %arg5[%c0_33, %c0_34] : memref<1x128xf32, #tpu.memory_space<vmem>>, vector<1x128xf32>
    %53 = vector.broadcast %52 : vector<1x128xf32> to vector<16x128xf32>
    %54 = arith.addf %51, %53 : vector<16x128xf32>
    %cst_35 = arith.constant 0.000000e+00 : f32
    %55 = vector.broadcast %cst_35 : f32 to vector<16x128xf32>
    %56 = arith.maximumf %54, %55 : vector<16x128xf32>
    %57 = arith.truncf %56 : vector<16x128xf32> to vector<16x128xbf16>
    %c0_36 = arith.constant 0 : index
    %c0_37 = arith.constant 0 : index
    %c0_38 = arith.constant 0 : index
    %58 = vector.load %arg6[%c0_36, %c0_37, %c0_38] : memref<1x16x128xbf16, #tpu.memory_space<vmem>>, vector<1x16x128xbf16>
    %59 = vector.shape_cast %58 : vector<1x16x128xbf16> to vector<16x128xbf16>
    %60 = vector.shape_cast %57 : vector<16x128xbf16> to vector<1x16x128xbf16>
    tpu.vector_store %arg6[%c0_36, %c0_37, %c0_38], %60 {strides = array<i32>} : memref<1x16x128xbf16, #tpu.memory_space<vmem>>, vector<1x16x128xbf16>,
    return
  }
  func.func @transform_0(%arg0: i32) -> (i32, i32, i32) {
    %c0_i32 = arith.constant 0 : i32
    %c0_i32_0 = arith.constant 0 : i32
    %c0_i32_1 = arith.constant 0 : i32
    return %arg0, %c0_i32, %c0_i32_0 : i32, i32, i32
  }
  func.func @transform_1(%arg0: i32) -> (i32, i32, i32) {
    %c0_i32 = arith.constant 0 : i32
    %c0_i32_0 = arith.constant 0 : i32
    %c0_i32_1 = arith.constant 0 : i32
    %c0_i32_2 = arith.constant 0 : i32
    return %c0_i32, %c0_i32_0, %c0_i32_1 : i32, i32, i32
  }
  func.func @transform_2(%arg0: i32) -> (i32, i32) {
    %c0_i32 = arith.constant 0 : i32
    %c0_i32_0 = arith.constant 0 : i32
    %c0_i32_1 = arith.constant 0 : i32
    return %c0_i32, %c0_i32_0 : i32, i32
  }
  func.func @transform_3(%arg0: i32) -> (i32, i32) {
    %c0_i32 = arith.constant 0 : i32
    %c0_i32_0 = arith.constant 0 : i32
    %c0_i32_1 = arith.constant 0 : i32
    return %c0_i32, %c0_i32_0 : i32, i32
  }
  func.func @transform_4(%arg0: i32) -> (i32, i32) {
    %c0_i32 = arith.constant 0 : i32
    %c0_i32_0 = arith.constant 0 : i32
    %c0_i32_1 = arith.constant 0 : i32
    return %c0_i32, %c0_i32_0 : i32, i32
  }
  func.func @transform_5(%arg0: i32) -> (i32, i32, i32) {
    %c0_i32 = arith.constant 0 : i32
    %c0_i32_0 = arith.constant 0 : i32
    %c0_i32_1 = arith.constant 0 : i32
    return %arg0, %c0_i32, %c0_i32_0 : i32, i32, i32
  }
}

module attributes {stable_mosaic.version = 11 : i64} {
  func.func @_conv_fused_kernel(%arg0: i32, %arg1: memref<1x80x256xbf16, #tpu.memory_space<vmem>>, %arg2: memref<3x256x128xbf16, #tpu.memory_space<vmem>>, %arg3: memref<1x128xf32, #tpu.memory_space<vmem>>, %arg4: memref<1x128xf32, #tpu.memory_space<vmem>>, %arg5: memref<1x128xf32, #tpu.memory_space<vmem>>, %arg6: memref<1x64x128xbf16, #tpu.memory_space<vmem>>) attributes {dimension_semantics = [#tpu.dimension_semantics<parallel>], iteration_bounds = array<i64: 2>, scalar_prefetch = 0 : i64, scratch_operands = 0 : i64, tpu.core_type = #tpu.core_type<tc>, window_params = [{transform_indices = @transform_0, window_bounds = array<i64: 1, 80, 256>}, {pipeline_mode = #tpu.pipeline_mode<synchronous>, transform_indices = @transform_1, window_bounds = array<i64: 3, 256, 128>}, {pipeline_mode = #tpu.pipeline_mode<synchronous>, transform_indices = @transform_2, window_bounds = array<i64: 1, 128>}, {pipeline_mode = #tpu.pipeline_mode<synchronous>, transform_indices = @transform_3, window_bounds = array<i64: 1, 128>}, {pipeline_mode = #tpu.pipeline_mode<synchronous>, transform_indices = @transform_4, window_bounds = array<i64: 1, 128>}, {transform_indices = @transform_5, window_bounds = array<i64: 1, 64, 128>}]} {
    %cst = arith.constant 0.000000e+00 : f32
    %0 = vector.broadcast %cst : f32 to vector<64x128xf32>
    %c0_i32 = arith.constant 0 : i32
    %c0_i32_0 = arith.constant 0 : i32
    %c0_i32_1 = arith.constant 0 : i32
    %1 = tpu.memref_slice %arg1[%c0_i32, %c0_i32_0, %c0_i32_1] : memref<1x80x256xbf16, #tpu.memory_space<vmem>> -> memref<1x80x256xbf16, #tpu.memory_space<vmem>>
    %2 = tpu.memref_squeeze %1 : memref<1x80x256xbf16, #tpu.memory_space<vmem>> -> memref<80x256xbf16, #tpu.memory_space<vmem>>
    %c0 = arith.constant 0 : index
    %c0_2 = arith.constant 0 : index
    %3 = vector.load %2[%c0, %c0_2] : memref<80x256xbf16, #tpu.memory_space<vmem>>, vector<64x256xbf16>
    %c0_3 = arith.constant 0 : index
    %c0_4 = arith.constant 0 : index
    %c0_5 = arith.constant 0 : index
    %4 = vector.load %arg2[%c0_3, %c0_4, %c0_5] : memref<3x256x128xbf16, #tpu.memory_space<vmem>>, vector<1x256x128xbf16>
    %5 = vector.shape_cast %4 : vector<1x256x128xbf16> to vector<256x128xbf16>
    %cst_6 = arith.constant dense<0.000000e+00> : vector<64x128xf32>
    %6 = tpu.matmul %3, %5, %cst_6 {dimension_numbers = #tpu.dot_dimension_numbers<[1], [0], [0], [1], [0, 0, 1, 1], [], []>} : vector<64x256xbf16>, vector<256x128xbf16>, vector<64x128xf32> -> vector<64x128xf32>
    %7 = arith.addf %0, %6 : vector<64x128xf32>
    %c0_i32_7 = arith.constant 0 : i32
    %c0_i32_8 = arith.constant 0 : i32
    %c0_i32_9 = arith.constant 0 : i32
    %8 = tpu.memref_slice %arg1[%c0_i32_7, %c0_i32_8, %c0_i32_9] : memref<1x80x256xbf16, #tpu.memory_space<vmem>> -> memref<1x80x256xbf16, #tpu.memory_space<vmem>>
    %9 = tpu.memref_squeeze %8 : memref<1x80x256xbf16, #tpu.memory_space<vmem>> -> memref<80x256xbf16, #tpu.memory_space<vmem>>
    %c8 = arith.constant 8 : index
    %c0_10 = arith.constant 0 : index
    %10 = vector.load %9[%c8, %c0_10] : memref<80x256xbf16, #tpu.memory_space<vmem>>, vector<64x256xbf16>
    %c1 = arith.constant 1 : index
    %c0_11 = arith.constant 0 : index
    %c0_12 = arith.constant 0 : index
    %11 = vector.load %arg2[%c1, %c0_11, %c0_12] : memref<3x256x128xbf16, #tpu.memory_space<vmem>>, vector<1x256x128xbf16>
    %12 = vector.shape_cast %11 : vector<1x256x128xbf16> to vector<256x128xbf16>
    %cst_13 = arith.constant dense<0.000000e+00> : vector<64x128xf32>
    %13 = tpu.matmul %10, %12, %cst_13 {dimension_numbers = #tpu.dot_dimension_numbers<[1], [0], [0], [1], [0, 0, 1, 1], [], []>} : vector<64x256xbf16>, vector<256x128xbf16>, vector<64x128xf32> -> vector<64x128xf32>
    %14 = arith.addf %7, %13 : vector<64x128xf32>
    %c0_i32_14 = arith.constant 0 : i32
    %c0_i32_15 = arith.constant 0 : i32
    %c0_i32_16 = arith.constant 0 : i32
    %15 = tpu.memref_slice %arg1[%c0_i32_14, %c0_i32_15, %c0_i32_16] : memref<1x80x256xbf16, #tpu.memory_space<vmem>> -> memref<1x80x256xbf16, #tpu.memory_space<vmem>>
    %16 = tpu.memref_squeeze %15 : memref<1x80x256xbf16, #tpu.memory_space<vmem>> -> memref<80x256xbf16, #tpu.memory_space<vmem>>
    %c16 = arith.constant 16 : index
    %c0_17 = arith.constant 0 : index
    %17 = vector.load %16[%c16, %c0_17] : memref<80x256xbf16, #tpu.memory_space<vmem>>, vector<64x256xbf16>
    %c2 = arith.constant 2 : index
    %c0_18 = arith.constant 0 : index
    %c0_19 = arith.constant 0 : index
    %18 = vector.load %arg2[%c2, %c0_18, %c0_19] : memref<3x256x128xbf16, #tpu.memory_space<vmem>>, vector<1x256x128xbf16>
    %19 = vector.shape_cast %18 : vector<1x256x128xbf16> to vector<256x128xbf16>
    %cst_20 = arith.constant dense<0.000000e+00> : vector<64x128xf32>
    %20 = tpu.matmul %17, %19, %cst_20 {dimension_numbers = #tpu.dot_dimension_numbers<[1], [0], [0], [1], [0, 0, 1, 1], [], []>} : vector<64x256xbf16>, vector<256x128xbf16>, vector<64x128xf32> -> vector<64x128xf32>
    %21 = arith.addf %14, %20 : vector<64x128xf32>
    %c0_21 = arith.constant 0 : index
    %c0_22 = arith.constant 0 : index
    %22 = vector.load %arg3[%c0_21, %c0_22] : memref<1x128xf32, #tpu.memory_space<vmem>>, vector<1x128xf32>
    %23 = vector.broadcast %22 : vector<1x128xf32> to vector<64x128xf32>
    %24 = arith.addf %21, %23 : vector<64x128xf32>
    %cst_23 = arith.constant dense<0.000000e+00> : vector<128xf32>
    %25 = vector.multi_reduction <add>, %24, %cst_23 [0] : vector<64x128xf32> to vector<128xf32>
    %26 = vector.shape_cast %25 : vector<128xf32> to vector<1x128xf32>
    %cst_24 = arith.constant dense<0.000000e+00> : vector<1xf32>
    %27 = vector.multi_reduction <add>, %26, %cst_24 [1] : vector<1x128xf32> to vector<1xf32>
    %28 = vector.shape_cast %27 : vector<1xf32> to vector<1x1xf32>
    %29 = arith.mulf %24, %24 : vector<64x128xf32>
    %cst_25 = arith.constant dense<0.000000e+00> : vector<128xf32>
    %30 = vector.multi_reduction <add>, %29, %cst_25 [0] : vector<64x128xf32> to vector<128xf32>
    %31 = vector.shape_cast %30 : vector<128xf32> to vector<1x128xf32>
    %cst_26 = arith.constant dense<0.000000e+00> : vector<1xf32>
    %32 = vector.multi_reduction <add>, %31, %cst_26 [1] : vector<1x128xf32> to vector<1xf32>
    %33 = vector.shape_cast %32 : vector<1xf32> to vector<1x1xf32>
    %cst_27 = arith.constant 9.765625E-4 : f32
    %34 = vector.broadcast %cst_27 : f32 to vector<1x1xf32>
    %35 = arith.mulf %28, %34 : vector<1x1xf32>
    %cst_28 = arith.constant 9.765625E-4 : f32
    %36 = vector.broadcast %cst_28 : f32 to vector<1x1xf32>
    %37 = arith.mulf %33, %36 : vector<1x1xf32>
    %38 = arith.mulf %35, %35 : vector<1x1xf32>
    %39 = arith.subf %37, %38 : vector<1x1xf32>
    %cst_29 = arith.constant 0.000000e+00 : f32
    %40 = vector.broadcast %cst_29 : f32 to vector<1x1xf32>
    %41 = arith.maximumf %39, %40 : vector<1x1xf32>
    %cst_30 = arith.constant 9.99999974E-6 : f32
    %42 = vector.broadcast %cst_30 : f32 to vector<1x1xf32>
    %43 = arith.addf %41, %42 : vector<1x1xf32>
    %44 = math.rsqrt %43 : vector<1x1xf32>
    %45 = vector.broadcast %35 : vector<1x1xf32> to vector<64x128xf32>
    %46 = arith.subf %24, %45 : vector<64x128xf32>
    %47 = vector.broadcast %44 : vector<1x1xf32> to vector<64x128xf32>
    %48 = arith.mulf %46, %47 : vector<64x128xf32>
    %c0_31 = arith.constant 0 : index
    %c0_32 = arith.constant 0 : index
    %49 = vector.load %arg4[%c0_31, %c0_32] : memref<1x128xf32, #tpu.memory_space<vmem>>, vector<1x128xf32>
    %50 = vector.broadcast %49 : vector<1x128xf32> to vector<64x128xf32>
    %51 = arith.mulf %48, %50 : vector<64x128xf32>
    %c0_33 = arith.constant 0 : index
    %c0_34 = arith.constant 0 : index
    %52 = vector.load %arg5[%c0_33, %c0_34] : memref<1x128xf32, #tpu.memory_space<vmem>>, vector<1x128xf32>
    %53 = vector.broadcast %52 : vector<1x128xf32> to vector<64x128xf32>
    %54 = arith.addf %51, %53 : vector<64x128xf32>
    %cst_35 = arith.constant 0.000000e+00 : f32
    %55 = vector.broadcast %cst_35 : f32 to vector<64x128xf32>
    %56 = arith.maximumf %54, %55 : vector<64x128xf32>
    %57 = arith.truncf %56 : vector<64x128xf32> to vector<64x128xbf16>
    %c0_36 = arith.constant 0 : index
    %c0_37 = arith.constant 0 : index
    %c0_38 = arith.constant 0 : index
    %58 = vector.load %arg6[%c0_36, %c0_37, %c0_38] : memref<1x64x128xbf16, #tpu.memory_space<vmem>>, vector<1x64x128xbf16>
    %59 = vector.shape_cast %58 : vector<1x64x128xbf16> to vector<64x128xbf16>
    %60 = vector.shape_cast %57 : vector<64x128xbf16> to vector<1x64x128xbf16>
    tpu.vector_store %arg6[%c0_36, %c0_37, %c0_38], %60 {strides = array<i32>} : memref<1x64x128xbf16, #tpu.memory_space<vmem>>, vector<1x64x128xbf16>,
    return
  }
  func.func @transform_0(%arg0: i32) -> (i32, i32, i32) {
    %c0_i32 = arith.constant 0 : i32
    %c0_i32_0 = arith.constant 0 : i32
    %c0_i32_1 = arith.constant 0 : i32
    return %arg0, %c0_i32, %c0_i32_0 : i32, i32, i32
  }
  func.func @transform_1(%arg0: i32) -> (i32, i32, i32) {
    %c0_i32 = arith.constant 0 : i32
    %c0_i32_0 = arith.constant 0 : i32
    %c0_i32_1 = arith.constant 0 : i32
    %c0_i32_2 = arith.constant 0 : i32
    return %c0_i32, %c0_i32_0, %c0_i32_1 : i32, i32, i32
  }
  func.func @transform_2(%arg0: i32) -> (i32, i32) {
    %c0_i32 = arith.constant 0 : i32
    %c0_i32_0 = arith.constant 0 : i32
    %c0_i32_1 = arith.constant 0 : i32
    return %c0_i32, %c0_i32_0 : i32, i32
  }
  func.func @transform_3(%arg0: i32) -> (i32, i32) {
    %c0_i32 = arith.constant 0 : i32
    %c0_i32_0 = arith.constant 0 : i32
    %c0_i32_1 = arith.constant 0 : i32
    return %c0_i32, %c0_i32_0 : i32, i32
  }
  func.func @transform_4(%arg0: i32) -> (i32, i32) {
    %c0_i32 = arith.constant 0 : i32
    %c0_i32_0 = arith.constant 0 : i32
    %c0_i32_1 = arith.constant 0 : i32
    return %c0_i32, %c0_i32_0 : i32, i32
  }
  func.func @transform_5(%arg0: i32) -> (i32, i32, i32) {
    %c0_i32 = arith.constant 0 : i32
    %c0_i32_0 = arith.constant 0 : i32
    %c0_i32_1 = arith.constant 0 : i32
    return %arg0, %c0_i32, %c0_i32_0 : i32, i32, i32
  }
}

module attributes {stable_mosaic.version = 11 : i64} {
  func.func @_conv_fused_kernel(%arg0: i32, %arg1: memref<1x288x128xbf16, #tpu.memory_space<vmem>>, %arg2: memref<3x128x128xbf16, #tpu.memory_space<vmem>>, %arg3: memref<1x128xf32, #tpu.memory_space<vmem>>, %arg4: memref<1x128xf32, #tpu.memory_space<vmem>>, %arg5: memref<1x128xf32, #tpu.memory_space<vmem>>, %arg6: memref<1x256x128xbf16, #tpu.memory_space<vmem>>) attributes {dimension_semantics = [#tpu.dimension_semantics<parallel>], iteration_bounds = array<i64: 2>, scalar_prefetch = 0 : i64, scratch_operands = 0 : i64, tpu.core_type = #tpu.core_type<tc>, window_params = [{transform_indices = @transform_0, window_bounds = array<i64: 1, 288, 128>}, {pipeline_mode = #tpu.pipeline_mode<synchronous>, transform_indices = @transform_1, window_bounds = array<i64: 3, 128, 128>}, {pipeline_mode = #tpu.pipeline_mode<synchronous>, transform_indices = @transform_2, window_bounds = array<i64: 1, 128>}, {pipeline_mode = #tpu.pipeline_mode<synchronous>, transform_indices = @transform_3, window_bounds = array<i64: 1, 128>}, {pipeline_mode = #tpu.pipeline_mode<synchronous>, transform_indices = @transform_4, window_bounds = array<i64: 1, 128>}, {transform_indices = @transform_5, window_bounds = array<i64: 1, 256, 128>}]} {
    %cst = arith.constant 0.000000e+00 : f32
    %0 = vector.broadcast %cst : f32 to vector<256x128xf32>
    %c0_i32 = arith.constant 0 : i32
    %c0_i32_0 = arith.constant 0 : i32
    %c0_i32_1 = arith.constant 0 : i32
    %1 = tpu.memref_slice %arg1[%c0_i32, %c0_i32_0, %c0_i32_1] : memref<1x288x128xbf16, #tpu.memory_space<vmem>> -> memref<1x288x128xbf16, #tpu.memory_space<vmem>>
    %2 = tpu.memref_squeeze %1 : memref<1x288x128xbf16, #tpu.memory_space<vmem>> -> memref<288x128xbf16, #tpu.memory_space<vmem>>
    %c0 = arith.constant 0 : index
    %c0_2 = arith.constant 0 : index
    %3 = vector.load %2[%c0, %c0_2] : memref<288x128xbf16, #tpu.memory_space<vmem>>, vector<256x128xbf16>
    %c0_3 = arith.constant 0 : index
    %c0_4 = arith.constant 0 : index
    %c0_5 = arith.constant 0 : index
    %4 = vector.load %arg2[%c0_3, %c0_4, %c0_5] : memref<3x128x128xbf16, #tpu.memory_space<vmem>>, vector<1x128x128xbf16>
    %5 = vector.shape_cast %4 : vector<1x128x128xbf16> to vector<128x128xbf16>
    %cst_6 = arith.constant dense<0.000000e+00> : vector<256x128xf32>
    %6 = tpu.matmul %3, %5, %cst_6 {dimension_numbers = #tpu.dot_dimension_numbers<[1], [0], [0], [1], [0, 0, 1, 1], [], []>} : vector<256x128xbf16>, vector<128x128xbf16>, vector<256x128xf32> -> vector<256x128xf32>
    %7 = arith.addf %0, %6 : vector<256x128xf32>
    %c0_i32_7 = arith.constant 0 : i32
    %c0_i32_8 = arith.constant 0 : i32
    %c0_i32_9 = arith.constant 0 : i32
    %8 = tpu.memref_slice %arg1[%c0_i32_7, %c0_i32_8, %c0_i32_9] : memref<1x288x128xbf16, #tpu.memory_space<vmem>> -> memref<1x288x128xbf16, #tpu.memory_space<vmem>>
    %9 = tpu.memref_squeeze %8 : memref<1x288x128xbf16, #tpu.memory_space<vmem>> -> memref<288x128xbf16, #tpu.memory_space<vmem>>
    %c16 = arith.constant 16 : index
    %c0_10 = arith.constant 0 : index
    %10 = vector.load %9[%c16, %c0_10] : memref<288x128xbf16, #tpu.memory_space<vmem>>, vector<256x128xbf16>
    %c1 = arith.constant 1 : index
    %c0_11 = arith.constant 0 : index
    %c0_12 = arith.constant 0 : index
    %11 = vector.load %arg2[%c1, %c0_11, %c0_12] : memref<3x128x128xbf16, #tpu.memory_space<vmem>>, vector<1x128x128xbf16>
    %12 = vector.shape_cast %11 : vector<1x128x128xbf16> to vector<128x128xbf16>
    %cst_13 = arith.constant dense<0.000000e+00> : vector<256x128xf32>
    %13 = tpu.matmul %10, %12, %cst_13 {dimension_numbers = #tpu.dot_dimension_numbers<[1], [0], [0], [1], [0, 0, 1, 1], [], []>} : vector<256x128xbf16>, vector<128x128xbf16>, vector<256x128xf32> -> vector<256x128xf32>
    %14 = arith.addf %7, %13 : vector<256x128xf32>
    %c0_i32_14 = arith.constant 0 : i32
    %c0_i32_15 = arith.constant 0 : i32
    %c0_i32_16 = arith.constant 0 : i32
    %15 = tpu.memref_slice %arg1[%c0_i32_14, %c0_i32_15, %c0_i32_16] : memref<1x288x128xbf16, #tpu.memory_space<vmem>> -> memref<1x288x128xbf16, #tpu.memory_space<vmem>>
    %16 = tpu.memref_squeeze %15 : memref<1x288x128xbf16, #tpu.memory_space<vmem>> -> memref<288x128xbf16, #tpu.memory_space<vmem>>
    %c32 = arith.constant 32 : index
    %c0_17 = arith.constant 0 : index
    %17 = vector.load %16[%c32, %c0_17] : memref<288x128xbf16, #tpu.memory_space<vmem>>, vector<256x128xbf16>
    %c2 = arith.constant 2 : index
    %c0_18 = arith.constant 0 : index
    %c0_19 = arith.constant 0 : index
    %18 = vector.load %arg2[%c2, %c0_18, %c0_19] : memref<3x128x128xbf16, #tpu.memory_space<vmem>>, vector<1x128x128xbf16>
    %19 = vector.shape_cast %18 : vector<1x128x128xbf16> to vector<128x128xbf16>
    %cst_20 = arith.constant dense<0.000000e+00> : vector<256x128xf32>
    %20 = tpu.matmul %17, %19, %cst_20 {dimension_numbers = #tpu.dot_dimension_numbers<[1], [0], [0], [1], [0, 0, 1, 1], [], []>} : vector<256x128xbf16>, vector<128x128xbf16>, vector<256x128xf32> -> vector<256x128xf32>
    %21 = arith.addf %14, %20 : vector<256x128xf32>
    %c0_21 = arith.constant 0 : index
    %c0_22 = arith.constant 0 : index
    %22 = vector.load %arg3[%c0_21, %c0_22] : memref<1x128xf32, #tpu.memory_space<vmem>>, vector<1x128xf32>
    %23 = vector.broadcast %22 : vector<1x128xf32> to vector<256x128xf32>
    %24 = arith.addf %21, %23 : vector<256x128xf32>
    %cst_23 = arith.constant dense<0.000000e+00> : vector<128xf32>
    %25 = vector.multi_reduction <add>, %24, %cst_23 [0] : vector<256x128xf32> to vector<128xf32>
    %26 = vector.shape_cast %25 : vector<128xf32> to vector<1x128xf32>
    %cst_24 = arith.constant dense<0.000000e+00> : vector<1xf32>
    %27 = vector.multi_reduction <add>, %26, %cst_24 [1] : vector<1x128xf32> to vector<1xf32>
    %28 = vector.shape_cast %27 : vector<1xf32> to vector<1x1xf32>
    %29 = arith.mulf %24, %24 : vector<256x128xf32>
    %cst_25 = arith.constant dense<0.000000e+00> : vector<128xf32>
    %30 = vector.multi_reduction <add>, %29, %cst_25 [0] : vector<256x128xf32> to vector<128xf32>
    %31 = vector.shape_cast %30 : vector<128xf32> to vector<1x128xf32>
    %cst_26 = arith.constant dense<0.000000e+00> : vector<1xf32>
    %32 = vector.multi_reduction <add>, %31, %cst_26 [1] : vector<1x128xf32> to vector<1xf32>
    %33 = vector.shape_cast %32 : vector<1xf32> to vector<1x1xf32>
    %cst_27 = arith.constant 4.8828125E-4 : f32
    %34 = vector.broadcast %cst_27 : f32 to vector<1x1xf32>
    %35 = arith.mulf %28, %34 : vector<1x1xf32>
    %cst_28 = arith.constant 4.8828125E-4 : f32
    %36 = vector.broadcast %cst_28 : f32 to vector<1x1xf32>
    %37 = arith.mulf %33, %36 : vector<1x1xf32>
    %38 = arith.mulf %35, %35 : vector<1x1xf32>
    %39 = arith.subf %37, %38 : vector<1x1xf32>
    %cst_29 = arith.constant 0.000000e+00 : f32
    %40 = vector.broadcast %cst_29 : f32 to vector<1x1xf32>
    %41 = arith.maximumf %39, %40 : vector<1x1xf32>
    %cst_30 = arith.constant 9.99999974E-6 : f32
    %42 = vector.broadcast %cst_30 : f32 to vector<1x1xf32>
    %43 = arith.addf %41, %42 : vector<1x1xf32>
    %44 = math.rsqrt %43 : vector<1x1xf32>
    %45 = vector.broadcast %35 : vector<1x1xf32> to vector<256x128xf32>
    %46 = arith.subf %24, %45 : vector<256x128xf32>
    %47 = vector.broadcast %44 : vector<1x1xf32> to vector<256x128xf32>
    %48 = arith.mulf %46, %47 : vector<256x128xf32>
    %c0_31 = arith.constant 0 : index
    %c0_32 = arith.constant 0 : index
    %49 = vector.load %arg4[%c0_31, %c0_32] : memref<1x128xf32, #tpu.memory_space<vmem>>, vector<1x128xf32>
    %50 = vector.broadcast %49 : vector<1x128xf32> to vector<256x128xf32>
    %51 = arith.mulf %48, %50 : vector<256x128xf32>
    %c0_33 = arith.constant 0 : index
    %c0_34 = arith.constant 0 : index
    %52 = vector.load %arg5[%c0_33, %c0_34] : memref<1x128xf32, #tpu.memory_space<vmem>>, vector<1x128xf32>
    %53 = vector.broadcast %52 : vector<1x128xf32> to vector<256x128xf32>
    %54 = arith.addf %51, %53 : vector<256x128xf32>
    %cst_35 = arith.constant 0.000000e+00 : f32
    %55 = vector.broadcast %cst_35 : f32 to vector<256x128xf32>
    %56 = arith.maximumf %54, %55 : vector<256x128xf32>
    %57 = arith.truncf %56 : vector<256x128xf32> to vector<256x128xbf16>
    %c0_36 = arith.constant 0 : index
    %c0_37 = arith.constant 0 : index
    %c0_38 = arith.constant 0 : index
    %58 = vector.load %arg6[%c0_36, %c0_37, %c0_38] : memref<1x256x128xbf16, #tpu.memory_space<vmem>>, vector<1x256x128xbf16>
    %59 = vector.shape_cast %58 : vector<1x256x128xbf16> to vector<256x128xbf16>
    %60 = vector.shape_cast %57 : vector<256x128xbf16> to vector<1x256x128xbf16>
    tpu.vector_store %arg6[%c0_36, %c0_37, %c0_38], %60 {strides = array<i32>} : memref<1x256x128xbf16, #tpu.memory_space<vmem>>, vector<1x256x128xbf16>,
    return
  }
  func.func @transform_0(%arg0: i32) -> (i32, i32, i32) {
    %c0_i32 = arith.constant 0 : i32
    %c0_i32_0 = arith.constant 0 : i32
    %c0_i32_1 = arith.constant 0 : i32
    return %arg0, %c0_i32, %c0_i32_0 : i32, i32, i32
  }
  func.func @transform_1(%arg0: i32) -> (i32, i32, i32) {
    %c0_i32 = arith.constant 0 : i32
    %c0_i32_0 = arith.constant 0 : i32
    %c0_i32_1 = arith.constant 0 : i32
    %c0_i32_2 = arith.constant 0 : i32
    return %c0_i32, %c0_i32_0, %c0_i32_1 : i32, i32, i32
  }
  func.func @transform_2(%arg0: i32) -> (i32, i32) {
    %c0_i32 = arith.constant 0 : i32
    %c0_i32_0 = arith.constant 0 : i32
    %c0_i32_1 = arith.constant 0 : i32
    return %c0_i32, %c0_i32_0 : i32, i32
  }
  func.func @transform_3(%arg0: i32) -> (i32, i32) {
    %c0_i32 = arith.constant 0 : i32
    %c0_i32_0 = arith.constant 0 : i32
    %c0_i32_1 = arith.constant 0 : i32
    return %c0_i32, %c0_i32_0 : i32, i32
  }
  func.func @transform_4(%arg0: i32) -> (i32, i32) {
    %c0_i32 = arith.constant 0 : i32
    %c0_i32_0 = arith.constant 0 : i32
    %c0_i32_1 = arith.constant 0 : i32
    return %c0_i32, %c0_i32_0 : i32, i32
  }
  func.func @transform_5(%arg0: i32) -> (i32, i32, i32) {
    %c0_i32 = arith.constant 0 : i32
    %c0_i32_0 = arith.constant 0 : i32
    %c0_i32_1 = arith.constant 0 : i32
    return %arg0, %c0_i32, %c0_i32_0 : i32, i32, i32
  }
}

module attributes {stable_mosaic.version = 11 : i64} {
  func.func @_conv_fused_kernel(%arg0: i32, %arg1: memref<1x288x128xbf16, #tpu.memory_space<vmem>>, %arg2: memref<3x128x128xbf16, #tpu.memory_space<vmem>>, %arg3: memref<1x128xf32, #tpu.memory_space<vmem>>, %arg4: memref<1x128xf32, #tpu.memory_space<vmem>>, %arg5: memref<1x128xf32, #tpu.memory_space<vmem>>, %arg6: memref<1x256x128xbf16, #tpu.memory_space<vmem>>) attributes {dimension_semantics = [#tpu.dimension_semantics<parallel>], iteration_bounds = array<i64: 2>, scalar_prefetch = 0 : i64, scratch_operands = 0 : i64, tpu.core_type = #tpu.core_type<tc>, window_params = [{transform_indices = @transform_0, window_bounds = array<i64: 1, 288, 128>}, {pipeline_mode = #tpu.pipeline_mode<synchronous>, transform_indices = @transform_1, window_bounds = array<i64: 3, 128, 128>}, {pipeline_mode = #tpu.pipeline_mode<synchronous>, transform_indices = @transform_2, window_bounds = array<i64: 1, 128>}, {pipeline_mode = #tpu.pipeline_mode<synchronous>, transform_indices = @transform_3, window_bounds = array<i64: 1, 128>}, {pipeline_mode = #tpu.pipeline_mode<synchronous>, transform_indices = @transform_4, window_bounds = array<i64: 1, 128>}, {transform_indices = @transform_5, window_bounds = array<i64: 1, 256, 128>}]} {
    %cst = arith.constant 0.000000e+00 : f32
    %0 = vector.broadcast %cst : f32 to vector<256x128xf32>
    %c0_i32 = arith.constant 0 : i32
    %c0_i32_0 = arith.constant 0 : i32
    %c0_i32_1 = arith.constant 0 : i32
    %1 = tpu.memref_slice %arg1[%c0_i32, %c0_i32_0, %c0_i32_1] : memref<1x288x128xbf16, #tpu.memory_space<vmem>> -> memref<1x288x128xbf16, #tpu.memory_space<vmem>>
    %2 = tpu.memref_squeeze %1 : memref<1x288x128xbf16, #tpu.memory_space<vmem>> -> memref<288x128xbf16, #tpu.memory_space<vmem>>
    %c0 = arith.constant 0 : index
    %c0_2 = arith.constant 0 : index
    %3 = vector.load %2[%c0, %c0_2] : memref<288x128xbf16, #tpu.memory_space<vmem>>, vector<256x128xbf16>
    %c0_3 = arith.constant 0 : index
    %c0_4 = arith.constant 0 : index
    %c0_5 = arith.constant 0 : index
    %4 = vector.load %arg2[%c0_3, %c0_4, %c0_5] : memref<3x128x128xbf16, #tpu.memory_space<vmem>>, vector<1x128x128xbf16>
    %5 = vector.shape_cast %4 : vector<1x128x128xbf16> to vector<128x128xbf16>
    %cst_6 = arith.constant dense<0.000000e+00> : vector<256x128xf32>
    %6 = tpu.matmul %3, %5, %cst_6 {dimension_numbers = #tpu.dot_dimension_numbers<[1], [0], [0], [1], [0, 0, 1, 1], [], []>} : vector<256x128xbf16>, vector<128x128xbf16>, vector<256x128xf32> -> vector<256x128xf32>
    %7 = arith.addf %0, %6 : vector<256x128xf32>
    %c0_i32_7 = arith.constant 0 : i32
    %c0_i32_8 = arith.constant 0 : i32
    %c0_i32_9 = arith.constant 0 : i32
    %8 = tpu.memref_slice %arg1[%c0_i32_7, %c0_i32_8, %c0_i32_9] : memref<1x288x128xbf16, #tpu.memory_space<vmem>> -> memref<1x288x128xbf16, #tpu.memory_space<vmem>>
    %9 = tpu.memref_squeeze %8 : memref<1x288x128xbf16, #tpu.memory_space<vmem>> -> memref<288x128xbf16, #tpu.memory_space<vmem>>
    %c16 = arith.constant 16 : index
    %c0_10 = arith.constant 0 : index
    %10 = vector.load %9[%c16, %c0_10] : memref<288x128xbf16, #tpu.memory_space<vmem>>, vector<256x128xbf16>
    %c1 = arith.constant 1 : index
    %c0_11 = arith.constant 0 : index
    %c0_12 = arith.constant 0 : index
    %11 = vector.load %arg2[%c1, %c0_11, %c0_12] : memref<3x128x128xbf16, #tpu.memory_space<vmem>>, vector<1x128x128xbf16>
    %12 = vector.shape_cast %11 : vector<1x128x128xbf16> to vector<128x128xbf16>
    %cst_13 = arith.constant dense<0.000000e+00> : vector<256x128xf32>
    %13 = tpu.matmul %10, %12, %cst_13 {dimension_numbers = #tpu.dot_dimension_numbers<[1], [0], [0], [1], [0, 0, 1, 1], [], []>} : vector<256x128xbf16>, vector<128x128xbf16>, vector<256x128xf32> -> vector<256x128xf32>
    %14 = arith.addf %7, %13 : vector<256x128xf32>
    %c0_i32_14 = arith.constant 0 : i32
    %c0_i32_15 = arith.constant 0 : i32
    %c0_i32_16 = arith.constant 0 : i32
    %15 = tpu.memref_slice %arg1[%c0_i32_14, %c0_i32_15, %c0_i32_16] : memref<1x288x128xbf16, #tpu.memory_space<vmem>> -> memref<1x288x128xbf16, #tpu.memory_space<vmem>>
    %16 = tpu.memref_squeeze %15 : memref<1x288x128xbf16, #tpu.memory_space<vmem>> -> memref<288x128xbf16, #tpu.memory_space<vmem>>
    %c32 = arith.constant 32 : index
    %c0_17 = arith.constant 0 : index
    %17 = vector.load %16[%c32, %c0_17] : memref<288x128xbf16, #tpu.memory_space<vmem>>, vector<256x128xbf16>
    %c2 = arith.constant 2 : index
    %c0_18 = arith.constant 0 : index
    %c0_19 = arith.constant 0 : index
    %18 = vector.load %arg2[%c2, %c0_18, %c0_19] : memref<3x128x128xbf16, #tpu.memory_space<vmem>>, vector<1x128x128xbf16>
    %19 = vector.shape_cast %18 : vector<1x128x128xbf16> to vector<128x128xbf16>
    %cst_20 = arith.constant dense<0.000000e+00> : vector<256x128xf32>
    %20 = tpu.matmul %17, %19, %cst_20 {dimension_numbers = #tpu.dot_dimension_numbers<[1], [0], [0], [1], [0, 0, 1, 1], [], []>} : vector<256x128xbf16>, vector<128x128xbf16>, vector<256x128xf32> -> vector<256x128xf32>
    %21 = arith.addf %14, %20 : vector<256x128xf32>
    %c0_21 = arith.constant 0 : index
    %c0_22 = arith.constant 0 : index
    %22 = vector.load %arg3[%c0_21, %c0_22] : memref<1x128xf32, #tpu.memory_space<vmem>>, vector<1x128xf32>
    %23 = vector.broadcast %22 : vector<1x128xf32> to vector<256x128xf32>
    %24 = arith.addf %21, %23 : vector<256x128xf32>
    %25 = arith.truncf %24 : vector<256x128xf32> to vector<256x128xbf16>
    %c0_23 = arith.constant 0 : index
    %c0_24 = arith.constant 0 : index
    %c0_25 = arith.constant 0 : index
    %26 = vector.load %arg6[%c0_23, %c0_24, %c0_25] : memref<1x256x128xbf16, #tpu.memory_space<vmem>>, vector<1x256x128xbf16>
    %27 = vector.shape_cast %26 : vector<1x256x128xbf16> to vector<256x128xbf16>
    %28 = vector.shape_cast %25 : vector<256x128xbf16> to vector<1x256x128xbf16>
    tpu.vector_store %arg6[%c0_23, %c0_24, %c0_25], %28 {strides = array<i32>} : memref<1x256x128xbf16, #tpu.memory_space<vmem>>, vector<1x256x128xbf16>,
    return
  }
  func.func @transform_0(%arg0: i32) -> (i32, i32, i32) {
    %c0_i32 = arith.constant 0 : i32
    %c0_i32_0 = arith.constant 0 : i32
    %c0_i32_1 = arith.constant 0 : i32
    return %arg0, %c0_i32, %c0_i32_0 : i32, i32, i32
  }
  func.func @transform_1(%arg0: i32) -> (i32, i32, i32) {
    %c0_i32 = arith.constant 0 : i32
    %c0_i32_0 = arith.constant 0 : i32
    %c0_i32_1 = arith.constant 0 : i32
    %c0_i32_2 = arith.constant 0 : i32
    return %c0_i32, %c0_i32_0, %c0_i32_1 : i32, i32, i32
  }
  func.func @transform_2(%arg0: i32) -> (i32, i32) {
    %c0_i32 = arith.constant 0 : i32
    %c0_i32_0 = arith.constant 0 : i32
    %c0_i32_1 = arith.constant 0 : i32
    return %c0_i32, %c0_i32_0 : i32, i32
  }
  func.func @transform_3(%arg0: i32) -> (i32, i32) {
    %c0_i32 = arith.constant 0 : i32
    %c0_i32_0 = arith.constant 0 : i32
    %c0_i32_1 = arith.constant 0 : i32
    return %c0_i32, %c0_i32_0 : i32, i32
  }
  func.func @transform_4(%arg0: i32) -> (i32, i32) {
    %c0_i32 = arith.constant 0 : i32
    %c0_i32_0 = arith.constant 0 : i32
    %c0_i32_1 = arith.constant 0 : i32
    return %c0_i32, %c0_i32_0 : i32, i32
  }
  func.func @transform_5(%arg0: i32) -> (i32, i32, i32) {
    %c0_i32 = arith.constant 0 : i32
    %c0_i32_0 = arith.constant 0 : i32
    %c0_i32_1 = arith.constant 0 : i32
    return %arg0, %c0_i32, %c0_i32_0 : i32, i32, i32
  }
}

</mosaic_0001>

<bundles_post_ra>
// kernel: vertex_net_forward.9
= control target key start
LH: loop header
LB: loop body
LE: loop exit
PB: predicated region body
PF: predicated region fallthrough
CT: control target
= control target key end

     0   :  { %s1237_s18 = smov 0   ;;  %s1378_s0 = inlined_call_operand.vmem [shape: bf16[2,80,128], index: 0, kind: input, shape index: {}]   ;;  %s1379_s1 = inlined_call_operand.vmem [shape: bf16[3,128,128], index: 1, kind: input, shape index: {}]   ;;  %s1380_s2 = inlined_call_operand.vmem [shape: f32[1,128], index: 2, kind: input, shape index: {}]   ;;  %s1381_s3 = inlined_call_operand.vmem [shape: f32[1,128], index: 3, kind: input, shape index: {}]   ;;  %s1382_s4 = inlined_call_operand.vmem [shape: f32[1,128], index: 4, kind: input, shape index: {}]   ;;  %s1383_s5 = inlined_call_operand.vmem [shape: bf16[2,64,128], index: 5, kind: output, shape index: {}]  }
   0x1 LB: > { %s907_s19 = sadd.s32 4294967295, %s1205_s18   ;;  %p911_p0 = scmp.ge.s32.totalorder %s1205_s18, 1  ;;  %s1205_s18 = sphi %s1237_s18, %s15_s18  }
   0x2   : > { %p187_p1 = scmp.lt.s32.totalorder %s1205_s18, 3 }
   0x4   : > { %p188_p2 = pnand %p911_p0, %p187_p1 }
   0x5   : > { %p215_p3 = scmp.lt.s32.totalorder (!%p188_p2), %s907_s19, 1 }
   0x6   : > { %191 = sbr.rel (%p188_p2) target bundleno = 481 (0x1e1), region = 40 }
   0xb   : > { %v1161_v0 = vld [vmem:[%s1379_s1 + $0x78] sm:$0xff]   ;;  %v1163_v2 = vld [vmem:[%s1379_s1 + $0x70] sm:$0xff]   ;;  %v1165_v4 = vld [vmem:[%s1379_s1 + $0x68] sm:$0xff]   ;;  %s1385_s19 = smov (!%p215_p3, %s907_s19), 1 }
   0xc   : > { %v1162_v1 = vld [vmem:[%s1379_s1 + $0x38] sm:$0xff]   ;;  %1064 = vmatprep.subr.bf16.mxu0 %v1161_v0  ;;  %v1164_v3 = vld [vmem:[%s1379_s1 + $0x30] sm:$0xff]   ;;  %v1166_v5 = vld [vmem:[%s1379_s1 + $0x28] sm:$0xff]   ;;  %s1152_s11 = smul.u32 40, %s1385_s19  ;;  %s996_s7 = sshll.u32 %s1385_s19, 5 }
   0xd   : > { %1088 = vmatprep.subr.bf16.mxu1 %v1162_v1  ;;  %1065 = vmatpush3.bf16.msra.mxu0 %v1161_v0  ;;  %v1167_v6 = vld [vmem:[%s1379_s1 + $0x60] sm:$0xff]   ;;  %v1169_v8 = vld [vmem:[%s1379_s1 + $0x58] sm:$0xff]   ;;  %v1171_v10 = vld [vmem:[%s1379_s1 + $0x50] sm:$0xff]   ;;  %s224_s10 = scalar_lea.vmem %s1383_s5, %s996_s7 }
   0xe   : > { %1089 = vmatpush3.bf16.msra.mxu1 %v1162_v1  ;;  %1066 = vmatprep.subr.bf16.mxu0 %v1163_v2  ;;  %v1168_v7 = vld [vmem:[%s1379_s1 + $0x20] sm:$0xff]   ;;  %v1170_v9 = vld [vmem:[%s1379_s1 + $0x18] sm:$0xff]   ;;  %s1281_s20 = scalar_lea.vmem %s1378_s0, %s1152_s11  ;;  %v1172_v13 = vld [vmem:[%s1379_s1 + $0x10] sm:$0xff]  }
   0xf   : > { %1090 = vmatprep.subr.bf16.mxu1 %v1164_v3  ;;  %v227_v11 = vld [vmem:[%s1281_s20 + $0x4] sm:$0xf]  ;;  %v228_v12 = vld [vmem:[%s1281_s20 + $0x8] sm:$0xf]  ;;  %v226_v15 = vld [vmem:[%s1281_s20] sm:$0xf] }
  0x10   : > { %v931_v14 = vcombine.low %v227_v11, %v228_v12  ;;  %v943_v16 = vcombine.low %v226_v15, %v227_v11  ;;  %v1173_v17 = vld [vmem:[%s1379_s1 + $0x48] sm:$0xff]   ;;  %v1175_v19 = vld [vmem:[%s1379_s1 + $0x40] sm:$0xff]   ;;  %v230_v22 = vld [vmem:[%s1281_s20 + $0x10] sm:$0xf] }
  0x11   : > { %1067 = vmatpush3.bf16.msra.mxu0 %v1163_v2  ;;  %v1174_v18 = vld [vmem:[%s1379_s1 + $0x8] sm:$0xff]   ;;  %v1176_v20 = vld [vmem:[%s1379_s1] sm:$0xff]   ;;  %v1181_v23 = vld [vmem:[%s1379_s1 + $0xb8] sm:$0xff]  }
  0x12   : > { %1091 = vmatpush3.bf16.msra.mxu1 %v1164_v3  ;;  %1068 = vmatprep.subr.bf16.mxu0 %v1165_v4  ;;  %v229_v21 = vld [vmem:[%s1281_s20 + $0xc] sm:$0xf]  ;;  %v231_v24 = vld [vmem:[%s1281_s20 + $0x14] sm:$0xf]  ;;  %v232_v26 = vld [vmem:[%s1281_s20 + $0x18] sm:$0xf] }
  0x13   : > { %1092 = vmatprep.subr.bf16.mxu1 %v1166_v5  ;;  %1080 = vmatprep.mubr.bf16.mxu0 %v931_v14  ;;  %v932_v25 = vcombine.low %v229_v21, %v230_v22  ;;  %v944_v27 = vcombine.low %v228_v12, %v229_v21  ;;  %v1182_v28 = vld [vmem:[%s1379_s1 + $0xb0] sm:$0xff]   ;;  %v933_v29 = vcombine.low %v231_v24, %v232_v26  ;;  %v233_v31 = vld [vmem:[%s1281_s20 + $0x1c] sm:$0xf]  ;;  %v250_v32 = vld [vmem:[%s1281_s20 + $0x20] sm:$0xf] }
  0x14   : > { %1104 = vmatprep.mubr.bf16.mxu1 %v943_v16  ;;  %v945_v30 = vcombine.low %v230_v22, %v231_v24  ;;  %v1183_v33 = vld [vmem:[%s1379_s1 + $0xa8] sm:$0xff]   ;;  %v934_v34 = vcombine.low %v233_v31, %v250_v32  ;;  %v946_v35 = vcombine.low %v232_v26, %v233_v31  ;;  %v1184_v36 = vld [vmem:[%s1379_s1 + $0xa0] sm:$0xff]   ;;  %v1194_v38 = vld [vmem:[%s1281_s20 + $0x18] sm:$0xff]  }
  0x15   : > { %1069 = vmatpush3.bf16.msra.mxu0 %v1165_v4  ;;  %v1193_v37 = vld [vmem:[%s1281_s20 + $0x8] sm:$0xff]   ;;  %v1185_v39 = vld [vmem:[%s1379_s1 + $0x98] sm:$0xff]   ;;  %v1190_v40 = vld [vmem:[%s1379_s1 + $0x90] sm:$0xff]  }
  0x16   : > { %1093 = vmatpush3.bf16.msra.mxu1 %v1166_v5  ;;  %1070 = vmatprep.subr.bf16.mxu0 %v1167_v6  ;;  %v1191_v41 = vld [vmem:[%s1379_s1 + $0x88] sm:$0xff]   ;;  %v1192_v42 = vld [vmem:[%s1379_s1 + $0x80] sm:$0xff]   ;;  %v1195_v43 = vld [vmem:[%s1281_s20 + $0x10] sm:$0xff]  }
  0x17   : > { %1094 = vmatprep.subr.bf16.mxu1 %v1168_v7  ;;  %v1196_v44 = vld [vmem:[%s1281_s20 + $0x20] sm:$0xff]  }
  0x19   : > { %1071 = vmatpush3.bf16.msra.mxu0 %v1167_v6 }
  0x1a   : > { %1095 = vmatpush3.bf16.msra.mxu1 %v1168_v7  ;;  %1072 = vmatprep.subr.bf16.mxu0 %v1169_v8 }
  0x1b   : > { %1096 = vmatprep.subr.bf16.mxu1 %v1170_v9 }
  0x1d   : > { %1073 = vmatpush3.bf16.msra.mxu0 %v1169_v8  ;;  %v983_v8 = vld [vmem:[%s1380_s2] ss:$0 sm:$0xff] }
  0x1e   : > { %1097 = vmatpush3.bf16.msra.mxu1 %v1170_v9  ;;  %1074 = vmatprep.subr.bf16.mxu0 %v1171_v10 }
  0x1f   : > { %1098 = vmatprep.subr.bf16.mxu1 %v1172_v13 }
  0x21   : > { %1075 = vmatpush3.bf16.msra.mxu0 %v1171_v10 }
  0x22   : > { %1099 = vmatpush3.bf16.msra.mxu1 %v1172_v13  ;;  %1076 = vmatprep.subr.bf16.mxu0 %v1173_v17 }
  0x23   : > { %1100 = vmatprep.subr.bf16.mxu1 %v1174_v18 }
  0x25   : > { %1077 = vmatpush3.bf16.msra.mxu0 %v1173_v17 }
  0x26   : > { %1101 = vmatpush3.bf16.msra.mxu1 %v1174_v18  ;;  %1078 = vmatprep.subr.bf16.mxu0 %v1175_v19 }
  0x27   : > { %1102 = vmatprep.subr.bf16.mxu1 %v1176_v20 }
  0x29   : > { %1079 = vmatpush3.bf16.msra.mxu0 %v1175_v19 }
  0x2a   : > { %1103 = vmatpush3.bf16.msra.mxu1 %v1176_v20  ;;  %1112 = vmatprep.subr.bf16.mxu0 %v1181_v23 }
  0x2b   : > { %1136 = vmatprep.subr.bf16.mxu1 %v1181_v23 }
  0x2c   : > { %1081 = vmatmul.mubr.bf16.vlgmr.msra.gmra.mxu0 %v932_v25 }
  0x2d   : > { %1105 = vmatmul.mubr.bf16.vlgmr.msra.gmra.mxu1 %v944_v27  ;;  %1113 = vmatpush3.bf16.msra.mxu0 %v1181_v23 }
  0x2e   : > { %1144 = vmatpush3.bf16.msra.mxu1 %v1181_v23  ;;  %1114 = vmatprep.subr.bf16.mxu0 %v1182_v28 }
  0x2f   : > { %1137 = vmatprep.subr.bf16.mxu1 %v1182_v28  ;;  %1084 = vmatprep.mubr.bf16.mxu0 %v933_v29 }
  0x30   : > { %1108 = vmatprep.mubr.bf16.mxu1 %v945_v30 }
  0x31   : > { %1115 = vmatpush3.bf16.msra.mxu0 %v1182_v28 }
  0x32   : > { %1145 = vmatpush3.bf16.msra.mxu1 %v1182_v28  ;;  %1116 = vmatprep.subr.bf16.mxu0 %v1183_v33 }
  0x33   : > { %1138 = vmatprep.subr.bf16.mxu1 %v1183_v33 }
  0x34   : > { %1085 = vmatmul.mubr.bf16.gmra.mxu0 %v934_v34 }
  0x35   : > { %1117 = vmatpush3.bf16.msra.mxu0 %v1183_v33  ;;  %1109 = vmatmul.mubr.bf16.gmra.mxu1 %v946_v35 }
  0x36   : > { %1146 = vmatpush3.bf16.msra.mxu1 %v1183_v33  ;;  %1118 = vmatprep.subr.bf16.mxu0 %v1184_v36 }
  0x37   : > { %1139 = vmatprep.subr.bf16.mxu1 %v1184_v36  ;;  %1128 = vmatprep.mubr.bf16.mxu0 %v1193_v37 }
  0x38   : > { %1132 = vmatprep.mubr.bf16.mxu1 %v1194_v38 }
  0x39   : > { %1119 = vmatpush3.bf16.msra.mxu0 %v1184_v36 }
  0x3a   : > { %1147 = vmatpush3.bf16.msra.mxu1 %v1184_v36  ;;  %1120 = vmatprep.subr.bf16.mxu0 %v1185_v39 }
  0x3b   : > { %1140 = vmatprep.subr.bf16.mxu1 %v1185_v39 }
  0x3d   : > { %1121 = vmatpush3.bf16.msra.mxu0 %v1185_v39 }
  0x3e   : > { %1148 = vmatpush3.bf16.msra.mxu1 %v1185_v39  ;;  %1122 = vmatprep.subr.bf16.mxu0 %v1190_v40 }
  0x3f   : > { %1141 = vmatprep.subr.bf16.mxu1 %v1190_v40 }
  0x41   : > { %1123 = vmatpush3.bf16.msra.mxu0 %v1190_v40 }
  0x42   : > { %1149 = vmatpush3.bf16.msra.mxu1 %v1190_v40  ;;  %1124 = vmatprep.subr.bf16.mxu0 %v1191_v41 }
  0x43   : > { %1142 = vmatprep.subr.bf16.mxu1 %v1191_v41 }
  0x45   : > { %1125 = vmatpush3.bf16.msra.mxu0 %v1191_v41 }
  0x46   : > { %1150 = vmatpush3.bf16.msra.mxu1 %v1191_v41  ;;  %1126 = vmatprep.subr.bf16.mxu0 %v1192_v42 }
  0x47   : > { %1143 = vmatprep.subr.bf16.mxu1 %v1192_v42 }
  0x49   : > { %1127 = vmatpush3.bf16.msra.mxu0 %v1192_v42 }
  0x4a   : > { %1151 = vmatpush3.bf16.msra.mxu1 %v1192_v42 }
  0x4c   : > { %1129 = vmatmul.mubr.bf16.vlgmr.msra.gmra.mxu0 %v1195_v43 }
  0x4d   : > { %1133 = vmatmul.mubr.bf16.vlgmr.msra.gmra.mxu1 %v1196_v44 }
  0xec   : > { %v1082_v45 = vpop.f32.mrf.mxu0 }
  0xed   : > { %v1106_v46 = vpop.f32.mrf.mxu1 }
  0xee   : > { %v374_v47 = vpop.f32.mrf.mxu0  ;;  %v506_v1 = vadd.f32 %v1106_v46, %v1082_v45 }
  0xef   : > { %v497_v48 = vpop.f32.mrf.mxu1 }
  0xf0   : > { %v1083_v49 = vpop.f32.mrf.mxu0  ;;  %v498_v62 = vadd.f32 %v497_v48, %v374_v47 }
  0xf1   : > { %v1107_v50 = vpop.f32.mrf.mxu1 }
  0xf2   : > { %v377_v51 = vpop.f32.mrf.mxu0  ;;  %v509_v5 = vadd.f32 %v1107_v50, %v1083_v49 }
  0xf3   : > { %v500_v52 = vpop.f32.mrf.mxu1 }
  0xf4   : > { %v1086_v53 = vpop.f32.mrf.mxu0  ;;  %v501_v6 = vadd.f32 %v500_v52, %v377_v51 }
  0xf5   : > { %v1110_v54 = vpop.f32.mrf.mxu1 }
  0xf6   : > { %v390_v55 = vpop.f32.mrf.mxu0  ;;  %v522_v20 = vadd.f32 %v1110_v54, %v1086_v53 }
  0xf7   : > { %v513_v56 = vpop.f32.mrf.mxu1 }
  0xf8   : > { %v1087_v57 = vpop.f32.mrf.mxu0  ;;  %v514_v12 = vadd.f32 %v513_v56, %v390_v55 }
  0xf9   : > { %v1111_v58 = vpop.f32.mrf.mxu1 }
  0xfa   : > { %v393_v59 = vpop.f32.mrf.mxu0  ;;  %v525_v26 = vadd.f32 %v1111_v58, %v1087_v57 }
  0xfb   : > { %v516_v60 = vpop.f32.mrf.mxu1 }
  0xfc   : > { %v517_v16 = vadd.f32 %v516_v60, %v393_v59 }
 0x10c   : > { %v1130_v61 = vpop.f32.mrf.mxu0 }
 0x10d   : > { %v1134_v63 = vpop.f32.mrf.mxu1  ;;  %v692_v7 = vadd.f32 %v1130_v61, %v506_v1 }
 0x10e   : > { %v659_v0 = vpop.f32.mrf.mxu0  ;;  %v696_v27 = vadd.f32 %v1134_v63, %v522_v20  ;;  %v984_v20 = vld [vmem:[%s1381_s3] ss:$0 sm:$0xff] }
 0x10f   : > { %v690_v2 = vadd.f32 %v659_v0, %v498_v62  ;;  %v675_v3 = vpop.f32.mrf.mxu1  ;;  %v1343_v17 = vadd.f32 %v983_v8, %v692_v7 }
 0x110   : > { %v1131_v4 = vpop.f32.mrf.mxu0  ;;  %v694_v18 = vadd.f32 %v675_v3, %v514_v12  ;;  %v711_v37 = vadd.f32 %v983_v8, %v696_v27 }
 0x111   : > { %v1135_v9 = vpop.f32.mrf.mxu1  ;;  %v1341_v10 = vadd.f32 %v983_v8, %v690_v2  ;;  %v693_v13 = vadd.f32 %v1131_v4, %v509_v5  ;;  %v730_v28 = vmul.f32 %v1343_v17, %v1343_v17 }
 0x112   : > { %v662_v11 = vpop.f32.mrf.mxu0  ;;  %v709_v29 = vadd.f32 %v983_v8, %v694_v18  ;;  %v697_v32 = vadd.f32 %v1135_v9, %v525_v26  ;;  %v734_v45 = vmul.f32 %v711_v37, %v711_v37 }
 0x113   : > { %v691_v14 = vadd.f32 %v662_v11, %v501_v6  ;;  %v678_v15 = vpop.f32.mrf.mxu1  ;;  %v728_v21 = vmul.f32 %v1341_v10, %v1341_v10  ;;  %v1349_v22 = vadd.f32 %v983_v8, %v693_v13 }
 0x114   : > { %v695_v25 = vadd.f32 %v678_v15, %v517_v16  ;;  %v732_v38 = vmul.f32 %v709_v29, %v709_v29  ;;  %v712_v41 = vadd.f32 %v983_v8, %v697_v32 }
 0x115   : > { %v1345_v19 = vadd.f32 %v983_v8, %v691_v14  ;;  %v731_v33 = vmul.f32 %v1349_v22, %v1349_v22 }
 0x116   : > { %v710_v35 = vadd.f32 %v983_v8, %v695_v25  ;;  %v735_v48 = vmul.f32 %v712_v41, %v712_v41 }
 0x117   : > { %v713_v23 = vadd.f32 %v1345_v19, %v1341_v10  ;;  %v729_v24 = vmul.f32 %v1345_v19, %v1345_v19 }
 0x118   : > { %v733_v43 = vmul.f32 %v710_v35, %v710_v35 }
 0x119   : > { %v714_v30 = vadd.f32 %v713_v23, %v1343_v17  ;;  %v736_v31 = vadd.f32 %v729_v24, %v728_v21 }
 0x11b   : > { %v737_v34 = vadd.f32 %v736_v31, %v730_v28  ;;  %v715_v36 = vadd.f32 %v714_v30, %v1349_v22 }
 0x11d   : > { %v716_v39 = vadd.f32 %v715_v36, %v709_v29  ;;  %v738_v40 = vadd.f32 %v737_v34, %v731_v33 }
 0x11f   : > { %v717_v42 = vadd.f32 %v716_v39, %v710_v35  ;;  %v739_v44 = vadd.f32 %v738_v40, %v732_v38 }
 0x121   : > { %v740_v46 = vadd.f32 %v739_v44, %v733_v43  ;;  %v718_v47 = vadd.f32 %v717_v42, %v711_v37 }
 0x123   : > { %v719_v49 = vadd.f32 %v718_v47, %v712_v41  ;;  %v741_v50 = vadd.f32 %v740_v46, %v734_v45 }
 0x125   : > { %v720_v51 = vrot.slane %v719_v49, 4  ;;  %v742_v52 = vadd.f32 %v741_v50, %v735_v48 }
 0x127   : > { %v721_v53 = vadd.f32 %v720_v51, %v719_v49  ;;  %v743_v54 = vrot.slane %v742_v52, 4 }
 0x129   : > { %v722_v55 = vrot.slane %v721_v53, 2  ;;  %v744_v56 = vadd.f32 %v743_v54, %v742_v52 }
 0x12b   : > { %v723_v57 = vadd.f32 %v722_v55, %v721_v53  ;;  %v745_v58 = vrot.slane %v744_v56, 2 }
 0x12d   : > { %v724_v59 = vrot.slane %v723_v57, 1  ;;  %v746_v60 = vadd.f32 %v745_v58, %v744_v56 }
 0x12f   : > { %v725_v61 = vadd.f32 %v724_v59, %v723_v57  ;;  %v747_v62 = vrot.slane %v746_v60, 1 }
 0x131   : > { %726 = vadd.xlane.f32.xlu0 %v725_v61  ;;  %v748_v63 = vadd.f32 %v747_v62, %v746_v60 }
 0x135   : > { %749 = vadd.xlane.f32.xlu0 %v748_v63 }
 0x1ba   : > { %v727_v0 = vpop.xlane.xlu0 %726 }
 0x1bb   : > { %v751_v1 = vmul.f32 0.0009765625, %v727_v0 }
 0x1bd   : > { %v753_v3 = vmul.f32 %v751_v1, %v751_v1  ;;  %v758_v8 = vsub.f32 %v1341_v10, %v751_v1  ;;  %v759_v9 = vsub.f32 %v1345_v19, %v751_v1  ;;  %v760_v11 = vsub.f32 %v1343_v17, %v751_v1  ;;  %v985_v17 = vld [vmem:[%s1382_s4] ss:$0 sm:$0xff] }
 0x1be   : > { %v750_v2 = vpop.xlane.xlu0 %749  ;;  %v761_v12 = vsub.f32 %v1349_v22, %v751_v1  ;;  %v762_v14 = vsub.f32 %v709_v29, %v751_v1  ;;  %v763_v15 = vsub.f32 %v710_v35, %v751_v1  ;;  %v764_v16 = vsub.f32 %v711_v37, %v751_v1 }
 0x1bf   : > { %v752_v4 = vmul.f32 0.0009765625, %v750_v2  ;;  %v765_v18 = vsub.f32 %v712_v41, %v751_v1 }
 0x1c1   : > { %v754_v5 = vsub.f32 %v752_v4, %v753_v3 }
 0x1c3   : > { %v755_v6 = vmax.f32 %v754_v5, 0.0 }
 0x1c5   : > { %v756_v7 = vadd.f32 1e-05, %v755_v6 }
 0x1c7   : > { %1197 = vrsqrt.f32 %v756_v7 }
 0x1d4   : > { %v1198_v13 = vpop.eup %1197 }
 0x1d5   : > { %v766_v21 = vmul.f32 %v1198_v13, %v758_v8  ;;  %v767_v23 = vmul.f32 %v1198_v13, %v759_v9  ;;  %v768_v24 = vmul.f32 %v1198_v13, %v760_v11  ;;  %v769_v10 = vmul.f32 %v1198_v13, %v761_v12 }
 0x1d6   : > { %v770_v19 = vmul.f32 %v1198_v13, %v762_v14  ;;  %v771_v22 = vmul.f32 %v1198_v13, %v763_v15  ;;  %v772_v25 = vmul.f32 %v1198_v13, %v764_v16  ;;  %v773_v26 = vmul.f32 %v1198_v13, %v765_v18 }
 0x1d7   : > { %v781_v27 = vmul.f32 %v984_v20, %v766_v21  ;;  %v782_v28 = vmul.f32 %v984_v20, %v767_v23  ;;  %v783_v29 = vmul.f32 %v984_v20, %v768_v24  ;;  %v784_v30 = vmul.f32 %v984_v20, %v769_v10 }
 0x1d8   : > { %v785_v31 = vmul.f32 %v984_v20, %v770_v19  ;;  %v786_v32 = vmul.f32 %v984_v20, %v771_v22  ;;  %v787_v33 = vmul.f32 %v984_v20, %v772_v25  ;;  %v788_v34 = vmul.f32 %v984_v20, %v773_v26 }
 0x1d9   : > { %v796_v35 = vadd.f32 %v985_v17, %v781_v27  ;;  %v797_v36 = vadd.f32 %v985_v17, %v782_v28  ;;  %v798_v37 = vadd.f32 %v985_v17, %v783_v29  ;;  %v799_v38 = vadd.f32 %v985_v17, %v784_v30 }
 0x1da   : > { %v800_v39 = vadd.f32 %v985_v17, %v785_v31  ;;  %v801_v40 = vadd.f32 %v985_v17, %v786_v32  ;;  %v802_v41 = vadd.f32 %v985_v17, %v787_v33  ;;  %v803_v42 = vadd.f32 %v985_v17, %v788_v34 }
 0x1db   : > { %v804_v43 = vmax.f32 %v796_v35, 0.0  ;;  %v805_v44 = vmax.f32 %v797_v36, 0.0  ;;  %v806_v45 = vmax.f32 %v798_v37, 0.0  ;;  %v807_v46 = vmax.f32 %v799_v38, 0.0 }
 0x1dc   : > { %v808_v47 = vmax.f32 %v800_v39, 0.0  ;;  %v809_v48 = vmax.f32 %v801_v40, 0.0  ;;  %v810_v49 = vmax.f32 %v802_v41, 0.0  ;;  %v811_v50 = vmax.f32 %v803_v42, 0.0 }
 0x1dd   : > { %v1008_v51 = vpack.c.bf16 %v805_v44, %v804_v43  ;;  %v1013_v52 = vpack.c.bf16 %v807_v46, %v806_v45 }
 0x1de   : > { %v1018_v53 = vpack.c.bf16 %v809_v48, %v808_v47  ;;  %v1023_v54 = vpack.c.bf16 %v811_v50, %v810_v49 }
 0x1df   : > { %1009 = vst [vmem:[%s224_s10] sm:$0xff] %v1008_v51   ;;  %1025 = vst [vmem:[%s224_s10 + $0x8] sm:$0xff] %v1013_v52  }
 0x1e0   : > { %1026 = vst [vmem:[%s224_s10 + $0x10] sm:$0xff] %v1018_v53   ;;  %1027 = vst [vmem:[%s224_s10 + $0x18] sm:$0xff] %v1023_v54  }
 0x1e1 PF: > { %s15_s18 = sadd.s32 1, %s1205_s18  }
 0x1e2   : > { %p12_p4 = scmp.ge.s32.totalorder %s15_s18, 4  }
 0x1e4   :  { %14 = sbr.rel (!%p12_p4) target bundleno = 1 (0x1), region = 72 }

// kernel: vertex_net_forward.8
= control target key start
LH: loop header
LB: loop body
LE: loop exit
PB: predicated region body
PF: predicated region fallthrough
CT: control target
= control target key end

     0   :  { %s2344_s18 = smov 0   ;;  %s2914_s0 = inlined_call_operand.vmem [shape: bf16[2,288,128], index: 0, kind: input, shape index: {}]   ;;  %s2915_s1 = inlined_call_operand.vmem [shape: bf16[3,128,128], index: 1, kind: input, shape index: {}]   ;;  %s2916_s2 = inlined_call_operand.vmem [shape: f32[1,128], index: 2, kind: input, shape index: {}]   ;;  %s2917_s3 = inlined_call_operand.vmem [shape: f32[1,128], index: 3, kind: input, shape index: {}]   ;;  %s2918_s4 = inlined_call_operand.vmem [shape: f32[1,128], index: 4, kind: input, shape index: {}]   ;;  %s2919_s5 = inlined_call_operand.vmem [shape: bf16[2,256,128], index: 5, kind: output, shape index: {}]  }
   0x1 LB: > { %s1744_s19 = sadd.s32 4294967295, %s2312_s18   ;;  %p1748_p0 = scmp.ge.s32.totalorder %s2312_s18, 1  ;;  %s2312_s18 = sphi %s2344_s18, %s15_s18  }
   0x2   : > { %p187_p1 = scmp.lt.s32.totalorder %s2312_s18, 3 }
   0x4   : > { %p188_p2 = pnand %p1748_p0, %p187_p1 }
   0x5   : > { %p215_p3 = scmp.lt.s32.totalorder (!%p188_p2), %s1744_s19, 1 }
   0x6   : > { %191 = sbr.rel (%p188_p2) target bundleno = 561 (0x231), region = 40 }
   0xb   : > { %v2247_v0 = vld [vmem:[%s2915_s1 + $0x78] sm:$0xff]   ;;  %v2248_v1 = vld [vmem:[%s2915_s1 + $0x70] sm:$0xff]   ;;  %s2921_s19 = smov (!%p215_p3, %s1744_s19), 1  ;;  %v2249_v2 = vld [vmem:[%s2915_s1 + $0x68] sm:$0xff]  }
   0xc   : > { %2078 = vmatprep.subr.bf16.mxu0 %v2247_v0  ;;  %2222 = vmatprep.subr.bf16.mxu1 %v2247_v0  ;;  %s2238_s26 = smul.u32 144, %s2921_s19  ;;  %v2250_v3 = vld [vmem:[%s2915_s1 + $0x60] sm:$0xff]   ;;  %v2251_v6 = vld [vmem:[%s2915_s1 + $0x58] sm:$0xff]   ;;  %v2252_v7 = vld [vmem:[%s2915_s1 + $0x50] sm:$0xff]   ;;  %s1878_s8 = sshll.u32 %s2921_s19, 7 }
   0xd   : > { %2079 = vmatpush3.bf16.msra.mxu0 %v2247_v0  ;;  %2230 = vmatpush3.bf16.msra.mxu1 %v2247_v0  ;;  %v2253_v8 = vld [vmem:[%s2915_s1 + $0x48] sm:$0xff]   ;;  %v2254_v9 = vld [vmem:[%s2915_s1 + $0x40] sm:$0xff]   ;;  %v2259_v10 = vld [vmem:[%s2915_s1 + $0x38] sm:$0xff]   ;;  %s2893_s11 = scalar_lea.vmem %s2919_s5, %s1878_s8 }
   0xe   : > { %2080 = vmatprep.subr.bf16.mxu0 %v2248_v1  ;;  %2223 = vmatprep.subr.bf16.mxu1 %v2248_v1  ;;  %s2367_s29 = scalar_lea.vmem %s2914_s0, %s2238_s26  ;;  %v2260_v12 = vld [vmem:[%s2915_s1 + $0xb8] sm:$0xff]   ;;  %v2261_v14 = vld [vmem:[%s2915_s1 + $0x30] sm:$0xff]   ;;  %v2267_v18 = vld [vmem:[%s2915_s1 + $0x28] sm:$0xff]  }
   0xf   : > { %v2373_v4 = vld [vmem:[%s2367_s29 + $0x8] sm:$0xff]   ;;  %v2396_v11 = vld [vmem:[%s2367_s29 + $0x10] sm:$0xff]   ;;  %v2411_v16 = vld [vmem:[%s2367_s29 + $0x18] sm:$0xff]  }
  0x10   : > { %v2376_v5 = vld [vmem:[%s2367_s29 + $0x48] sm:$0xff]   ;;  %2094 = vmatprep.mubr.bf16.mxu0 %v2373_v4  ;;  %v2402_v13 = vld [vmem:[%s2367_s29 + $0x50] sm:$0xff]   ;;  %v2414_v17 = vld [vmem:[%s2367_s29 + $0x58] sm:$0xff]  }
  0x11   : > { %2081 = vmatpush3.bf16.msra.mxu0 %v2248_v1  ;;  %2231 = vmatpush3.bf16.msra.mxu1 %v2248_v1  ;;  %v2262_v15 = vld [vmem:[%s2915_s1 + $0xb0] sm:$0xff]   ;;  %v2422_v19 = vld [vmem:[%s2367_s29 + $0x20] sm:$0xff]   ;;  %v2268_v20 = vld [vmem:[%s2915_s1 + $0xa8] sm:$0xff]  }
  0x12   : > { %2082 = vmatprep.subr.bf16.mxu0 %v2249_v2  ;;  %2224 = vmatprep.subr.bf16.mxu1 %v2249_v2  ;;  %v2430_v21 = vld [vmem:[%s2367_s29 + $0x60] sm:$0xff]   ;;  %v2439_v24 = vld [vmem:[%s2367_s29 + $0x28] sm:$0xff]   ;;  %v2275_v26 = vld [vmem:[%s2915_s1 + $0x18] sm:$0xff]  }
  0x13   : > { %2110 = vmatprep.mubr.bf16.mxu1 %v2376_v5  ;;  %v2269_v22 = vld [vmem:[%s2915_s1 + $0x20] sm:$0xff]   ;;  %v2442_v25 = vld [vmem:[%s2367_s29 + $0x68] sm:$0xff]   ;;  %v2273_v27 = vld [vmem:[%s2367_s29 + $0x30] sm:$0xff]  }
  0x14   : > { %v2270_v23 = vld [vmem:[%s2915_s1 + $0xa0] sm:$0xff]   ;;  %v2276_v28 = vld [vmem:[%s2915_s1 + $0x98] sm:$0xff]   ;;  %v2456_v29 = vld [vmem:[%s2367_s29 + $0x70] sm:$0xff]  }
  0x15   : > { %2083 = vmatpush3.bf16.msra.mxu0 %v2249_v2  ;;  %2232 = vmatpush3.bf16.msra.mxu1 %v2249_v2  ;;  %v2277_v30 = vld [vmem:[%s2915_s1 + $0x10] sm:$0xff]   ;;  %v2279_v32 = vld [vmem:[%s2367_s29 + $0x38] sm:$0xff]   ;;  %v2283_v34 = vld [vmem:[%s2915_s1 + $0x8] sm:$0xff]  }
  0x16   : > { %2084 = vmatprep.subr.bf16.mxu0 %v2250_v3  ;;  %2225 = vmatprep.subr.bf16.mxu1 %v2250_v3  ;;  %v2278_v31 = vld [vmem:[%s2915_s1 + $0x90] sm:$0xff]   ;;  %v2466_v33 = vld [vmem:[%s2367_s29 + $0x78] sm:$0xff]   ;;  %v2284_v35 = vld [vmem:[%s2915_s1 + $0x88] sm:$0xff]  }
  0x17   : > { %v2281_v36 = vld [vmem:[%s2367_s29 + $0x40] sm:$0xff]   ;;  %v2288_v41 = vld [vmem:[%s2367_s29 + $0x10] sm:$0xff]   ;;  %v2289_v42 = vld [vmem:[%s2367_s29 + $0x18] sm:$0xff]  }
  0x18   : > { %v2282_v37 = vld [vmem:[%s2367_s29 + $0x80] sm:$0xff]   ;;  %v2291_v44 = vld [vmem:[%s2367_s29 + $0x28] sm:$0xff]   ;;  %v2292_v45 = vld [vmem:[%s2367_s29 + $0x30] sm:$0xff]  }
  0x19   : > { %2085 = vmatpush3.bf16.msra.mxu0 %v2250_v3  ;;  %2233 = vmatpush3.bf16.msra.mxu1 %v2250_v3  ;;  %v2285_v38 = vld [vmem:[%s2915_s1] sm:$0xff]   ;;  %v2293_v46 = vld [vmem:[%s2367_s29 + $0x38] sm:$0xff]   ;;  %v2295_v48 = vld [vmem:[%s2367_s29 + $0x48] sm:$0xff]  }
  0x1a   : > { %2086 = vmatprep.subr.bf16.mxu0 %v2251_v6  ;;  %2226 = vmatprep.subr.bf16.mxu1 %v2251_v6  ;;  %v2286_v39 = vld [vmem:[%s2915_s1 + $0x80] sm:$0xff]   ;;  %v2296_v49 = vld [vmem:[%s2367_s29 + $0x50] sm:$0xff]   ;;  %v2297_v50 = vld [vmem:[%s2367_s29 + $0x58] sm:$0xff]  }
  0x1b   : > { %v2287_v40 = vld [vmem:[%s2367_s29] sm:$0xff]   ;;  %v2299_v52 = vld [vmem:[%s2367_s29 + $0x68] sm:$0xff]   ;;  %v2300_v53 = vld [vmem:[%s2367_s29 + $0x70] sm:$0xff]  }
  0x1c   : > { %v2290_v43 = vld [vmem:[%s2367_s29 + $0x20] sm:$0xff]   ;;  %v2301_v54 = vld [vmem:[%s2367_s29 + $0x78] sm:$0xff]   ;;  %v2303_v56 = vld [vmem:[%s2367_s29 + $0x88] sm:$0xff]  }
  0x1d   : > { %2087 = vmatpush3.bf16.msra.mxu0 %v2251_v6  ;;  %2234 = vmatpush3.bf16.msra.mxu1 %v2251_v6  ;;  %v2294_v47 = vld [vmem:[%s2367_s29 + $0x40] sm:$0xff]  }
  0x1e   : > { %2088 = vmatprep.subr.bf16.mxu0 %v2252_v7  ;;  %2227 = vmatprep.subr.bf16.mxu1 %v2252_v7  ;;  %v2298_v51 = vld [vmem:[%s2367_s29 + $0x60] sm:$0xff]  }
  0x1f   : > { %v2302_v55 = vld [vmem:[%s2367_s29 + $0x80] sm:$0xff]  }
  0x21   : > { %2089 = vmatpush3.bf16.msra.mxu0 %v2252_v7  ;;  %2235 = vmatpush3.bf16.msra.mxu1 %v2252_v7 }
  0x22   : > { %2090 = vmatprep.subr.bf16.mxu0 %v2253_v8  ;;  %2228 = vmatprep.subr.bf16.mxu1 %v2253_v8 }
  0x25   : > { %2091 = vmatpush3.bf16.msra.mxu0 %v2253_v8  ;;  %2236 = vmatpush3.bf16.msra.mxu1 %v2253_v8 }
  0x26   : > { %2092 = vmatprep.subr.bf16.mxu0 %v2254_v9  ;;  %2229 = vmatprep.subr.bf16.mxu1 %v2254_v9 }
  0x29   : > { %2093 = vmatpush3.bf16.msra.mxu0 %v2254_v9  ;;  %2237 = vmatpush3.bf16.msra.mxu1 %v2254_v9 }
  0x2a   : > { %2126 = vmatprep.subr.bf16.mxu1 %v2259_v10  ;;  %2174 = vmatprep.subr.bf16.mxu0 %v2260_v12 }
  0x2c   : > { %2095 = vmatmul.mubr.bf16.vlgmr.msra.gmra.mxu0 %v2396_v11  ;;  %2111 = vmatmul.mubr.bf16.vlgmr.msra.gmra.mxu1 %v2402_v13 }
  0x2d   : > { %2127 = vmatpush3.bf16.msra.mxu1 %v2259_v10  ;;  %2175 = vmatpush3.bf16.msra.mxu0 %v2260_v12 }
  0x2e   : > { %2128 = vmatprep.subr.bf16.mxu1 %v2261_v14  ;;  %2176 = vmatprep.subr.bf16.mxu0 %v2262_v15 }
  0x2f   : > { %2098 = vmatprep.mubr.bf16.mxu0 %v2411_v16  ;;  %2114 = vmatprep.mubr.bf16.mxu1 %v2414_v17 }
  0x31   : > { %2129 = vmatpush3.bf16.msra.mxu1 %v2261_v14  ;;  %2177 = vmatpush3.bf16.msra.mxu0 %v2262_v15 }
  0x32   : > { %2130 = vmatprep.subr.bf16.mxu1 %v2267_v18  ;;  %2178 = vmatprep.subr.bf16.mxu0 %v2268_v20 }
  0x34   : > { %2099 = vmatmul.mubr.bf16.gmra.mxu0 %v2422_v19  ;;  %2115 = vmatmul.mubr.bf16.gmra.mxu1 %v2430_v21 }
  0x35   : > { %2131 = vmatpush3.bf16.msra.mxu1 %v2267_v18  ;;  %2179 = vmatpush3.bf16.msra.mxu0 %v2268_v20 }
  0x36   : > { %2132 = vmatprep.subr.bf16.mxu1 %v2269_v22  ;;  %2180 = vmatprep.subr.bf16.mxu0 %v2270_v23 }
  0x37   : > { %2102 = vmatprep.mubr.bf16.mxu0 %v2439_v24  ;;  %2118 = vmatprep.mubr.bf16.mxu1 %v2442_v25 }
  0x39   : > { %2133 = vmatpush3.bf16.msra.mxu1 %v2269_v22  ;;  %2181 = vmatpush3.bf16.msra.mxu0 %v2270_v23 }
  0x3a   : > { %2134 = vmatprep.subr.bf16.mxu1 %v2275_v26  ;;  %2182 = vmatprep.subr.bf16.mxu0 %v2276_v28 }
  0x3c   : > { %2103 = vmatmul.mubr.bf16.gmra.mxu0 %v2273_v27  ;;  %2119 = vmatmul.mubr.bf16.gmra.mxu1 %v2456_v29 }
  0x3d   : > { %2135 = vmatpush3.bf16.msra.mxu1 %v2275_v26  ;;  %2183 = vmatpush3.bf16.msra.mxu0 %v2276_v28 }
  0x3e   : > { %2136 = vmatprep.subr.bf16.mxu1 %v2277_v30  ;;  %2184 = vmatprep.subr.bf16.mxu0 %v2278_v31 }
  0x3f   : > { %2106 = vmatprep.mubr.bf16.mxu0 %v2279_v32  ;;  %2122 = vmatprep.mubr.bf16.mxu1 %v2466_v33 }
  0x41   : > { %2137 = vmatpush3.bf16.msra.mxu1 %v2277_v30  ;;  %2185 = vmatpush3.bf16.msra.mxu0 %v2278_v31 }
  0x42   : > { %2138 = vmatprep.subr.bf16.mxu1 %v2283_v34  ;;  %2186 = vmatprep.subr.bf16.mxu0 %v2284_v35 }
  0x44   : > { %2107 = vmatmul.mubr.bf16.gmra.mxu0 %v2281_v36  ;;  %2123 = vmatmul.mubr.bf16.gmra.mxu1 %v2282_v37 }
  0x45   : > { %2139 = vmatpush3.bf16.msra.mxu1 %v2283_v34  ;;  %2187 = vmatpush3.bf16.msra.mxu0 %v2284_v35 }
  0x46   : > { %2140 = vmatprep.subr.bf16.mxu1 %v2285_v38  ;;  %2188 = vmatprep.subr.bf16.mxu0 %v2286_v39 }
  0x47   : > { %2142 = vmatprep.mubr.bf16.mxu1 %v2287_v40  ;;  %2190 = vmatprep.mubr.bf16.mxu0 %v2288_v41 }
  0x49   : > { %2141 = vmatpush3.bf16.msra.mxu1 %v2285_v38  ;;  %2189 = vmatpush3.bf16.msra.mxu0 %v2286_v39  ;;  %v2564_v38 = vld [vmem:[%s2916_s2] ss:$0 sm:$0xff] }
  0x4c   : > { %2143 = vmatmul.mubr.bf16.vlgmr.msra.gmra.mxu1 %v2373_v4  ;;  %2191 = vmatmul.mubr.bf16.vlgmr.msra.gmra.mxu0 %v2289_v42 }
  0x4d   : > { %2146 = vmatprep.mubr.bf16.mxu1 %v2396_v11  ;;  %2194 = vmatprep.mubr.bf16.mxu0 %v2290_v43 }
  0x54   : > { %2147 = vmatmul.mubr.bf16.gmra.mxu1 %v2411_v16  ;;  %2195 = vmatmul.mubr.bf16.gmra.mxu0 %v2291_v44 }
  0x55   : > { %2150 = vmatprep.mubr.bf16.mxu1 %v2422_v19  ;;  %2198 = vmatprep.mubr.bf16.mxu0 %v2292_v45 }
  0x5c   : > { %2151 = vmatmul.mubr.bf16.gmra.mxu1 %v2439_v24  ;;  %2199 = vmatmul.mubr.bf16.gmra.mxu0 %v2293_v46 }
  0x5d   : > { %2154 = vmatprep.mubr.bf16.mxu1 %v2273_v27  ;;  %2202 = vmatprep.mubr.bf16.mxu0 %v2294_v47 }
  0x64   : > { %2155 = vmatmul.mubr.bf16.gmra.mxu1 %v2279_v32  ;;  %2203 = vmatmul.mubr.bf16.gmra.mxu0 %v2295_v48 }
  0x65   : > { %2158 = vmatprep.mubr.bf16.mxu1 %v2281_v36  ;;  %2206 = vmatprep.mubr.bf16.mxu0 %v2296_v49 }
  0x6c   : > { %2159 = vmatmul.mubr.bf16.gmra.mxu1 %v2376_v5  ;;  %2207 = vmatmul.mubr.bf16.gmra.mxu0 %v2297_v50 }
  0x6d   : > { %2162 = vmatprep.mubr.bf16.mxu1 %v2402_v13  ;;  %2210 = vmatprep.mubr.bf16.mxu0 %v2298_v51 }
  0x74   : > { %2163 = vmatmul.mubr.bf16.gmra.mxu1 %v2414_v17  ;;  %2211 = vmatmul.mubr.bf16.gmra.mxu0 %v2299_v52 }
  0x75   : > { %2166 = vmatprep.mubr.bf16.mxu1 %v2430_v21  ;;  %2214 = vmatprep.mubr.bf16.mxu0 %v2300_v53 }
  0x7c   : > { %2167 = vmatmul.mubr.bf16.gmra.mxu1 %v2442_v25  ;;  %2215 = vmatmul.mubr.bf16.gmra.mxu0 %v2301_v54 }
  0x7d   : > { %2170 = vmatprep.mubr.bf16.mxu1 %v2456_v29  ;;  %2218 = vmatprep.mubr.bf16.mxu0 %v2302_v55 }
  0x84   : > { %2171 = vmatmul.mubr.bf16.gmra.mxu1 %v2466_v33  ;;  %2219 = vmatmul.mubr.bf16.gmra.mxu0 %v2303_v56 }
  0xec   : > { %v2096_v57 = vpop.f32.mrf.mxu0  ;;  %v2513_v58 = vpop.f32.mrf.mxu1 }
  0xee   : > { %v471_v59 = vpop.f32.mrf.mxu0  ;;  %v2515_v60 = vpop.f32.mrf.mxu1 }
  0xf0   : > { %v2097_v61 = vpop.f32.mrf.mxu0  ;;  %v2517_v62 = vpop.f32.mrf.mxu1 }
  0xf2   : > { %v474_v63 = vpop.f32.mrf.mxu0  ;;  %v2519_v0 = vpop.f32.mrf.mxu1 }
  0xf4   : > { %v2100_v1 = vpop.f32.mrf.mxu0  ;;  %v2521_v2 = vpop.f32.mrf.mxu1 }
  0xf6   : > { %v487_v3 = vpop.f32.mrf.mxu0  ;;  %v2523_v4 = vpop.f32.mrf.mxu1 }
  0xf8   : > { %v2101_v5 = vpop.f32.mrf.mxu0  ;;  %v2525_v6 = vpop.f32.mrf.mxu1 }
  0xfa   : > { %v490_v7 = vpop.f32.mrf.mxu0  ;;  %v2527_v8 = vpop.f32.mrf.mxu1 }
  0xfc   : > { %v2529_v9 = vpop.f32.mrf.mxu0  ;;  %v2531_v10 = vpop.f32.mrf.mxu1 }
  0xfe   : > { %v2533_v11 = vpop.f32.mrf.mxu0  ;;  %v2535_v12 = vpop.f32.mrf.mxu1 }
 0x100   : > { %v2537_v13 = vpop.f32.mrf.mxu0  ;;  %v2539_v14 = vpop.f32.mrf.mxu1 }
 0x102   : > { %v2541_v15 = vpop.f32.mrf.mxu0  ;;  %v2543_v16 = vpop.f32.mrf.mxu1 }
 0x104   : > { %v2545_v17 = vpop.f32.mrf.mxu0  ;;  %v2547_v18 = vpop.f32.mrf.mxu1 }
 0x106   : > { %v2549_v19 = vpop.f32.mrf.mxu0  ;;  %v2551_v20 = vpop.f32.mrf.mxu1 }
 0x108   : > { %v2553_v21 = vpop.f32.mrf.mxu0  ;;  %v2555_v22 = vpop.f32.mrf.mxu1 }
 0x10a   : > { %v2557_v23 = vpop.f32.mrf.mxu0  ;;  %v2559_v24 = vpop.f32.mrf.mxu1 }
 0x10c   : > { %v2144_v25 = vpop.f32.mrf.mxu1  ;;  %v2192_v26 = vpop.f32.mrf.mxu0 }
 0x10d   : > { %v695_v29 = vadd.f32 %v2144_v25, %v2096_v57 }
 0x10e   : > { %v686_v27 = vpop.f32.mrf.mxu1  ;;  %v1040_v28 = vpop.f32.mrf.mxu0 }
 0x10f   : > { %v687_v30 = vadd.f32 %v686_v27, %v471_v59  ;;  %v1169_v37 = vadd.f32 %v2192_v26, %v695_v29 }
 0x110   : > { %v2145_v31 = vpop.f32.mrf.mxu1  ;;  %v2193_v32 = vpop.f32.mrf.mxu0 }
 0x111   : > { %v1167_v33 = vadd.f32 %v1040_v28, %v687_v30  ;;  %v698_v34 = vadd.f32 %v2145_v31, %v2097_v61  ;;  %v2570_v47 = vadd.f32 %v2564_v38, %v1169_v37 }
 0x112   : > { %v689_v35 = vpop.f32.mrf.mxu1  ;;  %v1043_v36 = vpop.f32.mrf.mxu0 }
 0x113   : > { %v690_v39 = vadd.f32 %v689_v35, %v474_v63  ;;  %v2567_v40 = vadd.f32 %v2564_v38, %v1167_v33  ;;  %v1170_v43 = vadd.f32 %v2193_v32, %v698_v34 }
 0x114   : > { %v2148_v41 = vpop.f32.mrf.mxu1  ;;  %v2196_v42 = vpop.f32.mrf.mxu0 }
 0x115   : > { %v1168_v44 = vadd.f32 %v1043_v36, %v690_v39  ;;  %v1277_v50 = vmul.f32 %v2567_v40, %v2567_v40  ;;  %v711_v51 = vadd.f32 %v2148_v41, %v2100_v1  ;;  %v2578_v54 = vadd.f32 %v2564_v38, %v1170_v43 }
 0x116   : > { %v702_v45 = vpop.f32.mrf.mxu1  ;;  %v1056_v46 = vpop.f32.mrf.mxu0 }
 0x117   : > { %v2573_v48 = vadd.f32 %v2564_v38, %v1168_v44  ;;  %v703_v49 = vadd.f32 %v702_v45, %v487_v3  ;;  %v1279_v3 = vmul.f32 %v2570_v47, %v2570_v47  ;;  %v1173_v27 = vadd.f32 %v2196_v42, %v711_v51 }
 0x118   : > { %v2149_v52 = vpop.f32.mrf.mxu1  ;;  %v2197_v53 = vpop.f32.mrf.mxu0  ;;  %v1280_v31 = vmul.f32 %v2578_v54, %v2578_v54 }
 0x119   : > { %v1238_v55 = vadd.f32 %v2573_v48, %v2567_v40  ;;  %v1278_v56 = vmul.f32 %v2573_v48, %v2573_v48  ;;  %v1171_v57 = vadd.f32 %v1056_v46, %v703_v49  ;;  %v714_v59 = vadd.f32 %v2149_v52, %v2101_v5 }
 0x11a   : > { %v705_v61 = vpop.f32.mrf.mxu1  ;;  %v1059_v63 = vpop.f32.mrf.mxu0  ;;  %v2599_v43 = vadd.f32 %v2564_v38, %v1173_v27 }
 0x11b   : > { %v1239_v1 = vadd.f32 %v1238_v55, %v2570_v47  ;;  %v1309_v25 = vadd.f32 %v1278_v56, %v1277_v50  ;;  %v2588_v26 = vadd.f32 %v2564_v38, %v1171_v57  ;;  %v706_v28 = vadd.f32 %v705_v61, %v490_v7 }
 0x11c   : > { %v2152_v29 = vpop.f32.mrf.mxu1  ;;  %v2200_v30 = vpop.f32.mrf.mxu0  ;;  %v1174_v34 = vadd.f32 %v2197_v53, %v714_v59  ;;  %v1283_v59 = vmul.f32 %v2599_v43, %v2599_v43 }
 0x11d   : > { %v1310_v32 = vadd.f32 %v1309_v25, %v1279_v3  ;;  %v1240_v5 = vadd.f32 %v1239_v1, %v2578_v54  ;;  %v1281_v33 = vmul.f32 %v2588_v26, %v2588_v26  ;;  %v1172_v35 = vadd.f32 %v1059_v63, %v706_v28 }
 0x11e   : > { %v718_v36 = vpop.f32.mrf.mxu1  ;;  %v1072_v37 = vpop.f32.mrf.mxu0  ;;  %v727_v7 = vadd.f32 %v2152_v29, %v2529_v9  ;;  %v2605_v51 = vadd.f32 %v2564_v38, %v1174_v34 }
 0x11f   : > { %v1241_v39 = vadd.f32 %v1240_v5, %v2588_v26  ;;  %v1311_v41 = vadd.f32 %v1310_v32, %v1280_v31  ;;  %v719_v42 = vadd.f32 %v718_v36, %v2533_v11  ;;  %v2602_v44 = vadd.f32 %v2564_v38, %v1172_v35 }
 0x120   : > { %v2153_v45 = vpop.f32.mrf.mxu1  ;;  %v2201_v46 = vpop.f32.mrf.mxu0  ;;  %v1177_v56 = vadd.f32 %v2200_v30, %v727_v7 }
 0x121   : > { %v1312_v49 = vadd.f32 %v1311_v41, %v1281_v33  ;;  %v1175_v50 = vadd.f32 %v1072_v37, %v719_v42  ;;  %v1242_v52 = vadd.f32 %v1241_v39, %v2602_v44  ;;  %v1282_v9 = vmul.f32 %v2602_v44, %v2602_v44 }
 0x122   : > { %v730_v11 = vadd.f32 %v2153_v45, %v2537_v13  ;;  %v721_v53 = vpop.f32.mrf.mxu1  ;;  %v1075_v55 = vpop.f32.mrf.mxu0  ;;  %v1284_v13 = vmul.f32 %v2605_v51, %v2605_v51  ;;  %v2622_v32 = vadd.f32 %v2564_v38, %v1177_v56 }
 0x123   : > { %v722_v57 = vadd.f32 %v721_v53, %v2541_v15  ;;  %v1243_v61 = vadd.f32 %v1242_v52, %v2599_v43  ;;  %v1313_v63 = vadd.f32 %v1312_v49, %v1282_v9  ;;  %v2616_v3 = vadd.f32 %v2564_v38, %v1175_v50 }
 0x124   : > { %v2156_v1 = vpop.f32.mrf.mxu1  ;;  %v2204_v25 = vpop.f32.mrf.mxu0  ;;  %v1178_v30 = vadd.f32 %v2201_v46, %v730_v11  ;;  %v1287_v9 = vmul.f32 %v2622_v32, %v2622_v32 }
 0x125   : > { %v1176_v27 = vadd.f32 %v1075_v55, %v722_v57  ;;  %v1314_v28 = vadd.f32 %v1313_v63, %v1283_v59  ;;  %v1244_v29 = vadd.f32 %v1243_v61, %v2605_v51  ;;  %v1285_v35 = vmul.f32 %v2616_v3, %v2616_v3 }
 0x126   : > { %v734_v15 = vpop.f32.mrf.mxu1  ;;  %v1088_v31 = vpop.f32.mrf.mxu0  ;;  %v743_v37 = vadd.f32 %v2156_v1, %v2545_v17  ;;  %v2635_v46 = vadd.f32 %v2564_v38, %v1178_v30 }
 0x127   : > { %v2625_v5 = vadd.f32 %v2564_v38, %v1176_v27  ;;  %v735_v33 = vadd.f32 %v734_v15, %v2549_v19  ;;  %v1245_v34 = vadd.f32 %v1244_v29, %v2616_v3  ;;  %v1315_v36 = vadd.f32 %v1314_v28, %v1284_v13 }
 0x128   : > { %v2157_v39 = vpop.f32.mrf.mxu1  ;;  %v2205_v41 = vpop.f32.mrf.mxu0  ;;  %v1181_v55 = vadd.f32 %v2204_v25, %v743_v37 }
 0x129   : > { %v1286_v7 = vmul.f32 %v2625_v5, %v2625_v5  ;;  %v1179_v42 = vadd.f32 %v1088_v31, %v735_v33  ;;  %v1316_v45 = vadd.f32 %v1315_v36, %v1285_v35  ;;  %v1246_v19 = vadd.f32 %v1245_v34, %v2625_v5 }
 0x12a   : > { %v746_v49 = vadd.f32 %v2157_v39, %v2553_v21  ;;  %v737_v50 = vpop.f32.mrf.mxu1  ;;  %v1091_v52 = vpop.f32.mrf.mxu0  ;;  %v1288_v21 = vmul.f32 %v2635_v46, %v2635_v46  ;;  %v2655_v30 = vadd.f32 %v2564_v38, %v1181_v55 }
 0x12b   : > { %v738_v17 = vadd.f32 %v737_v50, %v2557_v23  ;;  %v1247_v11 = vadd.f32 %v1246_v19, %v2622_v32  ;;  %v1317_v53 = vadd.f32 %v1316_v45, %v1286_v7  ;;  %v2644_v56 = vadd.f32 %v2564_v38, %v1179_v42 }
 0x12c   : > { %v2160_v57 = vpop.f32.mrf.mxu1  ;;  %v2208_v59 = vpop.f32.mrf.mxu0  ;;  %v1182_v27 = vadd.f32 %v2205_v41, %v746_v49  ;;  %v1291_v49 = vmul.f32 %v2655_v30, %v2655_v30 }
 0x12d   : > { %v1180_v61 = vadd.f32 %v1091_v52, %v738_v17  ;;  %v1318_v63 = vadd.f32 %v1317_v53, %v1287_v9  ;;  %v1248_v1 = vadd.f32 %v1247_v11, %v2635_v46  ;;  %v759_v25 = vadd.f32 %v2160_v57, %v2513_v58 }
 0x12e   : > { %v750_v13 = vpop.f32.mrf.mxu1  ;;  %v1104_v28 = vpop.f32.mrf.mxu0  ;;  %v1289_v31 = vmul.f32 %v2644_v56, %v2644_v56  ;;  %v2663_v58 = vadd.f32 %v2564_v38, %v1182_v27 }
 0x12f   : > { %v2650_v23 = vadd.f32 %v2564_v38, %v1180_v61  ;;  %v751_v29 = vadd.f32 %v750_v13, %v2515_v60  ;;  %v1249_v15 = vadd.f32 %v1248_v1, %v2644_v56  ;;  %v1319_v33 = vadd.f32 %v1318_v63, %v1288_v21 }
 0x130   : > { %v2161_v34 = vpop.f32.mrf.mxu1  ;;  %v2209_v35 = vpop.f32.mrf.mxu0  ;;  %v1185_v45 = vadd.f32 %v2208_v59, %v759_v25 }
 0x131   : > { %v1290_v36 = vmul.f32 %v2650_v23, %v2650_v23  ;;  %v1183_v37 = vadd.f32 %v1104_v28, %v751_v29  ;;  %v1320_v39 = vadd.f32 %v1319_v33, %v1289_v31  ;;  %v1250_v60 = vadd.f32 %v1249_v15, %v2650_v23 }
 0x132   : > { %v762_v41 = vadd.f32 %v2161_v34, %v2517_v62  ;;  %v753_v7 = vpop.f32.mrf.mxu1  ;;  %v1107_v42 = vpop.f32.mrf.mxu0  ;;  %v1292_v62 = vmul.f32 %v2663_v58, %v2663_v58  ;;  %v2678_v21 = vadd.f32 %v2564_v38, %v1185_v45 }
 0x133   : > { %v754_v19 = vadd.f32 %v753_v7, %v2519_v0  ;;  %v1251_v50 = vadd.f32 %v1250_v60, %v2655_v30  ;;  %v1321_v52 = vadd.f32 %v1320_v39, %v1290_v36  ;;  %v2672_v9 = vadd.f32 %v2564_v38, %v1183_v37 }
 0x134   : > { %v2164_v17 = vpop.f32.mrf.mxu1  ;;  %v2212_v11 = vpop.f32.mrf.mxu0  ;;  %v1186_v59 = vadd.f32 %v2209_v35, %v762_v41  ;;  %v1295_v60 = vmul.f32 %v2678_v21, %v2678_v21 }
 0x135   : > { %v1184_v53 = vadd.f32 %v1107_v42, %v754_v19  ;;  %v1322_v55 = vadd.f32 %v1321_v52, %v1291_v49  ;;  %v1252_v57 = vadd.f32 %v1251_v50, %v2663_v58  ;;  %v1293_v13 = vmul.f32 %v2672_v9, %v2672_v9 }
 0x136   : > { %v766_v0 = vpop.f32.mrf.mxu1  ;;  %v1120_v61 = vpop.f32.mrf.mxu0  ;;  %v775_v25 = vadd.f32 %v2164_v17, %v2521_v2  ;;  %v2691_v35 = vadd.f32 %v2564_v38, %v1186_v59 }
 0x137   : > { %v2681_v63 = vadd.f32 %v2564_v38, %v1184_v53  ;;  %v767_v1 = vadd.f32 %v766_v0, %v2523_v4  ;;  %v1253_v27 = vadd.f32 %v1252_v57, %v2672_v9  ;;  %v1323_v28 = vadd.f32 %v1322_v55, %v1292_v62 }
 0x138   : > { %v2165_v29 = vpop.f32.mrf.mxu1  ;;  %v2213_v15 = vpop.f32.mrf.mxu0  ;;  %v1189_v42 = vadd.f32 %v2212_v11, %v775_v25 }
 0x139   : > { %v1294_v31 = vmul.f32 %v2681_v63, %v2681_v63  ;;  %v1187_v33 = vadd.f32 %v1120_v61, %v767_v1  ;;  %v1324_v34 = vadd.f32 %v1323_v28, %v1293_v13  ;;  %v1254_v4 = vadd.f32 %v1253_v27, %v2681_v63 }
 0x13a   : > { %v778_v36 = vadd.f32 %v2165_v29, %v2525_v6  ;;  %v769_v37 = vpop.f32.mrf.mxu1  ;;  %v1123_v39 = vpop.f32.mrf.mxu0  ;;  %v1296_v6 = vmul.f32 %v2691_v35, %v2691_v35  ;;  %v2711_v59 = vadd.f32 %v2564_v38, %v1189_v42 }
 0x13b   : > { %v770_v2 = vadd.f32 %v769_v37, %v2527_v8  ;;  %v1255_v41 = vadd.f32 %v1254_v4, %v2678_v21  ;;  %v1325_v7 = vadd.f32 %v1324_v34, %v1294_v31  ;;  %v2700_v45 = vadd.f32 %v2564_v38, %v1187_v33 }
 0x13c   : > { %v2168_v19 = vpop.f32.mrf.mxu1  ;;  %v2216_v49 = vpop.f32.mrf.mxu0  ;;  %v1190_v53 = vadd.f32 %v2213_v15, %v778_v36  ;;  %v1299_v36 = vmul.f32 %v2711_v59, %v2711_v59 }
 0x13d   : > { %v1188_v50 = vadd.f32 %v1123_v39, %v770_v2  ;;  %v1326_v52 = vadd.f32 %v1325_v7, %v1295_v60  ;;  %v1256_v17 = vadd.f32 %v1255_v41, %v2691_v35  ;;  %v791_v11 = vadd.f32 %v2168_v19, %v2531_v10 }
 0x13e   : > { %v782_v62 = vpop.f32.mrf.mxu1  ;;  %v1136_v55 = vpop.f32.mrf.mxu0  ;;  %v1297_v61 = vmul.f32 %v2700_v45, %v2700_v45  ;;  %v2719_v10 = vadd.f32 %v2564_v38, %v1190_v53 }
 0x13f   : > { %v2706_v8 = vadd.f32 %v2564_v38, %v1188_v50  ;;  %v783_v57 = vadd.f32 %v782_v62, %v2535_v12  ;;  %v1257_v0 = vadd.f32 %v1256_v17, %v2700_v45  ;;  %v1327_v1 = vadd.f32 %v1326_v52, %v1296_v6 }
 0x140   : > { %v2169_v27 = vpop.f32.mrf.mxu1  ;;  %v2217_v13 = vpop.f32.mrf.mxu0  ;;  %v1193_v34 = vadd.f32 %v2216_v49, %v791_v11 }
 0x141   : > { %v1298_v28 = vmul.f32 %v2706_v8, %v2706_v8  ;;  %v1191_v25 = vadd.f32 %v1136_v55, %v783_v57  ;;  %v1328_v29 = vadd.f32 %v1327_v1, %v1297_v61  ;;  %v1258_v12 = vadd.f32 %v1257_v0, %v2706_v8 }
 0x142   : > { %v794_v15 = vadd.f32 %v2169_v27, %v2539_v14  ;;  %v785_v31 = vpop.f32.mrf.mxu1  ;;  %v1139_v33 = vpop.f32.mrf.mxu0  ;;  %v1300_v14 = vmul.f32 %v2719_v10, %v2719_v10  ;;  %v2734_v6 = vadd.f32 %v2564_v38, %v1193_v34 }
 0x143   : > { %v786_v4 = vadd.f32 %v785_v31, %v2543_v16  ;;  %v1259_v37 = vadd.f32 %v1258_v12, %v2711_v59  ;;  %v1329_v39 = vadd.f32 %v1328_v29, %v1298_v28  ;;  %v2728_v60 = vadd.f32 %v2564_v38, %v1191_v25 }
 0x144   : > { %v2172_v2 = vpop.f32.mrf.mxu1  ;;  %v2220_v41 = vpop.f32.mrf.mxu0  ;;  %v1194_v49 = vadd.f32 %v2217_v13, %v794_v15  ;;  %v1303_v29 = vmul.f32 %v2734_v6, %v2734_v6 }
 0x145   : > { %v1192_v7 = vadd.f32 %v1139_v33, %v786_v4  ;;  %v1330_v42 = vadd.f32 %v1329_v39, %v1299_v36  ;;  %v1260_v19 = vadd.f32 %v1259_v37, %v2719_v10  ;;  %v1301_v62 = vmul.f32 %v2728_v60, %v2728_v60 }
 0x146   : > { %v798_v16 = vpop.f32.mrf.mxu1  ;;  %v1152_v50 = vpop.f32.mrf.mxu0  ;;  %v807_v11 = vadd.f32 %v2172_v2, %v2547_v18  ;;  %v2747_v13 = vadd.f32 %v2564_v38, %v1194_v49 }
 0x147   : > { %v2737_v52 = vadd.f32 %v2564_v38, %v1192_v7  ;;  %v799_v17 = vadd.f32 %v798_v16, %v2551_v20  ;;  %v1261_v53 = vadd.f32 %v1260_v19, %v2728_v60  ;;  %v1331_v55 = vadd.f32 %v1330_v42, %v1300_v14 }
 0x148   : > { %v2173_v57 = vpop.f32.mrf.mxu1  ;;  %v2221_v0 = vpop.f32.mrf.mxu0  ;;  %v1197_v31 = vadd.f32 %v2220_v41, %v807_v11  ;;  %v1304_v36 = vmul.f32 %v2747_v13, %v2747_v13 }
 0x149   : > { %v1302_v61 = vmul.f32 %v2737_v52, %v2737_v52  ;;  %v1195_v1 = vadd.f32 %v1152_v50, %v799_v17  ;;  %v1332_v27 = vadd.f32 %v1331_v55, %v1301_v62  ;;  %v1262_v20 = vadd.f32 %v1261_v53, %v2737_v52 }
 0x14a   : > { %v810_v28 = vadd.f32 %v2173_v57, %v2555_v22  ;;  %v801_v25 = vpop.f32.mrf.mxu1  ;;  %v1155_v34 = vpop.f32.mrf.mxu0 }
 0x14b   : > { %v802_v18 = vadd.f32 %v801_v25, %v2559_v24  ;;  %v1263_v12 = vadd.f32 %v1262_v20, %v2734_v6  ;;  %v1333_v15 = vadd.f32 %v1332_v27, %v1302_v61  ;;  %v2756_v33 = vadd.f32 %v2564_v38, %v1195_v1 }
 0x14c   : > { %v1198_v39 = vadd.f32 %v2221_v0, %v810_v28  ;;  %v2765_v24 = vadd.f32 %v2564_v38, %v1197_v31 }
 0x14d   : > { %v1196_v4 = vadd.f32 %v1155_v34, %v802_v18  ;;  %v1334_v37 = vadd.f32 %v1333_v15, %v1303_v29  ;;  %v1264_v22 = vadd.f32 %v1263_v12, %v2747_v13  ;;  %v1305_v7 = vmul.f32 %v2756_v33, %v2756_v33 }
 0x14e   : > { %v2773_v49 = vadd.f32 %v2564_v38, %v1198_v39  ;;  %v1307_v50 = vmul.f32 %v2765_v24, %v2765_v24 }
 0x14f   : > { %v2762_v2 = vadd.f32 %v2564_v38, %v1196_v4  ;;  %v1265_v41 = vadd.f32 %v1264_v22, %v2756_v33  ;;  %v1335_v14 = vadd.f32 %v1334_v37, %v1304_v36 }
 0x150   : > { %v1308_v62 = vmul.f32 %v2773_v49, %v2773_v49 }
 0x151   : > { %v1306_v42 = vmul.f32 %v2762_v2, %v2762_v2  ;;  %v1336_v19 = vadd.f32 %v1335_v14, %v1305_v7  ;;  %v1266_v16 = vadd.f32 %v1265_v41, %v2762_v2 }
 0x153   : > { %v1337_v17 = vadd.f32 %v1336_v19, %v1306_v42  ;;  %v1267_v53 = vadd.f32 %v1266_v16, %v2765_v24 }
 0x155   : > { %v1268_v55 = vadd.f32 %v1267_v53, %v2773_v49  ;;  %v1338_v11 = vadd.f32 %v1337_v17, %v1307_v50 }
 0x157   : > { %v1269_v57 = vrot.slane %v1268_v55, 4  ;;  %v1339_v0 = vadd.f32 %v1338_v11, %v1308_v62 }
 0x159   : > { %v1270_v61 = vadd.f32 %v1269_v57, %v1268_v55  ;;  %v1340_v1 = vrot.slane %v1339_v0, 4 }
 0x15b   : > { %v1271_v38 = vrot.slane %v1270_v61, 2  ;;  %v1341_v27 = vadd.f32 %v1340_v1, %v1339_v0 }
 0x15d   : > { %v1272_v20 = vadd.f32 %v1271_v38, %v1270_v61  ;;  %v1342_v28 = vrot.slane %v1341_v27, 2 }
 0x15f   : > { %v1273_v25 = vrot.slane %v1272_v20, 1  ;;  %v1343_v29 = vadd.f32 %v1342_v28, %v1341_v27 }
 0x161   : > { %v1274_v18 = vadd.f32 %v1273_v25, %v1272_v20  ;;  %v1344_v12 = vrot.slane %v1343_v29, 1 }
 0x163   : > { %1275 = vadd.xlane.f32.xlu0 %v1274_v18  ;;  %v1345_v15 = vadd.f32 %v1344_v12, %v1343_v29  ;;  %v1842_v18 = vld [vmem:[%s2917_s3] ss:$0 sm:$0xff] }
 0x167   : > { %1346 = vadd.xlane.f32.xlu0 %v1345_v15 }
 0x1ec   : > { %v1276_v31 = vpop.xlane.xlu0 %1275 }
 0x1ed   : > { %v2782_v34 = vmul.f32 0.00048828125, %v1276_v31 }
 0x1ef   : > { %v1350_v36 = vmul.f32 %v2782_v34, %v2782_v34  ;;  %v1355_v7 = vsub.f32 %v2567_v40, %v2782_v34  ;;  %v1356_v14 = vsub.f32 %v2573_v48, %v2782_v34  ;;  %v1357_v42 = vsub.f32 %v2570_v47, %v2782_v34 }
 0x1f0   : > { %v1347_v4 = vpop.xlane.xlu0 %1346  ;;  %v1358_v19 = vsub.f32 %v2578_v54, %v2782_v34  ;;  %v1359_v16 = vsub.f32 %v2588_v26, %v2782_v34  ;;  %v1360_v50 = vsub.f32 %v2602_v44, %v2782_v34  ;;  %v1361_v17 = vsub.f32 %v2599_v43, %v2782_v34 }
 0x1f1   : > { %v1349_v37 = vmul.f32 0.00048828125, %v1347_v4  ;;  %v1362_v40 = vsub.f32 %v2605_v51, %v2782_v34  ;;  %v1363_v48 = vsub.f32 %v2616_v3, %v2782_v34  ;;  %v1364_v47 = vsub.f32 %v2625_v5, %v2782_v34 }
 0x1f2   : > { %v1365_v54 = vsub.f32 %v2622_v32, %v2782_v34  ;;  %v1366_v26 = vsub.f32 %v2635_v46, %v2782_v34  ;;  %v1367_v44 = vsub.f32 %v2644_v56, %v2782_v34  ;;  %v1368_v43 = vsub.f32 %v2650_v23, %v2782_v34 }
 0x1f3   : > { %v1351_v22 = vsub.f32 %v1349_v37, %v1350_v36  ;;  %v1369_v51 = vsub.f32 %v2655_v30, %v2782_v34  ;;  %v1370_v3 = vsub.f32 %v2663_v58, %v2782_v34  ;;  %v1371_v5 = vsub.f32 %v2672_v9, %v2782_v34 }
 0x1f4   : > { %v1372_v32 = vsub.f32 %v2681_v63, %v2782_v34  ;;  %v1373_v46 = vsub.f32 %v2678_v21, %v2782_v34  ;;  %v1374_v56 = vsub.f32 %v2691_v35, %v2782_v34  ;;  %v1375_v23 = vsub.f32 %v2700_v45, %v2782_v34 }
 0x1f5   : > { %v1352_v39 = vmax.f32 %v1351_v22, 0.0  ;;  %v1376_v30 = vsub.f32 %v2706_v8, %v2782_v34  ;;  %v1377_v58 = vsub.f32 %v2711_v59, %v2782_v34  ;;  %v1378_v9 = vsub.f32 %v2719_v10, %v2782_v34 }
 0x1f6   : > { %v1379_v63 = vsub.f32 %v2728_v60, %v2782_v34  ;;  %v1380_v21 = vsub.f32 %v2737_v52, %v2782_v34  ;;  %v1381_v35 = vsub.f32 %v2734_v6, %v2782_v34  ;;  %v1382_v45 = vsub.f32 %v2747_v13, %v2782_v34 }
 0x1f7   : > { %v1353_v41 = vadd.f32 1e-05, %v1352_v39  ;;  %v1383_v8 = vsub.f32 %v2756_v33, %v2782_v34  ;;  %v1384_v59 = vsub.f32 %v2762_v2, %v2782_v34  ;;  %v1385_v10 = vsub.f32 %v2765_v24, %v2782_v34 }
 0x1f8   : > { %v1386_v60 = vsub.f32 %v2773_v49, %v2782_v34 }
 0x1f9   : > { %2304 = vrsqrt.f32 %v1353_v41 }
 0x206   : > { %v2305_v53 = vpop.eup %2304 }
 0x207   : > { %v1387_v52 = vmul.f32 %v2305_v53, %v1355_v7  ;;  %v1388_v62 = vmul.f32 %v2305_v53, %v1356_v14  ;;  %v1389_v55 = vmul.f32 %v2305_v53, %v1357_v42  ;;  %v1390_v6 = vmul.f32 %v2305_v53, %v1358_v19 }
 0x208   : > { %v1391_v11 = vmul.f32 %v2305_v53, %v1359_v16  ;;  %v1392_v57 = vmul.f32 %v2305_v53, %v1360_v50  ;;  %v1393_v13 = vmul.f32 %v2305_v53, %v1361_v17  ;;  %v1394_v0 = vmul.f32 %v2305_v53, %v1362_v40 }
 0x209   : > { %v1395_v61 = vmul.f32 %v2305_v53, %v1363_v48  ;;  %v1396_v1 = vmul.f32 %v2305_v53, %v1364_v47  ;;  %v1397_v33 = vmul.f32 %v2305_v53, %v1365_v54  ;;  %v1398_v38 = vmul.f32 %v2305_v53, %v1366_v26 }
 0x20a   : > { %v1399_v27 = vmul.f32 %v2305_v53, %v1367_v44  ;;  %v1400_v2 = vmul.f32 %v2305_v53, %v1368_v43  ;;  %v1401_v20 = vmul.f32 %v2305_v53, %v1369_v51  ;;  %v1402_v28 = vmul.f32 %v2305_v53, %v1370_v3 }
 0x20b   : > { %v1403_v24 = vmul.f32 %v2305_v53, %v1371_v5  ;;  %v1404_v25 = vmul.f32 %v2305_v53, %v1372_v32  ;;  %v1405_v29 = vmul.f32 %v2305_v53, %v1373_v46  ;;  %v1406_v49 = vmul.f32 %v2305_v53, %v1374_v56 }
 0x20c   : > { %v1407_v12 = vmul.f32 %v2305_v53, %v1375_v23  ;;  %v1408_v15 = vmul.f32 %v2305_v53, %v1376_v30  ;;  %v1409_v31 = vmul.f32 %v2305_v53, %v1377_v58  ;;  %v1410_v34 = vmul.f32 %v2305_v53, %v1378_v9  ;;  %v1843_v58 = vld [vmem:[%s2918_s4] ss:$0 sm:$0xff] }
 0x20d   : > { %v1411_v4 = vmul.f32 %v2305_v53, %v1379_v63  ;;  %v1412_v36 = vmul.f32 %v2305_v53, %v1380_v21  ;;  %v1413_v37 = vmul.f32 %v2305_v53, %v1381_v35  ;;  %v1414_v22 = vmul.f32 %v2305_v53, %v1382_v45 }
 0x20e   : > { %v1415_v39 = vmul.f32 %v2305_v53, %v1383_v8  ;;  %v1416_v41 = vmul.f32 %v2305_v53, %v1384_v59  ;;  %v1417_v7 = vmul.f32 %v2305_v53, %v1385_v10  ;;  %v1418_v14 = vmul.f32 %v2305_v53, %v1386_v60 }
 0x20f   : > { %v1426_v42 = vmul.f32 %v1842_v18, %v1387_v52  ;;  %v1427_v19 = vmul.f32 %v1842_v18, %v1388_v62  ;;  %v1428_v16 = vmul.f32 %v1842_v18, %v1389_v55  ;;  %v1429_v50 = vmul.f32 %v1842_v18, %v1390_v6 }
 0x210   : > { %v1430_v17 = vmul.f32 %v1842_v18, %v1391_v11  ;;  %v1431_v40 = vmul.f32 %v1842_v18, %v1392_v57  ;;  %v1432_v48 = vmul.f32 %v1842_v18, %v1393_v13  ;;  %v1433_v47 = vmul.f32 %v1842_v18, %v1394_v0 }
 0x211   : > { %v1434_v54 = vmul.f32 %v1842_v18, %v1395_v61  ;;  %v1435_v26 = vmul.f32 %v1842_v18, %v1396_v1  ;;  %v1436_v44 = vmul.f32 %v1842_v18, %v1397_v33  ;;  %v1437_v43 = vmul.f32 %v1842_v18, %v1398_v38 }
 0x212   : > { %v1438_v51 = vmul.f32 %v1842_v18, %v1399_v27  ;;  %v1439_v3 = vmul.f32 %v1842_v18, %v1400_v2  ;;  %v1440_v5 = vmul.f32 %v1842_v18, %v1401_v20  ;;  %v1441_v32 = vmul.f32 %v1842_v18, %v1402_v28 }
 0x213   : > { %v1442_v46 = vmul.f32 %v1842_v18, %v1403_v24  ;;  %v1443_v56 = vmul.f32 %v1842_v18, %v1404_v25  ;;  %v1444_v23 = vmul.f32 %v1842_v18, %v1405_v29  ;;  %v1445_v30 = vmul.f32 %v1842_v18, %v1406_v49 }
 0x214   : > { %v1446_v9 = vmul.f32 %v1842_v18, %v1407_v12  ;;  %v1447_v63 = vmul.f32 %v1842_v18, %v1408_v15  ;;  %v1448_v21 = vmul.f32 %v1842_v18, %v1409_v31  ;;  %v1449_v35 = vmul.f32 %v1842_v18, %v1410_v34 }
 0x215   : > { %v1450_v45 = vmul.f32 %v1842_v18, %v1411_v4  ;;  %v1451_v53 = vmul.f32 %v1842_v18, %v1412_v36  ;;  %v1452_v8 = vmul.f32 %v1842_v18, %v1413_v37  ;;  %v1453_v59 = vmul.f32 %v1842_v18, %v1414_v22 }
 0x216   : > { %v1454_v10 = vmul.f32 %v1842_v18, %v1415_v39  ;;  %v1455_v60 = vmul.f32 %v1842_v18, %v1416_v41  ;;  %v1456_v52 = vmul.f32 %v1842_v18, %v1417_v7  ;;  %v1457_v62 = vmul.f32 %v1842_v18, %v1418_v14 }
 0x217   : > { %v2856_v55 = vadd.f32 %v1843_v58, %v1426_v42  ;;  %v2858_v6 = vadd.f32 %v1843_v58, %v1427_v19  ;;  %v2860_v11 = vadd.f32 %v1843_v58, %v1428_v16  ;;  %v2862_v57 = vadd.f32 %v1843_v58, %v1429_v50 }
 0x218   : > { %v2864_v13 = vadd.f32 %v1843_v58, %v1430_v17  ;;  %v2866_v0 = vadd.f32 %v1843_v58, %v1431_v40  ;;  %v2868_v61 = vadd.f32 %v1843_v58, %v1432_v48  ;;  %v2870_v1 = vadd.f32 %v1843_v58, %v1433_v47 }
 0x219   : > { %v2872_v33 = vadd.f32 %v1843_v58, %v1434_v54  ;;  %v1474_v38 = vadd.f32 %v1843_v58, %v1435_v26  ;;  %v1475_v27 = vadd.f32 %v1843_v58, %v1436_v44  ;;  %v1476_v2 = vadd.f32 %v1843_v58, %v1437_v43 }
 0x21a   : > { %v1477_v20 = vadd.f32 %v1843_v58, %v1438_v51  ;;  %v1478_v28 = vadd.f32 %v1843_v58, %v1439_v3  ;;  %v1479_v24 = vadd.f32 %v1843_v58, %v1440_v5  ;;  %v1480_v25 = vadd.f32 %v1843_v58, %v1441_v32 }
 0x21b   : > { %v2874_v29 = vadd.f32 %v1843_v58, %v1442_v46  ;;  %v1482_v49 = vadd.f32 %v1843_v58, %v1443_v56  ;;  %v1483_v18 = vadd.f32 %v1843_v58, %v1444_v23  ;;  %v1484_v12 = vadd.f32 %v1843_v58, %v1445_v30 }
 0x21c   : > { %v1485_v15 = vadd.f32 %v1843_v58, %v1446_v9  ;;  %v1486_v31 = vadd.f32 %v1843_v58, %v1447_v63  ;;  %v1487_v34 = vadd.f32 %v1843_v58, %v1448_v21  ;;  %v1488_v4 = vadd.f32 %v1843_v58, %v1449_v35 }
 0x21d   : > { %v2876_v36 = vadd.f32 %v1843_v58, %v1450_v45  ;;  %v1490_v37 = vadd.f32 %v1843_v58, %v1451_v53  ;;  %v1491_v22 = vadd.f32 %v1843_v58, %v1452_v8  ;;  %v1492_v39 = vadd.f32 %v1843_v58, %v1453_v59 }
 0x21e   : > { %v1493_v41 = vadd.f32 %v1843_v58, %v1454_v10  ;;  %v1494_v7 = vadd.f32 %v1843_v58, %v1455_v60  ;;  %v1495_v14 = vadd.f32 %v1843_v58, %v1456_v52  ;;  %v1496_v42 = vadd.f32 %v1843_v58, %v1457_v62 }
 0x21f   : > { %v1497_v19 = vmax.f32 %v2856_v55, 0.0  ;;  %v1498_v16 = vmax.f32 %v2858_v6, 0.0  ;;  %v1499_v50 = vmax.f32 %v2860_v11, 0.0  ;;  %v1500_v17 = vmax.f32 %v2862_v57, 0.0 }
 0x220   : > { %v1501_v40 = vmax.f32 %v2864_v13, 0.0  ;;  %v1502_v48 = vmax.f32 %v2866_v0, 0.0  ;;  %v1503_v47 = vmax.f32 %v2868_v61, 0.0  ;;  %v1504_v54 = vmax.f32 %v2870_v1, 0.0 }
 0x221   : > { %v1505_v26 = vmax.f32 %v2872_v33, 0.0  ;;  %v1506_v44 = vmax.f32 %v1474_v38, 0.0  ;;  %v1507_v43 = vmax.f32 %v1475_v27, 0.0  ;;  %v1508_v51 = vmax.f32 %v1476_v2, 0.0 }
 0x222   : > { %v1509_v3 = vmax.f32 %v1477_v20, 0.0  ;;  %v1510_v5 = vmax.f32 %v1478_v28, 0.0  ;;  %v1511_v32 = vmax.f32 %v1479_v24, 0.0  ;;  %v1512_v46 = vmax.f32 %v1480_v25, 0.0 }
 0x223   : > { %v1513_v56 = vmax.f32 %v2874_v29, 0.0  ;;  %v1514_v23 = vmax.f32 %v1482_v49, 0.0  ;;  %v1515_v30 = vmax.f32 %v1483_v18, 0.0  ;;  %v1516_v58 = vmax.f32 %v1484_v12, 0.0 }
 0x224   : > { %v1517_v9 = vmax.f32 %v1485_v15, 0.0  ;;  %v1518_v63 = vmax.f32 %v1486_v31, 0.0  ;;  %v1519_v21 = vmax.f32 %v1487_v34, 0.0  ;;  %v1520_v35 = vmax.f32 %v1488_v4, 0.0 }
 0x225   : > { %v1521_v45 = vmax.f32 %v2876_v36, 0.0  ;;  %v1522_v53 = vmax.f32 %v1490_v37, 0.0  ;;  %v1523_v8 = vmax.f32 %v1491_v22, 0.0  ;;  %v1524_v59 = vmax.f32 %v1492_v39, 0.0 }
 0x226   : > { %v1525_v10 = vmax.f32 %v1493_v41, 0.0  ;;  %v1526_v60 = vmax.f32 %v1494_v7, 0.0  ;;  %v1527_v52 = vmax.f32 %v1495_v14, 0.0  ;;  %v1528_v62 = vmax.f32 %v1496_v42, 0.0 }
 0x227   : > { %v1914_v55 = vpack.c.bf16 %v1498_v16, %v1497_v19  ;;  %v1919_v6 = vpack.c.bf16 %v1500_v17, %v1499_v50  ;;  %v1924_v11 = vpack.c.bf16 %v1502_v48, %v1501_v40  ;;  %v1929_v57 = vpack.c.bf16 %v1504_v54, %v1503_v47 }
 0x228   : > { %v1934_v13 = vpack.c.bf16 %v1506_v44, %v1505_v26  ;;  %v1939_v0 = vpack.c.bf16 %v1508_v51, %v1507_v43  ;;  %v1944_v61 = vpack.c.bf16 %v1510_v5, %v1509_v3  ;;  %v1949_v1 = vpack.c.bf16 %v1512_v46, %v1511_v32 }
 0x229   : > { %1915 = vst [vmem:[%s2893_s11] sm:$0xff] %v1914_v55   ;;  %1991 = vst [vmem:[%s2893_s11 + $0x8] sm:$0xff] %v1919_v6   ;;  %v1954_v33 = vpack.c.bf16 %v1514_v23, %v1513_v56  ;;  %v1959_v38 = vpack.c.bf16 %v1516_v58, %v1515_v30  ;;  %v1964_v27 = vpack.c.bf16 %v1518_v63, %v1517_v9 }
 0x22a   : > { %1992 = vst [vmem:[%s2893_s11 + $0x10] sm:$0xff] %v1924_v11   ;;  %1993 = vst [vmem:[%s2893_s11 + $0x18] sm:$0xff] %v1929_v57   ;;  %v1969_v2 = vpack.c.bf16 %v1520_v35, %v1519_v21  ;;  %v1974_v20 = vpack.c.bf16 %v1522_v53, %v1521_v45  ;;  %v1979_v28 = vpack.c.bf16 %v1524_v59, %v1523_v8 }
 0x22b   : > { %1994 = vst [vmem:[%s2893_s11 + $0x20] sm:$0xff] %v1934_v13   ;;  %1995 = vst [vmem:[%s2893_s11 + $0x28] sm:$0xff] %v1939_v0   ;;  %v1984_v24 = vpack.c.bf16 %v1526_v60, %v1525_v10  ;;  %v1989_v25 = vpack.c.bf16 %v1528_v62, %v1527_v52 }
 0x22c   : > { %1996 = vst [vmem:[%s2893_s11 + $0x30] sm:$0xff] %v1944_v61   ;;  %1997 = vst [vmem:[%s2893_s11 + $0x38] sm:$0xff] %v1949_v1  }
 0x22d   : > { %1998 = vst [vmem:[%s2893_s11 + $0x40] sm:$0xff] %v1954_v33   ;;  %1999 = vst [vmem:[%s2893_s11 + $0x48] sm:$0xff] %v1959_v38  }
 0x22e   : > { %2000 = vst [vmem:[%s2893_s11 + $0x50] sm:$0xff] %v1964_v27   ;;  %2001 = vst [vmem:[%s2893_s11 + $0x58] sm:$0xff] %v1969_v2  }
 0x22f   : > { %2002 = vst [vmem:[%s2893_s11 + $0x60] sm:$0xff] %v1974_v20   ;;  %2003 = vst [vmem:[%s2893_s11 + $0x68] sm:$0xff] %v1979_v28  }
 0x230   : > { %2004 = vst [vmem:[%s2893_s11 + $0x70] sm:$0xff] %v1984_v24   ;;  %2005 = vst [vmem:[%s2893_s11 + $0x78] sm:$0xff] %v1989_v25  }
 0x231 PF: > { %s15_s18 = sadd.s32 1, %s2312_s18  }
 0x232   : > { %p12_p4 = scmp.ge.s32.totalorder %s15_s18, 4  }
 0x234   :  { %14 = sbr.rel (!%p12_p4) target bundleno = 1 (0x1), region = 72 }

// kernel: vertex_net_forward.10
= control target key start
LH: loop header
LB: loop body
LE: loop exit
PB: predicated region body
PF: predicated region fallthrough
CT: control target
= control target key end

     0   :  { %s950_s18 = smov 0   ;;  %s1089_s0 = inlined_call_operand.vmem [shape: bf16[2,24,128], index: 0, kind: input, shape index: {}]   ;;  %s1090_s1 = inlined_call_operand.vmem [shape: bf16[3,128,128], index: 1, kind: input, shape index: {}]   ;;  %s1091_s2 = inlined_call_operand.vmem [shape: f32[1,128], index: 2, kind: input, shape index: {}]   ;;  %s1092_s3 = inlined_call_operand.vmem [shape: f32[1,128], index: 3, kind: input, shape index: {}]   ;;  %s1093_s4 = inlined_call_operand.vmem [shape: f32[1,128], index: 4, kind: input, shape index: {}]   ;;  %s1094_s5 = inlined_call_operand.vmem [shape: bf16[2,16,128], index: 5, kind: output, shape index: {}]  }
   0x1 LB: > { %s699_s19 = sadd.s32 4294967295, %s916_s18   ;;  %p703_p0 = scmp.ge.s32.totalorder %s916_s18, 1  ;;  %s916_s18 = sphi %s950_s18, %s15_s18  }
   0x2   : > { %p187_p1 = scmp.lt.s32.totalorder %s916_s18, 3 }
   0x4   : > { %p188_p2 = pnand %p703_p0, %p187_p1 }
   0x5   : > { %p215_p3 = scmp.lt.s32.totalorder (!%p188_p2), %s699_s19, 1 }
   0x6   : > { %191 = sbr.rel (%p188_p2) target bundleno = 466 (0x1d2), region = 40 }
   0xb   : > { %v880_v0 = vld [vmem:[%s1090_s1 + $0x78] sm:$0xff]   ;;  %v918_v1 = vmov 0.0   ;;  %v882_v3 = vld [vmem:[%s1090_s1 + $0x70] sm:$0xff]   ;;  %vm919_vm0 = vmmov 0   ;;  %v884_v5 = vld [vmem:[%s1090_s1 + $0x68] sm:$0xff]   ;;  %s1096_s19 = smov (!%p215_p3, %s699_s19), 1 }
   0xc   : > { %809 = vmatprep.subr.bf16.mxu0 %v918_v1  ;;  %829 = vmatprep.subr.bf16.mxu1 %v918_v1  ;;  %v881_v2 = vld [vmem:[%s1090_s1 + $0x38] sm:$0xff]   ;;  %v883_v4 = vld [vmem:[%s1090_s1 + $0x30] sm:$0xff]   ;;  %v885_v6 = vld [vmem:[%s1090_s1 + $0x28] sm:$0xff]   ;;  %s869_s11 = smul.u32 12, %s1096_s19  ;;  %vm272_vm1 = vcmask 1045504   ;;  %s774_s7 = sshll.u32 %s1096_s19, 3 }
   0xd   : > { %810 = vmatpush3.bf16.msra.mxu0 %v880_v0  ;;  %825 = vmatprep.mubr.msk.bf16.mxu0 %vm919_vm0, %v918_v1  ;;  %v886_v7 = vld [vmem:[%s1090_s1 + $0x60] sm:$0xff]   ;;  %v888_v9 = vld [vmem:[%s1090_s1 + $0x58] sm:$0xff]   ;;  %v890_v11 = vld [vmem:[%s1090_s1 + $0x50] sm:$0xff]   ;;  %s224_s10 = scalar_lea.vmem %s1094_s5, %s774_s7 }
   0xe   : > { %830 = vmatpush3.bf16.msra.mxu1 %v881_v2  ;;  %811 = vmatprep.subr.bf16.mxu0 %v918_v1  ;;  %v887_v8 = vld [vmem:[%s1090_s1 + $0x20] sm:$0xff]   ;;  %v889_v10 = vld [vmem:[%s1090_s1 + $0x18] sm:$0xff]   ;;  %s1007_s20 = scalar_lea.vmem %s1089_s0, %s869_s11  ;;  %v891_v12 = vld [vmem:[%s1090_s1 + $0x10] sm:$0xff]  }
   0xf   : > { %831 = vmatprep.subr.bf16.mxu1 %v918_v1  ;;  %845 = vmatprep.mubr.msk.bf16.mxu1 %vm919_vm0, %v918_v1  ;;  %v244_v13 = vld [vmem:[%s1007_s20] sm:$0xc]  ;;  %v245_v14 = vld [vmem:[%s1007_s20 + $0x4] sm:$0xf]  ;;  %v892_v16 = vld [vmem:[%s1090_s1 + $0x48] sm:$0xff]  }
  0x10   : > { %v897_v15 = vld [vmem:[%s1007_s20 + $0x8] ss:$0 sps:$4 sm:$0x33]   ;;  %v723_v17 = vcombine.low %v244_v13, %v245_v14  ;;  %v894_v19 = vld [vmem:[%s1090_s1 + $0x40] sm:$0xff]   ;;  %v899_v25 = vld [vmem:[%s1090_s1 + $0xb8] sm:$0xff]  }
  0x11   : > { %812 = vmatpush3.bf16.msra.mxu0 %v882_v3  ;;  %v893_v18 = vld [vmem:[%s1090_s1 + $0x8] sm:$0xff]   ;;  %v274_v21 = vrot.slane %v897_v15, 2  ;;  %v895_v22 = vld [vmem:[%s1090_s1] sm:$0xff]   ;;  %v900_v26 = vld [vmem:[%s1090_s1 + $0xb0] sm:$0xff]  }
  0x12   : > { %832 = vmatpush3.bf16.msra.mxu1 %v883_v4  ;;  %813 = vmatprep.subr.bf16.mxu0 %v918_v1  ;;  %v273_v20 = vrot.slane %v723_v17, 2  ;;  %v898_v24 = vld [vmem:[%s1007_s20] sm:$0xff]   ;;  %v901_v27 = vld [vmem:[%s1090_s1 + $0xa8] sm:$0xff]   ;;  %v903_v29 = vld [vmem:[%s1090_s1 + $0x98] sm:$0xff]  }
  0x13   : > { %833 = vmatprep.subr.bf16.mxu1 %v918_v1  ;;  %v902_v28 = vld [vmem:[%s1090_s1 + $0xa0] sm:$0xff]   ;;  %v904_v30 = vld [vmem:[%s1090_s1 + $0x90] sm:$0xff]   ;;  %v905_v31 = vld [vmem:[%s1090_s1 + $0x88] sm:$0xff]  }
  0x14   : > { %v275_v23 = vsel %vm272_vm1, %v273_v20, %v274_v21  ;;  %v906_v32 = vld [vmem:[%s1090_s1 + $0x80] sm:$0xff]   ;;  %v461_v33 = vld [vmem:[%s1007_s20 + $0x8] sm:$0xf] }
  0x15   : > { %814 = vmatpush3.bf16.msra.mxu0 %v884_v5  ;;  %v758_v34 = vcombine.low %v245_v14, %v461_v33  ;;  %v767_v46 = vld [vmem:[%s1091_s2] ss:$0 sm:$0xff] }
  0x16   : > { %834 = vmatpush3.bf16.msra.mxu1 %v885_v6  ;;  %815 = vmatprep.subr.bf16.mxu0 %v918_v1  ;;  %v768_v17 = vld [vmem:[%s1092_s3] ss:$0 sm:$0xff] }
  0x17   : > { %835 = vmatprep.subr.bf16.mxu1 %v918_v1  ;;  %v769_v20 = vld [vmem:[%s1093_s4] ss:$0 sm:$0xff] }
  0x19   : > { %816 = vmatpush3.bf16.msra.mxu0 %v886_v7 }
  0x1a   : > { %836 = vmatpush3.bf16.msra.mxu1 %v887_v8  ;;  %817 = vmatprep.subr.bf16.mxu0 %v918_v1 }
  0x1b   : > { %837 = vmatprep.subr.bf16.mxu1 %v918_v1 }
  0x1d   : > { %818 = vmatpush3.bf16.msra.mxu0 %v888_v9 }
  0x1e   : > { %838 = vmatpush3.bf16.msra.mxu1 %v889_v10  ;;  %819 = vmatprep.subr.bf16.mxu0 %v918_v1 }
  0x1f   : > { %839 = vmatprep.subr.bf16.mxu1 %v918_v1 }
  0x21   : > { %820 = vmatpush3.bf16.msra.mxu0 %v890_v11 }
  0x22   : > { %840 = vmatpush3.bf16.msra.mxu1 %v891_v12  ;;  %821 = vmatprep.subr.bf16.mxu0 %v918_v1 }
  0x23   : > { %841 = vmatprep.subr.bf16.mxu1 %v918_v1 }
  0x25   : > { %822 = vmatpush3.bf16.msra.mxu0 %v892_v16 }
  0x26   : > { %842 = vmatpush3.bf16.msra.mxu1 %v893_v18  ;;  %823 = vmatprep.subr.bf16.mxu0 %v918_v1 }
  0x27   : > { %843 = vmatprep.subr.bf16.mxu1 %v918_v1 }
  0x29   : > { %824 = vmatpush3.bf16.msra.mxu0 %v894_v19 }
  0x2a   : > { %844 = vmatpush3.bf16.msra.mxu1 %v895_v22  ;;  %849 = vmatprep.subr.bf16.mxu0 %v918_v1 }
  0x2c   : > { %826 = vmatmul.mubr.bf16.vlgmr.msra.gmra.mxu0 %v275_v23 }
  0x2d   : > { %846 = vmatmul.mubr.bf16.vlgmr.msra.gmra.mxu1 %v898_v24  ;;  %850 = vmatpush3.bf16.msra.mxu0 %v899_v25 }
  0x2e   : > { %851 = vmatprep.subr.bf16.mxu0 %v918_v1  ;;  %865 = vmatprep.mubr.msk.bf16.mxu0 %vm919_vm0, %v918_v1 }
  0x31   : > { %852 = vmatpush3.bf16.msra.mxu0 %v900_v26 }
  0x32   : > { %853 = vmatprep.subr.bf16.mxu0 %v918_v1 }
  0x35   : > { %854 = vmatpush3.bf16.msra.mxu0 %v901_v27 }
  0x36   : > { %855 = vmatprep.subr.bf16.mxu0 %v918_v1 }
  0x39   : > { %856 = vmatpush3.bf16.msra.mxu0 %v902_v28 }
  0x3a   : > { %857 = vmatprep.subr.bf16.mxu0 %v918_v1 }
  0x3d   : > { %858 = vmatpush3.bf16.msra.mxu0 %v903_v29 }
  0x3e   : > { %859 = vmatprep.subr.bf16.mxu0 %v918_v1 }
  0x41   : > { %860 = vmatpush3.bf16.msra.mxu0 %v904_v30 }
  0x42   : > { %861 = vmatprep.subr.bf16.mxu0 %v918_v1 }
  0x45   : > { %862 = vmatpush3.bf16.msra.mxu0 %v905_v31 }
  0x46   : > { %863 = vmatprep.subr.bf16.mxu0 %v918_v1 }
  0x49   : > { %864 = vmatpush3.bf16.msra.mxu0 %v906_v32 }
  0x4c   : > { %866 = vmatmul.mubr.bf16.vlgmr.msra.gmra.mxu0 %v758_v34 }
  0xec   : > { %v359_v35 = vpop.f32.mrf.mxu0 }
  0xed   : > { %v454_v36 = vpop.f32.mrf.mxu1 }
  0xee   : > { %v827_v37 = vpop.f32.mrf.mxu0  ;;  %v455_v43 = vadd.f32 %v454_v36, %v359_v35 }
  0xef   : > { %v847_v38 = vpop.f32.mrf.mxu1 }
  0xf0   : > { %v362_v39 = vpop.f32.mrf.mxu0 }
  0xf1   : > { %v457_v40 = vpop.f32.mrf.mxu1 }
  0xf2   : > { %v828_v41 = vpop.f32.mrf.mxu0  ;;  %v458_v48 = vadd.f32 %v457_v40, %v362_v39 }
  0xf3   : > { %v848_v42 = vpop.f32.mrf.mxu1 }
 0x10c   : > { %v565_v44 = vpop.f32.mrf.mxu0 }
 0x10d   : > { %v572_v45 = vadd.f32 %v565_v44, %v455_v43 }
 0x10e   : > { %v867_v47 = vpop.f32.mrf.mxu0 }
 0x10f   : > { %v581_v50 = vadd.f32 %v767_v46, %v572_v45 }
 0x110   : > { %v568_v49 = vpop.f32.mrf.mxu0 }
 0x111   : > { %v573_v51 = vadd.f32 %v568_v49, %v458_v48  ;;  %v592_v54 = vmul.f32 %v581_v50, %v581_v50 }
 0x112   : > { %v868_v52 = vpop.f32.mrf.mxu0 }
 0x113   : > { %v582_v53 = vadd.f32 %v767_v46, %v573_v51 }
 0x115   : > { %v593_v55 = vmul.f32 %v582_v53, %v582_v53  ;;  %v583_v56 = vadd.f32 %v582_v53, %v581_v50 }
 0x117   : > { %v584_v57 = vrot.slane %v583_v56, 4  ;;  %v594_v58 = vadd.f32 %v593_v55, %v592_v54 }
 0x119   : > { %v585_v59 = vadd.f32 %v584_v57, %v583_v56  ;;  %v595_v60 = vrot.slane %v594_v58, 4 }
 0x11b   : > { %v586_v61 = vrot.slane %v585_v59, 2  ;;  %v596_v62 = vadd.f32 %v595_v60, %v594_v58 }
 0x11d   : > { %v587_v63 = vadd.f32 %v586_v61, %v585_v59  ;;  %v597_v0 = vrot.slane %v596_v62, 2 }
 0x11f   : > { %v588_v1 = vrot.slane %v587_v63, 1  ;;  %v598_v2 = vadd.f32 %v597_v0, %v596_v62 }
 0x121   : > { %v589_v3 = vadd.f32 %v588_v1, %v587_v63  ;;  %v599_v4 = vrot.slane %v598_v2, 1 }
 0x123   : > { %590 = vadd.xlane.f32.xlu0 %v589_v3  ;;  %v600_v5 = vadd.f32 %v599_v4, %v598_v2 }
 0x127   : > { %601 = vadd.xlane.f32.xlu0 %v600_v5 }
 0x1ac   : > { %v591_v6 = vpop.xlane.xlu0 %590 }
 0x1ad   : > { %v603_v7 = vmul.f32 0.001953125, %v591_v6 }
 0x1af   : > { %v605_v9 = vmul.f32 %v603_v7, %v603_v7  ;;  %v610_v14 = vsub.f32 %v581_v50, %v603_v7  ;;  %v611_v15 = vsub.f32 %v582_v53, %v603_v7 }
 0x1b0   : > { %v602_v8 = vpop.xlane.xlu0 %601 }
 0x1b1   : > { %v604_v10 = vmul.f32 0.001953125, %v602_v8 }
 0x1b3   : > { %v606_v11 = vsub.f32 %v604_v10, %v605_v9 }
 0x1b5   : > { %v607_v12 = vmax.f32 %v606_v11, 0.0 }
 0x1b7   : > { %v608_v13 = vadd.f32 1e-05, %v607_v12 }
 0x1b9   : > { %908 = vrsqrt.f32 %v608_v13 }
 0x1c6   : > { %v909_v16 = vpop.eup %908 }
 0x1c7   : > { %v612_v18 = vmul.f32 %v909_v16, %v610_v14  ;;  %v613_v19 = vmul.f32 %v909_v16, %v611_v15 }
 0x1c9   : > { %v621_v21 = vmul.f32 %v768_v17, %v612_v18  ;;  %v622_v22 = vmul.f32 %v768_v17, %v613_v19 }
 0x1cb   : > { %v630_v23 = vadd.f32 %v769_v20, %v621_v21  ;;  %v631_v24 = vadd.f32 %v769_v20, %v622_v22 }
 0x1cd   : > { %v632_v25 = vmax.f32 %v630_v23, 0.0  ;;  %v633_v26 = vmax.f32 %v631_v24, 0.0 }
 0x1cf   : > { %v780_v27 = vpack.c.bf16 %v633_v26, %v632_v25 }
 0x1d1   : > { %781 = vst [vmem:[%s224_s10] sm:$0xff] %v780_v27  }
 0x1d2 PF: > { %s15_s18 = sadd.s32 1, %s916_s18  }
 0x1d3   : > { %p12_p4 = scmp.ge.s32.totalorder %s15_s18, 4  }
 0x1d5   :  { %14 = sbr.rel (!%p12_p4) target bundleno = 1 (0x1), region = 72 }

// kernel: vertex_net_forward.11
= control target key start
LH: loop header
LB: loop body
LE: loop exit
PB: predicated region body
PF: predicated region fallthrough
CT: control target
= control target key end

     0   :  { %s893_s18 = smov 0   ;;  %s1030_s0 = inlined_call_operand.vmem [shape: bf16[2,8,128], index: 0, kind: input, shape index: {}]   ;;  %s1031_s1 = inlined_call_operand.vmem [shape: bf16[3,128,128], index: 1, kind: input, shape index: {}]   ;;  %s1032_s2 = inlined_call_operand.vmem [shape: f32[1,128], index: 2, kind: input, shape index: {}]   ;;  %s1033_s3 = inlined_call_operand.vmem [shape: f32[1,128], index: 3, kind: input, shape index: {}]   ;;  %s1034_s4 = inlined_call_operand.vmem [shape: f32[1,128], index: 4, kind: input, shape index: {}]   ;;  %s1035_s5 = inlined_call_operand.vmem [shape: bf16[2,4,128], index: 5, kind: output, shape index: {}]  }
   0x1 LB: > { %s658_s19 = sadd.s32 4294967295, %s859_s18   ;;  %p662_p0 = scmp.ge.s32.totalorder %s859_s18, 1  ;;  %s859_s18 = sphi %s893_s18, %s15_s18  }
   0x2   : > { %p186_p1 = scmp.lt.s32.totalorder %s859_s18, 3 }
   0x4   : > { %p187_p2 = pnand %p662_p0, %p186_p1 }
   0x5   : > { %p212_p3 = scmp.lt.s32.totalorder (!%p187_p2), %s658_s19, 1 }
   0x6   : > { %190 = sbr.rel (%p187_p2) target bundleno = 461 (0x1cd), region = 40 }
   0xb   : > { %v825_v0 = vld [vmem:[%s1031_s1 + $0x78] sm:$0xff]   ;;  %v861_v1 = vmov 0.0   ;;  %v827_v3 = vld [vmem:[%s1031_s1 + $0x70] sm:$0xff]   ;;  %vm862_vm0 = vmmov 0   ;;  %v829_v5 = vld [vmem:[%s1031_s1 + $0x68] sm:$0xff]   ;;  %s1037_s19 = smov (!%p212_p3, %s658_s19), 1 }
   0xc   : > { %755 = vmatprep.subr.bf16.mxu0 %v861_v1  ;;  %775 = vmatprep.subr.bf16.mxu1 %v861_v1  ;;  %v826_v2 = vld [vmem:[%s1031_s1 + $0x38] sm:$0xff]   ;;  %v828_v4 = vld [vmem:[%s1031_s1 + $0x30] sm:$0xff]   ;;  %v830_v6 = vld [vmem:[%s1031_s1 + $0x28] sm:$0xff]   ;;  %s663_s11 = sshll.u32 %s1037_s19, 2  ;;  %vm557_vm1 = vcmask 1043456   ;;  %s664_s7 = sshll.u32 %s1037_s19, 1 }
   0xd   : > { %756 = vmatpush3.bf16.msra.mxu0 %v825_v0  ;;  %771 = vmatprep.mubr.msk.bf16.mxu0 %vm862_vm0, %v861_v1  ;;  %v831_v7 = vld [vmem:[%s1031_s1 + $0x60] sm:$0xff]   ;;  %v833_v9 = vld [vmem:[%s1031_s1 + $0x58] sm:$0xff]   ;;  %s950_s20 = scalar_lea.vmem %s1030_s0, %s663_s11  ;;  %v835_v11 = vld [vmem:[%s1031_s1 + $0x50] sm:$0xff]   ;;  %s219_s10 = scalar_lea.vmem %s1035_s5, %s664_s7 }
   0xe   : > { %776 = vmatpush3.bf16.msra.mxu1 %v826_v2  ;;  %757 = vmatprep.subr.bf16.mxu0 %v861_v1  ;;  %v832_v8 = vld [vmem:[%s1031_s1 + $0x20] sm:$0xff]   ;;  %v834_v10 = vld [vmem:[%s1031_s1 + $0x18] sm:$0xff]   ;;  %v836_v12 = vld [vmem:[%s1031_s1 + $0x10] sm:$0xff]  }
   0xf   : > { %777 = vmatprep.subr.bf16.mxu1 %v861_v1  ;;  %791 = vmatprep.mubr.msk.bf16.mxu1 %vm862_vm0, %v861_v1  ;;  %v837_v13 = vld [vmem:[%s1031_s1 + $0x48] sm:$0xff]   ;;  %v841_v15 = vld [vmem:[%s950_s20] ss:$0 sps:$4 sm:$0x66]   ;;  %v842_v19 = vld [vmem:[%s1031_s1 + $0xb8] sm:$0xff]  }
  0x10   : > { %v838_v14 = vld [vmem:[%s1031_s1 + $0x8] sm:$0xff]   ;;  %v839_v16 = vld [vmem:[%s1031_s1 + $0x40] sm:$0xff]   ;;  %v259_v18 = vrot.slane %v841_v15, 1  ;;  %v843_v21 = vld [vmem:[%s1031_s1 + $0xb0] sm:$0xff]  }
  0x11   : > { %758 = vmatpush3.bf16.msra.mxu0 %v827_v3  ;;  %v840_v17 = vld [vmem:[%s1031_s1] sm:$0xff]   ;;  %v844_v22 = vld [vmem:[%s1031_s1 + $0xa8] sm:$0xff]   ;;  %v846_v24 = vld [vmem:[%s1031_s1 + $0x98] sm:$0xff]  }
  0x12   : > { %778 = vmatpush3.bf16.msra.mxu1 %v828_v4  ;;  %759 = vmatprep.subr.bf16.mxu0 %v861_v1  ;;  %v221_v20 = vld [vmem:[%s950_s20] sm:$0x3]  ;;  %v847_v25 = vld [vmem:[%s1031_s1 + $0x90] sm:$0xff]   ;;  %v848_v26 = vld [vmem:[%s1031_s1 + $0x88] sm:$0xff]  }
  0x13   : > { %779 = vmatprep.subr.bf16.mxu1 %v861_v1  ;;  %v845_v23 = vld [vmem:[%s1031_s1 + $0xa0] sm:$0xff]  }
  0x14   : > { %v850_v27 = vld [vmem:[%s950_s20] ss:$0 sps:$4 sm:$0xcc]  }
  0x15   : > { %760 = vmatpush3.bf16.msra.mxu0 %v829_v5  ;;  %v849_v28 = vld [vmem:[%s1031_s1 + $0x80] sm:$0xff]   ;;  %v458_v29 = vrot.slane %v850_v27, 2 }
  0x16   : > { %780 = vmatpush3.bf16.msra.mxu1 %v830_v6  ;;  %761 = vmatprep.subr.bf16.mxu0 %v861_v1  ;;  %v723_v40 = vld [vmem:[%s1032_s2] ss:$0 sm:$0xff] }
  0x17   : > { %781 = vmatprep.subr.bf16.mxu1 %v861_v1 }
  0x19   : > { %762 = vmatpush3.bf16.msra.mxu0 %v831_v7  ;;  %v724_v7 = vld [vmem:[%s1033_s3] ss:$0 sm:$0xff] }
  0x1a   : > { %782 = vmatpush3.bf16.msra.mxu1 %v832_v8  ;;  %763 = vmatprep.subr.bf16.mxu0 %v861_v1 }
  0x1b   : > { %783 = vmatprep.subr.bf16.mxu1 %v861_v1 }
  0x1d   : > { %764 = vmatpush3.bf16.msra.mxu0 %v833_v9  ;;  %v725_v9 = vld [vmem:[%s1034_s4] ss:$0 sm:$0xff] }
  0x1e   : > { %784 = vmatpush3.bf16.msra.mxu1 %v834_v10  ;;  %765 = vmatprep.subr.bf16.mxu0 %v861_v1 }
  0x1f   : > { %785 = vmatprep.subr.bf16.mxu1 %v861_v1 }
  0x21   : > { %766 = vmatpush3.bf16.msra.mxu0 %v835_v11 }
  0x22   : > { %786 = vmatpush3.bf16.msra.mxu1 %v836_v12  ;;  %767 = vmatprep.subr.bf16.mxu0 %v861_v1 }
  0x23   : > { %787 = vmatprep.subr.bf16.mxu1 %v861_v1 }
  0x25   : > { %768 = vmatpush3.bf16.msra.mxu0 %v837_v13 }
  0x26   : > { %788 = vmatpush3.bf16.msra.mxu1 %v838_v14  ;;  %769 = vmatprep.subr.bf16.mxu0 %v861_v1 }
  0x27   : > { %789 = vmatprep.subr.bf16.mxu1 %v861_v1 }
  0x29   : > { %770 = vmatpush3.bf16.msra.mxu0 %v839_v16 }
  0x2a   : > { %790 = vmatpush3.bf16.msra.mxu1 %v840_v17  ;;  %795 = vmatprep.subr.bf16.mxu0 %v861_v1 }
  0x2c   : > { %772 = vmatmul.mubr.bf16.vlgmr.msra.gmra.mxu0 %v259_v18 }
  0x2d   : > { %792 = vmatmul.mubr.bf16.vlgmr.msra.gmra.mxu1 %v221_v20  ;;  %796 = vmatpush3.bf16.msra.mxu0 %v842_v19 }
  0x2e   : > { %797 = vmatprep.subr.bf16.mxu0 %v861_v1  ;;  %811 = vmatprep.mubr.msk.bf16.mxu0 %vm862_vm0, %v861_v1 }
  0x31   : > { %798 = vmatpush3.bf16.msra.mxu0 %v843_v21 }
  0x32   : > { %799 = vmatprep.subr.bf16.mxu0 %v861_v1 }
  0x35   : > { %800 = vmatpush3.bf16.msra.mxu0 %v844_v22 }
  0x36   : > { %801 = vmatprep.subr.bf16.mxu0 %v861_v1 }
  0x39   : > { %802 = vmatpush3.bf16.msra.mxu0 %v845_v23 }
  0x3a   : > { %803 = vmatprep.subr.bf16.mxu0 %v861_v1 }
  0x3d   : > { %804 = vmatpush3.bf16.msra.mxu0 %v846_v24 }
  0x3e   : > { %805 = vmatprep.subr.bf16.mxu0 %v861_v1 }
  0x41   : > { %806 = vmatpush3.bf16.msra.mxu0 %v847_v25 }
  0x42   : > { %807 = vmatprep.subr.bf16.mxu0 %v861_v1 }
  0x45   : > { %808 = vmatpush3.bf16.msra.mxu0 %v848_v26 }
  0x46   : > { %809 = vmatprep.subr.bf16.mxu0 %v861_v1 }
  0x49   : > { %810 = vmatpush3.bf16.msra.mxu0 %v849_v28 }
  0x4c   : > { %812 = vmatmul.mubr.bf16.vlgmr.msra.gmra.mxu0 %v458_v29 }
  0xec   : > { %v343_v30 = vpop.f32.mrf.mxu0 }
  0xed   : > { %v431_v31 = vpop.f32.mrf.mxu1 }
  0xee   : > { %v773_v32 = vpop.f32.mrf.mxu0  ;;  %v432_v38 = vadd.f32 %v431_v31, %v343_v30 }
  0xef   : > { %v793_v33 = vpop.f32.mrf.mxu1 }
  0xf0   : > { %v346_v34 = vpop.f32.mrf.mxu0 }
  0xf1   : > { %v434_v35 = vpop.f32.mrf.mxu1 }
  0xf2   : > { %v774_v36 = vpop.f32.mrf.mxu0 }
  0xf3   : > { %v794_v37 = vpop.f32.mrf.mxu1 }
 0x10c   : > { %v542_v39 = vpop.f32.mrf.mxu0 }
 0x10d   : > { %v548_v41 = vadd.f32 %v542_v39, %v432_v38 }
 0x10e   : > { %v813_v42 = vpop.f32.mrf.mxu0 }
 0x10f   : > { %v556_v43 = vadd.f32 %v723_v40, %v548_v41 }
 0x110   : > { %v545_v44 = vpop.f32.mrf.mxu0 }
 0x111   : > { %v567_v45 = vmul.f32 %v556_v43, %v556_v43  ;;  %v558_v46 = vsel %vm557_vm1, %v556_v43, 0.0 }
 0x112   : > { %v814_v47 = vpop.f32.mrf.mxu0  ;;  %v559_v48 = vrot.slane %v558_v46, 4 }
 0x113   : > { %v568_v49 = vsel %vm557_vm1, %v567_v45, 0.0 }
 0x114   : > { %v560_v50 = vadd.f32 %v559_v48, %v558_v46  ;;  %v569_v51 = vrot.slane %v568_v49, 4 }
 0x116   : > { %v561_v52 = vrot.slane %v560_v50, 2  ;;  %v570_v53 = vadd.f32 %v569_v51, %v568_v49 }
 0x118   : > { %v562_v54 = vadd.f32 %v561_v52, %v560_v50  ;;  %v571_v55 = vrot.slane %v570_v53, 2 }
 0x11a   : > { %v563_v56 = vrot.slane %v562_v54, 1  ;;  %v572_v57 = vadd.f32 %v571_v55, %v570_v53 }
 0x11c   : > { %v564_v58 = vadd.f32 %v563_v56, %v562_v54  ;;  %v573_v59 = vrot.slane %v572_v57, 1 }
 0x11e   : > { %565 = vadd.xlane.f32.xlu0 %v564_v58  ;;  %v574_v60 = vadd.f32 %v573_v59, %v572_v57 }
 0x122   : > { %575 = vadd.xlane.f32.xlu0 %v574_v60 }
 0x1a7   : > { %v566_v61 = vpop.xlane.xlu0 %565 }
 0x1a8   : > { %v577_v62 = vmul.f32 0.00390625, %v566_v61 }
 0x1aa   : > { %v579_v0 = vmul.f32 %v577_v62, %v577_v62  ;;  %v584_v5 = vsub.f32 %v556_v43, %v577_v62 }
 0x1ab   : > { %v576_v63 = vpop.xlane.xlu0 %575 }
 0x1ac   : > { %v578_v1 = vmul.f32 0.00390625, %v576_v63 }
 0x1ae   : > { %v580_v2 = vsub.f32 %v578_v1, %v579_v0 }
 0x1b0   : > { %v581_v3 = vmax.f32 %v580_v2, 0.0 }
 0x1b2   : > { %v582_v4 = vadd.f32 1e-05, %v581_v3 }
 0x1b4   : > { %851 = vrsqrt.f32 %v582_v4 }
 0x1c1   : > { %v852_v6 = vpop.eup %851 }
 0x1c2   : > { %v585_v8 = vmul.f32 %v852_v6, %v584_v5 }
 0x1c4   : > { %v593_v10 = vmul.f32 %v724_v7, %v585_v8 }
 0x1c6   : > { %v601_v11 = vadd.f32 %v725_v9, %v593_v10 }
 0x1c8   : > { %v602_v12 = vmax.f32 %v601_v11, 0.0 }
 0x1ca   : > { %v603_v13 = vpack.c.bf16 %v602_v12, %v602_v12 }
 0x1cc   : > { %604 = vst [vmem:[%s219_s10] sm:$0x3] %v603_v13 }
 0x1cd PF: > { %s15_s18 = sadd.s32 1, %s859_s18  }
 0x1ce   : > { %p12_p4 = scmp.ge.s32.totalorder %s15_s18, 4  }
 0x1d0   :  { %14 = sbr.rel (!%p12_p4) target bundleno = 1 (0x1), region = 72 }

// kernel: vertex_net_forward.12
= control target key start
LH: loop header
LB: loop body
LE: loop exit
PB: predicated region body
PF: predicated region fallthrough
CT: control target
= control target key end

     0   :  { %s1743_s18 = smov 0   ;;  %s2050_s0 = inlined_call_operand.vmem [shape: bf16[2,24,384], index: 0, kind: input, shape index: {}]   ;;  %s2051_s1 = inlined_call_operand.vmem [shape: bf16[3,384,128], index: 1, kind: input, shape index: {}]   ;;  %s2052_s2 = inlined_call_operand.vmem [shape: f32[1,128], index: 2, kind: input, shape index: {}]   ;;  %s2053_s3 = inlined_call_operand.vmem [shape: f32[1,128], index: 3, kind: input, shape index: {}]   ;;  %s2054_s4 = inlined_call_operand.vmem [shape: f32[1,128], index: 4, kind: input, shape index: {}]   ;;  %s2055_s5 = inlined_call_operand.vmem [shape: bf16[2,16,128], index: 5, kind: output, shape index: {}]  }
   0x1 LB: > { %s1250_s19 = sadd.s32 4294967295, %s1709_s18   ;;  %p1254_p0 = scmp.ge.s32.totalorder %s1709_s18, 1  ;;  %s1709_s18 = sphi %s1743_s18, %s15_s18  }
   0x2   : > { %p187_p1 = scmp.lt.s32.totalorder %s1709_s18, 3 }
   0x4   : > { %p188_p2 = pnand %p1254_p0, %p187_p1 }
   0x5   : > { %p215_p3 = scmp.lt.s32.totalorder (!%p188_p2), %s1250_s19, 1 }
   0x6   : > { %191 = sbr.rel (%p188_p2) target bundleno = 505 (0x1f9), region = 40 }
   0xb   : > { %v1617_v0 = vld [vmem:[%s2051_s1 + $0x138] sm:$0xff]   ;;  %v1711_v1 = vmov 0.0   ;;  %vm1712_vm0 = vmmov 0   ;;  %v1620_v4 = vld [vmem:[%s2051_s1 + $0x130] sm:$0xff]   ;;  %v1623_v7 = vld [vmem:[%s2051_s1 + $0x128] sm:$0xff]   ;;  %s2057_s19 = smov (!%p215_p3, %s1250_s19), 1 }
   0xc   : > { %1546 = vmatprep.subr.bf16.mxu1 %v1711_v1  ;;  %v1618_v2 = vld [vmem:[%s2051_s1 + $0x178] sm:$0xff]   ;;  %1453 = vmatprep.subr.bf16.mxu0 %v1617_v0  ;;  %v1621_v5 = vld [vmem:[%s2051_s1 + $0x170] sm:$0xff]   ;;  %v1624_v8 = vld [vmem:[%s2051_s1 + $0x168] sm:$0xff]   ;;  %s1606_s29 = smul.u32 36, %s2057_s19  ;;  %vm354_vm1 = vcmask 1045504   ;;  %s1445_s14 = sshll.u32 %s2057_s19, 3 }
   0xd   : > { %v1619_v3 = vld [vmem:[%s2051_s1 + $0xf8] sm:$0xff]   ;;  %1562 = vmatprep.mubr.msk.bf16.mxu1 %vm1712_vm0, %v1711_v1  ;;  %1547 = vmatpush3.bf16.msra.mxu1 %v1618_v2  ;;  %v1622_v6 = vld [vmem:[%s2051_s1 + $0xf0] sm:$0xff]   ;;  %v1625_v9 = vld [vmem:[%s2051_s1 + $0xe8] sm:$0xff]   ;;  %s224_s17 = scalar_lea.vmem %s2055_s5, %s1445_s14 }
   0xe   : > { %1454 = vmatpush3.bf16.msra.mxu0 %v1619_v3  ;;  %1548 = vmatprep.subr.bf16.mxu1 %v1711_v1  ;;  %v1626_v10 = vld [vmem:[%s2051_s1 + $0x120] sm:$0xff]   ;;  %v1629_v13 = vld [vmem:[%s2051_s1 + $0x118] sm:$0xff]   ;;  %v1632_v16 = vld [vmem:[%s2051_s1 + $0x110] sm:$0xff]   ;;  %s1829_s15 = scalar_lea.vmem %s2050_s0, %s1606_s29 }
   0xf   : > { %1455 = vmatprep.subr.bf16.mxu0 %v1620_v4  ;;  %v1627_v11 = vld [vmem:[%s2051_s1 + $0x160] sm:$0xff]   ;;  %v1630_v14 = vld [vmem:[%s2051_s1 + $0x158] sm:$0xff]   ;;  %v1633_v17 = vld [vmem:[%s2051_s1 + $0x150] sm:$0xff]  }
  0x10   : > { %v1628_v12 = vld [vmem:[%s2051_s1 + $0xe0] sm:$0xff]   ;;  %v1631_v15 = vld [vmem:[%s2051_s1 + $0xd8] sm:$0xff]   ;;  %v1634_v18 = vld [vmem:[%s2051_s1 + $0xd0] sm:$0xff]  }
  0x11   : > { %1549 = vmatpush3.bf16.msra.mxu1 %v1621_v5  ;;  %v1635_v19 = vld [vmem:[%s2051_s1 + $0x108] sm:$0xff]   ;;  %v1638_v22 = vld [vmem:[%s2051_s1 + $0x100] sm:$0xff]   ;;  %v282_v25 = vld [vmem:[%s1829_s15 + $0x18] sm:$0x33] }
  0x12   : > { %1456 = vmatpush3.bf16.msra.mxu0 %v1622_v6  ;;  %1550 = vmatprep.subr.bf16.mxu1 %v1711_v1  ;;  %v1636_v20 = vld [vmem:[%s2051_s1 + $0x148] sm:$0xff]   ;;  %v278_v23 = vld [vmem:[%s1829_s15] sm:$0xcc]  ;;  %v1310_v28 = vcombine.high %v282_v25, %v282_v25  ;;  %v1849_v30 = vld [vmem:[%s1829_s15 + $0x14] sm:$0xf]  ;;  %v1309_v32 = vcombine.low %v282_v25, %v282_v25 }
  0x13   : > { %1457 = vmatprep.subr.bf16.mxu0 %v1623_v7  ;;  %v1637_v21 = vld [vmem:[%s2051_s1 + $0xc8] sm:$0xff]   ;;  %v1639_v26 = vld [vmem:[%s2051_s1 + $0x140] sm:$0xff]   ;;  %v1647_v43 = vld [vmem:[%s2051_s1 + $0x78] sm:$0xff]  }
  0x14   : > { %v1840_v24 = vld [vmem:[%s1829_s15 + $0xc] sm:$0xff]  ;;  %v279_v29 = vld [vmem:[%s1829_s15 + $0x8] sm:$0xc]  ;;  %v1640_v33 = vld [vmem:[%s2051_s1 + $0xc0] sm:$0xff]   ;;  %v359_v37 = vrot.slane %v1310_v28, 2  ;;  %v356_v39 = vrot.slane %v1309_v32, 2 }
  0x15   : > { %1551 = vmatpush3.bf16.msra.mxu1 %v1624_v8  ;;  %v1307_v27 = vcombine.high %v278_v23, %v1840_v24  ;;  %v1306_v31 = vcombine.low %v278_v23, %v1840_v24  ;;  %v1308_v34 = vcombine.low %v279_v29, %v1849_v30  ;;  %v1644_v35 = vld [vmem:[%s1829_s15 + $0x20] ss:$0 sps:$4 sm:$0x33]   ;;  %v1648_v45 = vld [vmem:[%s2051_s1 + $0xb8] sm:$0xff]   ;;  %v1650_v48 = vld [vmem:[%s2051_s1 + $0x70] sm:$0xff]  }
  0x16   : > { %1458 = vmatpush3.bf16.msra.mxu0 %v1625_v9  ;;  %1552 = vmatprep.subr.bf16.mxu1 %v1711_v1  ;;  %v362_v41 = vrot.slane %v1644_v35, 2  ;;  %v1649_v47 = vld [vmem:[%s2051_s1 + $0x38] sm:$0xff]   ;;  %v1651_v49 = vld [vmem:[%s2051_s1 + $0xb0] sm:$0xff]   ;;  %v1653_v51 = vld [vmem:[%s2051_s1 + $0x68] sm:$0xff]  }
  0x17   : > { %1459 = vmatprep.subr.bf16.mxu0 %v1626_v10  ;;  %v358_v36 = vrot.slane %v1307_v27, 2  ;;  %v355_v38 = vrot.slane %v1306_v31, 2  ;;  %v361_v40 = vrot.slane %v1308_v34, 2  ;;  %v1652_v50 = vld [vmem:[%s2051_s1 + $0x30] sm:$0xff]   ;;  %v1654_v52 = vld [vmem:[%s2051_s1 + $0xa8] sm:$0xff]   ;;  %v1656_v54 = vld [vmem:[%s2051_s1 + $0x60] sm:$0xff]  }
  0x18   : > { %v1655_v53 = vld [vmem:[%s2051_s1 + $0x28] sm:$0xff]   ;;  %v1657_v55 = vld [vmem:[%s2051_s1 + $0xa0] sm:$0xff]   ;;  %v1659_v57 = vld [vmem:[%s2051_s1 + $0x58] sm:$0xff]  }
  0x19   : > { %1553 = vmatpush3.bf16.msra.mxu1 %v1627_v11  ;;  %v360_v42 = vsel %vm354_vm1, %v358_v36, %v359_v37  ;;  %v363_v44 = vsel %vm354_vm1, %v361_v40, %v362_v41  ;;  %v357_v46 = vsel %vm354_vm1, %v355_v38, %v356_v39  ;;  %v1658_v56 = vld [vmem:[%s2051_s1 + $0x20] sm:$0xff]   ;;  %v1660_v58 = vld [vmem:[%s2051_s1 + $0x98] sm:$0xff]   ;;  %v1662_v60 = vld [vmem:[%s2051_s1 + $0x50] sm:$0xff]  }
  0x1a   : > { %1460 = vmatpush3.bf16.msra.mxu0 %v1628_v12  ;;  %1554 = vmatprep.subr.bf16.mxu1 %v1711_v1  ;;  %v1661_v59 = vld [vmem:[%s2051_s1 + $0x18] sm:$0xff]   ;;  %v1663_v61 = vld [vmem:[%s2051_s1 + $0x90] sm:$0xff]   ;;  %v226_v62 = vld [vmem:[%s1829_s15] sm:$0xff] }
  0x1b   : > { %1461 = vmatprep.subr.bf16.mxu0 %v1629_v13  ;;  %543 = vmatprep.mubr.bf16.mxu0 %v360_v42  ;;  %v1664_v63 = vld [vmem:[%s2051_s1 + $0x10] sm:$0xff]   ;;  %v1337_v0 = vcombine.high %v226_v62, %v1840_v24  ;;  %v1665_v2 = vld [vmem:[%s2051_s1 + $0x48] sm:$0xff]   ;;  %v1668_v5 = vld [vmem:[%s2051_s1 + $0x40] sm:$0xff]   ;;  %v1336_v10 = vcombine.low %v226_v62, %v1840_v24 }
  0x1c   : > { %v1666_v3 = vld [vmem:[%s2051_s1 + $0x88] sm:$0xff]   ;;  %v1669_v6 = vld [vmem:[%s2051_s1 + $0x80] sm:$0xff]   ;;  %v1674_v8 = vld [vmem:[%s2051_s1 + $0x1f8] sm:$0xff]  }
  0x1d   : > { %1555 = vmatpush3.bf16.msra.mxu1 %v1630_v14  ;;  %v1667_v4 = vld [vmem:[%s2051_s1 + $0x8] sm:$0xff]   ;;  %v1670_v7 = vld [vmem:[%s2051_s1] sm:$0xff]   ;;  %v1675_v11 = vld [vmem:[%s2051_s1 + $0x238] sm:$0xff]  }
  0x1e   : > { %1462 = vmatpush3.bf16.msra.mxu0 %v1631_v15  ;;  %1556 = vmatprep.subr.bf16.mxu1 %v1711_v1  ;;  %v1673_v9 = vld [vmem:[%s1829_s15 + $0x8] ss:$12 sps:$4 sm:$0xff]   ;;  %v1676_v12 = vld [vmem:[%s2051_s1 + $0x1b8] sm:$0xff]   ;;  %v1695_v36 = vld [vmem:[%s2051_s1 + $0x1c0] sm:$0xff]  }
  0x1f   : > { %1463 = vmatprep.subr.bf16.mxu0 %v1632_v16  ;;  %v1677_v13 = vld [vmem:[%s2051_s1 + $0x1f0] sm:$0xff]   ;;  %v1680_v16 = vld [vmem:[%s2051_s1 + $0x1e8] sm:$0xff]   ;;  %v1686_v23 = vld [vmem:[%s2051_s1 + $0x1d8] sm:$0xff]  }
  0x20   : > { %v1678_v14 = vld [vmem:[%s2051_s1 + $0x230] sm:$0xff]   ;;  %v1687_v28 = vld [vmem:[%s2051_s1 + $0x218] sm:$0xff]   ;;  %v1693_v34 = vld [vmem:[%s2051_s1 + $0x208] sm:$0xff]  }
  0x21   : > { %1557 = vmatpush3.bf16.msra.mxu1 %v1633_v17  ;;  %v1679_v15 = vld [vmem:[%s2051_s1 + $0x1b0] sm:$0xff]   ;;  %v1681_v17 = vld [vmem:[%s2051_s1 + $0x228] sm:$0xff]   ;;  %v1688_v29 = vld [vmem:[%s2051_s1 + $0x198] sm:$0xff]  }
  0x22   : > { %1464 = vmatpush3.bf16.msra.mxu0 %v1634_v18  ;;  %1558 = vmatprep.subr.bf16.mxu1 %v1711_v1  ;;  %v1682_v18 = vld [vmem:[%s2051_s1 + $0x1a8] sm:$0xff]   ;;  %v1689_v31 = vld [vmem:[%s2051_s1 + $0x1d0] sm:$0xff]   ;;  %v1696_v37 = vld [vmem:[%s2051_s1 + $0x200] sm:$0xff]  }
  0x23   : > { %1465 = vmatprep.subr.bf16.mxu0 %v1635_v19  ;;  %v1683_v19 = vld [vmem:[%s2051_s1 + $0x1e0] sm:$0xff]   ;;  %v1691_v32 = vld [vmem:[%s2051_s1 + $0x190] sm:$0xff]   ;;  %v1694_v35 = vld [vmem:[%s2051_s1 + $0x188] sm:$0xff]  }
  0x24   : > { %v1697_v38 = vld [vmem:[%s2051_s1 + $0x180] sm:$0xff]  }
  0x25   : > { %1559 = vmatpush3.bf16.msra.mxu1 %v1636_v20  ;;  %v1684_v20 = vld [vmem:[%s2051_s1 + $0x220] sm:$0xff]  }
  0x26   : > { %1466 = vmatpush3.bf16.msra.mxu0 %v1637_v21  ;;  %1560 = vmatprep.subr.bf16.mxu1 %v1711_v1  ;;  %v1685_v21 = vld [vmem:[%s2051_s1 + $0x1a0] sm:$0xff]  }
  0x27   : > { %1467 = vmatprep.subr.bf16.mxu0 %v1638_v22  ;;  %v835_v22 = vld [vmem:[%s1829_s15 + $0x18] sm:$0xff] }
  0x28   : > { %v1412_v25 = vcombine.high %v1840_v24, %v835_v22  ;;  %v1411_v39 = vcombine.low %v1840_v24, %v835_v22 }
  0x29   : > { %1561 = vmatpush3.bf16.msra.mxu1 %v1639_v26  ;;  %v836_v26 = vld [vmem:[%s1829_s15 + $0x20] sm:$0xf] }
  0x2a   : > { %1468 = vmatpush3.bf16.msra.mxu0 %v1640_v33  ;;  %1566 = vmatprep.subr.bf16.mxu1 %v1711_v1  ;;  %v1413_v27 = vcombine.low %v1849_v30, %v836_v26  ;;  %v1690_v30 = vld [vmem:[%s2051_s1 + $0x210] sm:$0xff]   ;;  %v1692_v33 = vld [vmem:[%s2051_s1 + $0x1c8] sm:$0xff]  }
  0x2b   : > { %1484 = vmatprep.subr.bf16.mxu0 %v1647_v43 }
  0x2c   : > { %1563 = vmatmul.mubr.bf16.vlgmr.msra.gmra.mxu1 %v363_v44 }
  0x2d   : > { %544 = vmatmul.mubr.bf16.vlgmr.msra.gmra.mxu0 %v357_v46  ;;  %1567 = vmatpush3.bf16.msra.mxu1 %v1648_v45 }
  0x2e   : > { %1485 = vmatpush3.bf16.msra.mxu0 %v1649_v47  ;;  %1568 = vmatprep.subr.bf16.mxu1 %v1711_v1 }
  0x2f   : > { %1486 = vmatprep.subr.bf16.mxu0 %v1650_v48  ;;  %1582 = vmatprep.mubr.msk.bf16.mxu1 %vm1712_vm0, %v1711_v1 }
  0x30   : > { %785 = vmatprep.mubr.bf16.mxu0 %v1337_v0 }
  0x31   : > { %1569 = vmatpush3.bf16.msra.mxu1 %v1651_v49 }
  0x32   : > { %1487 = vmatpush3.bf16.msra.mxu0 %v1652_v50  ;;  %1570 = vmatprep.subr.bf16.mxu1 %v1711_v1 }
  0x33   : > { %1488 = vmatprep.subr.bf16.mxu0 %v1653_v51 }
  0x35   : > { %1571 = vmatpush3.bf16.msra.mxu1 %v1654_v52 }
  0x36   : > { %1489 = vmatpush3.bf16.msra.mxu0 %v1655_v53  ;;  %1572 = vmatprep.subr.bf16.mxu1 %v1711_v1 }
  0x37   : > { %1490 = vmatprep.subr.bf16.mxu0 %v1656_v54 }
  0x39   : > { %1573 = vmatpush3.bf16.msra.mxu1 %v1657_v55 }
  0x3a   : > { %1491 = vmatpush3.bf16.msra.mxu0 %v1658_v56  ;;  %1574 = vmatprep.subr.bf16.mxu1 %v1711_v1 }
  0x3b   : > { %1492 = vmatprep.subr.bf16.mxu0 %v1659_v57 }
  0x3d   : > { %1575 = vmatpush3.bf16.msra.mxu1 %v1660_v58 }
  0x3e   : > { %1493 = vmatpush3.bf16.msra.mxu0 %v1661_v59  ;;  %1576 = vmatprep.subr.bf16.mxu1 %v1711_v1 }
  0x3f   : > { %1494 = vmatprep.subr.bf16.mxu0 %v1662_v60 }
  0x41   : > { %1577 = vmatpush3.bf16.msra.mxu1 %v1663_v61 }
  0x42   : > { %1495 = vmatpush3.bf16.msra.mxu0 %v1664_v63  ;;  %1578 = vmatprep.subr.bf16.mxu1 %v1711_v1 }
  0x43   : > { %1496 = vmatprep.subr.bf16.mxu0 %v1665_v2 }
  0x45   : > { %1579 = vmatpush3.bf16.msra.mxu1 %v1666_v3 }
  0x46   : > { %1497 = vmatpush3.bf16.msra.mxu0 %v1667_v4  ;;  %1580 = vmatprep.subr.bf16.mxu1 %v1711_v1 }
  0x47   : > { %1498 = vmatprep.subr.bf16.mxu0 %v1668_v5 }
  0x49   : > { %1581 = vmatpush3.bf16.msra.mxu1 %v1669_v6 }
  0x4a   : > { %1499 = vmatpush3.bf16.msra.mxu0 %v1670_v7  ;;  %1586 = vmatprep.subr.bf16.mxu1 %v1711_v1 }
  0x4b   : > { %1515 = vmatprep.subr.bf16.mxu0 %v1674_v8 }
  0x4c   : > { %1583 = vmatmul.mubr.bf16.vlgmr.msra.gmra.mxu1 %v1673_v9 }
  0x4d   : > { %786 = vmatmul.mubr.bf16.vlgmr.msra.gmra.mxu0 %v1336_v10  ;;  %1587 = vmatpush3.bf16.msra.mxu1 %v1675_v11 }
  0x4e   : > { %1516 = vmatpush3.bf16.msra.mxu0 %v1676_v12  ;;  %1588 = vmatprep.subr.bf16.mxu1 %v1711_v1  ;;  %v1438_v12 = vld [vmem:[%s2052_s2] ss:$0 sm:$0xff] }
  0x4f   : > { %1517 = vmatprep.subr.bf16.mxu0 %v1677_v13  ;;  %1602 = vmatprep.mubr.msk.bf16.mxu1 %vm1712_vm0, %v1711_v1 }
  0x50   : > { %1073 = vmatprep.mubr.bf16.mxu0 %v1412_v25 }
  0x51   : > { %1589 = vmatpush3.bf16.msra.mxu1 %v1678_v14 }
  0x52   : > { %1518 = vmatpush3.bf16.msra.mxu0 %v1679_v15  ;;  %1590 = vmatprep.subr.bf16.mxu1 %v1711_v1 }
  0x53   : > { %1519 = vmatprep.subr.bf16.mxu0 %v1680_v16 }
  0x55   : > { %1591 = vmatpush3.bf16.msra.mxu1 %v1681_v17 }
  0x56   : > { %1520 = vmatpush3.bf16.msra.mxu0 %v1682_v18  ;;  %1592 = vmatprep.subr.bf16.mxu1 %v1711_v1 }
  0x57   : > { %1521 = vmatprep.subr.bf16.mxu0 %v1683_v19 }
  0x59   : > { %1593 = vmatpush3.bf16.msra.mxu1 %v1684_v20 }
  0x5a   : > { %1522 = vmatpush3.bf16.msra.mxu0 %v1685_v21  ;;  %1594 = vmatprep.subr.bf16.mxu1 %v1711_v1 }
  0x5b   : > { %1523 = vmatprep.subr.bf16.mxu0 %v1686_v23 }
  0x5d   : > { %1595 = vmatpush3.bf16.msra.mxu1 %v1687_v28 }
  0x5e   : > { %1524 = vmatpush3.bf16.msra.mxu0 %v1688_v29  ;;  %1596 = vmatprep.subr.bf16.mxu1 %v1711_v1 }
  0x5f   : > { %1525 = vmatprep.subr.bf16.mxu0 %v1689_v31 }
  0x61   : > { %1597 = vmatpush3.bf16.msra.mxu1 %v1690_v30 }
  0x62   : > { %1526 = vmatpush3.bf16.msra.mxu0 %v1691_v32  ;;  %1598 = vmatprep.subr.bf16.mxu1 %v1711_v1 }
  0x63   : > { %1527 = vmatprep.subr.bf16.mxu0 %v1692_v33 }
  0x65   : > { %1599 = vmatpush3.bf16.msra.mxu1 %v1693_v34 }
  0x66   : > { %1528 = vmatpush3.bf16.msra.mxu0 %v1694_v35  ;;  %1600 = vmatprep.subr.bf16.mxu1 %v1711_v1 }
  0x67   : > { %1529 = vmatprep.subr.bf16.mxu0 %v1695_v36 }
  0x69   : > { %1601 = vmatpush3.bf16.msra.mxu1 %v1696_v37 }
  0x6a   : > { %1530 = vmatpush3.bf16.msra.mxu0 %v1697_v38 }
  0x6c   : > { %1603 = vmatmul.mubr.bf16.vlgmr.msra.gmra.mxu1 %v1413_v27 }
  0x6d   : > { %1074 = vmatmul.mubr.bf16.vlgmr.msra.gmra.mxu0 %v1411_v39 }
  0xec   : > { %v586_v40 = vpop.f32.mrf.mxu1 }
  0xed   : > { %v1469_v47 = vpop.f32.mrf.mxu0 }
  0xee   : > { %v1564_v41 = vpop.f32.mrf.mxu1 }
  0xef   : > { %v1470_v48 = vpop.f32.mrf.mxu0 }
  0xf0   : > { %v589_v42 = vpop.f32.mrf.mxu1  ;;  %v1471_v54 = vadd.f32 %v1470_v48, %v1469_v47  ;;  %v1440_v48 = vld [vmem:[%s2054_s4] ss:$0 sm:$0xff] }
  0xf1   : > { %v1472_v49 = vpop.f32.mrf.mxu0 }
  0xf2   : > { %v1565_v43 = vpop.f32.mrf.mxu1  ;;  %v587_v56 = vadd.f32 %v1471_v54, %v586_v40 }
  0xf3   : > { %v1473_v50 = vpop.f32.mrf.mxu0 }
  0xf4   : > { %v1474_v57 = vadd.f32 %v1473_v50, %v1472_v49 }
  0xf6   : > { %v590_v0 = vadd.f32 %v1474_v57, %v589_v42 }
 0x10c   : > { %v828_v44 = vpop.f32.mrf.mxu1 }
 0x10d   : > { %v1500_v51 = vpop.f32.mrf.mxu0 }
 0x10e   : > { %v1584_v45 = vpop.f32.mrf.mxu1 }
 0x10f   : > { %v1501_v52 = vpop.f32.mrf.mxu0 }
 0x110   : > { %v831_v46 = vpop.f32.mrf.mxu1  ;;  %v1502_v24 = vadd.f32 %v1501_v52, %v1500_v51 }
 0x111   : > { %v1503_v53 = vpop.f32.mrf.mxu0 }
 0x112   : > { %v1585_v1 = vpop.f32.mrf.mxu1  ;;  %v788_v60 = vadd.f32 %v1502_v24, %v587_v56 }
 0x113   : > { %v1504_v55 = vpop.f32.mrf.mxu0 }
 0x114   : > { %v1505_v61 = vadd.f32 %v1504_v55, %v1503_v53  ;;  %v829_v5 = vadd.f32 %v828_v44, %v788_v60 }
 0x116   : > { %v791_v6 = vadd.f32 %v1505_v61, %v590_v0 }
 0x118   : > { %v832_v13 = vadd.f32 %v831_v46, %v791_v6  ;;  %v1439_v46 = vld [vmem:[%s2053_s3] ss:$0 sm:$0xff] }
 0x12c   : > { %v1116_v58 = vpop.f32.mrf.mxu1 }
 0x12d   : > { %v1531_v59 = vpop.f32.mrf.mxu0 }
 0x12e   : > { %v1604_v62 = vpop.f32.mrf.mxu1 }
 0x12f   : > { %v1532_v63 = vpop.f32.mrf.mxu0 }
 0x130   : > { %v1533_v2 = vadd.f32 %v1532_v63, %v1531_v59  ;;  %v1119_v3 = vpop.f32.mrf.mxu1 }
 0x131   : > { %v1534_v4 = vpop.f32.mrf.mxu0 }
 0x132   : > { %v1117_v7 = vadd.f32 %v1533_v2, %v1116_v58  ;;  %v1605_v8 = vpop.f32.mrf.mxu1 }
 0x133   : > { %v1535_v9 = vpop.f32.mrf.mxu0 }
 0x134   : > { %v1123_v10 = vadd.f32 %v1117_v7, %v829_v5  ;;  %v1536_v11 = vadd.f32 %v1535_v9, %v1534_v4 }
 0x136   : > { %v1120_v14 = vadd.f32 %v1536_v11, %v1119_v3  ;;  %v1132_v15 = vadd.f32 %v1438_v12, %v1123_v10 }
 0x138   : > { %v1124_v16 = vadd.f32 %v1120_v14, %v832_v13  ;;  %v1143_v19 = vmul.f32 %v1132_v15, %v1132_v15 }
 0x13a   : > { %v1133_v17 = vadd.f32 %v1438_v12, %v1124_v16 }
 0x13c   : > { %v1134_v18 = vadd.f32 %v1133_v17, %v1132_v15  ;;  %v1144_v20 = vmul.f32 %v1133_v17, %v1133_v17 }
 0x13e   : > { %v1135_v21 = vrot.slane %v1134_v18, 4  ;;  %v1145_v22 = vadd.f32 %v1144_v20, %v1143_v19 }
 0x140   : > { %v1136_v23 = vadd.f32 %v1135_v21, %v1134_v18  ;;  %v1146_v25 = vrot.slane %v1145_v22, 4 }
 0x142   : > { %v1137_v26 = vrot.slane %v1136_v23, 2  ;;  %v1147_v27 = vadd.f32 %v1146_v25, %v1145_v22 }
 0x144   : > { %v1138_v28 = vadd.f32 %v1137_v26, %v1136_v23  ;;  %v1148_v29 = vrot.slane %v1147_v27, 2 }
 0x146   : > { %v1139_v31 = vrot.slane %v1138_v28, 1  ;;  %v1149_v30 = vadd.f32 %v1148_v29, %v1147_v27 }
 0x148   : > { %v1140_v32 = vadd.f32 %v1139_v31, %v1138_v28  ;;  %v1150_v33 = vrot.slane %v1149_v30, 1 }
 0x14a   : > { %1141 = vadd.xlane.f32.xlu0 %v1140_v32  ;;  %v1151_v34 = vadd.f32 %v1150_v33, %v1149_v30 }
 0x14e   : > { %1152 = vadd.xlane.f32.xlu0 %v1151_v34 }
 0x1d3   : > { %v1142_v35 = vpop.xlane.xlu0 %1141 }
 0x1d4   : > { %v1154_v36 = vmul.f32 0.001953125, %v1142_v35 }
 0x1d6   : > { %v1156_v38 = vmul.f32 %v1154_v36, %v1154_v36  ;;  %v1161_v43 = vsub.f32 %v1132_v15, %v1154_v36  ;;  %v1162_v44 = vsub.f32 %v1133_v17, %v1154_v36 }
 0x1d7   : > { %v1153_v37 = vpop.xlane.xlu0 %1152 }
 0x1d8   : > { %v1155_v39 = vmul.f32 0.001953125, %v1153_v37 }
 0x1da   : > { %v1157_v40 = vsub.f32 %v1155_v39, %v1156_v38 }
 0x1dc   : > { %v1158_v41 = vmax.f32 %v1157_v40, 0.0 }
 0x1de   : > { %v1159_v42 = vadd.f32 1e-05, %v1158_v41 }
 0x1e0   : > { %1701 = vrsqrt.f32 %v1159_v42 }
 0x1ed   : > { %v1702_v45 = vpop.eup %1701 }
 0x1ee   : > { %v1163_v47 = vmul.f32 %v1702_v45, %v1161_v43  ;;  %v1164_v1 = vmul.f32 %v1702_v45, %v1162_v44 }
 0x1f0   : > { %v1172_v49 = vmul.f32 %v1439_v46, %v1163_v47  ;;  %v1173_v50 = vmul.f32 %v1439_v46, %v1164_v1 }
 0x1f2   : > { %v1181_v51 = vadd.f32 %v1440_v48, %v1172_v49  ;;  %v1182_v52 = vadd.f32 %v1440_v48, %v1173_v50 }
 0x1f4   : > { %v1183_v53 = vmax.f32 %v1181_v51, 0.0  ;;  %v1184_v54 = vmax.f32 %v1182_v52, 0.0 }
 0x1f6   : > { %v1451_v24 = vpack.c.bf16 %v1184_v54, %v1183_v53 }
 0x1f8   : > { %1452 = vst [vmem:[%s224_s17] sm:$0xff] %v1451_v24  }
 0x1f9 PF: > { %s15_s18 = sadd.s32 1, %s1709_s18  }
 0x1fa   : > { %p12_p4 = scmp.ge.s32.totalorder %s15_s18, 4  }
 0x1fc   :  { %14 = sbr.rel (!%p12_p4) target bundleno = 1 (0x1), region = 72 }

// kernel: vertex_net_forward.13
= control target key start
LH: loop header
LB: loop body
LE: loop exit
PB: predicated region body
PF: predicated region fallthrough
CT: control target
= control target key end

     0   :  { %s1580_s18 = smov 0   ;;  %s1798_s0 = inlined_call_operand.vmem [shape: bf16[2,80,256], index: 0, kind: input, shape index: {}]   ;;  %s1799_s1 = inlined_call_operand.vmem [shape: bf16[3,256,128], index: 1, kind: input, shape index: {}]   ;;  %s1800_s2 = inlined_call_operand.vmem [shape: f32[1,128], index: 2, kind: input, shape index: {}]   ;;  %s1801_s3 = inlined_call_operand.vmem [shape: f32[1,128], index: 3, kind: input, shape index: {}]   ;;  %s1802_s4 = inlined_call_operand.vmem [shape: f32[1,128], index: 4, kind: input, shape index: {}]   ;;  %s1803_s5 = inlined_call_operand.vmem [shape: bf16[2,64,128], index: 5, kind: output, shape index: {}]  }
   0x1 LB: > { %s1140_s19 = sadd.s32 4294967295, %s1548_s18   ;;  %p1144_p0 = scmp.ge.s32.totalorder %s1548_s18, 1  ;;  %s1548_s18 = sphi %s1580_s18, %s15_s18  }
   0x2   : > { %p187_p1 = scmp.lt.s32.totalorder %s1548_s18, 3 }
   0x4   : > { %p188_p2 = pnand %p1144_p0, %p187_p1 }
   0x5   : > { %p215_p3 = scmp.lt.s32.totalorder (!%p188_p2), %s1140_s19, 1 }
   0x6   : > { %191 = sbr.rel (%p188_p2) target bundleno = 489 (0x1e9), region = 40 }
   0xb   : > { %v1474_v0 = vld [vmem:[%s1799_s1 + $0xf8] sm:$0xff]   ;;  %v1478_v4 = vld [vmem:[%s1799_s1 + $0xf0] sm:$0xff]   ;;  %v1482_v8 = vld [vmem:[%s1799_s1 + $0xe8] sm:$0xff]   ;;  %s1805_s19 = smov (!%p215_p3, %s1140_s19), 1 }
   0xc   : > { %v1475_v1 = vld [vmem:[%s1799_s1 + $0x78] sm:$0xff]   ;;  %1329 = vmatprep.subr.bf16.mxu0 %v1474_v0  ;;  %v1479_v5 = vld [vmem:[%s1799_s1 + $0x70] sm:$0xff]   ;;  %v1483_v9 = vld [vmem:[%s1799_s1 + $0x68] sm:$0xff]   ;;  %s1465_s26 = smul.u32 80, %s1805_s19  ;;  %s1297_s9 = sshll.u32 %s1805_s19, 5 }
   0xd   : > { %v1476_v2 = vld [vmem:[%s1799_s1 + $0xb8] sm:$0xff]   ;;  %1369 = vmatprep.subr.bf16.mxu1 %v1475_v1  ;;  %v1480_v6 = vld [vmem:[%s1799_s1 + $0xb0] sm:$0xff]   ;;  %v1484_v10 = vld [vmem:[%s1799_s1 + $0xa8] sm:$0xff]   ;;  %s224_s13 = scalar_lea.vmem %s1803_s5, %s1297_s9 }
   0xe   : > { %v1477_v3 = vld [vmem:[%s1799_s1 + $0x38] sm:$0xff]   ;;  %1330 = vmatpush3.bf16.msra.mxu0 %v1476_v2  ;;  %v1481_v7 = vld [vmem:[%s1799_s1 + $0x30] sm:$0xff]   ;;  %v1485_v11 = vld [vmem:[%s1799_s1 + $0x28] sm:$0xff]   ;;  %s1688_s12 = scalar_lea.vmem %s1798_s0, %s1465_s26 }
   0xf   : > { %1370 = vmatpush3.bf16.msra.mxu1 %v1477_v3  ;;  %1331 = vmatprep.subr.bf16.mxu0 %v1478_v4  ;;  %v1486_v12 = vld [vmem:[%s1799_s1 + $0xe0] sm:$0xff]   ;;  %v1490_v16 = vld [vmem:[%s1799_s1 + $0xd8] sm:$0xff]   ;;  %v1494_v20 = vld [vmem:[%s1799_s1 + $0xd0] sm:$0xff]  }
  0x10   : > { %1371 = vmatprep.subr.bf16.mxu1 %v1479_v5  ;;  %v1487_v13 = vld [vmem:[%s1799_s1 + $0x60] sm:$0xff]   ;;  %v1491_v17 = vld [vmem:[%s1799_s1 + $0x58] sm:$0xff]   ;;  %v1495_v21 = vld [vmem:[%s1799_s1 + $0x50] sm:$0xff]  }
  0x11   : > { %v1488_v14 = vld [vmem:[%s1799_s1 + $0xa0] sm:$0xff]   ;;  %v1492_v18 = vld [vmem:[%s1799_s1 + $0x98] sm:$0xff]   ;;  %v1496_v22 = vld [vmem:[%s1799_s1 + $0x90] sm:$0xff]  }
  0x12   : > { %1332 = vmatpush3.bf16.msra.mxu0 %v1480_v6  ;;  %v1489_v15 = vld [vmem:[%s1799_s1 + $0x20] sm:$0xff]   ;;  %v1493_v19 = vld [vmem:[%s1799_s1 + $0x18] sm:$0xff]   ;;  %v1497_v23 = vld [vmem:[%s1799_s1 + $0x10] sm:$0xff]  }
  0x13   : > { %1372 = vmatpush3.bf16.msra.mxu1 %v1481_v7  ;;  %1333 = vmatprep.subr.bf16.mxu0 %v1482_v8  ;;  %v1498_v24 = vld [vmem:[%s1799_s1 + $0xc8] sm:$0xff]   ;;  %v1502_v28 = vld [vmem:[%s1799_s1 + $0xc0] sm:$0xff]   ;;  %v228_v33 = vld [vmem:[%s1688_s12 + $0x10] sm:$0xff] }
  0x14   : > { %1373 = vmatprep.subr.bf16.mxu1 %v1483_v9  ;;  %v1499_v25 = vld [vmem:[%s1799_s1 + $0x48] sm:$0xff]   ;;  %v1503_v29 = vld [vmem:[%s1799_s1 + $0x40] sm:$0xff]   ;;  %v1510_v39 = vld [vmem:[%s1799_s1 + $0x178] sm:$0xff]  }
  0x15   : > { %v1500_v26 = vld [vmem:[%s1799_s1 + $0x88] sm:$0xff]   ;;  %v1504_v30 = vld [vmem:[%s1799_s1 + $0x80] sm:$0xff]   ;;  %v1511_v40 = vld [vmem:[%s1799_s1 + $0x138] sm:$0xff]  }
  0x16   : > { %1334 = vmatpush3.bf16.msra.mxu0 %v1484_v10  ;;  %v1501_v27 = vld [vmem:[%s1799_s1 + $0x8] sm:$0xff]   ;;  %v1505_v31 = vld [vmem:[%s1799_s1] sm:$0xff]   ;;  %v1512_v41 = vld [vmem:[%s1799_s1 + $0x170] sm:$0xff]  }
  0x17   : > { %1374 = vmatpush3.bf16.msra.mxu1 %v1485_v11  ;;  %1335 = vmatprep.subr.bf16.mxu0 %v1486_v12  ;;  %v227_v32 = vld [vmem:[%s1688_s12 + $0x8] sm:$0xff]  ;;  %v226_v34 = vld [vmem:[%s1688_s12] sm:$0xff]  ;;  %v229_v42 = vld [vmem:[%s1688_s12 + $0x18] sm:$0xff] }
  0x18   : > { %1375 = vmatprep.subr.bf16.mxu1 %v1487_v13  ;;  %v1181_v35 = vcombine.high %v227_v32, %v228_v33  ;;  %v1204_v36 = vcombine.low %v226_v34, %v227_v32  ;;  %v1205_v37 = vcombine.high %v226_v34, %v227_v32  ;;  %v1180_v38 = vcombine.low %v227_v32, %v228_v33  ;;  %v230_v43 = vld [vmem:[%s1688_s12 + $0x20] sm:$0xff]  ;;  %v1513_v44 = vld [vmem:[%s1799_s1 + $0x130] sm:$0xff]   ;;  %v1518_v47 = vld [vmem:[%s1799_s1 + $0x168] sm:$0xff]  }
  0x19   : > { %v1183_v45 = vcombine.high %v229_v42, %v230_v43  ;;  %v1207_v46 = vcombine.high %v228_v33, %v229_v42  ;;  %v1182_v48 = vcombine.low %v229_v42, %v230_v43  ;;  %v1716_v49 = vcombine.low %v228_v33, %v229_v42  ;;  %v1519_v50 = vld [vmem:[%s1799_s1 + $0x128] sm:$0xff]   ;;  %v232_v52 = vld [vmem:[%s1688_s12 + $0x30] sm:$0xff]  ;;  %v1520_v54 = vld [vmem:[%s1799_s1 + $0x160] sm:$0xff]  }
  0x1a   : > { %1336 = vmatpush3.bf16.msra.mxu0 %v1488_v14  ;;  %468 = vmatprep.mubr.bf16.mxu0 %v1181_v35  ;;  %v231_v51 = vld [vmem:[%s1688_s12 + $0x28] sm:$0xff]  ;;  %v1521_v56 = vld [vmem:[%s1799_s1 + $0x120] sm:$0xff]   ;;  %v233_v57 = vld [vmem:[%s1688_s12 + $0x38] sm:$0xff] }
  0x1b   : > { %1376 = vmatpush3.bf16.msra.mxu1 %v1489_v15  ;;  %1337 = vmatprep.subr.bf16.mxu0 %v1490_v16  ;;  %v1209_v53 = vcombine.high %v230_v43, %v231_v51  ;;  %v1185_v55 = vcombine.high %v231_v51, %v232_v52  ;;  %v266_v58 = vld [vmem:[%s1688_s12 + $0x40] sm:$0xff]  ;;  %v1526_v59 = vld [vmem:[%s1799_s1 + $0x158] sm:$0xff]   ;;  %v1184_v60 = vcombine.low %v231_v51, %v232_v52  ;;  %v1528_v1 = vld [vmem:[%s1799_s1 + $0x150] sm:$0xff]  }
  0x1c   : > { %1377 = vmatprep.subr.bf16.mxu1 %v1491_v17  ;;  %648 = vmatprep.mubr.bf16.mxu1 %v1205_v37  ;;  %v1208_v61 = vcombine.low %v230_v43, %v231_v51  ;;  %v1187_v62 = vcombine.high %v233_v57, %v266_v58  ;;  %v1211_v63 = vcombine.high %v232_v52, %v233_v57  ;;  %v1527_v0 = vld [vmem:[%s1799_s1 + $0x118] sm:$0xff]   ;;  %v1529_v2 = vld [vmem:[%s1799_s1 + $0x110] sm:$0xff]   ;;  %v1534_v3 = vld [vmem:[%s1799_s1 + $0x148] sm:$0xff]  }
  0x1d   : > { %v1186_v4 = vcombine.low %v233_v57, %v266_v58  ;;  %v1210_v5 = vcombine.low %v232_v52, %v233_v57  ;;  %v1535_v6 = vld [vmem:[%s1799_s1 + $0x108] sm:$0xff]   ;;  %v1536_v7 = vld [vmem:[%s1799_s1 + $0x140] sm:$0xff]  }
  0x1e   : > { %1338 = vmatpush3.bf16.msra.mxu0 %v1492_v18  ;;  %v1537_v8 = vld [vmem:[%s1799_s1 + $0x100] sm:$0xff]   ;;  %v688_v9 = vld [vmem:[%s1688_s12 + $0x48] sm:$0xff] }
  0x1f   : > { %1378 = vmatpush3.bf16.msra.mxu1 %v1493_v19  ;;  %1339 = vmatprep.subr.bf16.mxu0 %v1494_v20  ;;  %v1267_v10 = vcombine.high %v266_v58, %v688_v9  ;;  %v1266_v11 = vcombine.low %v266_v58, %v688_v9 }
  0x20   : > { %1379 = vmatprep.subr.bf16.mxu1 %v1495_v21 }
  0x22   : > { %1340 = vmatpush3.bf16.msra.mxu0 %v1496_v22 }
  0x23   : > { %1380 = vmatpush3.bf16.msra.mxu1 %v1497_v23  ;;  %1341 = vmatprep.subr.bf16.mxu0 %v1498_v24 }
  0x24   : > { %1381 = vmatprep.subr.bf16.mxu1 %v1499_v25 }
  0x26   : > { %1342 = vmatpush3.bf16.msra.mxu0 %v1500_v26 }
  0x27   : > { %1382 = vmatpush3.bf16.msra.mxu1 %v1501_v27  ;;  %1343 = vmatprep.subr.bf16.mxu0 %v1502_v28 }
  0x28   : > { %1383 = vmatprep.subr.bf16.mxu1 %v1503_v29 }
  0x2a   : > { %1344 = vmatpush3.bf16.msra.mxu0 %v1504_v30 }
  0x2b   : > { %1384 = vmatpush3.bf16.msra.mxu1 %v1505_v31  ;;  %1409 = vmatprep.subr.bf16.mxu0 %v1510_v39 }
  0x2c   : > { %1449 = vmatprep.subr.bf16.mxu1 %v1510_v39 }
  0x2d   : > { %469 = vmatmul.mubr.bf16.vlgmr.msra.gmra.mxu0 %v1180_v38 }
  0x2e   : > { %649 = vmatmul.mubr.bf16.vlgmr.msra.gmra.mxu1 %v1204_v36  ;;  %1410 = vmatpush3.bf16.msra.mxu0 %v1511_v40 }
  0x2f   : > { %1457 = vmatpush3.bf16.msra.mxu1 %v1511_v40  ;;  %1411 = vmatprep.subr.bf16.mxu0 %v1512_v41 }
  0x30   : > { %1450 = vmatprep.subr.bf16.mxu1 %v1512_v41  ;;  %476 = vmatprep.mubr.bf16.mxu0 %v1183_v45 }
  0x31   : > { %656 = vmatprep.mubr.bf16.mxu1 %v1207_v46 }
  0x32   : > { %1412 = vmatpush3.bf16.msra.mxu0 %v1513_v44 }
  0x33   : > { %1458 = vmatpush3.bf16.msra.mxu1 %v1513_v44  ;;  %1413 = vmatprep.subr.bf16.mxu0 %v1518_v47 }
  0x34   : > { %1451 = vmatprep.subr.bf16.mxu1 %v1518_v47 }
  0x35   : > { %477 = vmatmul.mubr.bf16.gmra.mxu0 %v1182_v48 }
  0x36   : > { %657 = vmatmul.mubr.bf16.gmra.mxu1 %v1716_v49  ;;  %484 = vmatprep.mubr.bf16.mxu0 %v1185_v55 }
  0x37   : > { %664 = vmatprep.mubr.bf16.mxu1 %v1209_v53  ;;  %1414 = vmatpush3.bf16.msra.mxu0 %v1519_v50 }
  0x38   : > { %1459 = vmatpush3.bf16.msra.mxu1 %v1519_v50  ;;  %1415 = vmatprep.subr.bf16.mxu0 %v1520_v54 }
  0x39   : > { %1452 = vmatprep.subr.bf16.mxu1 %v1520_v54 }
  0x3b   : > { %1416 = vmatpush3.bf16.msra.mxu0 %v1521_v56 }
  0x3c   : > { %1460 = vmatpush3.bf16.msra.mxu1 %v1521_v56  ;;  %1417 = vmatprep.subr.bf16.mxu0 %v1526_v59 }
  0x3d   : > { %1453 = vmatprep.subr.bf16.mxu1 %v1526_v59  ;;  %485 = vmatmul.mubr.bf16.gmra.mxu0 %v1184_v60 }
  0x3e   : > { %665 = vmatmul.mubr.bf16.gmra.mxu1 %v1208_v61  ;;  %492 = vmatprep.mubr.bf16.mxu0 %v1187_v62 }
  0x3f   : > { %672 = vmatprep.mubr.bf16.mxu1 %v1211_v63  ;;  %1418 = vmatpush3.bf16.msra.mxu0 %v1527_v0 }
  0x40   : > { %1461 = vmatpush3.bf16.msra.mxu1 %v1527_v0  ;;  %1419 = vmatprep.subr.bf16.mxu0 %v1528_v1 }
  0x41   : > { %1454 = vmatprep.subr.bf16.mxu1 %v1528_v1 }
  0x43   : > { %1420 = vmatpush3.bf16.msra.mxu0 %v1529_v2 }
  0x44   : > { %1462 = vmatpush3.bf16.msra.mxu1 %v1529_v2  ;;  %1421 = vmatprep.subr.bf16.mxu0 %v1534_v3 }
  0x45   : > { %1455 = vmatprep.subr.bf16.mxu1 %v1534_v3  ;;  %493 = vmatmul.mubr.bf16.gmra.mxu0 %v1186_v4 }
  0x46   : > { %673 = vmatmul.mubr.bf16.gmra.mxu1 %v1210_v5  ;;  %890 = vmatprep.mubr.bf16.mxu0 %v1207_v46 }
  0x47   : > { %906 = vmatprep.mubr.bf16.mxu1 %v1211_v63  ;;  %1422 = vmatpush3.bf16.msra.mxu0 %v1535_v6 }
  0x48   : > { %1463 = vmatpush3.bf16.msra.mxu1 %v1535_v6  ;;  %1423 = vmatprep.subr.bf16.mxu0 %v1536_v7 }
  0x49   : > { %1456 = vmatprep.subr.bf16.mxu1 %v1536_v7 }
  0x4b   : > { %1424 = vmatpush3.bf16.msra.mxu0 %v1537_v8 }
  0x4c   : > { %1464 = vmatpush3.bf16.msra.mxu1 %v1537_v8 }
  0x4e   : > { %891 = vmatmul.mubr.bf16.vlgmr.msra.gmra.mxu0 %v1716_v49 }
  0x4f   : > { %907 = vmatmul.mubr.bf16.vlgmr.msra.gmra.mxu1 %v1210_v5  ;;  %898 = vmatprep.mubr.bf16.mxu0 %v1209_v53  ;;  %v1284_v5 = vld [vmem:[%s1800_s2] ss:$0 sm:$0xff] }
  0x50   : > { %914 = vmatprep.mubr.bf16.mxu1 %v1267_v10 }
  0x56   : > { %899 = vmatmul.mubr.bf16.gmra.mxu0 %v1208_v61 }
  0x57   : > { %915 = vmatmul.mubr.bf16.gmra.mxu1 %v1266_v11 }
  0xed   : > { %v1345_v12 = vpop.f32.mrf.mxu0 }
  0xee   : > { %v1385_v13 = vpop.f32.mrf.mxu1 }
  0xef   : > { %v1346_v14 = vpop.f32.mrf.mxu0 }
  0xf0   : > { %v1386_v15 = vpop.f32.mrf.mxu1  ;;  %v1347_v46 = vadd.f32 %v1346_v14, %v1345_v12 }
  0xf1   : > { %v1348_v16 = vpop.f32.mrf.mxu0  ;;  %v1387_v47 = vadd.f32 %v1386_v15, %v1385_v13 }
  0xf2   : > { %v1388_v17 = vpop.f32.mrf.mxu1 }
  0xf3   : > { %v1349_v18 = vpop.f32.mrf.mxu0  ;;  %v651_v55 = vadd.f32 %v1387_v47, %v1347_v46 }
  0xf4   : > { %v1389_v19 = vpop.f32.mrf.mxu1  ;;  %v1350_v48 = vadd.f32 %v1349_v18, %v1348_v16 }
  0xf5   : > { %v1351_v20 = vpop.f32.mrf.mxu0  ;;  %v1390_v49 = vadd.f32 %v1389_v19, %v1388_v17 }
  0xf6   : > { %v1391_v21 = vpop.f32.mrf.mxu1 }
  0xf7   : > { %v1352_v22 = vpop.f32.mrf.mxu0  ;;  %v654_v56 = vadd.f32 %v1390_v49, %v1350_v48 }
  0xf8   : > { %v1392_v23 = vpop.f32.mrf.mxu1  ;;  %v1353_v57 = vadd.f32 %v1352_v22, %v1351_v20 }
  0xf9   : > { %v1354_v24 = vpop.f32.mrf.mxu0  ;;  %v1393_v60 = vadd.f32 %v1392_v23, %v1391_v21 }
  0xfa   : > { %v1394_v25 = vpop.f32.mrf.mxu1 }
  0xfb   : > { %v1355_v26 = vpop.f32.mrf.mxu0  ;;  %v659_v12 = vadd.f32 %v1393_v60, %v1353_v57 }
  0xfc   : > { %v1395_v27 = vpop.f32.mrf.mxu1  ;;  %v1356_v3 = vadd.f32 %v1355_v26, %v1354_v24 }
  0xfd   : > { %v1357_v28 = vpop.f32.mrf.mxu0  ;;  %v1396_v4 = vadd.f32 %v1395_v27, %v1394_v25 }
  0xfe   : > { %v1397_v29 = vpop.f32.mrf.mxu1 }
  0xff   : > { %v1358_v30 = vpop.f32.mrf.mxu0  ;;  %v662_v22 = vadd.f32 %v1396_v4, %v1356_v3 }
 0x100   : > { %v1398_v31 = vpop.f32.mrf.mxu1  ;;  %v1359_v61 = vadd.f32 %v1358_v30, %v1357_v28 }
 0x101   : > { %v1360_v32 = vpop.f32.mrf.mxu0  ;;  %v1399_v62 = vadd.f32 %v1398_v31, %v1397_v29 }
 0x102   : > { %v1400_v33 = vpop.f32.mrf.mxu1 }
 0x103   : > { %v1361_v34 = vpop.f32.mrf.mxu0  ;;  %v667_v13 = vadd.f32 %v1399_v62, %v1359_v61 }
 0x104   : > { %v1401_v35 = vpop.f32.mrf.mxu1  ;;  %v1362_v7 = vadd.f32 %v1361_v34, %v1360_v32 }
 0x105   : > { %v1363_v36 = vpop.f32.mrf.mxu0  ;;  %v1402_v8 = vadd.f32 %v1401_v35, %v1400_v33 }
 0x106   : > { %v1403_v37 = vpop.f32.mrf.mxu1 }
 0x107   : > { %v1364_v38 = vpop.f32.mrf.mxu0  ;;  %v670_v24 = vadd.f32 %v1402_v8, %v1362_v7 }
 0x108   : > { %v1404_v39 = vpop.f32.mrf.mxu1  ;;  %v1365_v16 = vadd.f32 %v1364_v38, %v1363_v36 }
 0x109   : > { %v1366_v40 = vpop.f32.mrf.mxu0  ;;  %v1405_v17 = vadd.f32 %v1404_v39, %v1403_v37 }
 0x10a   : > { %v1406_v41 = vpop.f32.mrf.mxu1 }
 0x10b   : > { %v1367_v42 = vpop.f32.mrf.mxu0  ;;  %v675_v34 = vadd.f32 %v1405_v17, %v1365_v16 }
 0x10c   : > { %v1407_v43 = vpop.f32.mrf.mxu1  ;;  %v1368_v25 = vadd.f32 %v1367_v42, %v1366_v40 }
 0x10d   : > { %v1408_v26 = vadd.f32 %v1407_v43, %v1406_v41 }
 0x10e   : > { %v1425_v44 = vpop.f32.mrf.mxu0 }
 0x10f   : > { %v1437_v45 = vpop.f32.mrf.mxu1  ;;  %v678_v41 = vadd.f32 %v1408_v26, %v1368_v25 }
 0x110   : > { %v1426_v50 = vpop.f32.mrf.mxu0 }
 0x111   : > { %v1438_v51 = vpop.f32.mrf.mxu1  ;;  %v1427_v52 = vadd.f32 %v1426_v50, %v1425_v44 }
 0x112   : > { %v1428_v53 = vpop.f32.mrf.mxu0  ;;  %v1439_v9 = vadd.f32 %v1438_v51, %v1437_v45 }
 0x113   : > { %v1440_v54 = vpop.f32.mrf.mxu1  ;;  %v923_v0 = vadd.f32 %v1427_v52, %v651_v55 }
 0x114   : > { %v1429_v58 = vpop.f32.mrf.mxu0  ;;  %v927_v27 = vadd.f32 %v1439_v9, %v667_v13 }
 0x115   : > { %v1441_v59 = vpop.f32.mrf.mxu1  ;;  %v1430_v63 = vadd.f32 %v1429_v58, %v1428_v53  ;;  %v1763_v18 = vadd.f32 %v1284_v5, %v923_v0 }
 0x116   : > { %v1431_v1 = vpop.f32.mrf.mxu0  ;;  %v1442_v19 = vadd.f32 %v1441_v59, %v1440_v54  ;;  %v1775_v42 = vadd.f32 %v1284_v5, %v927_v27 }
 0x117   : > { %v1443_v2 = vpop.f32.mrf.mxu1  ;;  %v924_v6 = vadd.f32 %v1430_v63, %v654_v56  ;;  %v961_v35 = vmul.f32 %v1763_v18, %v1763_v18 }
 0x118   : > { %v1432_v10 = vpop.f32.mrf.mxu0  ;;  %v928_v36 = vadd.f32 %v1442_v19, %v670_v24  ;;  %v965_v52 = vmul.f32 %v1775_v42, %v1775_v42 }
 0x119   : > { %v1444_v11 = vpop.f32.mrf.mxu1  ;;  %v1761_v14 = vadd.f32 %v1284_v5, %v924_v6  ;;  %v1433_v15 = vadd.f32 %v1432_v10, %v1431_v1 }
 0x11a   : > { %v1434_v20 = vpop.f32.mrf.mxu0  ;;  %v1445_v32 = vadd.f32 %v1444_v11, %v1443_v2  ;;  %v943_v47 = vadd.f32 %v1284_v5, %v928_v36 }
 0x11b   : > { %v1446_v21 = vpop.f32.mrf.mxu1  ;;  %v925_v23 = vadd.f32 %v1433_v15, %v659_v12  ;;  %v962_v30 = vmul.f32 %v1761_v14, %v1761_v14  ;;  %v946_v37 = vadd.f32 %v1761_v14, %v1763_v18 }
 0x11c   : > { %v1435_v28 = vpop.f32.mrf.mxu0  ;;  %v929_v45 = vadd.f32 %v1445_v32, %v675_v34  ;;  %v966_v56 = vmul.f32 %v943_v47, %v943_v47 }
 0x11d   : > { %v1447_v29 = vpop.f32.mrf.mxu1  ;;  %v1767_v31 = vadd.f32 %v1284_v5, %v925_v23  ;;  %v1436_v33 = vadd.f32 %v1435_v28, %v1434_v20  ;;  %v969_v43 = vadd.f32 %v962_v30, %v961_v35  ;;  %v1285_v35 = vld [vmem:[%s1801_s3] ss:$0 sm:$0xff] }
 0x11e   : > { %v1448_v40 = vadd.f32 %v1447_v29, %v1446_v21  ;;  %v944_v53 = vadd.f32 %v1284_v5, %v929_v45 }
 0x11f   : > { %v963_v38 = vmul.f32 %v1767_v31, %v1767_v31  ;;  %v926_v39 = vadd.f32 %v1436_v33, %v662_v22  ;;  %v947_v44 = vadd.f32 %v946_v37, %v1767_v31 }
 0x120   : > { %v930_v51 = vadd.f32 %v1448_v40, %v678_v41  ;;  %v967_v60 = vmul.f32 %v944_v53, %v944_v53 }
 0x121   : > { %v941_v46 = vadd.f32 %v1284_v5, %v926_v39  ;;  %v970_v48 = vadd.f32 %v969_v43, %v963_v38 }
 0x122   : > { %v945_v58 = vadd.f32 %v1284_v5, %v930_v51 }
 0x123   : > { %v948_v49 = vadd.f32 %v947_v44, %v941_v46  ;;  %v964_v50 = vmul.f32 %v941_v46, %v941_v46 }
 0x124   : > { %v968_v63 = vmul.f32 %v945_v58, %v945_v58 }
 0x125   : > { %v949_v54 = vadd.f32 %v948_v49, %v1775_v42  ;;  %v971_v55 = vadd.f32 %v970_v48, %v964_v50 }
 0x127   : > { %v972_v57 = vadd.f32 %v971_v55, %v965_v52  ;;  %v950_v59 = vadd.f32 %v949_v54, %v943_v47 }
 0x129   : > { %v951_v61 = vadd.f32 %v950_v59, %v944_v53  ;;  %v973_v62 = vadd.f32 %v972_v57, %v966_v56 }
 0x12b   : > { %v952_v0 = vadd.f32 %v951_v61, %v945_v58  ;;  %v974_v1 = vadd.f32 %v973_v62, %v967_v60 }
 0x12d   : > { %v953_v2 = vrot.slane %v952_v0, 4  ;;  %v975_v3 = vadd.f32 %v974_v1, %v968_v63 }
 0x12f   : > { %v954_v4 = vadd.f32 %v953_v2, %v952_v0  ;;  %v976_v6 = vrot.slane %v975_v3, 4 }
 0x131   : > { %v955_v7 = vrot.slane %v954_v4, 2  ;;  %v977_v8 = vadd.f32 %v976_v6, %v975_v3 }
 0x133   : > { %v956_v9 = vadd.f32 %v955_v7, %v954_v4  ;;  %v978_v10 = vrot.slane %v977_v8, 2 }
 0x135   : > { %v957_v11 = vrot.slane %v956_v9, 1  ;;  %v979_v12 = vadd.f32 %v978_v10, %v977_v8 }
 0x137   : > { %v958_v13 = vadd.f32 %v957_v11, %v956_v9  ;;  %v980_v15 = vrot.slane %v979_v12, 1 }
 0x139   : > { %959 = vadd.xlane.f32.xlu0 %v958_v13  ;;  %v981_v5 = vadd.f32 %v980_v15, %v979_v12 }
 0x13d   : > { %982 = vadd.xlane.f32.xlu0 %v981_v5 }
 0x1c2   : > { %v960_v16 = vpop.xlane.xlu0 %959 }
 0x1c3   : > { %v984_v17 = vmul.f32 0.0009765625, %v960_v16 }
 0x1c5   : > { %v986_v20 = vmul.f32 %v984_v17, %v984_v17  ;;  %v991_v25 = vsub.f32 %v1763_v18, %v984_v17  ;;  %v992_v26 = vsub.f32 %v1761_v14, %v984_v17  ;;  %v993_v27 = vsub.f32 %v1767_v31, %v984_v17  ;;  %v1286_v14 = vld [vmem:[%s1802_s4] ss:$0 sm:$0xff] }
 0x1c6   : > { %v983_v19 = vpop.xlane.xlu0 %982  ;;  %v994_v28 = vsub.f32 %v941_v46, %v984_v17  ;;  %v995_v30 = vsub.f32 %v1775_v42, %v984_v17  ;;  %v996_v32 = vsub.f32 %v943_v47, %v984_v17  ;;  %v997_v33 = vsub.f32 %v944_v53, %v984_v17 }
 0x1c7   : > { %v985_v21 = vmul.f32 0.0009765625, %v983_v19  ;;  %v998_v34 = vsub.f32 %v945_v58, %v984_v17 }
 0x1c9   : > { %v987_v22 = vsub.f32 %v985_v21, %v986_v20 }
 0x1cb   : > { %v988_v23 = vmax.f32 %v987_v22, 0.0 }
 0x1cd   : > { %v989_v24 = vadd.f32 1e-05, %v988_v23 }
 0x1cf   : > { %1540 = vrsqrt.f32 %v989_v24 }
 0x1dc   : > { %v1541_v29 = vpop.eup %1540 }
 0x1dd   : > { %v999_v36 = vmul.f32 %v1541_v29, %v991_v25  ;;  %v1000_v37 = vmul.f32 %v1541_v29, %v992_v26  ;;  %v1001_v38 = vmul.f32 %v1541_v29, %v993_v27  ;;  %v1002_v18 = vmul.f32 %v1541_v29, %v994_v28 }
 0x1de   : > { %v1003_v31 = vmul.f32 %v1541_v29, %v995_v30  ;;  %v1004_v39 = vmul.f32 %v1541_v29, %v996_v32  ;;  %v1005_v40 = vmul.f32 %v1541_v29, %v997_v33  ;;  %v1006_v41 = vmul.f32 %v1541_v29, %v998_v34 }
 0x1df   : > { %v1014_v42 = vmul.f32 %v1285_v35, %v999_v36  ;;  %v1015_v43 = vmul.f32 %v1285_v35, %v1000_v37  ;;  %v1016_v44 = vmul.f32 %v1285_v35, %v1001_v38  ;;  %v1017_v45 = vmul.f32 %v1285_v35, %v1002_v18 }
 0x1e0   : > { %v1018_v46 = vmul.f32 %v1285_v35, %v1003_v31  ;;  %v1019_v47 = vmul.f32 %v1285_v35, %v1004_v39  ;;  %v1020_v48 = vmul.f32 %v1285_v35, %v1005_v40  ;;  %v1021_v49 = vmul.f32 %v1285_v35, %v1006_v41 }
 0x1e1   : > { %v1029_v50 = vadd.f32 %v1286_v14, %v1014_v42  ;;  %v1030_v51 = vadd.f32 %v1286_v14, %v1015_v43  ;;  %v1031_v52 = vadd.f32 %v1286_v14, %v1016_v44  ;;  %v1032_v53 = vadd.f32 %v1286_v14, %v1017_v45 }
 0x1e2   : > { %v1033_v54 = vadd.f32 %v1286_v14, %v1018_v46  ;;  %v1034_v55 = vadd.f32 %v1286_v14, %v1019_v47  ;;  %v1035_v56 = vadd.f32 %v1286_v14, %v1020_v48  ;;  %v1036_v57 = vadd.f32 %v1286_v14, %v1021_v49 }
 0x1e3   : > { %v1037_v58 = vmax.f32 %v1029_v50, 0.0  ;;  %v1038_v59 = vmax.f32 %v1030_v51, 0.0  ;;  %v1039_v60 = vmax.f32 %v1031_v52, 0.0  ;;  %v1040_v61 = vmax.f32 %v1032_v53, 0.0 }
 0x1e4   : > { %v1041_v62 = vmax.f32 %v1033_v54, 0.0  ;;  %v1042_v63 = vmax.f32 %v1034_v55, 0.0  ;;  %v1043_v0 = vmax.f32 %v1035_v56, 0.0  ;;  %v1044_v1 = vmax.f32 %v1036_v57, 0.0 }
 0x1e5   : > { %v1309_v2 = vpack.c.bf16 %v1038_v59, %v1037_v58  ;;  %v1314_v3 = vpack.c.bf16 %v1040_v61, %v1039_v60 }
 0x1e6   : > { %v1319_v4 = vpack.c.bf16 %v1042_v63, %v1041_v62  ;;  %v1324_v6 = vpack.c.bf16 %v1044_v1, %v1043_v0 }
 0x1e7   : > { %1310 = vst [vmem:[%s224_s13] sm:$0xff] %v1309_v2   ;;  %1326 = vst [vmem:[%s224_s13 + $0x8] sm:$0xff] %v1314_v3  }
 0x1e8   : > { %1327 = vst [vmem:[%s224_s13 + $0x10] sm:$0xff] %v1319_v4   ;;  %1328 = vst [vmem:[%s224_s13 + $0x18] sm:$0xff] %v1324_v6  }
 0x1e9 PF: > { %s15_s18 = sadd.s32 1, %s1548_s18  }
 0x1ea   : > { %p12_p4 = scmp.ge.s32.totalorder %s15_s18, 4  }
 0x1ec   :  { %14 = sbr.rel (!%p12_p4) target bundleno = 1 (0x1), region = 72 }

// kernel: vertex_net_forward.14
= control target key start
LH: loop header
LB: loop body
LE: loop exit
PB: predicated region body
PF: predicated region fallthrough
CT: control target
= control target key end

     0   :  { %s2344_s18 = smov 0   ;;  %s2914_s0 = inlined_call_operand.vmem [shape: bf16[2,288,128], index: 0, kind: input, shape index: {}]   ;;  %s2915_s1 = inlined_call_operand.vmem [shape: bf16[3,128,128], index: 1, kind: input, shape index: {}]   ;;  %s2916_s2 = inlined_call_operand.vmem [shape: f32[1,128], index: 2, kind: input, shape index: {}]   ;;  %s2917_s3 = inlined_call_operand.vmem [shape: f32[1,128], index: 3, kind: input, shape index: {}]   ;;  %s2918_s4 = inlined_call_operand.vmem [shape: f32[1,128], index: 4, kind: input, shape index: {}]   ;;  %s2919_s5 = inlined_call_operand.vmem [shape: bf16[2,256,128], index: 5, kind: output, shape index: {}]  }
   0x1 LB: > { %s1744_s19 = sadd.s32 4294967295, %s2312_s18   ;;  %p1748_p0 = scmp.ge.s32.totalorder %s2312_s18, 1  ;;  %s2312_s18 = sphi %s2344_s18, %s15_s18  }
   0x2   : > { %p187_p1 = scmp.lt.s32.totalorder %s2312_s18, 3 }
   0x4   : > { %p188_p2 = pnand %p1748_p0, %p187_p1 }
   0x5   : > { %p215_p3 = scmp.lt.s32.totalorder (!%p188_p2), %s1744_s19, 1 }
   0x6   : > { %191 = sbr.rel (%p188_p2) target bundleno = 561 (0x231), region = 40 }
   0xb   : > { %v2247_v0 = vld [vmem:[%s2915_s1 + $0x78] sm:$0xff]   ;;  %v2248_v1 = vld [vmem:[%s2915_s1 + $0x70] sm:$0xff]   ;;  %s2921_s19 = smov (!%p215_p3, %s1744_s19), 1  ;;  %v2249_v2 = vld [vmem:[%s2915_s1 + $0x68] sm:$0xff]  }
   0xc   : > { %2078 = vmatprep.subr.bf16.mxu0 %v2247_v0  ;;  %2222 = vmatprep.subr.bf16.mxu1 %v2247_v0  ;;  %s2238_s26 = smul.u32 144, %s2921_s19  ;;  %v2250_v3 = vld [vmem:[%s2915_s1 + $0x60] sm:$0xff]   ;;  %v2251_v6 = vld [vmem:[%s2915_s1 + $0x58] sm:$0xff]   ;;  %v2252_v7 = vld [vmem:[%s2915_s1 + $0x50] sm:$0xff]   ;;  %s1878_s8 = sshll.u32 %s2921_s19, 7 }
   0xd   : > { %2079 = vmatpush3.bf16.msra.mxu0 %v2247_v0  ;;  %2230 = vmatpush3.bf16.msra.mxu1 %v2247_v0  ;;  %v2253_v8 = vld [vmem:[%s2915_s1 + $0x48] sm:$0xff]   ;;  %v2254_v9 = vld [vmem:[%s2915_s1 + $0x40] sm:$0xff]   ;;  %v2259_v10 = vld [vmem:[%s2915_s1 + $0x38] sm:$0xff]   ;;  %s2893_s11 = scalar_lea.vmem %s2919_s5, %s1878_s8 }
   0xe   : > { %2080 = vmatprep.subr.bf16.mxu0 %v2248_v1  ;;  %2223 = vmatprep.subr.bf16.mxu1 %v2248_v1  ;;  %s2367_s29 = scalar_lea.vmem %s2914_s0, %s2238_s26  ;;  %v2260_v12 = vld [vmem:[%s2915_s1 + $0xb8] sm:$0xff]   ;;  %v2261_v14 = vld [vmem:[%s2915_s1 + $0x30] sm:$0xff]   ;;  %v2267_v18 = vld [vmem:[%s2915_s1 + $0x28] sm:$0xff]  }
   0xf   : > { %v2373_v4 = vld [vmem:[%s2367_s29 + $0x8] sm:$0xff]   ;;  %v2396_v11 = vld [vmem:[%s2367_s29 + $0x10] sm:$0xff]   ;;  %v2411_v16 = vld [vmem:[%s2367_s29 + $0x18] sm:$0xff]  }
  0x10   : > { %v2376_v5 = vld [vmem:[%s2367_s29 + $0x48] sm:$0xff]   ;;  %2094 = vmatprep.mubr.bf16.mxu0 %v2373_v4  ;;  %v2402_v13 = vld [vmem:[%s2367_s29 + $0x50] sm:$0xff]   ;;  %v2414_v17 = vld [vmem:[%s2367_s29 + $0x58] sm:$0xff]  }
  0x11   : > { %2081 = vmatpush3.bf16.msra.mxu0 %v2248_v1  ;;  %2231 = vmatpush3.bf16.msra.mxu1 %v2248_v1  ;;  %v2262_v15 = vld [vmem:[%s2915_s1 + $0xb0] sm:$0xff]   ;;  %v2422_v19 = vld [vmem:[%s2367_s29 + $0x20] sm:$0xff]   ;;  %v2268_v20 = vld [vmem:[%s2915_s1 + $0xa8] sm:$0xff]  }
  0x12   : > { %2082 = vmatprep.subr.bf16.mxu0 %v2249_v2  ;;  %2224 = vmatprep.subr.bf16.mxu1 %v2249_v2  ;;  %v2430_v21 = vld [vmem:[%s2367_s29 + $0x60] sm:$0xff]   ;;  %v2439_v24 = vld [vmem:[%s2367_s29 + $0x28] sm:$0xff]   ;;  %v2275_v26 = vld [vmem:[%s2915_s1 + $0x18] sm:$0xff]  }
  0x13   : > { %2110 = vmatprep.mubr.bf16.mxu1 %v2376_v5  ;;  %v2269_v22 = vld [vmem:[%s2915_s1 + $0x20] sm:$0xff]   ;;  %v2442_v25 = vld [vmem:[%s2367_s29 + $0x68] sm:$0xff]   ;;  %v2273_v27 = vld [vmem:[%s2367_s29 + $0x30] sm:$0xff]  }
  0x14   : > { %v2270_v23 = vld [vmem:[%s2915_s1 + $0xa0] sm:$0xff]   ;;  %v2276_v28 = vld [vmem:[%s2915_s1 + $0x98] sm:$0xff]   ;;  %v2456_v29 = vld [vmem:[%s2367_s29 + $0x70] sm:$0xff]  }
  0x15   : > { %2083 = vmatpush3.bf16.msra.mxu0 %v2249_v2  ;;  %2232 = vmatpush3.bf16.msra.mxu1 %v2249_v2  ;;  %v2277_v30 = vld [vmem:[%s2915_s1 + $0x10] sm:$0xff]   ;;  %v2279_v32 = vld [vmem:[%s2367_s29 + $0x38] sm:$0xff]   ;;  %v2283_v34 = vld [vmem:[%s2915_s1 + $0x8] sm:$0xff]  }
  0x16   : > { %2084 = vmatprep.subr.bf16.mxu0 %v2250_v3  ;;  %2225 = vmatprep.subr.bf16.mxu1 %v2250_v3  ;;  %v2278_v31 = vld [vmem:[%s2915_s1 + $0x90] sm:$0xff]   ;;  %v2466_v33 = vld [vmem:[%s2367_s29 + $0x78] sm:$0xff]   ;;  %v2284_v35 = vld [vmem:[%s2915_s1 + $0x88] sm:$0xff]  }
  0x17   : > { %v2281_v36 = vld [vmem:[%s2367_s29 + $0x40] sm:$0xff]   ;;  %v2288_v41 = vld [vmem:[%s2367_s29 + $0x10] sm:$0xff]   ;;  %v2289_v42 = vld [vmem:[%s2367_s29 + $0x18] sm:$0xff]  }
  0x18   : > { %v2282_v37 = vld [vmem:[%s2367_s29 + $0x80] sm:$0xff]   ;;  %v2291_v44 = vld [vmem:[%s2367_s29 + $0x28] sm:$0xff]   ;;  %v2292_v45 = vld [vmem:[%s2367_s29 + $0x30] sm:$0xff]  }
  0x19   : > { %2085 = vmatpush3.bf16.msra.mxu0 %v2250_v3  ;;  %2233 = vmatpush3.bf16.msra.mxu1 %v2250_v3  ;;  %v2285_v38 = vld [vmem:[%s2915_s1] sm:$0xff]   ;;  %v2293_v46 = vld [vmem:[%s2367_s29 + $0x38] sm:$0xff]   ;;  %v2295_v48 = vld [vmem:[%s2367_s29 + $0x48] sm:$0xff]  }
  0x1a   : > { %2086 = vmatprep.subr.bf16.mxu0 %v2251_v6  ;;  %2226 = vmatprep.subr.bf16.mxu1 %v2251_v6  ;;  %v2286_v39 = vld [vmem:[%s2915_s1 + $0x80] sm:$0xff]   ;;  %v2296_v49 = vld [vmem:[%s2367_s29 + $0x50] sm:$0xff]   ;;  %v2297_v50 = vld [vmem:[%s2367_s29 + $0x58] sm:$0xff]  }
  0x1b   : > { %v2287_v40 = vld [vmem:[%s2367_s29] sm:$0xff]   ;;  %v2299_v52 = vld [vmem:[%s2367_s29 + $0x68] sm:$0xff]   ;;  %v2300_v53 = vld [vmem:[%s2367_s29 + $0x70] sm:$0xff]  }
  0x1c   : > { %v2290_v43 = vld [vmem:[%s2367_s29 + $0x20] sm:$0xff]   ;;  %v2301_v54 = vld [vmem:[%s2367_s29 + $0x78] sm:$0xff]   ;;  %v2303_v56 = vld [vmem:[%s2367_s29 + $0x88] sm:$0xff]  }
  0x1d   : > { %2087 = vmatpush3.bf16.msra.mxu0 %v2251_v6  ;;  %2234 = vmatpush3.bf16.msra.mxu1 %v2251_v6  ;;  %v2294_v47 = vld [vmem:[%s2367_s29 + $0x40] sm:$0xff]  }
  0x1e   : > { %2088 = vmatprep.subr.bf16.mxu0 %v2252_v7  ;;  %2227 = vmatprep.subr.bf16.mxu1 %v2252_v7  ;;  %v2298_v51 = vld [vmem:[%s2367_s29 + $0x60] sm:$0xff]  }
  0x1f   : > { %v2302_v55 = vld [vmem:[%s2367_s29 + $0x80] sm:$0xff]  }
  0x21   : > { %2089 = vmatpush3.bf16.msra.mxu0 %v2252_v7  ;;  %2235 = vmatpush3.bf16.msra.mxu1 %v2252_v7 }
  0x22   : > { %2090 = vmatprep.subr.bf16.mxu0 %v2253_v8  ;;  %2228 = vmatprep.subr.bf16.mxu1 %v2253_v8 }
  0x25   : > { %2091 = vmatpush3.bf16.msra.mxu0 %v2253_v8  ;;  %2236 = vmatpush3.bf16.msra.mxu1 %v2253_v8 }
  0x26   : > { %2092 = vmatprep.subr.bf16.mxu0 %v2254_v9  ;;  %2229 = vmatprep.subr.bf16.mxu1 %v2254_v9 }
  0x29   : > { %2093 = vmatpush3.bf16.msra.mxu0 %v2254_v9  ;;  %2237 = vmatpush3.bf16.msra.mxu1 %v2254_v9 }
  0x2a   : > { %2126 = vmatprep.subr.bf16.mxu1 %v2259_v10  ;;  %2174 = vmatprep.subr.bf16.mxu0 %v2260_v12 }
  0x2c   : > { %2095 = vmatmul.mubr.bf16.vlgmr.msra.gmra.mxu0 %v2396_v11  ;;  %2111 = vmatmul.mubr.bf16.vlgmr.msra.gmra.mxu1 %v2402_v13 }
  0x2d   : > { %2127 = vmatpush3.bf16.msra.mxu1 %v2259_v10  ;;  %2175 = vmatpush3.bf16.msra.mxu0 %v2260_v12 }
  0x2e   : > { %2128 = vmatprep.subr.bf16.mxu1 %v2261_v14  ;;  %2176 = vmatprep.subr.bf16.mxu0 %v2262_v15 }
  0x2f   : > { %2098 = vmatprep.mubr.bf16.mxu0 %v2411_v16  ;;  %2114 = vmatprep.mubr.bf16.mxu1 %v2414_v17 }
  0x31   : > { %2129 = vmatpush3.bf16.msra.mxu1 %v2261_v14  ;;  %2177 = vmatpush3.bf16.msra.mxu0 %v2262_v15 }
  0x32   : > { %2130 = vmatprep.subr.bf16.mxu1 %v2267_v18  ;;  %2178 = vmatprep.subr.bf16.mxu0 %v2268_v20 }
  0x34   : > { %2099 = vmatmul.mubr.bf16.gmra.mxu0 %v2422_v19  ;;  %2115 = vmatmul.mubr.bf16.gmra.mxu1 %v2430_v21 }
  0x35   : > { %2131 = vmatpush3.bf16.msra.mxu1 %v2267_v18  ;;  %2179 = vmatpush3.bf16.msra.mxu0 %v2268_v20 }
  0x36   : > { %2132 = vmatprep.subr.bf16.mxu1 %v2269_v22  ;;  %2180 = vmatprep.subr.bf16.mxu0 %v2270_v23 }
  0x37   : > { %2102 = vmatprep.mubr.bf16.mxu0 %v2439_v24  ;;  %2118 = vmatprep.mubr.bf16.mxu1 %v2442_v25 }
  0x39   : > { %2133 = vmatpush3.bf16.msra.mxu1 %v2269_v22  ;;  %2181 = vmatpush3.bf16.msra.mxu0 %v2270_v23 }
  0x3a   : > { %2134 = vmatprep.subr.bf16.mxu1 %v2275_v26  ;;  %2182 = vmatprep.subr.bf16.mxu0 %v2276_v28 }
  0x3c   : > { %2103 = vmatmul.mubr.bf16.gmra.mxu0 %v2273_v27  ;;  %2119 = vmatmul.mubr.bf16.gmra.mxu1 %v2456_v29 }
  0x3d   : > { %2135 = vmatpush3.bf16.msra.mxu1 %v2275_v26  ;;  %2183 = vmatpush3.bf16.msra.mxu0 %v2276_v28 }
  0x3e   : > { %2136 = vmatprep.subr.bf16.mxu1 %v2277_v30  ;;  %2184 = vmatprep.subr.bf16.mxu0 %v2278_v31 }
  0x3f   : > { %2106 = vmatprep.mubr.bf16.mxu0 %v2279_v32  ;;  %2122 = vmatprep.mubr.bf16.mxu1 %v2466_v33 }
  0x41   : > { %2137 = vmatpush3.bf16.msra.mxu1 %v2277_v30  ;;  %2185 = vmatpush3.bf16.msra.mxu0 %v2278_v31 }
  0x42   : > { %2138 = vmatprep.subr.bf16.mxu1 %v2283_v34  ;;  %2186 = vmatprep.subr.bf16.mxu0 %v2284_v35 }
  0x44   : > { %2107 = vmatmul.mubr.bf16.gmra.mxu0 %v2281_v36  ;;  %2123 = vmatmul.mubr.bf16.gmra.mxu1 %v2282_v37 }
  0x45   : > { %2139 = vmatpush3.bf16.msra.mxu1 %v2283_v34  ;;  %2187 = vmatpush3.bf16.msra.mxu0 %v2284_v35 }
  0x46   : > { %2140 = vmatprep.subr.bf16.mxu1 %v2285_v38  ;;  %2188 = vmatprep.subr.bf16.mxu0 %v2286_v39 }
  0x47   : > { %2142 = vmatprep.mubr.bf16.mxu1 %v2287_v40  ;;  %2190 = vmatprep.mubr.bf16.mxu0 %v2288_v41 }
  0x49   : > { %2141 = vmatpush3.bf16.msra.mxu1 %v2285_v38  ;;  %2189 = vmatpush3.bf16.msra.mxu0 %v2286_v39  ;;  %v2564_v38 = vld [vmem:[%s2916_s2] ss:$0 sm:$0xff] }
  0x4c   : > { %2143 = vmatmul.mubr.bf16.vlgmr.msra.gmra.mxu1 %v2373_v4  ;;  %2191 = vmatmul.mubr.bf16.vlgmr.msra.gmra.mxu0 %v2289_v42 }
  0x4d   : > { %2146 = vmatprep.mubr.bf16.mxu1 %v2396_v11  ;;  %2194 = vmatprep.mubr.bf16.mxu0 %v2290_v43 }
  0x54   : > { %2147 = vmatmul.mubr.bf16.gmra.mxu1 %v2411_v16  ;;  %2195 = vmatmul.mubr.bf16.gmra.mxu0 %v2291_v44 }
  0x55   : > { %2150 = vmatprep.mubr.bf16.mxu1 %v2422_v19  ;;  %2198 = vmatprep.mubr.bf16.mxu0 %v2292_v45 }
  0x5c   : > { %2151 = vmatmul.mubr.bf16.gmra.mxu1 %v2439_v24  ;;  %2199 = vmatmul.mubr.bf16.gmra.mxu0 %v2293_v46 }
  0x5d   : > { %2154 = vmatprep.mubr.bf16.mxu1 %v2273_v27  ;;  %2202 = vmatprep.mubr.bf16.mxu0 %v2294_v47 }
  0x64   : > { %2155 = vmatmul.mubr.bf16.gmra.mxu1 %v2279_v32  ;;  %2203 = vmatmul.mubr.bf16.gmra.mxu0 %v2295_v48 }
  0x65   : > { %2158 = vmatprep.mubr.bf16.mxu1 %v2281_v36  ;;  %2206 = vmatprep.mubr.bf16.mxu0 %v2296_v49 }
  0x6c   : > { %2159 = vmatmul.mubr.bf16.gmra.mxu1 %v2376_v5  ;;  %2207 = vmatmul.mubr.bf16.gmra.mxu0 %v2297_v50 }
  0x6d   : > { %2162 = vmatprep.mubr.bf16.mxu1 %v2402_v13  ;;  %2210 = vmatprep.mubr.bf16.mxu0 %v2298_v51 }
  0x74   : > { %2163 = vmatmul.mubr.bf16.gmra.mxu1 %v2414_v17  ;;  %2211 = vmatmul.mubr.bf16.gmra.mxu0 %v2299_v52 }
  0x75   : > { %2166 = vmatprep.mubr.bf16.mxu1 %v2430_v21  ;;  %2214 = vmatprep.mubr.bf16.mxu0 %v2300_v53 }
  0x7c   : > { %2167 = vmatmul.mubr.bf16.gmra.mxu1 %v2442_v25  ;;  %2215 = vmatmul.mubr.bf16.gmra.mxu0 %v2301_v54 }
  0x7d   : > { %2170 = vmatprep.mubr.bf16.mxu1 %v2456_v29  ;;  %2218 = vmatprep.mubr.bf16.mxu0 %v2302_v55 }
  0x84   : > { %2171 = vmatmul.mubr.bf16.gmra.mxu1 %v2466_v33  ;;  %2219 = vmatmul.mubr.bf16.gmra.mxu0 %v2303_v56 }
  0xec   : > { %v2096_v57 = vpop.f32.mrf.mxu0  ;;  %v2513_v58 = vpop.f32.mrf.mxu1 }
  0xee   : > { %v471_v59 = vpop.f32.mrf.mxu0  ;;  %v2515_v60 = vpop.f32.mrf.mxu1 }
  0xf0   : > { %v2097_v61 = vpop.f32.mrf.mxu0  ;;  %v2517_v62 = vpop.f32.mrf.mxu1 }
  0xf2   : > { %v474_v63 = vpop.f32.mrf.mxu0  ;;  %v2519_v0 = vpop.f32.mrf.mxu1 }
  0xf4   : > { %v2100_v1 = vpop.f32.mrf.mxu0  ;;  %v2521_v2 = vpop.f32.mrf.mxu1 }
  0xf6   : > { %v487_v3 = vpop.f32.mrf.mxu0  ;;  %v2523_v4 = vpop.f32.mrf.mxu1 }
  0xf8   : > { %v2101_v5 = vpop.f32.mrf.mxu0  ;;  %v2525_v6 = vpop.f32.mrf.mxu1 }
  0xfa   : > { %v490_v7 = vpop.f32.mrf.mxu0  ;;  %v2527_v8 = vpop.f32.mrf.mxu1 }
  0xfc   : > { %v2529_v9 = vpop.f32.mrf.mxu0  ;;  %v2531_v10 = vpop.f32.mrf.mxu1 }
  0xfe   : > { %v2533_v11 = vpop.f32.mrf.mxu0  ;;  %v2535_v12 = vpop.f32.mrf.mxu1 }
 0x100   : > { %v2537_v13 = vpop.f32.mrf.mxu0  ;;  %v2539_v14 = vpop.f32.mrf.mxu1 }
 0x102   : > { %v2541_v15 = vpop.f32.mrf.mxu0  ;;  %v2543_v16 = vpop.f32.mrf.mxu1 }
 0x104   : > { %v2545_v17 = vpop.f32.mrf.mxu0  ;;  %v2547_v18 = vpop.f32.mrf.mxu1 }
 0x106   : > { %v2549_v19 = vpop.f32.mrf.mxu0  ;;  %v2551_v20 = vpop.f32.mrf.mxu1 }
 0x108   : > { %v2553_v21 = vpop.f32.mrf.mxu0  ;;  %v2555_v22 = vpop.f32.mrf.mxu1 }
 0x10a   : > { %v2557_v23 = vpop.f32.mrf.mxu0  ;;  %v2559_v24 = vpop.f32.mrf.mxu1 }
 0x10c   : > { %v2144_v25 = vpop.f32.mrf.mxu1  ;;  %v2192_v26 = vpop.f32.mrf.mxu0 }
 0x10d   : > { %v695_v29 = vadd.f32 %v2144_v25, %v2096_v57 }
 0x10e   : > { %v686_v27 = vpop.f32.mrf.mxu1  ;;  %v1040_v28 = vpop.f32.mrf.mxu0 }
 0x10f   : > { %v687_v30 = vadd.f32 %v686_v27, %v471_v59  ;;  %v1169_v37 = vadd.f32 %v2192_v26, %v695_v29 }
 0x110   : > { %v2145_v31 = vpop.f32.mrf.mxu1  ;;  %v2193_v32 = vpop.f32.mrf.mxu0 }
 0x111   : > { %v1167_v33 = vadd.f32 %v1040_v28, %v687_v30  ;;  %v698_v34 = vadd.f32 %v2145_v31, %v2097_v61  ;;  %v2570_v47 = vadd.f32 %v2564_v38, %v1169_v37 }
 0x112   : > { %v689_v35 = vpop.f32.mrf.mxu1  ;;  %v1043_v36 = vpop.f32.mrf.mxu0 }
 0x113   : > { %v690_v39 = vadd.f32 %v689_v35, %v474_v63  ;;  %v2567_v40 = vadd.f32 %v2564_v38, %v1167_v33  ;;  %v1170_v43 = vadd.f32 %v2193_v32, %v698_v34 }
 0x114   : > { %v2148_v41 = vpop.f32.mrf.mxu1  ;;  %v2196_v42 = vpop.f32.mrf.mxu0 }
 0x115   : > { %v1168_v44 = vadd.f32 %v1043_v36, %v690_v39  ;;  %v1277_v50 = vmul.f32 %v2567_v40, %v2567_v40  ;;  %v711_v51 = vadd.f32 %v2148_v41, %v2100_v1  ;;  %v2578_v54 = vadd.f32 %v2564_v38, %v1170_v43 }
 0x116   : > { %v702_v45 = vpop.f32.mrf.mxu1  ;;  %v1056_v46 = vpop.f32.mrf.mxu0 }
 0x117   : > { %v2573_v48 = vadd.f32 %v2564_v38, %v1168_v44  ;;  %v703_v49 = vadd.f32 %v702_v45, %v487_v3  ;;  %v1279_v3 = vmul.f32 %v2570_v47, %v2570_v47  ;;  %v1173_v27 = vadd.f32 %v2196_v42, %v711_v51 }
 0x118   : > { %v2149_v52 = vpop.f32.mrf.mxu1  ;;  %v2197_v53 = vpop.f32.mrf.mxu0  ;;  %v1280_v31 = vmul.f32 %v2578_v54, %v2578_v54 }
 0x119   : > { %v1238_v55 = vadd.f32 %v2573_v48, %v2567_v40  ;;  %v1278_v56 = vmul.f32 %v2573_v48, %v2573_v48  ;;  %v1171_v57 = vadd.f32 %v1056_v46, %v703_v49  ;;  %v714_v59 = vadd.f32 %v2149_v52, %v2101_v5 }
 0x11a   : > { %v705_v61 = vpop.f32.mrf.mxu1  ;;  %v1059_v63 = vpop.f32.mrf.mxu0  ;;  %v2599_v43 = vadd.f32 %v2564_v38, %v1173_v27 }
 0x11b   : > { %v1239_v1 = vadd.f32 %v1238_v55, %v2570_v47  ;;  %v1309_v25 = vadd.f32 %v1278_v56, %v1277_v50  ;;  %v2588_v26 = vadd.f32 %v2564_v38, %v1171_v57  ;;  %v706_v28 = vadd.f32 %v705_v61, %v490_v7 }
 0x11c   : > { %v2152_v29 = vpop.f32.mrf.mxu1  ;;  %v2200_v30 = vpop.f32.mrf.mxu0  ;;  %v1174_v34 = vadd.f32 %v2197_v53, %v714_v59  ;;  %v1283_v59 = vmul.f32 %v2599_v43, %v2599_v43 }
 0x11d   : > { %v1310_v32 = vadd.f32 %v1309_v25, %v1279_v3  ;;  %v1240_v5 = vadd.f32 %v1239_v1, %v2578_v54  ;;  %v1281_v33 = vmul.f32 %v2588_v26, %v2588_v26  ;;  %v1172_v35 = vadd.f32 %v1059_v63, %v706_v28 }
 0x11e   : > { %v718_v36 = vpop.f32.mrf.mxu1  ;;  %v1072_v37 = vpop.f32.mrf.mxu0  ;;  %v727_v7 = vadd.f32 %v2152_v29, %v2529_v9  ;;  %v2605_v51 = vadd.f32 %v2564_v38, %v1174_v34 }
 0x11f   : > { %v1241_v39 = vadd.f32 %v1240_v5, %v2588_v26  ;;  %v1311_v41 = vadd.f32 %v1310_v32, %v1280_v31  ;;  %v719_v42 = vadd.f32 %v718_v36, %v2533_v11  ;;  %v2602_v44 = vadd.f32 %v2564_v38, %v1172_v35 }
 0x120   : > { %v2153_v45 = vpop.f32.mrf.mxu1  ;;  %v2201_v46 = vpop.f32.mrf.mxu0  ;;  %v1177_v56 = vadd.f32 %v2200_v30, %v727_v7 }
 0x121   : > { %v1312_v49 = vadd.f32 %v1311_v41, %v1281_v33  ;;  %v1175_v50 = vadd.f32 %v1072_v37, %v719_v42  ;;  %v1242_v52 = vadd.f32 %v1241_v39, %v2602_v44  ;;  %v1282_v9 = vmul.f32 %v2602_v44, %v2602_v44 }
 0x122   : > { %v730_v11 = vadd.f32 %v2153_v45, %v2537_v13  ;;  %v721_v53 = vpop.f32.mrf.mxu1  ;;  %v1075_v55 = vpop.f32.mrf.mxu0  ;;  %v1284_v13 = vmul.f32 %v2605_v51, %v2605_v51  ;;  %v2622_v32 = vadd.f32 %v2564_v38, %v1177_v56 }
 0x123   : > { %v722_v57 = vadd.f32 %v721_v53, %v2541_v15  ;;  %v1243_v61 = vadd.f32 %v1242_v52, %v2599_v43  ;;  %v1313_v63 = vadd.f32 %v1312_v49, %v1282_v9  ;;  %v2616_v3 = vadd.f32 %v2564_v38, %v1175_v50 }
 0x124   : > { %v2156_v1 = vpop.f32.mrf.mxu1  ;;  %v2204_v25 = vpop.f32.mrf.mxu0  ;;  %v1178_v30 = vadd.f32 %v2201_v46, %v730_v11  ;;  %v1287_v9 = vmul.f32 %v2622_v32, %v2622_v32 }
 0x125   : > { %v1176_v27 = vadd.f32 %v1075_v55, %v722_v57  ;;  %v1314_v28 = vadd.f32 %v1313_v63, %v1283_v59  ;;  %v1244_v29 = vadd.f32 %v1243_v61, %v2605_v51  ;;  %v1285_v35 = vmul.f32 %v2616_v3, %v2616_v3 }
 0x126   : > { %v734_v15 = vpop.f32.mrf.mxu1  ;;  %v1088_v31 = vpop.f32.mrf.mxu0  ;;  %v743_v37 = vadd.f32 %v2156_v1, %v2545_v17  ;;  %v2635_v46 = vadd.f32 %v2564_v38, %v1178_v30 }
 0x127   : > { %v2625_v5 = vadd.f32 %v2564_v38, %v1176_v27  ;;  %v735_v33 = vadd.f32 %v734_v15, %v2549_v19  ;;  %v1245_v34 = vadd.f32 %v1244_v29, %v2616_v3  ;;  %v1315_v36 = vadd.f32 %v1314_v28, %v1284_v13 }
 0x128   : > { %v2157_v39 = vpop.f32.mrf.mxu1  ;;  %v2205_v41 = vpop.f32.mrf.mxu0  ;;  %v1181_v55 = vadd.f32 %v2204_v25, %v743_v37 }
 0x129   : > { %v1286_v7 = vmul.f32 %v2625_v5, %v2625_v5  ;;  %v1179_v42 = vadd.f32 %v1088_v31, %v735_v33  ;;  %v1316_v45 = vadd.f32 %v1315_v36, %v1285_v35  ;;  %v1246_v19 = vadd.f32 %v1245_v34, %v2625_v5 }
 0x12a   : > { %v746_v49 = vadd.f32 %v2157_v39, %v2553_v21  ;;  %v737_v50 = vpop.f32.mrf.mxu1  ;;  %v1091_v52 = vpop.f32.mrf.mxu0  ;;  %v1288_v21 = vmul.f32 %v2635_v46, %v2635_v46  ;;  %v2655_v30 = vadd.f32 %v2564_v38, %v1181_v55 }
 0x12b   : > { %v738_v17 = vadd.f32 %v737_v50, %v2557_v23  ;;  %v1247_v11 = vadd.f32 %v1246_v19, %v2622_v32  ;;  %v1317_v53 = vadd.f32 %v1316_v45, %v1286_v7  ;;  %v2644_v56 = vadd.f32 %v2564_v38, %v1179_v42 }
 0x12c   : > { %v2160_v57 = vpop.f32.mrf.mxu1  ;;  %v2208_v59 = vpop.f32.mrf.mxu0  ;;  %v1182_v27 = vadd.f32 %v2205_v41, %v746_v49  ;;  %v1291_v49 = vmul.f32 %v2655_v30, %v2655_v30 }
 0x12d   : > { %v1180_v61 = vadd.f32 %v1091_v52, %v738_v17  ;;  %v1318_v63 = vadd.f32 %v1317_v53, %v1287_v9  ;;  %v1248_v1 = vadd.f32 %v1247_v11, %v2635_v46  ;;  %v759_v25 = vadd.f32 %v2160_v57, %v2513_v58 }
 0x12e   : > { %v750_v13 = vpop.f32.mrf.mxu1  ;;  %v1104_v28 = vpop.f32.mrf.mxu0  ;;  %v1289_v31 = vmul.f32 %v2644_v56, %v2644_v56  ;;  %v2663_v58 = vadd.f32 %v2564_v38, %v1182_v27 }
 0x12f   : > { %v2650_v23 = vadd.f32 %v2564_v38, %v1180_v61  ;;  %v751_v29 = vadd.f32 %v750_v13, %v2515_v60  ;;  %v1249_v15 = vadd.f32 %v1248_v1, %v2644_v56  ;;  %v1319_v33 = vadd.f32 %v1318_v63, %v1288_v21 }
 0x130   : > { %v2161_v34 = vpop.f32.mrf.mxu1  ;;  %v2209_v35 = vpop.f32.mrf.mxu0  ;;  %v1185_v45 = vadd.f32 %v2208_v59, %v759_v25 }
 0x131   : > { %v1290_v36 = vmul.f32 %v2650_v23, %v2650_v23  ;;  %v1183_v37 = vadd.f32 %v1104_v28, %v751_v29  ;;  %v1320_v39 = vadd.f32 %v1319_v33, %v1289_v31  ;;  %v1250_v60 = vadd.f32 %v1249_v15, %v2650_v23 }
 0x132   : > { %v762_v41 = vadd.f32 %v2161_v34, %v2517_v62  ;;  %v753_v7 = vpop.f32.mrf.mxu1  ;;  %v1107_v42 = vpop.f32.mrf.mxu0  ;;  %v1292_v62 = vmul.f32 %v2663_v58, %v2663_v58  ;;  %v2678_v21 = vadd.f32 %v2564_v38, %v1185_v45 }
 0x133   : > { %v754_v19 = vadd.f32 %v753_v7, %v2519_v0  ;;  %v1251_v50 = vadd.f32 %v1250_v60, %v2655_v30  ;;  %v1321_v52 = vadd.f32 %v1320_v39, %v1290_v36  ;;  %v2672_v9 = vadd.f32 %v2564_v38, %v1183_v37 }
 0x134   : > { %v2164_v17 = vpop.f32.mrf.mxu1  ;;  %v2212_v11 = vpop.f32.mrf.mxu0  ;;  %v1186_v59 = vadd.f32 %v2209_v35, %v762_v41  ;;  %v1295_v60 = vmul.f32 %v2678_v21, %v2678_v21 }
 0x135   : > { %v1184_v53 = vadd.f32 %v1107_v42, %v754_v19  ;;  %v1322_v55 = vadd.f32 %v1321_v52, %v1291_v49  ;;  %v1252_v57 = vadd.f32 %v1251_v50, %v2663_v58  ;;  %v1293_v13 = vmul.f32 %v2672_v9, %v2672_v9 }
 0x136   : > { %v766_v0 = vpop.f32.mrf.mxu1  ;;  %v1120_v61 = vpop.f32.mrf.mxu0  ;;  %v775_v25 = vadd.f32 %v2164_v17, %v2521_v2  ;;  %v2691_v35 = vadd.f32 %v2564_v38, %v1186_v59 }
 0x137   : > { %v2681_v63 = vadd.f32 %v2564_v38, %v1184_v53  ;;  %v767_v1 = vadd.f32 %v766_v0, %v2523_v4  ;;  %v1253_v27 = vadd.f32 %v1252_v57, %v2672_v9  ;;  %v1323_v28 = vadd.f32 %v1322_v55, %v1292_v62 }
 0x138   : > { %v2165_v29 = vpop.f32.mrf.mxu1  ;;  %v2213_v15 = vpop.f32.mrf.mxu0  ;;  %v1189_v42 = vadd.f32 %v2212_v11, %v775_v25 }
 0x139   : > { %v1294_v31 = vmul.f32 %v2681_v63, %v2681_v63  ;;  %v1187_v33 = vadd.f32 %v1120_v61, %v767_v1  ;;  %v1324_v34 = vadd.f32 %v1323_v28, %v1293_v13  ;;  %v1254_v4 = vadd.f32 %v1253_v27, %v2681_v63 }
 0x13a   : > { %v778_v36 = vadd.f32 %v2165_v29, %v2525_v6  ;;  %v769_v37 = vpop.f32.mrf.mxu1  ;;  %v1123_v39 = vpop.f32.mrf.mxu0  ;;  %v1296_v6 = vmul.f32 %v2691_v35, %v2691_v35  ;;  %v2711_v59 = vadd.f32 %v2564_v38, %v1189_v42 }
 0x13b   : > { %v770_v2 = vadd.f32 %v769_v37, %v2527_v8  ;;  %v1255_v41 = vadd.f32 %v1254_v4, %v2678_v21  ;;  %v1325_v7 = vadd.f32 %v1324_v34, %v1294_v31  ;;  %v2700_v45 = vadd.f32 %v2564_v38, %v1187_v33 }
 0x13c   : > { %v2168_v19 = vpop.f32.mrf.mxu1  ;;  %v2216_v49 = vpop.f32.mrf.mxu0  ;;  %v1190_v53 = vadd.f32 %v2213_v15, %v778_v36  ;;  %v1299_v36 = vmul.f32 %v2711_v59, %v2711_v59 }
 0x13d   : > { %v1188_v50 = vadd.f32 %v1123_v39, %v770_v2  ;;  %v1326_v52 = vadd.f32 %v1325_v7, %v1295_v60  ;;  %v1256_v17 = vadd.f32 %v1255_v41, %v2691_v35  ;;  %v791_v11 = vadd.f32 %v2168_v19, %v2531_v10 }
 0x13e   : > { %v782_v62 = vpop.f32.mrf.mxu1  ;;  %v1136_v55 = vpop.f32.mrf.mxu0  ;;  %v1297_v61 = vmul.f32 %v2700_v45, %v2700_v45  ;;  %v2719_v10 = vadd.f32 %v2564_v38, %v1190_v53 }
 0x13f   : > { %v2706_v8 = vadd.f32 %v2564_v38, %v1188_v50  ;;  %v783_v57 = vadd.f32 %v782_v62, %v2535_v12  ;;  %v1257_v0 = vadd.f32 %v1256_v17, %v2700_v45  ;;  %v1327_v1 = vadd.f32 %v1326_v52, %v1296_v6 }
 0x140   : > { %v2169_v27 = vpop.f32.mrf.mxu1  ;;  %v2217_v13 = vpop.f32.mrf.mxu0  ;;  %v1193_v34 = vadd.f32 %v2216_v49, %v791_v11 }
 0x141   : > { %v1298_v28 = vmul.f32 %v2706_v8, %v2706_v8  ;;  %v1191_v25 = vadd.f32 %v1136_v55, %v783_v57  ;;  %v1328_v29 = vadd.f32 %v1327_v1, %v1297_v61  ;;  %v1258_v12 = vadd.f32 %v1257_v0, %v2706_v8 }
 0x142   : > { %v794_v15 = vadd.f32 %v2169_v27, %v2539_v14  ;;  %v785_v31 = vpop.f32.mrf.mxu1  ;;  %v1139_v33 = vpop.f32.mrf.mxu0  ;;  %v1300_v14 = vmul.f32 %v2719_v10, %v2719_v10  ;;  %v2734_v6 = vadd.f32 %v2564_v38, %v1193_v34 }
 0x143   : > { %v786_v4 = vadd.f32 %v785_v31, %v2543_v16  ;;  %v1259_v37 = vadd.f32 %v1258_v12, %v2711_v59  ;;  %v1329_v39 = vadd.f32 %v1328_v29, %v1298_v28  ;;  %v2728_v60 = vadd.f32 %v2564_v38, %v1191_v25 }
 0x144   : > { %v2172_v2 = vpop.f32.mrf.mxu1  ;;  %v2220_v41 = vpop.f32.mrf.mxu0  ;;  %v1194_v49 = vadd.f32 %v2217_v13, %v794_v15  ;;  %v1303_v29 = vmul.f32 %v2734_v6, %v2734_v6 }
 0x145   : > { %v1192_v7 = vadd.f32 %v1139_v33, %v786_v4  ;;  %v1330_v42 = vadd.f32 %v1329_v39, %v1299_v36  ;;  %v1260_v19 = vadd.f32 %v1259_v37, %v2719_v10  ;;  %v1301_v62 = vmul.f32 %v2728_v60, %v2728_v60 }
 0x146   : > { %v798_v16 = vpop.f32.mrf.mxu1  ;;  %v1152_v50 = vpop.f32.mrf.mxu0  ;;  %v807_v11 = vadd.f32 %v2172_v2, %v2547_v18  ;;  %v2747_v13 = vadd.f32 %v2564_v38, %v1194_v49 }
 0x147   : > { %v2737_v52 = vadd.f32 %v2564_v38, %v1192_v7  ;;  %v799_v17 = vadd.f32 %v798_v16, %v2551_v20  ;;  %v1261_v53 = vadd.f32 %v1260_v19, %v2728_v60  ;;  %v1331_v55 = vadd.f32 %v1330_v42, %v1300_v14 }
 0x148   : > { %v2173_v57 = vpop.f32.mrf.mxu1  ;;  %v2221_v0 = vpop.f32.mrf.mxu0  ;;  %v1197_v31 = vadd.f32 %v2220_v41, %v807_v11  ;;  %v1304_v36 = vmul.f32 %v2747_v13, %v2747_v13 }
 0x149   : > { %v1302_v61 = vmul.f32 %v2737_v52, %v2737_v52  ;;  %v1195_v1 = vadd.f32 %v1152_v50, %v799_v17  ;;  %v1332_v27 = vadd.f32 %v1331_v55, %v1301_v62  ;;  %v1262_v20 = vadd.f32 %v1261_v53, %v2737_v52 }
 0x14a   : > { %v810_v28 = vadd.f32 %v2173_v57, %v2555_v22  ;;  %v801_v25 = vpop.f32.mrf.mxu1  ;;  %v1155_v34 = vpop.f32.mrf.mxu0 }
 0x14b   : > { %v802_v18 = vadd.f32 %v801_v25, %v2559_v24  ;;  %v1263_v12 = vadd.f32 %v1262_v20, %v2734_v6  ;;  %v1333_v15 = vadd.f32 %v1332_v27, %v1302_v61  ;;  %v2756_v33 = vadd.f32 %v2564_v38, %v1195_v1 }
 0x14c   : > { %v1198_v39 = vadd.f32 %v2221_v0, %v810_v28  ;;  %v2765_v24 = vadd.f32 %v2564_v38, %v1197_v31 }
 0x14d   : > { %v1196_v4 = vadd.f32 %v1155_v34, %v802_v18  ;;  %v1334_v37 = vadd.f32 %v1333_v15, %v1303_v29  ;;  %v1264_v22 = vadd.f32 %v1263_v12, %v2747_v13  ;;  %v1305_v7 = vmul.f32 %v2756_v33, %v2756_v33 }
 0x14e   : > { %v2773_v49 = vadd.f32 %v2564_v38, %v1198_v39  ;;  %v1307_v50 = vmul.f32 %v2765_v24, %v2765_v24 }
 0x14f   : > { %v2762_v2 = vadd.f32 %v2564_v38, %v1196_v4  ;;  %v1265_v41 = vadd.f32 %v1264_v22, %v2756_v33  ;;  %v1335_v14 = vadd.f32 %v1334_v37, %v1304_v36 }
 0x150   : > { %v1308_v62 = vmul.f32 %v2773_v49, %v2773_v49 }
 0x151   : > { %v1306_v42 = vmul.f32 %v2762_v2, %v2762_v2  ;;  %v1336_v19 = vadd.f32 %v1335_v14, %v1305_v7  ;;  %v1266_v16 = vadd.f32 %v1265_v41, %v2762_v2 }
 0x153   : > { %v1337_v17 = vadd.f32 %v1336_v19, %v1306_v42  ;;  %v1267_v53 = vadd.f32 %v1266_v16, %v2765_v24 }
 0x155   : > { %v1268_v55 = vadd.f32 %v1267_v53, %v2773_v49  ;;  %v1338_v11 = vadd.f32 %v1337_v17, %v1307_v50 }
 0x157   : > { %v1269_v57 = vrot.slane %v1268_v55, 4  ;;  %v1339_v0 = vadd.f32 %v1338_v11, %v1308_v62 }
 0x159   : > { %v1270_v61 = vadd.f32 %v1269_v57, %v1268_v55  ;;  %v1340_v1 = vrot.slane %v1339_v0, 4 }
 0x15b   : > { %v1271_v38 = vrot.slane %v1270_v61, 2  ;;  %v1341_v27 = vadd.f32 %v1340_v1, %v1339_v0 }
 0x15d   : > { %v1272_v20 = vadd.f32 %v1271_v38, %v1270_v61  ;;  %v1342_v28 = vrot.slane %v1341_v27, 2 }
 0x15f   : > { %v1273_v25 = vrot.slane %v1272_v20, 1  ;;  %v1343_v29 = vadd.f32 %v1342_v28, %v1341_v27 }
 0x161   : > { %v1274_v18 = vadd.f32 %v1273_v25, %v1272_v20  ;;  %v1344_v12 = vrot.slane %v1343_v29, 1 }
 0x163   : > { %1275 = vadd.xlane.f32.xlu0 %v1274_v18  ;;  %v1345_v15 = vadd.f32 %v1344_v12, %v1343_v29  ;;  %v1842_v18 = vld [vmem:[%s2917_s3] ss:$0 sm:$0xff] }
 0x167   : > { %1346 = vadd.xlane.f32.xlu0 %v1345_v15 }
 0x1ec   : > { %v1276_v31 = vpop.xlane.xlu0 %1275 }
 0x1ed   : > { %v2782_v34 = vmul.f32 0.00048828125, %v1276_v31 }
 0x1ef   : > { %v1350_v36 = vmul.f32 %v2782_v34, %v2782_v34  ;;  %v1355_v7 = vsub.f32 %v2567_v40, %v2782_v34  ;;  %v1356_v14 = vsub.f32 %v2573_v48, %v2782_v34  ;;  %v1357_v42 = vsub.f32 %v2570_v47, %v2782_v34 }
 0x1f0   : > { %v1347_v4 = vpop.xlane.xlu0 %1346  ;;  %v1358_v19 = vsub.f32 %v2578_v54, %v2782_v34  ;;  %v1359_v16 = vsub.f32 %v2588_v26, %v2782_v34  ;;  %v1360_v50 = vsub.f32 %v2602_v44, %v2782_v34  ;;  %v1361_v17 = vsub.f32 %v2599_v43, %v2782_v34 }
 0x1f1   : > { %v1349_v37 = vmul.f32 0.00048828125, %v1347_v4  ;;  %v1362_v40 = vsub.f32 %v2605_v51, %v2782_v34  ;;  %v1363_v48 = vsub.f32 %v2616_v3, %v2782_v34  ;;  %v1364_v47 = vsub.f32 %v2625_v5, %v2782_v34 }
 0x1f2   : > { %v1365_v54 = vsub.f32 %v2622_v32, %v2782_v34  ;;  %v1366_v26 = vsub.f32 %v2635_v46, %v2782_v34  ;;  %v1367_v44 = vsub.f32 %v2644_v56, %v2782_v34  ;;  %v1368_v43 = vsub.f32 %v2650_v23, %v2782_v34 }
 0x1f3   : > { %v1351_v22 = vsub.f32 %v1349_v37, %v1350_v36  ;;  %v1369_v51 = vsub.f32 %v2655_v30, %v2782_v34  ;;  %v1370_v3 = vsub.f32 %v2663_v58, %v2782_v34  ;;  %v1371_v5 = vsub.f32 %v2672_v9, %v2782_v34 }
 0x1f4   : > { %v1372_v32 = vsub.f32 %v2681_v63, %v2782_v34  ;;  %v1373_v46 = vsub.f32 %v2678_v21, %v2782_v34  ;;  %v1374_v56 = vsub.f32 %v2691_v35, %v2782_v34  ;;  %v1375_v23 = vsub.f32 %v2700_v45, %v2782_v34 }
 0x1f5   : > { %v1352_v39 = vmax.f32 %v1351_v22, 0.0  ;;  %v1376_v30 = vsub.f32 %v2706_v8, %v2782_v34  ;;  %v1377_v58 = vsub.f32 %v2711_v59, %v2782_v34  ;;  %v1378_v9 = vsub.f32 %v2719_v10, %v2782_v34 }
 0x1f6   : > { %v1379_v63 = vsub.f32 %v2728_v60, %v2782_v34  ;;  %v1380_v21 = vsub.f32 %v2737_v52, %v2782_v34  ;;  %v1381_v35 = vsub.f32 %v2734_v6, %v2782_v34  ;;  %v1382_v45 = vsub.f32 %v2747_v13, %v2782_v34 }
 0x1f7   : > { %v1353_v41 = vadd.f32 1e-05, %v1352_v39  ;;  %v1383_v8 = vsub.f32 %v2756_v33, %v2782_v34  ;;  %v1384_v59 = vsub.f32 %v2762_v2, %v2782_v34  ;;  %v1385_v10 = vsub.f32 %v2765_v24, %v2782_v34 }
 0x1f8   : > { %v1386_v60 = vsub.f32 %v2773_v49, %v2782_v34 }
 0x1f9   : > { %2304 = vrsqrt.f32 %v1353_v41 }
 0x206   : > { %v2305_v53 = vpop.eup %2304 }
 0x207   : > { %v1387_v52 = vmul.f32 %v2305_v53, %v1355_v7  ;;  %v1388_v62 = vmul.f32 %v2305_v53, %v1356_v14  ;;  %v1389_v55 = vmul.f32 %v2305_v53, %v1357_v42  ;;  %v1390_v6 = vmul.f32 %v2305_v53, %v1358_v19 }
 0x208   : > { %v1391_v11 = vmul.f32 %v2305_v53, %v1359_v16  ;;  %v1392_v57 = vmul.f32 %v2305_v53, %v1360_v50  ;;  %v1393_v13 = vmul.f32 %v2305_v53, %v1361_v17  ;;  %v1394_v0 = vmul.f32 %v2305_v53, %v1362_v40 }
 0x209   : > { %v1395_v61 = vmul.f32 %v2305_v53, %v1363_v48  ;;  %v1396_v1 = vmul.f32 %v2305_v53, %v1364_v47  ;;  %v1397_v33 = vmul.f32 %v2305_v53, %v1365_v54  ;;  %v1398_v38 = vmul.f32 %v2305_v53, %v1366_v26 }
 0x20a   : > { %v1399_v27 = vmul.f32 %v2305_v53, %v1367_v44  ;;  %v1400_v2 = vmul.f32 %v2305_v53, %v1368_v43  ;;  %v1401_v20 = vmul.f32 %v2305_v53, %v1369_v51  ;;  %v1402_v28 = vmul.f32 %v2305_v53, %v1370_v3 }
 0x20b   : > { %v1403_v24 = vmul.f32 %v2305_v53, %v1371_v5  ;;  %v1404_v25 = vmul.f32 %v2305_v53, %v1372_v32  ;;  %v1405_v29 = vmul.f32 %v2305_v53, %v1373_v46  ;;  %v1406_v49 = vmul.f32 %v2305_v53, %v1374_v56 }
 0x20c   : > { %v1407_v12 = vmul.f32 %v2305_v53, %v1375_v23  ;;  %v1408_v15 = vmul.f32 %v2305_v53, %v1376_v30  ;;  %v1409_v31 = vmul.f32 %v2305_v53, %v1377_v58  ;;  %v1410_v34 = vmul.f32 %v2305_v53, %v1378_v9  ;;  %v1843_v58 = vld [vmem:[%s2918_s4] ss:$0 sm:$0xff] }
 0x20d   : > { %v1411_v4 = vmul.f32 %v2305_v53, %v1379_v63  ;;  %v1412_v36 = vmul.f32 %v2305_v53, %v1380_v21  ;;  %v1413_v37 = vmul.f32 %v2305_v53, %v1381_v35  ;;  %v1414_v22 = vmul.f32 %v2305_v53, %v1382_v45 }
 0x20e   : > { %v1415_v39 = vmul.f32 %v2305_v53, %v1383_v8  ;;  %v1416_v41 = vmul.f32 %v2305_v53, %v1384_v59  ;;  %v1417_v7 = vmul.f32 %v2305_v53, %v1385_v10  ;;  %v1418_v14 = vmul.f32 %v2305_v53, %v1386_v60 }
 0x20f   : > { %v1426_v42 = vmul.f32 %v1842_v18, %v1387_v52  ;;  %v1427_v19 = vmul.f32 %v1842_v18, %v1388_v62  ;;  %v1428_v16 = vmul.f32 %v1842_v18, %v1389_v55  ;;  %v1429_v50 = vmul.f32 %v1842_v18, %v1390_v6 }
 0x210   : > { %v1430_v17 = vmul.f32 %v1842_v18, %v1391_v11  ;;  %v1431_v40 = vmul.f32 %v1842_v18, %v1392_v57  ;;  %v1432_v48 = vmul.f32 %v1842_v18, %v1393_v13  ;;  %v1433_v47 = vmul.f32 %v1842_v18, %v1394_v0 }
 0x211   : > { %v1434_v54 = vmul.f32 %v1842_v18, %v1395_v61  ;;  %v1435_v26 = vmul.f32 %v1842_v18, %v1396_v1  ;;  %v1436_v44 = vmul.f32 %v1842_v18, %v1397_v33  ;;  %v1437_v43 = vmul.f32 %v1842_v18, %v1398_v38 }
 0x212   : > { %v1438_v51 = vmul.f32 %v1842_v18, %v1399_v27  ;;  %v1439_v3 = vmul.f32 %v1842_v18, %v1400_v2  ;;  %v1440_v5 = vmul.f32 %v1842_v18, %v1401_v20  ;;  %v1441_v32 = vmul.f32 %v1842_v18, %v1402_v28 }
 0x213   : > { %v1442_v46 = vmul.f32 %v1842_v18, %v1403_v24  ;;  %v1443_v56 = vmul.f32 %v1842_v18, %v1404_v25  ;;  %v1444_v23 = vmul.f32 %v1842_v18, %v1405_v29  ;;  %v1445_v30 = vmul.f32 %v1842_v18, %v1406_v49 }
 0x214   : > { %v1446_v9 = vmul.f32 %v1842_v18, %v1407_v12  ;;  %v1447_v63 = vmul.f32 %v1842_v18, %v1408_v15  ;;  %v1448_v21 = vmul.f32 %v1842_v18, %v1409_v31  ;;  %v1449_v35 = vmul.f32 %v1842_v18, %v1410_v34 }
 0x215   : > { %v1450_v45 = vmul.f32 %v1842_v18, %v1411_v4  ;;  %v1451_v53 = vmul.f32 %v1842_v18, %v1412_v36  ;;  %v1452_v8 = vmul.f32 %v1842_v18, %v1413_v37  ;;  %v1453_v59 = vmul.f32 %v1842_v18, %v1414_v22 }
 0x216   : > { %v1454_v10 = vmul.f32 %v1842_v18, %v1415_v39  ;;  %v1455_v60 = vmul.f32 %v1842_v18, %v1416_v41  ;;  %v1456_v52 = vmul.f32 %v1842_v18, %v1417_v7  ;;  %v1457_v62 = vmul.f32 %v1842_v18, %v1418_v14 }
 0x217   : > { %v2856_v55 = vadd.f32 %v1843_v58, %v1426_v42  ;;  %v2858_v6 = vadd.f32 %v1843_v58, %v1427_v19  ;;  %v2860_v11 = vadd.f32 %v1843_v58, %v1428_v16  ;;  %v2862_v57 = vadd.f32 %v1843_v58, %v1429_v50 }
 0x218   : > { %v2864_v13 = vadd.f32 %v1843_v58, %v1430_v17  ;;  %v2866_v0 = vadd.f32 %v1843_v58, %v1431_v40  ;;  %v2868_v61 = vadd.f32 %v1843_v58, %v1432_v48  ;;  %v2870_v1 = vadd.f32 %v1843_v58, %v1433_v47 }
 0x219   : > { %v2872_v33 = vadd.f32 %v1843_v58, %v1434_v54  ;;  %v1474_v38 = vadd.f32 %v1843_v58, %v1435_v26  ;;  %v1475_v27 = vadd.f32 %v1843_v58, %v1436_v44  ;;  %v1476_v2 = vadd.f32 %v1843_v58, %v1437_v43 }
 0x21a   : > { %v1477_v20 = vadd.f32 %v1843_v58, %v1438_v51  ;;  %v1478_v28 = vadd.f32 %v1843_v58, %v1439_v3  ;;  %v1479_v24 = vadd.f32 %v1843_v58, %v1440_v5  ;;  %v1480_v25 = vadd.f32 %v1843_v58, %v1441_v32 }
 0x21b   : > { %v2874_v29 = vadd.f32 %v1843_v58, %v1442_v46  ;;  %v1482_v49 = vadd.f32 %v1843_v58, %v1443_v56  ;;  %v1483_v18 = vadd.f32 %v1843_v58, %v1444_v23  ;;  %v1484_v12 = vadd.f32 %v1843_v58, %v1445_v30 }
 0x21c   : > { %v1485_v15 = vadd.f32 %v1843_v58, %v1446_v9  ;;  %v1486_v31 = vadd.f32 %v1843_v58, %v1447_v63  ;;  %v1487_v34 = vadd.f32 %v1843_v58, %v1448_v21  ;;  %v1488_v4 = vadd.f32 %v1843_v58, %v1449_v35 }
 0x21d   : > { %v2876_v36 = vadd.f32 %v1843_v58, %v1450_v45  ;;  %v1490_v37 = vadd.f32 %v1843_v58, %v1451_v53  ;;  %v1491_v22 = vadd.f32 %v1843_v58, %v1452_v8  ;;  %v1492_v39 = vadd.f32 %v1843_v58, %v1453_v59 }
 0x21e   : > { %v1493_v41 = vadd.f32 %v1843_v58, %v1454_v10  ;;  %v1494_v7 = vadd.f32 %v1843_v58, %v1455_v60  ;;  %v1495_v14 = vadd.f32 %v1843_v58, %v1456_v52  ;;  %v1496_v42 = vadd.f32 %v1843_v58, %v1457_v62 }
 0x21f   : > { %v1497_v19 = vmax.f32 %v2856_v55, 0.0  ;;  %v1498_v16 = vmax.f32 %v2858_v6, 0.0  ;;  %v1499_v50 = vmax.f32 %v2860_v11, 0.0  ;;  %v1500_v17 = vmax.f32 %v2862_v57, 0.0 }
 0x220   : > { %v1501_v40 = vmax.f32 %v2864_v13, 0.0  ;;  %v1502_v48 = vmax.f32 %v2866_v0, 0.0  ;;  %v1503_v47 = vmax.f32 %v2868_v61, 0.0  ;;  %v1504_v54 = vmax.f32 %v2870_v1, 0.0 }
 0x221   : > { %v1505_v26 = vmax.f32 %v2872_v33, 0.0  ;;  %v1506_v44 = vmax.f32 %v1474_v38, 0.0  ;;  %v1507_v43 = vmax.f32 %v1475_v27, 0.0  ;;  %v1508_v51 = vmax.f32 %v1476_v2, 0.0 }
 0x222   : > { %v1509_v3 = vmax.f32 %v1477_v20, 0.0  ;;  %v1510_v5 = vmax.f32 %v1478_v28, 0.0  ;;  %v1511_v32 = vmax.f32 %v1479_v24, 0.0  ;;  %v1512_v46 = vmax.f32 %v1480_v25, 0.0 }
 0x223   : > { %v1513_v56 = vmax.f32 %v2874_v29, 0.0  ;;  %v1514_v23 = vmax.f32 %v1482_v49, 0.0  ;;  %v1515_v30 = vmax.f32 %v1483_v18, 0.0  ;;  %v1516_v58 = vmax.f32 %v1484_v12, 0.0 }
 0x224   : > { %v1517_v9 = vmax.f32 %v1485_v15, 0.0  ;;  %v1518_v63 = vmax.f32 %v1486_v31, 0.0  ;;  %v1519_v21 = vmax.f32 %v1487_v34, 0.0  ;;  %v1520_v35 = vmax.f32 %v1488_v4, 0.0 }
 0x225   : > { %v1521_v45 = vmax.f32 %v2876_v36, 0.0  ;;  %v1522_v53 = vmax.f32 %v1490_v37, 0.0  ;;  %v1523_v8 = vmax.f32 %v1491_v22, 0.0  ;;  %v1524_v59 = vmax.f32 %v1492_v39, 0.0 }
 0x226   : > { %v1525_v10 = vmax.f32 %v1493_v41, 0.0  ;;  %v1526_v60 = vmax.f32 %v1494_v7, 0.0  ;;  %v1527_v52 = vmax.f32 %v1495_v14, 0.0  ;;  %v1528_v62 = vmax.f32 %v1496_v42, 0.0 }
 0x227   : > { %v1914_v55 = vpack.c.bf16 %v1498_v16, %v1497_v19  ;;  %v1919_v6 = vpack.c.bf16 %v1500_v17, %v1499_v50  ;;  %v1924_v11 = vpack.c.bf16 %v1502_v48, %v1501_v40  ;;  %v1929_v57 = vpack.c.bf16 %v1504_v54, %v1503_v47 }
 0x228   : > { %v1934_v13 = vpack.c.bf16 %v1506_v44, %v1505_v26  ;;  %v1939_v0 = vpack.c.bf16 %v1508_v51, %v1507_v43  ;;  %v1944_v61 = vpack.c.bf16 %v1510_v5, %v1509_v3  ;;  %v1949_v1 = vpack.c.bf16 %v1512_v46, %v1511_v32 }
 0x229   : > { %1915 = vst [vmem:[%s2893_s11] sm:$0xff] %v1914_v55   ;;  %1991 = vst [vmem:[%s2893_s11 + $0x8] sm:$0xff] %v1919_v6   ;;  %v1954_v33 = vpack.c.bf16 %v1514_v23, %v1513_v56  ;;  %v1959_v38 = vpack.c.bf16 %v1516_v58, %v1515_v30  ;;  %v1964_v27 = vpack.c.bf16 %v1518_v63, %v1517_v9 }
 0x22a   : > { %1992 = vst [vmem:[%s2893_s11 + $0x10] sm:$0xff] %v1924_v11   ;;  %1993 = vst [vmem:[%s2893_s11 + $0x18] sm:$0xff] %v1929_v57   ;;  %v1969_v2 = vpack.c.bf16 %v1520_v35, %v1519_v21  ;;  %v1974_v20 = vpack.c.bf16 %v1522_v53, %v1521_v45  ;;  %v1979_v28 = vpack.c.bf16 %v1524_v59, %v1523_v8 }
 0x22b   : > { %1994 = vst [vmem:[%s2893_s11 + $0x20] sm:$0xff] %v1934_v13   ;;  %1995 = vst [vmem:[%s2893_s11 + $0x28] sm:$0xff] %v1939_v0   ;;  %v1984_v24 = vpack.c.bf16 %v1526_v60, %v1525_v10  ;;  %v1989_v25 = vpack.c.bf16 %v1528_v62, %v1527_v52 }
 0x22c   : > { %1996 = vst [vmem:[%s2893_s11 + $0x30] sm:$0xff] %v1944_v61   ;;  %1997 = vst [vmem:[%s2893_s11 + $0x38] sm:$0xff] %v1949_v1  }
 0x22d   : > { %1998 = vst [vmem:[%s2893_s11 + $0x40] sm:$0xff] %v1954_v33   ;;  %1999 = vst [vmem:[%s2893_s11 + $0x48] sm:$0xff] %v1959_v38  }
 0x22e   : > { %2000 = vst [vmem:[%s2893_s11 + $0x50] sm:$0xff] %v1964_v27   ;;  %2001 = vst [vmem:[%s2893_s11 + $0x58] sm:$0xff] %v1969_v2  }
 0x22f   : > { %2002 = vst [vmem:[%s2893_s11 + $0x60] sm:$0xff] %v1974_v20   ;;  %2003 = vst [vmem:[%s2893_s11 + $0x68] sm:$0xff] %v1979_v28  }
 0x230   : > { %2004 = vst [vmem:[%s2893_s11 + $0x70] sm:$0xff] %v1984_v24   ;;  %2005 = vst [vmem:[%s2893_s11 + $0x78] sm:$0xff] %v1989_v25  }
 0x231 PF: > { %s15_s18 = sadd.s32 1, %s2312_s18  }
 0x232   : > { %p12_p4 = scmp.ge.s32.totalorder %s15_s18, 4  }
 0x234   :  { %14 = sbr.rel (!%p12_p4) target bundleno = 1 (0x1), region = 72 }

// kernel: vertex_net_forward.15
= control target key start
LH: loop header
LB: loop body
LE: loop exit
PB: predicated region body
PF: predicated region fallthrough
CT: control target
= control target key end

     0   :  { %s2049_s18 = smov 0   ;;  %s2352_s0 = inlined_call_operand.vmem [shape: bf16[2,288,128], index: 0, kind: input, shape index: {}]   ;;  %s2353_s1 = inlined_call_operand.vmem [shape: bf16[3,128,128], index: 1, kind: input, shape index: {}]   ;;  %s2354_s2 = inlined_call_operand.vmem [shape: f32[1,128], index: 2, kind: input, shape index: {}]   ;;  %s2355_s3 = inlined_call_operand.vmem [shape: f32[1,128], index: 3, kind: input, shape index: {}]   ;;  %s2356_s4 = inlined_call_operand.vmem [shape: f32[1,128], index: 4, kind: input, shape index: {}]   ;;  %s2357_s5 = inlined_call_operand.vmem [shape: bf16[2,256,128], index: 5, kind: output, shape index: {}]  }
   0x1 LB: > { %s1453_s19 = sadd.s32 4294967295, %s2017_s18   ;;  %p1457_p0 = scmp.ge.s32.totalorder %s2017_s18, 1  ;;  %s2017_s18 = sphi %s2049_s18, %s15_s18  }
   0x2   : > { %p187_p1 = scmp.lt.s32.totalorder %s2017_s18, 3 }
   0x4   : > { %p188_p2 = pnand %p1457_p0, %p187_p1 }
   0x5   : > { %p215_p3 = scmp.lt.s32.totalorder (!%p188_p2), %s1453_s19, 1 }
   0x6   : > { %191 = sbr.rel (%p188_p2) target bundleno = 340 (0x154), region = 40 }
   0xb   : > { %v1954_v0 = vld [vmem:[%s2353_s1 + $0x78] sm:$0xff]   ;;  %v1955_v1 = vld [vmem:[%s2353_s1 + $0x70] sm:$0xff]   ;;  %s2359_s19 = smov (!%p215_p3, %s1453_s19), 1  ;;  %v1956_v2 = vld [vmem:[%s2353_s1 + $0x68] sm:$0xff]  }
   0xc   : > { %1785 = vmatprep.subr.bf16.mxu0 %v1954_v0  ;;  %1929 = vmatprep.subr.bf16.mxu1 %v1954_v0  ;;  %s1945_s24 = smul.u32 144, %s2359_s19  ;;  %v1957_v3 = vld [vmem:[%s2353_s1 + $0x60] sm:$0xff]   ;;  %v1958_v6 = vld [vmem:[%s2353_s1 + $0x58] sm:$0xff]   ;;  %v1959_v7 = vld [vmem:[%s2353_s1 + $0x50] sm:$0xff]   ;;  %s1585_s22 = sshll.u32 %s2359_s19, 7 }
   0xd   : > { %1786 = vmatpush3.bf16.msra.mxu0 %v1954_v0  ;;  %1937 = vmatpush3.bf16.msra.mxu1 %v1954_v0  ;;  %v1960_v8 = vld [vmem:[%s2353_s1 + $0x48] sm:$0xff]   ;;  %v1961_v9 = vld [vmem:[%s2353_s1 + $0x40] sm:$0xff]   ;;  %v1966_v10 = vld [vmem:[%s2353_s1 + $0x38] sm:$0xff]   ;;  %s2277_s25 = scalar_lea.vmem %s2357_s5, %s1585_s22 }
   0xe   : > { %1787 = vmatprep.subr.bf16.mxu0 %v1955_v1  ;;  %1930 = vmatprep.subr.bf16.mxu1 %v1955_v1  ;;  %s2072_s27 = scalar_lea.vmem %s2352_s0, %s1945_s24  ;;  %v1967_v12 = vld [vmem:[%s2353_s1 + $0xb8] sm:$0xff]   ;;  %v1968_v14 = vld [vmem:[%s2353_s1 + $0x30] sm:$0xff]   ;;  %v1974_v18 = vld [vmem:[%s2353_s1 + $0x28] sm:$0xff]  }
   0xf   : > { %v2078_v4 = vld [vmem:[%s2072_s27 + $0x8] sm:$0xff]   ;;  %v2101_v11 = vld [vmem:[%s2072_s27 + $0x10] sm:$0xff]   ;;  %v2116_v16 = vld [vmem:[%s2072_s27 + $0x18] sm:$0xff]  }
  0x10   : > { %v2081_v5 = vld [vmem:[%s2072_s27 + $0x48] sm:$0xff]   ;;  %1801 = vmatprep.mubr.bf16.mxu0 %v2078_v4  ;;  %v2107_v13 = vld [vmem:[%s2072_s27 + $0x50] sm:$0xff]   ;;  %v2119_v17 = vld [vmem:[%s2072_s27 + $0x58] sm:$0xff]  }
  0x11   : > { %1788 = vmatpush3.bf16.msra.mxu0 %v1955_v1  ;;  %1938 = vmatpush3.bf16.msra.mxu1 %v1955_v1  ;;  %v1969_v15 = vld [vmem:[%s2353_s1 + $0xb0] sm:$0xff]   ;;  %v2127_v19 = vld [vmem:[%s2072_s27 + $0x20] sm:$0xff]   ;;  %v1975_v20 = vld [vmem:[%s2353_s1 + $0xa8] sm:$0xff]  }
  0x12   : > { %1789 = vmatprep.subr.bf16.mxu0 %v1956_v2  ;;  %1931 = vmatprep.subr.bf16.mxu1 %v1956_v2  ;;  %v2135_v21 = vld [vmem:[%s2072_s27 + $0x60] sm:$0xff]   ;;  %v2144_v24 = vld [vmem:[%s2072_s27 + $0x28] sm:$0xff]   ;;  %v1982_v26 = vld [vmem:[%s2353_s1 + $0x18] sm:$0xff]  }
  0x13   : > { %1817 = vmatprep.mubr.bf16.mxu1 %v2081_v5  ;;  %v1976_v22 = vld [vmem:[%s2353_s1 + $0x20] sm:$0xff]   ;;  %v2147_v25 = vld [vmem:[%s2072_s27 + $0x68] sm:$0xff]   ;;  %v1980_v27 = vld [vmem:[%s2072_s27 + $0x30] sm:$0xff]  }
  0x14   : > { %v1977_v23 = vld [vmem:[%s2353_s1 + $0xa0] sm:$0xff]   ;;  %v1983_v28 = vld [vmem:[%s2353_s1 + $0x98] sm:$0xff]   ;;  %v2161_v29 = vld [vmem:[%s2072_s27 + $0x70] sm:$0xff]  }
  0x15   : > { %1790 = vmatpush3.bf16.msra.mxu0 %v1956_v2  ;;  %1939 = vmatpush3.bf16.msra.mxu1 %v1956_v2  ;;  %v1984_v30 = vld [vmem:[%s2353_s1 + $0x10] sm:$0xff]   ;;  %v1986_v32 = vld [vmem:[%s2072_s27 + $0x38] sm:$0xff]   ;;  %v1990_v34 = vld [vmem:[%s2353_s1 + $0x8] sm:$0xff]  }
  0x16   : > { %1791 = vmatprep.subr.bf16.mxu0 %v1957_v3  ;;  %1932 = vmatprep.subr.bf16.mxu1 %v1957_v3  ;;  %v1985_v31 = vld [vmem:[%s2353_s1 + $0x90] sm:$0xff]   ;;  %v2171_v33 = vld [vmem:[%s2072_s27 + $0x78] sm:$0xff]   ;;  %v1991_v35 = vld [vmem:[%s2353_s1 + $0x88] sm:$0xff]  }
  0x17   : > { %v1988_v36 = vld [vmem:[%s2072_s27 + $0x40] sm:$0xff]   ;;  %v1995_v41 = vld [vmem:[%s2072_s27 + $0x10] sm:$0xff]   ;;  %v1996_v42 = vld [vmem:[%s2072_s27 + $0x18] sm:$0xff]  }
  0x18   : > { %v1989_v37 = vld [vmem:[%s2072_s27 + $0x80] sm:$0xff]   ;;  %v1998_v44 = vld [vmem:[%s2072_s27 + $0x28] sm:$0xff]   ;;  %v1999_v45 = vld [vmem:[%s2072_s27 + $0x30] sm:$0xff]  }
  0x19   : > { %1792 = vmatpush3.bf16.msra.mxu0 %v1957_v3  ;;  %1940 = vmatpush3.bf16.msra.mxu1 %v1957_v3  ;;  %v1992_v38 = vld [vmem:[%s2353_s1] sm:$0xff]   ;;  %v2000_v46 = vld [vmem:[%s2072_s27 + $0x38] sm:$0xff]   ;;  %v2002_v48 = vld [vmem:[%s2072_s27 + $0x48] sm:$0xff]  }
  0x1a   : > { %1793 = vmatprep.subr.bf16.mxu0 %v1958_v6  ;;  %1933 = vmatprep.subr.bf16.mxu1 %v1958_v6  ;;  %v1993_v39 = vld [vmem:[%s2353_s1 + $0x80] sm:$0xff]   ;;  %v2003_v49 = vld [vmem:[%s2072_s27 + $0x50] sm:$0xff]   ;;  %v2004_v50 = vld [vmem:[%s2072_s27 + $0x58] sm:$0xff]  }
  0x1b   : > { %v1994_v40 = vld [vmem:[%s2072_s27] sm:$0xff]   ;;  %v2006_v52 = vld [vmem:[%s2072_s27 + $0x68] sm:$0xff]   ;;  %v2007_v53 = vld [vmem:[%s2072_s27 + $0x70] sm:$0xff]  }
  0x1c   : > { %v1997_v43 = vld [vmem:[%s2072_s27 + $0x20] sm:$0xff]   ;;  %v2008_v54 = vld [vmem:[%s2072_s27 + $0x78] sm:$0xff]   ;;  %v2010_v56 = vld [vmem:[%s2072_s27 + $0x88] sm:$0xff]  }
  0x1d   : > { %1794 = vmatpush3.bf16.msra.mxu0 %v1958_v6  ;;  %1941 = vmatpush3.bf16.msra.mxu1 %v1958_v6  ;;  %v2001_v47 = vld [vmem:[%s2072_s27 + $0x40] sm:$0xff]  }
  0x1e   : > { %1795 = vmatprep.subr.bf16.mxu0 %v1959_v7  ;;  %1934 = vmatprep.subr.bf16.mxu1 %v1959_v7  ;;  %v2005_v51 = vld [vmem:[%s2072_s27 + $0x60] sm:$0xff]  }
  0x1f   : > { %v2009_v55 = vld [vmem:[%s2072_s27 + $0x80] sm:$0xff]  }
  0x21   : > { %1796 = vmatpush3.bf16.msra.mxu0 %v1959_v7  ;;  %1942 = vmatpush3.bf16.msra.mxu1 %v1959_v7 }
  0x22   : > { %1797 = vmatprep.subr.bf16.mxu0 %v1960_v8  ;;  %1935 = vmatprep.subr.bf16.mxu1 %v1960_v8 }
  0x25   : > { %1798 = vmatpush3.bf16.msra.mxu0 %v1960_v8  ;;  %1943 = vmatpush3.bf16.msra.mxu1 %v1960_v8 }
  0x26   : > { %1799 = vmatprep.subr.bf16.mxu0 %v1961_v9  ;;  %1936 = vmatprep.subr.bf16.mxu1 %v1961_v9 }
  0x29   : > { %1800 = vmatpush3.bf16.msra.mxu0 %v1961_v9  ;;  %1944 = vmatpush3.bf16.msra.mxu1 %v1961_v9 }
  0x2a   : > { %1833 = vmatprep.subr.bf16.mxu1 %v1966_v10  ;;  %1881 = vmatprep.subr.bf16.mxu0 %v1967_v12 }
  0x2c   : > { %1802 = vmatmul.mubr.bf16.vlgmr.msra.gmra.mxu0 %v2101_v11  ;;  %1818 = vmatmul.mubr.bf16.vlgmr.msra.gmra.mxu1 %v2107_v13 }
  0x2d   : > { %1834 = vmatpush3.bf16.msra.mxu1 %v1966_v10  ;;  %1882 = vmatpush3.bf16.msra.mxu0 %v1967_v12 }
  0x2e   : > { %1835 = vmatprep.subr.bf16.mxu1 %v1968_v14  ;;  %1883 = vmatprep.subr.bf16.mxu0 %v1969_v15 }
  0x2f   : > { %1805 = vmatprep.mubr.bf16.mxu0 %v2116_v16  ;;  %1821 = vmatprep.mubr.bf16.mxu1 %v2119_v17 }
  0x31   : > { %1836 = vmatpush3.bf16.msra.mxu1 %v1968_v14  ;;  %1884 = vmatpush3.bf16.msra.mxu0 %v1969_v15 }
  0x32   : > { %1837 = vmatprep.subr.bf16.mxu1 %v1974_v18  ;;  %1885 = vmatprep.subr.bf16.mxu0 %v1975_v20 }
  0x34   : > { %1806 = vmatmul.mubr.bf16.gmra.mxu0 %v2127_v19  ;;  %1822 = vmatmul.mubr.bf16.gmra.mxu1 %v2135_v21 }
  0x35   : > { %1838 = vmatpush3.bf16.msra.mxu1 %v1974_v18  ;;  %1886 = vmatpush3.bf16.msra.mxu0 %v1975_v20 }
  0x36   : > { %1839 = vmatprep.subr.bf16.mxu1 %v1976_v22  ;;  %1887 = vmatprep.subr.bf16.mxu0 %v1977_v23 }
  0x37   : > { %1809 = vmatprep.mubr.bf16.mxu0 %v2144_v24  ;;  %1825 = vmatprep.mubr.bf16.mxu1 %v2147_v25 }
  0x39   : > { %1840 = vmatpush3.bf16.msra.mxu1 %v1976_v22  ;;  %1888 = vmatpush3.bf16.msra.mxu0 %v1977_v23 }
  0x3a   : > { %1841 = vmatprep.subr.bf16.mxu1 %v1982_v26  ;;  %1889 = vmatprep.subr.bf16.mxu0 %v1983_v28 }
  0x3c   : > { %1810 = vmatmul.mubr.bf16.gmra.mxu0 %v1980_v27  ;;  %1826 = vmatmul.mubr.bf16.gmra.mxu1 %v2161_v29 }
  0x3d   : > { %1842 = vmatpush3.bf16.msra.mxu1 %v1982_v26  ;;  %1890 = vmatpush3.bf16.msra.mxu0 %v1983_v28 }
  0x3e   : > { %1843 = vmatprep.subr.bf16.mxu1 %v1984_v30  ;;  %1891 = vmatprep.subr.bf16.mxu0 %v1985_v31 }
  0x3f   : > { %1813 = vmatprep.mubr.bf16.mxu0 %v1986_v32  ;;  %1829 = vmatprep.mubr.bf16.mxu1 %v2171_v33 }
  0x41   : > { %1844 = vmatpush3.bf16.msra.mxu1 %v1984_v30  ;;  %1892 = vmatpush3.bf16.msra.mxu0 %v1985_v31 }
  0x42   : > { %1845 = vmatprep.subr.bf16.mxu1 %v1990_v34  ;;  %1893 = vmatprep.subr.bf16.mxu0 %v1991_v35 }
  0x44   : > { %1814 = vmatmul.mubr.bf16.gmra.mxu0 %v1988_v36  ;;  %1830 = vmatmul.mubr.bf16.gmra.mxu1 %v1989_v37 }
  0x45   : > { %1846 = vmatpush3.bf16.msra.mxu1 %v1990_v34  ;;  %1894 = vmatpush3.bf16.msra.mxu0 %v1991_v35  ;;  %v2269_v35 = vld [vmem:[%s2354_s2] ss:$0 sm:$0xff] }
  0x46   : > { %1847 = vmatprep.subr.bf16.mxu1 %v1992_v38  ;;  %1895 = vmatprep.subr.bf16.mxu0 %v1993_v39 }
  0x47   : > { %1849 = vmatprep.mubr.bf16.mxu1 %v1994_v40  ;;  %1897 = vmatprep.mubr.bf16.mxu0 %v1995_v41 }
  0x49   : > { %1848 = vmatpush3.bf16.msra.mxu1 %v1992_v38  ;;  %1896 = vmatpush3.bf16.msra.mxu0 %v1993_v39 }
  0x4c   : > { %1850 = vmatmul.mubr.bf16.vlgmr.msra.gmra.mxu1 %v2078_v4  ;;  %1898 = vmatmul.mubr.bf16.vlgmr.msra.gmra.mxu0 %v1996_v42 }
  0x4d   : > { %1853 = vmatprep.mubr.bf16.mxu1 %v2101_v11  ;;  %1901 = vmatprep.mubr.bf16.mxu0 %v1997_v43 }
  0x54   : > { %1854 = vmatmul.mubr.bf16.gmra.mxu1 %v2116_v16  ;;  %1902 = vmatmul.mubr.bf16.gmra.mxu0 %v1998_v44 }
  0x55   : > { %1857 = vmatprep.mubr.bf16.mxu1 %v2127_v19  ;;  %1905 = vmatprep.mubr.bf16.mxu0 %v1999_v45 }
  0x5c   : > { %1858 = vmatmul.mubr.bf16.gmra.mxu1 %v2144_v24  ;;  %1906 = vmatmul.mubr.bf16.gmra.mxu0 %v2000_v46 }
  0x5d   : > { %1861 = vmatprep.mubr.bf16.mxu1 %v1980_v27  ;;  %1909 = vmatprep.mubr.bf16.mxu0 %v2001_v47 }
  0x64   : > { %1862 = vmatmul.mubr.bf16.gmra.mxu1 %v1986_v32  ;;  %1910 = vmatmul.mubr.bf16.gmra.mxu0 %v2002_v48 }
  0x65   : > { %1865 = vmatprep.mubr.bf16.mxu1 %v1988_v36  ;;  %1913 = vmatprep.mubr.bf16.mxu0 %v2003_v49 }
  0x6c   : > { %1866 = vmatmul.mubr.bf16.gmra.mxu1 %v2081_v5  ;;  %1914 = vmatmul.mubr.bf16.gmra.mxu0 %v2004_v50 }
  0x6d   : > { %1869 = vmatprep.mubr.bf16.mxu1 %v2107_v13  ;;  %1917 = vmatprep.mubr.bf16.mxu0 %v2005_v51 }
  0x74   : > { %1870 = vmatmul.mubr.bf16.gmra.mxu1 %v2119_v17  ;;  %1918 = vmatmul.mubr.bf16.gmra.mxu0 %v2006_v52 }
  0x75   : > { %1873 = vmatprep.mubr.bf16.mxu1 %v2135_v21  ;;  %1921 = vmatprep.mubr.bf16.mxu0 %v2007_v53 }
  0x7c   : > { %1874 = vmatmul.mubr.bf16.gmra.mxu1 %v2147_v25  ;;  %1922 = vmatmul.mubr.bf16.gmra.mxu0 %v2008_v54 }
  0x7d   : > { %1877 = vmatprep.mubr.bf16.mxu1 %v2161_v29  ;;  %1925 = vmatprep.mubr.bf16.mxu0 %v2009_v55 }
  0x84   : > { %1878 = vmatmul.mubr.bf16.gmra.mxu1 %v2171_v33  ;;  %1926 = vmatmul.mubr.bf16.gmra.mxu0 %v2010_v56 }
  0xec   : > { %v1803_v57 = vpop.f32.mrf.mxu0  ;;  %v2218_v58 = vpop.f32.mrf.mxu1 }
  0xee   : > { %v471_v59 = vpop.f32.mrf.mxu0  ;;  %v2220_v60 = vpop.f32.mrf.mxu1 }
  0xf0   : > { %v1804_v61 = vpop.f32.mrf.mxu0  ;;  %v2222_v62 = vpop.f32.mrf.mxu1 }
  0xf2   : > { %v474_v63 = vpop.f32.mrf.mxu0  ;;  %v2224_v0 = vpop.f32.mrf.mxu1 }
  0xf4   : > { %v1807_v1 = vpop.f32.mrf.mxu0  ;;  %v2226_v2 = vpop.f32.mrf.mxu1 }
  0xf6   : > { %v487_v3 = vpop.f32.mrf.mxu0  ;;  %v2228_v4 = vpop.f32.mrf.mxu1 }
  0xf8   : > { %v1808_v5 = vpop.f32.mrf.mxu0  ;;  %v2230_v6 = vpop.f32.mrf.mxu1 }
  0xfa   : > { %v490_v7 = vpop.f32.mrf.mxu0  ;;  %v2232_v8 = vpop.f32.mrf.mxu1 }
  0xfc   : > { %v2234_v9 = vpop.f32.mrf.mxu0  ;;  %v2236_v10 = vpop.f32.mrf.mxu1 }
  0xfe   : > { %v2238_v11 = vpop.f32.mrf.mxu0  ;;  %v2240_v12 = vpop.f32.mrf.mxu1 }
 0x100   : > { %v2242_v13 = vpop.f32.mrf.mxu0  ;;  %v2244_v14 = vpop.f32.mrf.mxu1 }
 0x102   : > { %v2246_v15 = vpop.f32.mrf.mxu0  ;;  %v2248_v16 = vpop.f32.mrf.mxu1 }
 0x104   : > { %v2250_v17 = vpop.f32.mrf.mxu0  ;;  %v2252_v18 = vpop.f32.mrf.mxu1 }
 0x106   : > { %v2254_v19 = vpop.f32.mrf.mxu0  ;;  %v2256_v20 = vpop.f32.mrf.mxu1 }
 0x108   : > { %v2258_v21 = vpop.f32.mrf.mxu0  ;;  %v2260_v22 = vpop.f32.mrf.mxu1 }
 0x10a   : > { %v2262_v23 = vpop.f32.mrf.mxu0  ;;  %v2264_v24 = vpop.f32.mrf.mxu1 }
 0x10c   : > { %v1851_v25 = vpop.f32.mrf.mxu1  ;;  %v1899_v26 = vpop.f32.mrf.mxu0 }
 0x10d   : > { %v695_v27 = vadd.f32 %v1851_v25, %v1803_v57 }
 0x10e   : > { %v686_v28 = vpop.f32.mrf.mxu1  ;;  %v1040_v29 = vpop.f32.mrf.mxu0 }
 0x10f   : > { %v687_v30 = vadd.f32 %v686_v28, %v471_v59  ;;  %v1169_v33 = vadd.f32 %v1899_v26, %v695_v27 }
 0x110   : > { %v1852_v31 = vpop.f32.mrf.mxu1  ;;  %v1900_v32 = vpop.f32.mrf.mxu0 }
 0x111   : > { %v698_v34 = vadd.f32 %v1852_v31, %v1804_v61  ;;  %v1167_v38 = vadd.f32 %v1040_v29, %v687_v30  ;;  %v1208_v43 = vadd.f32 %v2269_v35, %v1169_v33 }
 0x112   : > { %v689_v36 = vpop.f32.mrf.mxu1  ;;  %v1043_v37 = vpop.f32.mrf.mxu0 }
 0x113   : > { %v1170_v39 = vadd.f32 %v1900_v32, %v698_v34  ;;  %v690_v40 = vadd.f32 %v689_v36, %v474_v63  ;;  %v1206_v49 = vadd.f32 %v2269_v35, %v1167_v38 }
 0x114   : > { %v1855_v41 = vpop.f32.mrf.mxu1  ;;  %v1903_v42 = vpop.f32.mrf.mxu0 }
 0x115   : > { %v1209_v44 = vadd.f32 %v2269_v35, %v1170_v39  ;;  %v1168_v45 = vadd.f32 %v1043_v37, %v690_v40  ;;  %v711_v46 = vadd.f32 %v1855_v41, %v1807_v1 }
 0x116   : > { %v702_v47 = vpop.f32.mrf.mxu1  ;;  %v1056_v48 = vpop.f32.mrf.mxu0 }
 0x117   : > { %v1626_v50 = vpack.c.bf16 %v1209_v44, %v1208_v43  ;;  %v1207_v51 = vadd.f32 %v2269_v35, %v1168_v45  ;;  %v703_v52 = vadd.f32 %v702_v47, %v487_v3  ;;  %v1173_v56 = vadd.f32 %v1903_v42, %v711_v46 }
 0x118   : > { %v1856_v53 = vpop.f32.mrf.mxu1  ;;  %v1904_v54 = vpop.f32.mrf.mxu0 }
 0x119   : > { %1698 = vst [vmem:[%s2277_s25 + $0x8] sm:$0xff] %v1626_v50   ;;  %v1621_v55 = vpack.c.bf16 %v1207_v51, %v1206_v49  ;;  %v714_v57 = vadd.f32 %v1856_v53, %v1808_v5  ;;  %v1171_v63 = vadd.f32 %v1056_v48, %v703_v52  ;;  %v1212_v28 = vadd.f32 %v2269_v35, %v1173_v56 }
 0x11a   : > { %v705_v59 = vpop.f32.mrf.mxu1  ;;  %v1059_v61 = vpop.f32.mrf.mxu0 }
 0x11b   : > { %1622 = vst [vmem:[%s2277_s25] sm:$0xff] %v1621_v55   ;;  %v1174_v1 = vadd.f32 %v1904_v54, %v714_v57  ;;  %v706_v25 = vadd.f32 %v705_v59, %v490_v7  ;;  %v1210_v5 = vadd.f32 %v2269_v35, %v1171_v63 }
 0x11c   : > { %v1859_v26 = vpop.f32.mrf.mxu1  ;;  %v1907_v27 = vpop.f32.mrf.mxu0 }
 0x11d   : > { %v1213_v29 = vadd.f32 %v2269_v35, %v1174_v1  ;;  %v1172_v3 = vadd.f32 %v1059_v61, %v706_v25  ;;  %v727_v30 = vadd.f32 %v1859_v26, %v2234_v9 }
 0x11e   : > { %v718_v31 = vpop.f32.mrf.mxu1  ;;  %v1072_v32 = vpop.f32.mrf.mxu0 }
 0x11f   : > { %v1636_v33 = vpack.c.bf16 %v1213_v29, %v1212_v28  ;;  %v1211_v34 = vadd.f32 %v2269_v35, %v1172_v3  ;;  %v719_v36 = vadd.f32 %v718_v31, %v2238_v11  ;;  %v1177_v39 = vadd.f32 %v1907_v27, %v727_v30 }
 0x120   : > { %v1860_v7 = vpop.f32.mrf.mxu1  ;;  %v1908_v37 = vpop.f32.mrf.mxu0 }
 0x121   : > { %1700 = vst [vmem:[%s2277_s25 + $0x18] sm:$0xff] %v1636_v33   ;;  %v1631_v38 = vpack.c.bf16 %v1211_v34, %v1210_v5  ;;  %v730_v40 = vadd.f32 %v1860_v7, %v2242_v13  ;;  %v1175_v9 = vadd.f32 %v1072_v32, %v719_v36  ;;  %v1216_v47 = vadd.f32 %v2269_v35, %v1177_v39 }
 0x122   : > { %v721_v41 = vpop.f32.mrf.mxu1  ;;  %v1075_v42 = vpop.f32.mrf.mxu0 }
 0x123   : > { %1699 = vst [vmem:[%s2277_s25 + $0x10] sm:$0xff] %v1631_v38   ;;  %v1178_v43 = vadd.f32 %v1908_v37, %v730_v40  ;;  %v722_v44 = vadd.f32 %v721_v41, %v2246_v15  ;;  %v1214_v51 = vadd.f32 %v2269_v35, %v1175_v9 }
 0x124   : > { %v1863_v45 = vpop.f32.mrf.mxu1  ;;  %v1911_v46 = vpop.f32.mrf.mxu0 }
 0x125   : > { %v1217_v11 = vadd.f32 %v2269_v35, %v1178_v43  ;;  %v1176_v48 = vadd.f32 %v1075_v42, %v722_v44  ;;  %v743_v49 = vadd.f32 %v1863_v45, %v2250_v17 }
 0x126   : > { %v734_v50 = vpop.f32.mrf.mxu1  ;;  %v1088_v13 = vpop.f32.mrf.mxu0 }
 0x127   : > { %v1646_v52 = vpack.c.bf16 %v1217_v11, %v1216_v47  ;;  %v1215_v53 = vadd.f32 %v2269_v35, %v1176_v48  ;;  %v735_v54 = vadd.f32 %v734_v50, %v2254_v19  ;;  %v1181_v57 = vadd.f32 %v1911_v46, %v743_v49 }
 0x128   : > { %v1864_v15 = vpop.f32.mrf.mxu1  ;;  %v1912_v55 = vpop.f32.mrf.mxu0 }
 0x129   : > { %1702 = vst [vmem:[%s2277_s25 + $0x28] sm:$0xff] %v1646_v52   ;;  %v1641_v56 = vpack.c.bf16 %v1215_v53, %v1214_v51  ;;  %v746_v59 = vadd.f32 %v1864_v15, %v2258_v21  ;;  %v1179_v17 = vadd.f32 %v1088_v13, %v735_v54  ;;  %v1220_v28 = vadd.f32 %v2269_v35, %v1181_v57 }
 0x12a   : > { %v737_v61 = vpop.f32.mrf.mxu1  ;;  %v1091_v63 = vpop.f32.mrf.mxu0 }
 0x12b   : > { %1701 = vst [vmem:[%s2277_s25 + $0x20] sm:$0xff] %v1641_v56   ;;  %v1182_v1 = vadd.f32 %v1912_v55, %v746_v59  ;;  %v738_v25 = vadd.f32 %v737_v61, %v2262_v23  ;;  %v1218_v31 = vadd.f32 %v2269_v35, %v1179_v17 }
 0x12c   : > { %v1867_v26 = vpop.f32.mrf.mxu1  ;;  %v1915_v27 = vpop.f32.mrf.mxu0 }
 0x12d   : > { %v1221_v19 = vadd.f32 %v2269_v35, %v1182_v1  ;;  %v1180_v29 = vadd.f32 %v1091_v63, %v738_v25  ;;  %v759_v3 = vadd.f32 %v1867_v26, %v2218_v58 }
 0x12e   : > { %v750_v30 = vpop.f32.mrf.mxu1  ;;  %v1104_v21 = vpop.f32.mrf.mxu0 }
 0x12f   : > { %v1656_v32 = vpack.c.bf16 %v1221_v19, %v1220_v28  ;;  %v1219_v5 = vadd.f32 %v2269_v35, %v1180_v29  ;;  %v751_v33 = vadd.f32 %v750_v30, %v2220_v60  ;;  %v1185_v7 = vadd.f32 %v1915_v27, %v759_v3 }
 0x130   : > { %v1868_v23 = vpop.f32.mrf.mxu1  ;;  %v1916_v34 = vpop.f32.mrf.mxu0 }
 0x131   : > { %1704 = vst [vmem:[%s2277_s25 + $0x38] sm:$0xff] %v1656_v32   ;;  %v1651_v36 = vpack.c.bf16 %v1219_v5, %v1218_v31  ;;  %v762_v37 = vadd.f32 %v1868_v23, %v2222_v62  ;;  %v1183_v58 = vadd.f32 %v1104_v21, %v751_v33  ;;  %v1224_v43 = vadd.f32 %v2269_v35, %v1185_v7 }
 0x132   : > { %v753_v38 = vpop.f32.mrf.mxu1  ;;  %v1107_v39 = vpop.f32.mrf.mxu0 }
 0x133   : > { %1703 = vst [vmem:[%s2277_s25 + $0x30] sm:$0xff] %v1651_v36   ;;  %v1186_v40 = vadd.f32 %v1916_v34, %v762_v37  ;;  %v754_v41 = vadd.f32 %v753_v38, %v2224_v0  ;;  %v1222_v47 = vadd.f32 %v2269_v35, %v1183_v58 }
 0x134   : > { %v1871_v42 = vpop.f32.mrf.mxu1  ;;  %v1919_v9 = vpop.f32.mrf.mxu0 }
 0x135   : > { %v1225_v60 = vadd.f32 %v2269_v35, %v1186_v40  ;;  %v1184_v44 = vadd.f32 %v1107_v39, %v754_v41  ;;  %v775_v45 = vadd.f32 %v1871_v42, %v2226_v2 }
 0x136   : > { %v766_v46 = vpop.f32.mrf.mxu1  ;;  %v1120_v62 = vpop.f32.mrf.mxu0 }
 0x137   : > { %v1666_v11 = vpack.c.bf16 %v1225_v60, %v1224_v43  ;;  %v1223_v48 = vadd.f32 %v2269_v35, %v1184_v44  ;;  %v767_v49 = vadd.f32 %v766_v46, %v2228_v4  ;;  %v1189_v51 = vadd.f32 %v1919_v9, %v775_v45 }
 0x138   : > { %v1872_v0 = vpop.f32.mrf.mxu1  ;;  %v1920_v50 = vpop.f32.mrf.mxu0 }
 0x139   : > { %1706 = vst [vmem:[%s2277_s25 + $0x48] sm:$0xff] %v1666_v11   ;;  %v1661_v13 = vpack.c.bf16 %v1223_v48, %v1222_v47  ;;  %v778_v52 = vadd.f32 %v1872_v0, %v2230_v6  ;;  %v1187_v2 = vadd.f32 %v1120_v62, %v767_v49  ;;  %v1228_v59 = vadd.f32 %v2269_v35, %v1189_v51 }
 0x13a   : > { %v769_v53 = vpop.f32.mrf.mxu1  ;;  %v1123_v54 = vpop.f32.mrf.mxu0 }
 0x13b   : > { %1705 = vst [vmem:[%s2277_s25 + $0x40] sm:$0xff] %v1661_v13   ;;  %v1190_v15 = vadd.f32 %v1920_v50, %v778_v52  ;;  %v770_v55 = vadd.f32 %v769_v53, %v2232_v8  ;;  %v1226_v1 = vadd.f32 %v2269_v35, %v1187_v2 }
 0x13c   : > { %v1875_v56 = vpop.f32.mrf.mxu1  ;;  %v1923_v57 = vpop.f32.mrf.mxu0 }
 0x13d   : > { %v1229_v4 = vadd.f32 %v2269_v35, %v1190_v15  ;;  %v1188_v61 = vadd.f32 %v1123_v54, %v770_v55  ;;  %v791_v63 = vadd.f32 %v1875_v56, %v2236_v10 }
 0x13e   : > { %v782_v17 = vpop.f32.mrf.mxu1  ;;  %v1136_v6 = vpop.f32.mrf.mxu0 }
 0x13f   : > { %v1676_v25 = vpack.c.bf16 %v1229_v4, %v1228_v59  ;;  %v1227_v26 = vadd.f32 %v2269_v35, %v1188_v61  ;;  %v783_v27 = vadd.f32 %v782_v17, %v2240_v12  ;;  %v1193_v29 = vadd.f32 %v1923_v57, %v791_v63 }
 0x140   : > { %v1876_v8 = vpop.f32.mrf.mxu1  ;;  %v1924_v28 = vpop.f32.mrf.mxu0 }
 0x141   : > { %1708 = vst [vmem:[%s2277_s25 + $0x58] sm:$0xff] %v1676_v25   ;;  %v1671_v19 = vpack.c.bf16 %v1227_v26, %v1226_v1  ;;  %v794_v3 = vadd.f32 %v1876_v8, %v2244_v14  ;;  %v1191_v10 = vadd.f32 %v1136_v6, %v783_v27  ;;  %v1232_v23 = vadd.f32 %v2269_v35, %v1193_v29 }
 0x142   : > { %v785_v30 = vpop.f32.mrf.mxu1  ;;  %v1139_v21 = vpop.f32.mrf.mxu0 }
 0x143   : > { %1707 = vst [vmem:[%s2277_s25 + $0x50] sm:$0xff] %v1671_v19   ;;  %v1194_v31 = vadd.f32 %v1924_v28, %v794_v3  ;;  %v786_v32 = vadd.f32 %v785_v30, %v2248_v16  ;;  %v1230_v37 = vadd.f32 %v2269_v35, %v1191_v10 }
 0x144   : > { %v1879_v5 = vpop.f32.mrf.mxu1  ;;  %v1927_v33 = vpop.f32.mrf.mxu0 }
 0x145   : > { %v1233_v12 = vadd.f32 %v2269_v35, %v1194_v31  ;;  %v1192_v34 = vadd.f32 %v1139_v21, %v786_v32  ;;  %v807_v36 = vadd.f32 %v1879_v5, %v2252_v18 }
 0x146   : > { %v798_v7 = vpop.f32.mrf.mxu1  ;;  %v1152_v14 = vpop.f32.mrf.mxu0 }
 0x147   : > { %v1686_v38 = vpack.c.bf16 %v1233_v12, %v1232_v23  ;;  %v1231_v39 = vadd.f32 %v2269_v35, %v1192_v34  ;;  %v799_v58 = vadd.f32 %v798_v7, %v2256_v20  ;;  %v1197_v42 = vadd.f32 %v1927_v33, %v807_v36 }
 0x148   : > { %v1880_v16 = vpop.f32.mrf.mxu1  ;;  %v1928_v40 = vpop.f32.mrf.mxu0 }
 0x149   : > { %1710 = vst [vmem:[%s2277_s25 + $0x68] sm:$0xff] %v1686_v38   ;;  %v1681_v41 = vpack.c.bf16 %v1231_v39, %v1230_v37  ;;  %v810_v9 = vadd.f32 %v1880_v16, %v2260_v22  ;;  %v1195_v18 = vadd.f32 %v1152_v14, %v799_v58  ;;  %v1236_v46 = vadd.f32 %v2269_v35, %v1197_v42 }
 0x14a   : > { %v801_v43 = vpop.f32.mrf.mxu1  ;;  %v1155_v45 = vpop.f32.mrf.mxu0 }
 0x14b   : > { %1709 = vst [vmem:[%s2277_s25 + $0x60] sm:$0xff] %v1681_v41   ;;  %v1198_v60 = vadd.f32 %v1928_v40, %v810_v9  ;;  %v802_v44 = vadd.f32 %v801_v43, %v2264_v24  ;;  %v1234_v47 = vadd.f32 %v2269_v35, %v1195_v18 }
 0x14d   : > { %v1237_v20 = vadd.f32 %v2269_v35, %v1198_v60  ;;  %v1196_v62 = vadd.f32 %v1155_v45, %v802_v44 }
 0x14f   : > { %v1696_v11 = vpack.c.bf16 %v1237_v20, %v1236_v46  ;;  %v1235_v48 = vadd.f32 %v2269_v35, %v1196_v62 }
 0x151   : > { %1712 = vst [vmem:[%s2277_s25 + $0x78] sm:$0xff] %v1696_v11   ;;  %v1691_v49 = vpack.c.bf16 %v1235_v48, %v1234_v47 }
 0x153   : > { %1711 = vst [vmem:[%s2277_s25 + $0x70] sm:$0xff] %v1691_v49  }
 0x154 PF: > { %s15_s18 = sadd.s32 1, %s2017_s18  }
 0x155   : > { %p12_p4 = scmp.ge.s32.totalorder %s15_s18, 4  }
 0x157   :  { %14 = sbr.rel (!%p12_p4) target bundleno = 1 (0x1), region = 72 }

</bundles_post_ra>
